<compile_context>
chip_gen: v5e
topology: v5e:2x2
jax: 0.10.0
libtpu: 0.0.40
codegen_flags: <defaults>
</compile_context>

<pallas_src>
import functools
import math

import jax
import jax.numpy as jnp
import numpy as np
from jax.experimental import pallas as pl
from jax.experimental.pallas import tpu as pltpu

BN_EPS = 1e-5

# Pool placement after conv index:
# [start, 1_1, 1_2, 2_1, 2_2, 3_1, 3_2, 4_1, 4_2, out_conv]
POOL_AFTER = (False, False, True, False, True, False, True, False, False, False)


# ------------------------------ fused kernel ------------------------------

def _encoder_kernel(x_ref, *refs, block_b, bands0, hw, conv_plan, d_prime,
                    n_last, n_masks):
    """Entire encoder for one batch block (grid axis 0 = batch block)."""
    n_conv = len(conv_plan)
    w_refs = refs[:2 * n_conv]
    wfin_ref = refs[2 * n_conv]
    bfin_ref = refs[2 * n_conv + 1]
    mask_refs = refs[2 * n_conv + 2:2 * n_conv + 2 + n_masks]
    out_ref = refs[2 * n_conv + 2 + n_masks]
    sa = refs[2 * n_conv + 3 + n_masks]
    sb = refs[2 * n_conv + 4 + n_masks]
    act_dt = sa.dtype

    bands = bands0
    span = bands + 2                  # rows per batch element (incl. 2 pads)
    rows = block_b * span             # active rows this stage

    # Stage 0: pack the batch block into the zero-padded band-row layout.
    # The producer always fully defines [0:rows, 0:width] (pad rows = 0).
    sa[0:rows, 0:hw] = jnp.zeros((rows, hw), act_dt)
    for b in range(block_b):
        sa[b * span + 1:b * span + 1 + bands, 0:hw] = x_ref[b]

    src, dst = sa, sb
    stage = 0
    for li, (k, n, pool_after) in enumerate(conv_plan):
        w_ref = w_refs[2 * li]
        b_ref = w_refs[2 * li + 1]
        m = mask_refs[stage][...]                         # (rows-2, 1) f32

        # 3-tap band conv (BatchNorm folded into taps/bias), acc-chained dots.
        y = jnp.dot(src[0:rows - 2, 0:k], w_ref[0],
                    preferred_element_type=jnp.float32)
        y = y + jnp.dot(src[1:rows - 1, 0:k], w_ref[1],
                        preferred_element_type=jnp.float32)
        y = y + jnp.dot(src[2:rows, 0:k], w_ref[2],
                        preferred_element_type=jnp.float32)
        y = jnp.maximum(y + b_ref[...], 0.0) * m          # ReLU + pad-row mask
        dst[1:rows - 1, 0:n] = y.astype(act_dt)
        zr = jnp.zeros((1, n), act_dt)
        dst[0:1, 0:n] = zr                                # outer pad rows
        dst[rows - 1:rows, 0:n] = zr
        src, dst = dst, src

        if pool_after:                                    # MaxPool1d(2, 2)
            nb = bands // 2
            span_new = nb + 2
            rows_new = block_b * span_new
            dst[0:rows_new, 0:n] = jnp.zeros((rows_new, n), act_dt)
            for b in range(block_b):
                blk = src[b * span + 1:b * span + 1 + bands, 0:n]
                r3 = blk.reshape(nb, 2, n)
                dst[b * span_new + 1:b * span_new + 1 + nb, 0:n] = (
                    jnp.maximum(r3[:, 0, :], r3[:, 1, :]))
            src, dst = dst, src
            bands, span, rows = nb, span_new, rows_new
            stage += 1

    # AvgPool3d(2,2,2) + flatten + Linear.  The 2x2 spatial pool and the 1/8
    # factor are folded into wfin at pack time; depth pairs are pre-added here
    # and staged dp-major so each dp's matmul has M = block_b rows.
    for b in range(block_b):
        blk = src[b * span + 1:b * span + 1 + 2 * d_prime,
                  0:n_last].astype(jnp.float32)
        r3 = blk.reshape(d_prime, 2, n_last)
        pooled = (r3[:, 0, :] + r3[:, 1, :]).astype(act_dt)
        for dp in range(d_prime):
            row = dp * block_b + b
            dst[row:row + 1, 0:n_last] = pooled[dp:dp + 1, :]

    y = jnp.dot(dst[0:block_b, 0:n_last], wfin_ref[0],
                preferred_element_type=jnp.float32)
    for dp in range(1, d_prime):
        y = y + jnp.dot(dst[dp * block_b:(dp + 1) * block_b, 0:n_last],
                        wfin_ref[dp], preferred_element_type=jnp.float32)
    out_ref[...] = y + bfin_ref[...]


def _const_index(ndim):
    return lambda g: (0,) * ndim


def _build_masks(bands0, block_b, n_stages=4):
    """Host-built (rows-2, 1) f32 row-validity masks, one per band stage."""
    masks = []
    bands = bands0
    for _ in range(n_stages):
        span = bands + 2
        rows = block_b * span
        t = np.arange(1, rows - 1)
        r = t % span
        masks.append(((r >= 1) & (r <= bands)).astype(np.float32)[:, None])
        bands //= 2
    return masks


def unet_3dcnn_encoder(x, packed, *, block_b=2, out_dim=None):
    """x: (B, 1, bands, H, W) float32 (NCDHW); packed = pack_params(...)."""
    b_sz, c_in, bands, h, w = x.shape
    assert c_in == 1
    hw = h * w

    conv_w = packed["conv_w"]
    conv_b = packed["conv_b"]
    wfin = packed["wfin"]
    bfin = packed["bfin"]
    conv_plan = tuple((int(wm.shape[1]), int(wm.shape[2]), POOL_AFTER[i])
                      for i, wm in enumerate(conv_w))
    n_last = conv_plan[-1][1]
    d_prime = int(wfin.shape[0])
    e_pad = int(wfin.shape[2])
    if out_dim is None:
        out_dim = e_pad

    n_grid = -(-b_sz // block_b)
    b_pad = n_grid * block_b
    x2 = x.reshape(b_sz, bands, hw).astype(jnp.bfloat16)
    if b_pad != b_sz:
        x2 = jnp.pad(x2, ((0, b_pad - b_sz), (0, 0), (0, 0)))

    masks = [jnp.asarray(mk) for mk in _build_masks(bands, block_b)]

    kernel = functools.partial(_encoder_kernel, block_b=block_b, bands0=bands,
                               hw=hw, conv_plan=conv_plan, d_prime=d_prime,
                               n_last=n_last, n_masks=len(masks))

    in_specs = [pl.BlockSpec((block_b, bands, hw), lambda g: (g, 0, 0))]
    inputs = [x2]
    for wm, bm in zip(conv_w, conv_b):
        in_specs.append(pl.BlockSpec(wm.shape, _const_index(wm.ndim)))
        in_specs.append(pl.BlockSpec(bm.shape, _const_index(bm.ndim)))
        inputs += [wm, bm]
    in_specs.append(pl.BlockSpec(wfin.shape, _const_index(wfin.ndim)))
    in_specs.append(pl.BlockSpec(bfin.shape, _const_index(bfin.ndim)))
    inputs += [wfin, bfin]
    for mk in masks:
        in_specs.append(pl.BlockSpec(mk.shape, _const_index(mk.ndim)))
        inputs.append(mk)

    rows_alloc = block_b * (bands + 2)
    out = pl.pallas_call(
        kernel,
        grid=(n_grid,),
        out_shape=jax.ShapeDtypeStruct((n_grid, block_b, e_pad), jnp.float32),
        in_specs=in_specs,
        out_specs=pl.BlockSpec((None, block_b, e_pad), lambda g: (g, 0, 0)),
        scratch_shapes=[pltpu.VMEM((rows_alloc, n_last), jnp.bfloat16),
                        pltpu.VMEM((rows_alloc, n_last), jnp.bfloat16)],
        compiler_params=pltpu.CompilerParams(
            dimension_semantics=("parallel",),
            vmem_limit_bytes=48 * 1024 * 1024),
    )(*inputs)
    return out.reshape(b_pad, e_pad)[:b_sz, :out_dim]


# ------------------------- weight packing (host, once) -------------------------

def _fold_bn_np(conv_bias, bn):
    gamma, beta, mean, var = (np.asarray(t, np.float32) for t in bn)
    cb = np.asarray(conv_bias, np.float32)
    s = gamma / np.sqrt(var + BN_EPS)
    return s, (cb - mean) * s + beta


def _pack_spectral(p):
    """Conv1d(cin_tot->cout_tot, k=3, pad=1) + BN1d  ->  (3, cin, cout), (1, cout)."""
    wt = np.asarray(p["w"], np.float32)                    # (cout, cin, 3)
    s, bias = _fold_bn_np(p["b"], p["bn"])
    taps = np.transpose(wt, (2, 1, 0)) * s[None, None, :]  # (3, cin, cout)
    return taps, bias.reshape(1, -1)


def _pack_common3d(p, h, w):
    """Conv3d 3x3x3 pad 1 + BN3d  ->  3 band-tap matrices over (c*H*W) lanes."""
    wt = np.asarray(p["w"], np.float32)                    # (cout, cin, 3, 3, 3)
    cout, cin = wt.shape[0], wt.shape[1]
    hw = h * w
    s, bias_c = _fold_bn_np(p["b"], p["bn"])
    taps = np.zeros((3, cin * hw, cout * hw), np.float32)
    rows = np.arange(cin)[:, None] * hw
    cols = np.arange(cout)[None, :] * hw
    for kd in range(3):
        for kh in range(3):
            for kw in range(3):
                blk = wt[:, :, kd, kh, kw].T * s[None, :]  # (cin, cout), BN folded
                for ho in range(h):
                    hi = ho + kh - 1
                    if hi < 0 or hi >= h:
                        continue
                    for wo in range(w):
                        wi = wo + kw - 1
                        if wi < 0 or wi >= w:
                            continue
                        taps[kd, rows + hi * w + wi, cols + ho * w + wo] += blk
    return taps, np.repeat(bias_c, hw).reshape(1, -1)


def _pack_final(p_lin, cout_last, d_prime, h, w, e_pad):
    """AvgPool3d(2) + flatten + Linear -> (d', cout_last*H*W, e_pad), (1, e_pad)."""
    w_lin = np.asarray(p_lin["w"], np.float32)             # (out_emb, in_feature)
    b_lin = np.asarray(p_lin["b"], np.float32)
    out_emb = w_lin.shape[0]
    h2, w2 = h // 2, w // 2
    hw = h * w
    wfin = np.zeros((d_prime, cout_last * hw, e_pad), np.float32)
    for dp in range(d_prime):
        for co in range(cout_last):
            for hi in range(h):
                for wi in range(w):
                    lane = co * hw + hi * w + wi
                    feat = (co * (d_prime * h2 * w2) + dp * (h2 * w2)
                            + (hi // 2) * w2 + (wi // 2))
                    wfin[dp, lane, 0:out_emb] = 0.125 * w_lin[:, feat]
    bfin = np.zeros((1, e_pad), np.float32)
    bfin[0, 0:out_emb] = b_lin
    return wfin, bfin


def pack_params(params, bands, h, w):
    assert bands % 16 == 0 and h % 2 == 0 and w % 2 == 0
    conv_w, conv_b = [], []
    wm, bm = _pack_common3d(params["start_conv"], h, w)
    conv_w.append(wm)
    conv_b.append(bm)
    for name in ("conv1_1", "conv1_2", "conv2_1", "conv2_2",
                 "conv3_1", "conv3_2", "conv4_1", "conv4_2"):
        wm, bm = _pack_spectral(params[name])
        conv_w.append(wm)
        conv_b.append(bm)
    wm, bm = _pack_common3d(params["out_conv"], h, w)
    conv_w.append(wm)
    conv_b.append(bm)
    out_emb = int(np.asarray(params["linear"]["w"]).shape[0])
    e_pad = ((out_emb + 127) // 128) * 128                 # lane-dense output
    wfin, bfin = _pack_final(params["linear"], 32, bands // 16, h, w, e_pad)
    return {"conv_w": [jnp.asarray(a, jnp.bfloat16) for a in conv_w],
            "conv_b": [jnp.asarray(a, jnp.float32) for a in conv_b],
            "wfin": jnp.asarray(wfin, jnp.bfloat16),
            "bfin": jnp.asarray(bfin, jnp.float32)}


# ------------------------- parameter init (PyTorch layout) -------------------------

def _init_conv(key, shape, fan_in):
    kw, kb = jax.random.split(key)
    bound = 1.0 / math.sqrt(fan_in)
    w = jax.random.uniform(kw, shape, jnp.float32, -bound, bound)
    b = jax.random.uniform(kb, (shape[0],), jnp.float32, -bound, bound)
    return w, b


def _init_bn(key, n):
    k1, k2, k3, k4 = jax.random.split(key, 4)
    gamma = 1.0 + 0.1 * jax.random.normal(k1, (n,), jnp.float32)
    beta = 0.05 * jax.random.normal(k2, (n,), jnp.float32)
    mean = 0.05 * jax.random.normal(k3, (n,), jnp.float32)
    var = 1.0 + jnp.abs(0.1 * jax.random.normal(k4, (n,), jnp.float32))
    return gamma, beta, mean, var


def _make_common3d(key, cin, cout):
    k1, k2 = jax.random.split(key)
    w, b = _init_conv(k1, (cout, cin, 3, 3, 3), cin * 27)
    return {"w": w, "b": b, "bn": _init_bn(k2, cout)}


def _make_spectral(key, cin, cout, hw):
    k1, k2 = jax.random.split(key)
    w, b = _init_conv(k1, (cout * hw, cin * hw, 3), cin * hw * 3)
    return {"w": w, "b": b, "bn": _init_bn(k2, cout * hw)}


def init_params(key, bands, H, W, out_embedding):
    hw = H * W
    keys = jax.random.split(key, 11)
    params = {
        "start_conv": _make_common3d(keys[0], 1, 1),
        "conv1_1": _make_spectral(keys[1], 1, 2, hw),
        "conv1_2": _make_spectral(keys[2], 2, 2, hw),
        "conv2_1": _make_spectral(keys[3], 2, 4, hw),
        "conv2_2": _make_spectral(keys[4], 4, 4, hw),
        "conv3_1": _make_spectral(keys[5], 4, 8, hw),
        "conv3_2": _make_spectral(keys[6], 8, 8, hw),
        "conv4_1": _make_spectral(keys[7], 8, 16, hw),
        "conv4_2": _make_spectral(keys[8], 16, 16, hw),
        "out_conv": _make_common3d(keys[9], 16, 32),
    }
    in_feature = (bands // 16) * (H // 2) * (W // 2) * 32
    kw, kb = jax.random.split(keys[10])
    bound = 1.0 / math.sqrt(in_feature)
    params["linear"] = {
        "w": jax.random.uniform(kw, (out_embedding, in_feature),
                                jnp.float32, -bound, bound),
        "b": jax.random.uniform(kb, (out_embedding,),
                                jnp.float32, -bound, bound),
    }
    return params


if __name__ == "__main__":
    # Small config consistent with the module: in_shape=(bands=16, H=4, W=4),
    # out_embedding=32, batch=4, block_b=2 (two batch-blocks on the grid).
    B, bands, H, W, out_embedding = 4, 16, 4, 4, 32

    key = jax.random.PRNGKey(0)
    kx, kp = jax.random.split(key)
    x = jax.random.normal(kx, (B, 1, bands, H, W), jnp.float32)
    params = init_params(kp, bands, H, W, out_embedding)
    packed = pack_params(params, bands, H, W)      # one-time weight repacking

    fwd = jax.jit(functools.partial(unet_3dcnn_encoder, block_b=2,
                                    out_dim=out_embedding))
    out = fwd(x, packed)
    jax.block_until_ready(out)
    assert out.shape == (B, out_embedding) and out.dtype == jnp.float32
    assert bool(jnp.all(jnp.isfinite(out)))
    print("KERNEL_OK")
</pallas_src>

<mosaic_0001>
module attributes {stable_mosaic.version = 11 : i64} {
  func.func @_encoder_kernel(%arg0: i32, %arg1: memref<2x16x16xbf16, #tpu.memory_space<vmem>>, %arg2: memref<3x16x16xbf16, #tpu.memory_space<vmem>>, %arg3: memref<1x16xf32, #tpu.memory_space<vmem>>, %arg4: memref<3x16x32xbf16, #tpu.memory_space<vmem>>, %arg5: memref<1x32xf32, #tpu.memory_space<vmem>>, %arg6: memref<3x32x32xbf16, #tpu.memory_space<vmem>>, %arg7: memref<1x32xf32, #tpu.memory_space<vmem>>, %arg8: memref<3x32x64xbf16, #tpu.memory_space<vmem>>, %arg9: memref<1x64xf32, #tpu.memory_space<vmem>>, %arg10: memref<3x64x64xbf16, #tpu.memory_space<vmem>>, %arg11: memref<1x64xf32, #tpu.memory_space<vmem>>, %arg12: memref<3x64x128xbf16, #tpu.memory_space<vmem>>, %arg13: memref<1x128xf32, #tpu.memory_space<vmem>>, %arg14: memref<3x128x128xbf16, #tpu.memory_space<vmem>>, %arg15: memref<1x128xf32, #tpu.memory_space<vmem>>, %arg16: memref<3x128x256xbf16, #tpu.memory_space<vmem>>, %arg17: memref<1x256xf32, #tpu.memory_space<vmem>>, %arg18: memref<3x256x256xbf16, #tpu.memory_space<vmem>>, %arg19: memref<1x256xf32, #tpu.memory_space<vmem>>, %arg20: memref<3x256x512xbf16, #tpu.memory_space<vmem>>, %arg21: memref<1x512xf32, #tpu.memory_space<vmem>>, %arg22: memref<1x512x128xbf16, #tpu.memory_space<vmem>>, %arg23: memref<1x128xf32, #tpu.memory_space<vmem>>, %arg24: memref<34x1xf32, #tpu.memory_space<vmem>>, %arg25: memref<18x1xf32, #tpu.memory_space<vmem>>, %arg26: memref<10x1xf32, #tpu.memory_space<vmem>>, %arg27: memref<6x1xf32, #tpu.memory_space<vmem>>, %arg28: memref<1x2x128xf32, #tpu.memory_space<vmem>>, %arg29: memref<36x512xbf16, #tpu.memory_space<vmem>>, %arg30: memref<36x512xbf16, #tpu.memory_space<vmem>>) attributes {dimension_semantics = [#tpu.dimension_semantics<parallel>], iteration_bounds = array<i64: 2>, scalar_prefetch = 0 : i64, scratch_operands = 2 : i64, tpu.core_type = #tpu.core_type<tc>, window_params = [{transform_indices = @transform_0, window_bounds = array<i64: 2, 16, 16>}, {pipeline_mode = #tpu.pipeline_mode<synchronous>, transform_indices = @transform_1, window_bounds = array<i64: 3, 16, 16>}, {pipeline_mode = #tpu.pipeline_mode<synchronous>, transform_indices = @transform_2, window_bounds = array<i64: 1, 16>}, {pipeline_mode = #tpu.pipeline_mode<synchronous>, transform_indices = @transform_3, window_bounds = array<i64: 3, 16, 32>}, {pipeline_mode = #tpu.pipeline_mode<synchronous>, transform_indices = @transform_4, window_bounds = array<i64: 1, 32>}, {pipeline_mode = #tpu.pipeline_mode<synchronous>, transform_indices = @transform_5, window_bounds = array<i64: 3, 32, 32>}, {pipeline_mode = #tpu.pipeline_mode<synchronous>, transform_indices = @transform_6, window_bounds = array<i64: 1, 32>}, {pipeline_mode = #tpu.pipeline_mode<synchronous>, transform_indices = @transform_7, window_bounds = array<i64: 3, 32, 64>}, {pipeline_mode = #tpu.pipeline_mode<synchronous>, transform_indices = @transform_8, window_bounds = array<i64: 1, 64>}, {pipeline_mode = #tpu.pipeline_mode<synchronous>, transform_indices = @transform_9, window_bounds = array<i64: 3, 64, 64>}, {pipeline_mode = #tpu.pipeline_mode<synchronous>, transform_indices = @transform_10, window_bounds = array<i64: 1, 64>}, {pipeline_mode = #tpu.pipeline_mode<synchronous>, transform_indices = @transform_11, window_bounds = array<i64: 3, 64, 128>}, {pipeline_mode = #tpu.pipeline_mode<synchronous>, transform_indices = @transform_12, window_bounds = array<i64: 1, 128>}, {pipeline_mode = #tpu.pipeline_mode<synchronous>, transform_indices = @transform_13, window_bounds = array<i64: 3, 128, 128>}, {pipeline_mode = #tpu.pipeline_mode<synchronous>, transform_indices = @transform_14, window_bounds = array<i64: 1, 128>}, {pipeline_mode = #tpu.pipeline_mode<synchronous>, transform_indices = @transform_15, window_bounds = array<i64: 3, 128, 256>}, {pipeline_mode = #tpu.pipeline_mode<synchronous>, transform_indices = @transform_16, window_bounds = array<i64: 1, 256>}, {pipeline_mode = #tpu.pipeline_mode<synchronous>, transform_indices = @transform_17, window_bounds = array<i64: 3, 256, 256>}, {pipeline_mode = #tpu.pipeline_mode<synchronous>, transform_indices = @transform_18, window_bounds = array<i64: 1, 256>}, {pipeline_mode = #tpu.pipeline_mode<synchronous>, transform_indices = @transform_19, window_bounds = array<i64: 3, 256, 512>}, {pipeline_mode = #tpu.pipeline_mode<synchronous>, transform_indices = @transform_20, window_bounds = array<i64: 1, 512>}, {pipeline_mode = #tpu.pipeline_mode<synchronous>, transform_indices = @transform_21, window_bounds = array<i64: 1, 512, 128>}, {pipeline_mode = #tpu.pipeline_mode<synchronous>, transform_indices = @transform_22, window_bounds = array<i64: 1, 128>}, {pipeline_mode = #tpu.pipeline_mode<synchronous>, transform_indices = @transform_23, window_bounds = array<i64: 34, 1>}, {pipeline_mode = #tpu.pipeline_mode<synchronous>, transform_indices = @transform_24, window_bounds = array<i64: 18, 1>}, {pipeline_mode = #tpu.pipeline_mode<synchronous>, transform_indices = @transform_25, window_bounds = array<i64: 10, 1>}, {pipeline_mode = #tpu.pipeline_mode<synchronous>, transform_indices = @transform_26, window_bounds = array<i64: 6, 1>}, {transform_indices = @transform_27, window_bounds = array<i64: 1, 2, 128>}]} {
    %cst = arith.constant 0.000000e+00 : bf16
    %0 = vector.broadcast %cst : bf16 to vector<36x16xbf16>
    %c0 = arith.constant 0 : index
    %c0_0 = arith.constant 0 : index
    %1 = vector.load %arg29[%c0, %c0_0] : memref<36x512xbf16, #tpu.memory_space<vmem>>, vector<36x16xbf16>
    tpu.vector_store %arg29[%c0, %c0_0], %0 {strides = array<i32>} : memref<36x512xbf16, #tpu.memory_space<vmem>>, vector<36x16xbf16>,
    %c0_1 = arith.constant 0 : index
    %c0_2 = arith.constant 0 : index
    %c0_3 = arith.constant 0 : index
    %2 = vector.load %arg1[%c0_1, %c0_2, %c0_3] : memref<2x16x16xbf16, #tpu.memory_space<vmem>>, vector<1x16x16xbf16>
    %3 = vector.shape_cast %2 : vector<1x16x16xbf16> to vector<16x16xbf16>
    %c1 = arith.constant 1 : index
    %c0_4 = arith.constant 0 : index
    %4 = vector.load %arg29[%c1, %c0_4] : memref<36x512xbf16, #tpu.memory_space<vmem>>, vector<16x16xbf16>
    tpu.vector_store %arg29[%c1, %c0_4], %3 {strides = array<i32>} : memref<36x512xbf16, #tpu.memory_space<vmem>>, vector<16x16xbf16>,
    %c1_5 = arith.constant 1 : index
    %c0_6 = arith.constant 0 : index
    %c0_7 = arith.constant 0 : index
    %5 = vector.load %arg1[%c1_5, %c0_6, %c0_7] : memref<2x16x16xbf16, #tpu.memory_space<vmem>>, vector<1x16x16xbf16>
    %6 = vector.shape_cast %5 : vector<1x16x16xbf16> to vector<16x16xbf16>
    %c19 = arith.constant 19 : index
    %c0_8 = arith.constant 0 : index
    %7 = vector.load %arg29[%c19, %c0_8] : memref<36x512xbf16, #tpu.memory_space<vmem>>, vector<16x16xbf16>
    tpu.vector_store %arg29[%c19, %c0_8], %6 {strides = array<i32>} : memref<36x512xbf16, #tpu.memory_space<vmem>>, vector<16x16xbf16>,
    %c0_9 = arith.constant 0 : index
    %c0_10 = arith.constant 0 : index
    %8 = vector.load %arg24[%c0_9, %c0_10] : memref<34x1xf32, #tpu.memory_space<vmem>>, vector<34x1xf32>
    %c0_11 = arith.constant 0 : index
    %c0_12 = arith.constant 0 : index
    %9 = vector.load %arg29[%c0_11, %c0_12] : memref<36x512xbf16, #tpu.memory_space<vmem>>, vector<34x16xbf16>
    %c0_13 = arith.constant 0 : index
    %c0_14 = arith.constant 0 : index
    %c0_15 = arith.constant 0 : index
    %10 = vector.load %arg2[%c0_13, %c0_14, %c0_15] : memref<3x16x16xbf16, #tpu.memory_space<vmem>>, vector<1x16x16xbf16>
    %11 = vector.shape_cast %10 : vector<1x16x16xbf16> to vector<16x16xbf16>
    %cst_16 = arith.constant dense<0.000000e+00> : vector<34x16xf32>
    %12 = tpu.matmul %9, %11, %cst_16 {dimension_numbers = #tpu.dot_dimension_numbers<[1], [0], [0], [1], [0, 0, 1, 1], [], []>} : vector<34x16xbf16>, vector<16x16xbf16>, vector<34x16xf32> -> vector<34x16xf32>
    %c1_17 = arith.constant 1 : index
    %c0_18 = arith.constant 0 : index
    %13 = vector.load %arg29[%c1_17, %c0_18] : memref<36x512xbf16, #tpu.memory_space<vmem>>, vector<34x16xbf16>
    %c1_19 = arith.constant 1 : index
    %c0_20 = arith.constant 0 : index
    %c0_21 = arith.constant 0 : index
    %14 = vector.load %arg2[%c1_19, %c0_20, %c0_21] : memref<3x16x16xbf16, #tpu.memory_space<vmem>>, vector<1x16x16xbf16>
    %15 = vector.shape_cast %14 : vector<1x16x16xbf16> to vector<16x16xbf16>
    %cst_22 = arith.constant dense<0.000000e+00> : vector<34x16xf32>
    %16 = tpu.matmul %13, %15, %cst_22 {dimension_numbers = #tpu.dot_dimension_numbers<[1], [0], [0], [1], [0, 0, 1, 1], [], []>} : vector<34x16xbf16>, vector<16x16xbf16>, vector<34x16xf32> -> vector<34x16xf32>
    %17 = arith.addf %12, %16 : vector<34x16xf32>
    %c2 = arith.constant 2 : index
    %c0_23 = arith.constant 0 : index
    %18 = vector.load %arg29[%c2, %c0_23] : memref<36x512xbf16, #tpu.memory_space<vmem>>, vector<34x16xbf16>
    %c2_24 = arith.constant 2 : index
    %c0_25 = arith.constant 0 : index
    %c0_26 = arith.constant 0 : index
    %19 = vector.load %arg2[%c2_24, %c0_25, %c0_26] : memref<3x16x16xbf16, #tpu.memory_space<vmem>>, vector<1x16x16xbf16>
    %20 = vector.shape_cast %19 : vector<1x16x16xbf16> to vector<16x16xbf16>
    %cst_27 = arith.constant dense<0.000000e+00> : vector<34x16xf32>
    %21 = tpu.matmul %18, %20, %cst_27 {dimension_numbers = #tpu.dot_dimension_numbers<[1], [0], [0], [1], [0, 0, 1, 1], [], []>} : vector<34x16xbf16>, vector<16x16xbf16>, vector<34x16xf32> -> vector<34x16xf32>
    %22 = arith.addf %17, %21 : vector<34x16xf32>
    %c0_28 = arith.constant 0 : index
    %c0_29 = arith.constant 0 : index
    %23 = vector.load %arg3[%c0_28, %c0_29] : memref<1x16xf32, #tpu.memory_space<vmem>>, vector<1x16xf32>
    %24 = vector.broadcast %23 : vector<1x16xf32> to vector<34x16xf32>
    %25 = arith.addf %22, %24 : vector<34x16xf32>
    %cst_30 = arith.constant 0.000000e+00 : f32
    %26 = vector.broadcast %cst_30 : f32 to vector<34x16xf32>
    %27 = arith.maximumf %25, %26 : vector<34x16xf32>
    %28 = vector.broadcast %8 : vector<34x1xf32> to vector<34x16xf32>
    %29 = arith.mulf %27, %28 : vector<34x16xf32>
    %30 = arith.truncf %29 : vector<34x16xf32> to vector<34x16xbf16>
    %c1_31 = arith.constant 1 : index
    %c0_32 = arith.constant 0 : index
    %31 = vector.load %arg30[%c1_31, %c0_32] : memref<36x512xbf16, #tpu.memory_space<vmem>>, vector<34x16xbf16>
    tpu.vector_store %arg30[%c1_31, %c0_32], %30 {strides = array<i32>} : memref<36x512xbf16, #tpu.memory_space<vmem>>, vector<34x16xbf16>,
    %cst_33 = arith.constant 0.000000e+00 : bf16
    %32 = vector.broadcast %cst_33 : bf16 to vector<1x16xbf16>
    %c0_34 = arith.constant 0 : index
    %c0_35 = arith.constant 0 : index
    %33 = vector.load %arg30[%c0_34, %c0_35] : memref<36x512xbf16, #tpu.memory_space<vmem>>, vector<1x16xbf16>
    tpu.vector_store %arg30[%c0_34, %c0_35], %32 {strides = array<i32>} : memref<36x512xbf16, #tpu.memory_space<vmem>>, vector<1x16xbf16>,
    %c35 = arith.constant 35 : index
    %c0_36 = arith.constant 0 : index
    %34 = vector.load %arg30[%c35, %c0_36] : memref<36x512xbf16, #tpu.memory_space<vmem>>, vector<1x16xbf16>
    tpu.vector_store %arg30[%c35, %c0_36], %32 {strides = array<i32>} : memref<36x512xbf16, #tpu.memory_space<vmem>>, vector<1x16xbf16>,
    %c0_37 = arith.constant 0 : index
    %c0_38 = arith.constant 0 : index
    %35 = vector.load %arg24[%c0_37, %c0_38] : memref<34x1xf32, #tpu.memory_space<vmem>>, vector<34x1xf32>
    %c0_39 = arith.constant 0 : index
    %c0_40 = arith.constant 0 : index
    %36 = vector.load %arg30[%c0_39, %c0_40] : memref<36x512xbf16, #tpu.memory_space<vmem>>, vector<34x16xbf16>
    %c0_41 = arith.constant 0 : index
    %c0_42 = arith.constant 0 : index
    %c0_43 = arith.constant 0 : index
    %37 = vector.load %arg4[%c0_41, %c0_42, %c0_43] : memref<3x16x32xbf16, #tpu.memory_space<vmem>>, vector<1x16x32xbf16>
    %38 = vector.shape_cast %37 : vector<1x16x32xbf16> to vector<16x32xbf16>
    %cst_44 = arith.constant dense<0.000000e+00> : vector<34x32xf32>
    %39 = tpu.matmul %36, %38, %cst_44 {dimension_numbers = #tpu.dot_dimension_numbers<[1], [0], [0], [1], [0, 0, 1, 1], [], []>} : vector<34x16xbf16>, vector<16x32xbf16>, vector<34x32xf32> -> vector<34x32xf32>
    %c1_45 = arith.constant 1 : index
    %c0_46 = arith.constant 0 : index
    %40 = vector.load %arg30[%c1_45, %c0_46] : memref<36x512xbf16, #tpu.memory_space<vmem>>, vector<34x16xbf16>
    %c1_47 = arith.constant 1 : index
    %c0_48 = arith.constant 0 : index
    %c0_49 = arith.constant 0 : index
    %41 = vector.load %arg4[%c1_47, %c0_48, %c0_49] : memref<3x16x32xbf16, #tpu.memory_space<vmem>>, vector<1x16x32xbf16>
    %42 = vector.shape_cast %41 : vector<1x16x32xbf16> to vector<16x32xbf16>
    %cst_50 = arith.constant dense<0.000000e+00> : vector<34x32xf32>
    %43 = tpu.matmul %40, %42, %cst_50 {dimension_numbers = #tpu.dot_dimension_numbers<[1], [0], [0], [1], [0, 0, 1, 1], [], []>} : vector<34x16xbf16>, vector<16x32xbf16>, vector<34x32xf32> -> vector<34x32xf32>
    %44 = arith.addf %39, %43 : vector<34x32xf32>
    %c2_51 = arith.constant 2 : index
    %c0_52 = arith.constant 0 : index
    %45 = vector.load %arg30[%c2_51, %c0_52] : memref<36x512xbf16, #tpu.memory_space<vmem>>, vector<34x16xbf16>
    %c2_53 = arith.constant 2 : index
    %c0_54 = arith.constant 0 : index
    %c0_55 = arith.constant 0 : index
    %46 = vector.load %arg4[%c2_53, %c0_54, %c0_55] : memref<3x16x32xbf16, #tpu.memory_space<vmem>>, vector<1x16x32xbf16>
    %47 = vector.shape_cast %46 : vector<1x16x32xbf16> to vector<16x32xbf16>
    %cst_56 = arith.constant dense<0.000000e+00> : vector<34x32xf32>
    %48 = tpu.matmul %45, %47, %cst_56 {dimension_numbers = #tpu.dot_dimension_numbers<[1], [0], [0], [1], [0, 0, 1, 1], [], []>} : vector<34x16xbf16>, vector<16x32xbf16>, vector<34x32xf32> -> vector<34x32xf32>
    %49 = arith.addf %44, %48 : vector<34x32xf32>
    %c0_57 = arith.constant 0 : index
    %c0_58 = arith.constant 0 : index
    %50 = vector.load %arg5[%c0_57, %c0_58] : memref<1x32xf32, #tpu.memory_space<vmem>>, vector<1x32xf32>
    %51 = vector.broadcast %50 : vector<1x32xf32> to vector<34x32xf32>
    %52 = arith.addf %49, %51 : vector<34x32xf32>
    %cst_59 = arith.constant 0.000000e+00 : f32
    %53 = vector.broadcast %cst_59 : f32 to vector<34x32xf32>
    %54 = arith.maximumf %52, %53 : vector<34x32xf32>
    %55 = vector.broadcast %35 : vector<34x1xf32> to vector<34x32xf32>
    %56 = arith.mulf %54, %55 : vector<34x32xf32>
    %57 = arith.truncf %56 : vector<34x32xf32> to vector<34x32xbf16>
    %c1_60 = arith.constant 1 : index
    %c0_61 = arith.constant 0 : index
    %58 = vector.load %arg29[%c1_60, %c0_61] : memref<36x512xbf16, #tpu.memory_space<vmem>>, vector<34x32xbf16>
    tpu.vector_store %arg29[%c1_60, %c0_61], %57 {strides = array<i32>} : memref<36x512xbf16, #tpu.memory_space<vmem>>, vector<34x32xbf16>,
    %cst_62 = arith.constant 0.000000e+00 : bf16
    %59 = vector.broadcast %cst_62 : bf16 to vector<1x32xbf16>
    %c0_63 = arith.constant 0 : index
    %c0_64 = arith.constant 0 : index
    %60 = vector.load %arg29[%c0_63, %c0_64] : memref<36x512xbf16, #tpu.memory_space<vmem>>, vector<1x32xbf16>
    tpu.vector_store %arg29[%c0_63, %c0_64], %59 {strides = array<i32>} : memref<36x512xbf16, #tpu.memory_space<vmem>>, vector<1x32xbf16>,
    %c35_65 = arith.constant 35 : index
    %c0_66 = arith.constant 0 : index
    %61 = vector.load %arg29[%c35_65, %c0_66] : memref<36x512xbf16, #tpu.memory_space<vmem>>, vector<1x32xbf16>
    tpu.vector_store %arg29[%c35_65, %c0_66], %59 {strides = array<i32>} : memref<36x512xbf16, #tpu.memory_space<vmem>>, vector<1x32xbf16>,
    %c0_67 = arith.constant 0 : index
    %c0_68 = arith.constant 0 : index
    %62 = vector.load %arg24[%c0_67, %c0_68] : memref<34x1xf32, #tpu.memory_space<vmem>>, vector<34x1xf32>
    %c0_69 = arith.constant 0 : index
    %c0_70 = arith.constant 0 : index
    %63 = vector.load %arg29[%c0_69, %c0_70] : memref<36x512xbf16, #tpu.memory_space<vmem>>, vector<34x32xbf16>
    %c0_71 = arith.constant 0 : index
    %c0_72 = arith.constant 0 : index
    %c0_73 = arith.constant 0 : index
    %64 = vector.load %arg6[%c0_71, %c0_72, %c0_73] : memref<3x32x32xbf16, #tpu.memory_space<vmem>>, vector<1x32x32xbf16>
    %65 = vector.shape_cast %64 : vector<1x32x32xbf16> to vector<32x32xbf16>
    %cst_74 = arith.constant dense<0.000000e+00> : vector<34x32xf32>
    %66 = tpu.matmul %63, %65, %cst_74 {dimension_numbers = #tpu.dot_dimension_numbers<[1], [0], [0], [1], [0, 0, 1, 1], [], []>} : vector<34x32xbf16>, vector<32x32xbf16>, vector<34x32xf32> -> vector<34x32xf32>
    %c1_75 = arith.constant 1 : index
    %c0_76 = arith.constant 0 : index
    %67 = vector.load %arg29[%c1_75, %c0_76] : memref<36x512xbf16, #tpu.memory_space<vmem>>, vector<34x32xbf16>
    %c1_77 = arith.constant 1 : index
    %c0_78 = arith.constant 0 : index
    %c0_79 = arith.constant 0 : index
    %68 = vector.load %arg6[%c1_77, %c0_78, %c0_79] : memref<3x32x32xbf16, #tpu.memory_space<vmem>>, vector<1x32x32xbf16>
    %69 = vector.shape_cast %68 : vector<1x32x32xbf16> to vector<32x32xbf16>
    %cst_80 = arith.constant dense<0.000000e+00> : vector<34x32xf32>
    %70 = tpu.matmul %67, %69, %cst_80 {dimension_numbers = #tpu.dot_dimension_numbers<[1], [0], [0], [1], [0, 0, 1, 1], [], []>} : vector<34x32xbf16>, vector<32x32xbf16>, vector<34x32xf32> -> vector<34x32xf32>
    %71 = arith.addf %66, %70 : vector<34x32xf32>
    %c2_81 = arith.constant 2 : index
    %c0_82 = arith.constant 0 : index
    %72 = vector.load %arg29[%c2_81, %c0_82] : memref<36x512xbf16, #tpu.memory_space<vmem>>, vector<34x32xbf16>
    %c2_83 = arith.constant 2 : index
    %c0_84 = arith.constant 0 : index
    %c0_85 = arith.constant 0 : index
    %73 = vector.load %arg6[%c2_83, %c0_84, %c0_85] : memref<3x32x32xbf16, #tpu.memory_space<vmem>>, vector<1x32x32xbf16>
    %74 = vector.shape_cast %73 : vector<1x32x32xbf16> to vector<32x32xbf16>
    %cst_86 = arith.constant dense<0.000000e+00> : vector<34x32xf32>
    %75 = tpu.matmul %72, %74, %cst_86 {dimension_numbers = #tpu.dot_dimension_numbers<[1], [0], [0], [1], [0, 0, 1, 1], [], []>} : vector<34x32xbf16>, vector<32x32xbf16>, vector<34x32xf32> -> vector<34x32xf32>
    %76 = arith.addf %71, %75 : vector<34x32xf32>
    %c0_87 = arith.constant 0 : index
    %c0_88 = arith.constant 0 : index
    %77 = vector.load %arg7[%c0_87, %c0_88] : memref<1x32xf32, #tpu.memory_space<vmem>>, vector<1x32xf32>
    %78 = vector.broadcast %77 : vector<1x32xf32> to vector<34x32xf32>
    %79 = arith.addf %76, %78 : vector<34x32xf32>
    %cst_89 = arith.constant 0.000000e+00 : f32
    %80 = vector.broadcast %cst_89 : f32 to vector<34x32xf32>
    %81 = arith.maximumf %79, %80 : vector<34x32xf32>
    %82 = vector.broadcast %62 : vector<34x1xf32> to vector<34x32xf32>
    %83 = arith.mulf %81, %82 : vector<34x32xf32>
    %84 = arith.truncf %83 : vector<34x32xf32> to vector<34x32xbf16>
    %c1_90 = arith.constant 1 : index
    %c0_91 = arith.constant 0 : index
    %85 = vector.load %arg30[%c1_90, %c0_91] : memref<36x512xbf16, #tpu.memory_space<vmem>>, vector<34x32xbf16>
    tpu.vector_store %arg30[%c1_90, %c0_91], %84 {strides = array<i32>} : memref<36x512xbf16, #tpu.memory_space<vmem>>, vector<34x32xbf16>,
    %cst_92 = arith.constant 0.000000e+00 : bf16
    %86 = vector.broadcast %cst_92 : bf16 to vector<1x32xbf16>
    %c0_93 = arith.constant 0 : index
    %c0_94 = arith.constant 0 : index
    %87 = vector.load %arg30[%c0_93, %c0_94] : memref<36x512xbf16, #tpu.memory_space<vmem>>, vector<1x32xbf16>
    tpu.vector_store %arg30[%c0_93, %c0_94], %86 {strides = array<i32>} : memref<36x512xbf16, #tpu.memory_space<vmem>>, vector<1x32xbf16>,
    %c35_95 = arith.constant 35 : index
    %c0_96 = arith.constant 0 : index
    %88 = vector.load %arg30[%c35_95, %c0_96] : memref<36x512xbf16, #tpu.memory_space<vmem>>, vector<1x32xbf16>
    tpu.vector_store %arg30[%c35_95, %c0_96], %86 {strides = array<i32>} : memref<36x512xbf16, #tpu.memory_space<vmem>>, vector<1x32xbf16>,
    %cst_97 = arith.constant 0.000000e+00 : bf16
    %89 = vector.broadcast %cst_97 : bf16 to vector<20x32xbf16>
    %c0_98 = arith.constant 0 : index
    %c0_99 = arith.constant 0 : index
    %90 = vector.load %arg29[%c0_98, %c0_99] : memref<36x512xbf16, #tpu.memory_space<vmem>>, vector<20x32xbf16>
    tpu.vector_store %arg29[%c0_98, %c0_99], %89 {strides = array<i32>} : memref<36x512xbf16, #tpu.memory_space<vmem>>, vector<20x32xbf16>,
    %c1_100 = arith.constant 1 : index
    %c0_101 = arith.constant 0 : index
    %91 = vector.load %arg30[%c1_100, %c0_101] : memref<36x512xbf16, #tpu.memory_space<vmem>>, vector<16x32xbf16>
    %92 = vector.shape_cast %91 : vector<16x32xbf16> to vector<8x2x32xbf16>
    %93 = vector.extract_strided_slice %92 {offsets = [0, 0, 0], sizes = [8, 1, 32], strides = [1, 1, 1]} : vector<8x2x32xbf16> to vector<8x1x32xbf16>
    %94 = vector.shape_cast %93 : vector<8x1x32xbf16> to vector<8x32xbf16>
    %95 = vector.extract_strided_slice %92 {offsets = [0, 1, 0], sizes = [8, 1, 32], strides = [1, 1, 1]} : vector<8x2x32xbf16> to vector<8x1x32xbf16>
    %96 = vector.shape_cast %95 : vector<8x1x32xbf16> to vector<8x32xbf16>
    %97 = arith.maximumf %94, %96 : vector<8x32xbf16>
    %c1_102 = arith.constant 1 : index
    %c0_103 = arith.constant 0 : index
    %98 = vector.load %arg29[%c1_102, %c0_103] : memref<36x512xbf16, #tpu.memory_space<vmem>>, vector<8x32xbf16>
    tpu.vector_store %arg29[%c1_102, %c0_103], %97 {strides = array<i32>} : memref<36x512xbf16, #tpu.memory_space<vmem>>, vector<8x32xbf16>,
    %c19_104 = arith.constant 19 : index
    %c0_105 = arith.constant 0 : index
    %99 = vector.load %arg30[%c19_104, %c0_105] : memref<36x512xbf16, #tpu.memory_space<vmem>>, vector<16x32xbf16>
    %100 = vector.shape_cast %99 : vector<16x32xbf16> to vector<8x2x32xbf16>
    %101 = vector.extract_strided_slice %100 {offsets = [0, 0, 0], sizes = [8, 1, 32], strides = [1, 1, 1]} : vector<8x2x32xbf16> to vector<8x1x32xbf16>
    %102 = vector.shape_cast %101 : vector<8x1x32xbf16> to vector<8x32xbf16>
    %103 = vector.extract_strided_slice %100 {offsets = [0, 1, 0], sizes = [8, 1, 32], strides = [1, 1, 1]} : vector<8x2x32xbf16> to vector<8x1x32xbf16>
    %104 = vector.shape_cast %103 : vector<8x1x32xbf16> to vector<8x32xbf16>
    %105 = arith.maximumf %102, %104 : vector<8x32xbf16>
    %c11 = arith.constant 11 : index
    %c0_106 = arith.constant 0 : index
    %106 = vector.load %arg29[%c11, %c0_106] : memref<36x512xbf16, #tpu.memory_space<vmem>>, vector<8x32xbf16>
    tpu.vector_store %arg29[%c11, %c0_106], %105 {strides = array<i32>} : memref<36x512xbf16, #tpu.memory_space<vmem>>, vector<8x32xbf16>,
    %c0_107 = arith.constant 0 : index
    %c0_108 = arith.constant 0 : index
    %107 = vector.load %arg25[%c0_107, %c0_108] : memref<18x1xf32, #tpu.memory_space<vmem>>, vector<18x1xf32>
    %c0_109 = arith.constant 0 : index
    %c0_110 = arith.constant 0 : index
    %108 = vector.load %arg29[%c0_109, %c0_110] : memref<36x512xbf16, #tpu.memory_space<vmem>>, vector<18x32xbf16>
    %c0_111 = arith.constant 0 : index
    %c0_112 = arith.constant 0 : index
    %c0_113 = arith.constant 0 : index
    %109 = vector.load %arg8[%c0_111, %c0_112, %c0_113] : memref<3x32x64xbf16, #tpu.memory_space<vmem>>, vector<1x32x64xbf16>
    %110 = vector.shape_cast %109 : vector<1x32x64xbf16> to vector<32x64xbf16>
    %cst_114 = arith.constant dense<0.000000e+00> : vector<18x64xf32>
    %111 = tpu.matmul %108, %110, %cst_114 {dimension_numbers = #tpu.dot_dimension_numbers<[1], [0], [0], [1], [0, 0, 1, 1], [], []>} : vector<18x32xbf16>, vector<32x64xbf16>, vector<18x64xf32> -> vector<18x64xf32>
    %c1_115 = arith.constant 1 : index
    %c0_116 = arith.constant 0 : index
    %112 = vector.load %arg29[%c1_115, %c0_116] : memref<36x512xbf16, #tpu.memory_space<vmem>>, vector<18x32xbf16>
    %c1_117 = arith.constant 1 : index
    %c0_118 = arith.constant 0 : index
    %c0_119 = arith.constant 0 : index
    %113 = vector.load %arg8[%c1_117, %c0_118, %c0_119] : memref<3x32x64xbf16, #tpu.memory_space<vmem>>, vector<1x32x64xbf16>
    %114 = vector.shape_cast %113 : vector<1x32x64xbf16> to vector<32x64xbf16>
    %cst_120 = arith.constant dense<0.000000e+00> : vector<18x64xf32>
    %115 = tpu.matmul %112, %114, %cst_120 {dimension_numbers = #tpu.dot_dimension_numbers<[1], [0], [0], [1], [0, 0, 1, 1], [], []>} : vector<18x32xbf16>, vector<32x64xbf16>, vector<18x64xf32> -> vector<18x64xf32>
    %116 = arith.addf %111, %115 : vector<18x64xf32>
    %c2_121 = arith.constant 2 : index
    %c0_122 = arith.constant 0 : index
    %117 = vector.load %arg29[%c2_121, %c0_122] : memref<36x512xbf16, #tpu.memory_space<vmem>>, vector<18x32xbf16>
    %c2_123 = arith.constant 2 : index
    %c0_124 = arith.constant 0 : index
    %c0_125 = arith.constant 0 : index
    %118 = vector.load %arg8[%c2_123, %c0_124, %c0_125] : memref<3x32x64xbf16, #tpu.memory_space<vmem>>, vector<1x32x64xbf16>
    %119 = vector.shape_cast %118 : vector<1x32x64xbf16> to vector<32x64xbf16>
    %cst_126 = arith.constant dense<0.000000e+00> : vector<18x64xf32>
    %120 = tpu.matmul %117, %119, %cst_126 {dimension_numbers = #tpu.dot_dimension_numbers<[1], [0], [0], [1], [0, 0, 1, 1], [], []>} : vector<18x32xbf16>, vector<32x64xbf16>, vector<18x64xf32> -> vector<18x64xf32>
    %121 = arith.addf %116, %120 : vector<18x64xf32>
    %c0_127 = arith.constant 0 : index
    %c0_128 = arith.constant 0 : index
    %122 = vector.load %arg9[%c0_127, %c0_128] : memref<1x64xf32, #tpu.memory_space<vmem>>, vector<1x64xf32>
    %123 = vector.broadcast %122 : vector<1x64xf32> to vector<18x64xf32>
    %124 = arith.addf %121, %123 : vector<18x64xf32>
    %cst_129 = arith.constant 0.000000e+00 : f32
    %125 = vector.broadcast %cst_129 : f32 to vector<18x64xf32>
    %126 = arith.maximumf %124, %125 : vector<18x64xf32>
    %127 = vector.broadcast %107 : vector<18x1xf32> to vector<18x64xf32>
    %128 = arith.mulf %126, %127 : vector<18x64xf32>
    %129 = arith.truncf %128 : vector<18x64xf32> to vector<18x64xbf16>
    %c1_130 = arith.constant 1 : index
    %c0_131 = arith.constant 0 : index
    %130 = vector.load %arg30[%c1_130, %c0_131] : memref<36x512xbf16, #tpu.memory_space<vmem>>, vector<18x64xbf16>
    tpu.vector_store %arg30[%c1_130, %c0_131], %129 {strides = array<i32>} : memref<36x512xbf16, #tpu.memory_space<vmem>>, vector<18x64xbf16>,
    %cst_132 = arith.constant 0.000000e+00 : bf16
    %131 = vector.broadcast %cst_132 : bf16 to vector<1x64xbf16>
    %c0_133 = arith.constant 0 : index
    %c0_134 = arith.constant 0 : index
    %132 = vector.load %arg30[%c0_133, %c0_134] : memref<36x512xbf16, #tpu.memory_space<vmem>>, vector<1x64xbf16>
    tpu.vector_store %arg30[%c0_133, %c0_134], %131 {strides = array<i32>} : memref<36x512xbf16, #tpu.memory_space<vmem>>, vector<1x64xbf16>,
    %c19_135 = arith.constant 19 : index
    %c0_136 = arith.constant 0 : index
    %133 = vector.load %arg30[%c19_135, %c0_136] : memref<36x512xbf16, #tpu.memory_space<vmem>>, vector<1x64xbf16>
    tpu.vector_store %arg30[%c19_135, %c0_136], %131 {strides = array<i32>} : memref<36x512xbf16, #tpu.memory_space<vmem>>, vector<1x64xbf16>,
    %c0_137 = arith.constant 0 : index
    %c0_138 = arith.constant 0 : index
    %134 = vector.load %arg25[%c0_137, %c0_138] : memref<18x1xf32, #tpu.memory_space<vmem>>, vector<18x1xf32>
    %c0_139 = arith.constant 0 : index
    %c0_140 = arith.constant 0 : index
    %135 = vector.load %arg30[%c0_139, %c0_140] : memref<36x512xbf16, #tpu.memory_space<vmem>>, vector<18x64xbf16>
    %c0_141 = arith.constant 0 : index
    %c0_142 = arith.constant 0 : index
    %c0_143 = arith.constant 0 : index
    %136 = vector.load %arg10[%c0_141, %c0_142, %c0_143] : memref<3x64x64xbf16, #tpu.memory_space<vmem>>, vector<1x64x64xbf16>
    %137 = vector.shape_cast %136 : vector<1x64x64xbf16> to vector<64x64xbf16>
    %cst_144 = arith.constant dense<0.000000e+00> : vector<18x64xf32>
    %138 = tpu.matmul %135, %137, %cst_144 {dimension_numbers = #tpu.dot_dimension_numbers<[1], [0], [0], [1], [0, 0, 1, 1], [], []>} : vector<18x64xbf16>, vector<64x64xbf16>, vector<18x64xf32> -> vector<18x64xf32>
    %c1_145 = arith.constant 1 : index
    %c0_146 = arith.constant 0 : index
    %139 = vector.load %arg30[%c1_145, %c0_146] : memref<36x512xbf16, #tpu.memory_space<vmem>>, vector<18x64xbf16>
    %c1_147 = arith.constant 1 : index
    %c0_148 = arith.constant 0 : index
    %c0_149 = arith.constant 0 : index
    %140 = vector.load %arg10[%c1_147, %c0_148, %c0_149] : memref<3x64x64xbf16, #tpu.memory_space<vmem>>, vector<1x64x64xbf16>
    %141 = vector.shape_cast %140 : vector<1x64x64xbf16> to vector<64x64xbf16>
    %cst_150 = arith.constant dense<0.000000e+00> : vector<18x64xf32>
    %142 = tpu.matmul %139, %141, %cst_150 {dimension_numbers = #tpu.dot_dimension_numbers<[1], [0], [0], [1], [0, 0, 1, 1], [], []>} : vector<18x64xbf16>, vector<64x64xbf16>, vector<18x64xf32> -> vector<18x64xf32>
    %143 = arith.addf %138, %142 : vector<18x64xf32>
    %c2_151 = arith.constant 2 : index
    %c0_152 = arith.constant 0 : index
    %144 = vector.load %arg30[%c2_151, %c0_152] : memref<36x512xbf16, #tpu.memory_space<vmem>>, vector<18x64xbf16>
    %c2_153 = arith.constant 2 : index
    %c0_154 = arith.constant 0 : index
    %c0_155 = arith.constant 0 : index
    %145 = vector.load %arg10[%c2_153, %c0_154, %c0_155] : memref<3x64x64xbf16, #tpu.memory_space<vmem>>, vector<1x64x64xbf16>
    %146 = vector.shape_cast %145 : vector<1x64x64xbf16> to vector<64x64xbf16>
    %cst_156 = arith.constant dense<0.000000e+00> : vector<18x64xf32>
    %147 = tpu.matmul %144, %146, %cst_156 {dimension_numbers = #tpu.dot_dimension_numbers<[1], [0], [0], [1], [0, 0, 1, 1], [], []>} : vector<18x64xbf16>, vector<64x64xbf16>, vector<18x64xf32> -> vector<18x64xf32>
    %148 = arith.addf %143, %147 : vector<18x64xf32>
    %c0_157 = arith.constant 0 : index
    %c0_158 = arith.constant 0 : index
    %149 = vector.load %arg11[%c0_157, %c0_158] : memref<1x64xf32, #tpu.memory_space<vmem>>, vector<1x64xf32>
    %150 = vector.broadcast %149 : vector<1x64xf32> to vector<18x64xf32>
    %151 = arith.addf %148, %150 : vector<18x64xf32>
    %cst_159 = arith.constant 0.000000e+00 : f32
    %152 = vector.broadcast %cst_159 : f32 to vector<18x64xf32>
    %153 = arith.maximumf %151, %152 : vector<18x64xf32>
    %154 = vector.broadcast %134 : vector<18x1xf32> to vector<18x64xf32>
    %155 = arith.mulf %153, %154 : vector<18x64xf32>
    %156 = arith.truncf %155 : vector<18x64xf32> to vector<18x64xbf16>
    %c1_160 = arith.constant 1 : index
    %c0_161 = arith.constant 0 : index
    %157 = vector.load %arg29[%c1_160, %c0_161] : memref<36x512xbf16, #tpu.memory_space<vmem>>, vector<18x64xbf16>
    tpu.vector_store %arg29[%c1_160, %c0_161], %156 {strides = array<i32>} : memref<36x512xbf16, #tpu.memory_space<vmem>>, vector<18x64xbf16>,
    %cst_162 = arith.constant 0.000000e+00 : bf16
    %158 = vector.broadcast %cst_162 : bf16 to vector<1x64xbf16>
    %c0_163 = arith.constant 0 : index
    %c0_164 = arith.constant 0 : index
    %159 = vector.load %arg29[%c0_163, %c0_164] : memref<36x512xbf16, #tpu.memory_space<vmem>>, vector<1x64xbf16>
    tpu.vector_store %arg29[%c0_163, %c0_164], %158 {strides = array<i32>} : memref<36x512xbf16, #tpu.memory_space<vmem>>, vector<1x64xbf16>,
    %c19_165 = arith.constant 19 : index
    %c0_166 = arith.constant 0 : index
    %160 = vector.load %arg29[%c19_165, %c0_166] : memref<36x512xbf16, #tpu.memory_space<vmem>>, vector<1x64xbf16>
    tpu.vector_store %arg29[%c19_165, %c0_166], %158 {strides = array<i32>} : memref<36x512xbf16, #tpu.memory_space<vmem>>, vector<1x64xbf16>,
    %cst_167 = arith.constant 0.000000e+00 : bf16
    %161 = vector.broadcast %cst_167 : bf16 to vector<12x64xbf16>
    %c0_168 = arith.constant 0 : index
    %c0_169 = arith.constant 0 : index
    %162 = vector.load %arg30[%c0_168, %c0_169] : memref<36x512xbf16, #tpu.memory_space<vmem>>, vector<12x64xbf16>
    tpu.vector_store %arg30[%c0_168, %c0_169], %161 {strides = array<i32>} : memref<36x512xbf16, #tpu.memory_space<vmem>>, vector<12x64xbf16>,
    %c1_170 = arith.constant 1 : index
    %c0_171 = arith.constant 0 : index
    %163 = vector.load %arg29[%c1_170, %c0_171] : memref<36x512xbf16, #tpu.memory_space<vmem>>, vector<8x64xbf16>
    %164 = vector.shape_cast %163 : vector<8x64xbf16> to vector<4x2x64xbf16>
    %165 = vector.extract_strided_slice %164 {offsets = [0, 0, 0], sizes = [4, 1, 64], strides = [1, 1, 1]} : vector<4x2x64xbf16> to vector<4x1x64xbf16>
    %166 = vector.shape_cast %165 : vector<4x1x64xbf16> to vector<4x64xbf16>
    %167 = vector.extract_strided_slice %164 {offsets = [0, 1, 0], sizes = [4, 1, 64], strides = [1, 1, 1]} : vector<4x2x64xbf16> to vector<4x1x64xbf16>
    %168 = vector.shape_cast %167 : vector<4x1x64xbf16> to vector<4x64xbf16>
    %169 = arith.maximumf %166, %168 : vector<4x64xbf16>
    %c1_172 = arith.constant 1 : index
    %c0_173 = arith.constant 0 : index
    %170 = vector.load %arg30[%c1_172, %c0_173] : memref<36x512xbf16, #tpu.memory_space<vmem>>, vector<4x64xbf16>
    tpu.vector_store %arg30[%c1_172, %c0_173], %169 {strides = array<i32>} : memref<36x512xbf16, #tpu.memory_space<vmem>>, vector<4x64xbf16>,
    %c11_174 = arith.constant 11 : index
    %c0_175 = arith.constant 0 : index
    %171 = vector.load %arg29[%c11_174, %c0_175] : memref<36x512xbf16, #tpu.memory_space<vmem>>, vector<8x64xbf16>
    %172 = vector.shape_cast %171 : vector<8x64xbf16> to vector<4x2x64xbf16>
    %173 = vector.extract_strided_slice %172 {offsets = [0, 0, 0], sizes = [4, 1, 64], strides = [1, 1, 1]} : vector<4x2x64xbf16> to vector<4x1x64xbf16>
    %174 = vector.shape_cast %173 : vector<4x1x64xbf16> to vector<4x64xbf16>
    %175 = vector.extract_strided_slice %172 {offsets = [0, 1, 0], sizes = [4, 1, 64], strides = [1, 1, 1]} : vector<4x2x64xbf16> to vector<4x1x64xbf16>
    %176 = vector.shape_cast %175 : vector<4x1x64xbf16> to vector<4x64xbf16>
    %177 = arith.maximumf %174, %176 : vector<4x64xbf16>
    %c7 = arith.constant 7 : index
    %c0_176 = arith.constant 0 : index
    %178 = vector.load %arg30[%c7, %c0_176] : memref<36x512xbf16, #tpu.memory_space<vmem>>, vector<4x64xbf16>
    tpu.vector_store %arg30[%c7, %c0_176], %177 {strides = array<i32>} : memref<36x512xbf16, #tpu.memory_space<vmem>>, vector<4x64xbf16>,
    %c0_177 = arith.constant 0 : index
    %c0_178 = arith.constant 0 : index
    %179 = vector.load %arg26[%c0_177, %c0_178] : memref<10x1xf32, #tpu.memory_space<vmem>>, vector<10x1xf32>
    %c0_179 = arith.constant 0 : index
    %c0_180 = arith.constant 0 : index
    %180 = vector.load %arg30[%c0_179, %c0_180] : memref<36x512xbf16, #tpu.memory_space<vmem>>, vector<10x64xbf16>
    %c0_181 = arith.constant 0 : index
    %c0_182 = arith.constant 0 : index
    %c0_183 = arith.constant 0 : index
    %181 = vector.load %arg12[%c0_181, %c0_182, %c0_183] : memref<3x64x128xbf16, #tpu.memory_space<vmem>>, vector<1x64x128xbf16>
    %182 = vector.shape_cast %181 : vector<1x64x128xbf16> to vector<64x128xbf16>
    %cst_184 = arith.constant dense<0.000000e+00> : vector<10x128xf32>
    %183 = tpu.matmul %180, %182, %cst_184 {dimension_numbers = #tpu.dot_dimension_numbers<[1], [0], [0], [1], [0, 0, 1, 1], [], []>} : vector<10x64xbf16>, vector<64x128xbf16>, vector<10x128xf32> -> vector<10x128xf32>
    %c1_185 = arith.constant 1 : index
    %c0_186 = arith.constant 0 : index
    %184 = vector.load %arg30[%c1_185, %c0_186] : memref<36x512xbf16, #tpu.memory_space<vmem>>, vector<10x64xbf16>
    %c1_187 = arith.constant 1 : index
    %c0_188 = arith.constant 0 : index
    %c0_189 = arith.constant 0 : index
    %185 = vector.load %arg12[%c1_187, %c0_188, %c0_189] : memref<3x64x128xbf16, #tpu.memory_space<vmem>>, vector<1x64x128xbf16>
    %186 = vector.shape_cast %185 : vector<1x64x128xbf16> to vector<64x128xbf16>
    %cst_190 = arith.constant dense<0.000000e+00> : vector<10x128xf32>
    %187 = tpu.matmul %184, %186, %cst_190 {dimension_numbers = #tpu.dot_dimension_numbers<[1], [0], [0], [1], [0, 0, 1, 1], [], []>} : vector<10x64xbf16>, vector<64x128xbf16>, vector<10x128xf32> -> vector<10x128xf32>
    %188 = arith.addf %183, %187 : vector<10x128xf32>
    %c2_191 = arith.constant 2 : index
    %c0_192 = arith.constant 0 : index
    %189 = vector.load %arg30[%c2_191, %c0_192] : memref<36x512xbf16, #tpu.memory_space<vmem>>, vector<10x64xbf16>
    %c2_193 = arith.constant 2 : index
    %c0_194 = arith.constant 0 : index
    %c0_195 = arith.constant 0 : index
    %190 = vector.load %arg12[%c2_193, %c0_194, %c0_195] : memref<3x64x128xbf16, #tpu.memory_space<vmem>>, vector<1x64x128xbf16>
    %191 = vector.shape_cast %190 : vector<1x64x128xbf16> to vector<64x128xbf16>
    %cst_196 = arith.constant dense<0.000000e+00> : vector<10x128xf32>
    %192 = tpu.matmul %189, %191, %cst_196 {dimension_numbers = #tpu.dot_dimension_numbers<[1], [0], [0], [1], [0, 0, 1, 1], [], []>} : vector<10x64xbf16>, vector<64x128xbf16>, vector<10x128xf32> -> vector<10x128xf32>
    %193 = arith.addf %188, %192 : vector<10x128xf32>
    %c0_197 = arith.constant 0 : index
    %c0_198 = arith.constant 0 : index
    %194 = vector.load %arg13[%c0_197, %c0_198] : memref<1x128xf32, #tpu.memory_space<vmem>>, vector<1x128xf32>
    %195 = vector.broadcast %194 : vector<1x128xf32> to vector<10x128xf32>
    %196 = arith.addf %193, %195 : vector<10x128xf32>
    %cst_199 = arith.constant 0.000000e+00 : f32
    %197 = vector.broadcast %cst_199 : f32 to vector<10x128xf32>
    %198 = arith.maximumf %196, %197 : vector<10x128xf32>
    %199 = vector.broadcast %179 : vector<10x1xf32> to vector<10x128xf32>
    %200 = arith.mulf %198, %199 : vector<10x128xf32>
    %201 = arith.truncf %200 : vector<10x128xf32> to vector<10x128xbf16>
    %c1_200 = arith.constant 1 : index
    %c0_201 = arith.constant 0 : index
    %202 = vector.load %arg29[%c1_200, %c0_201] : memref<36x512xbf16, #tpu.memory_space<vmem>>, vector<10x128xbf16>
    tpu.vector_store %arg29[%c1_200, %c0_201], %201 {strides = array<i32>} : memref<36x512xbf16, #tpu.memory_space<vmem>>, vector<10x128xbf16>,
    %cst_202 = arith.constant 0.000000e+00 : bf16
    %203 = vector.broadcast %cst_202 : bf16 to vector<1x128xbf16>
    %c0_203 = arith.constant 0 : index
    %c0_204 = arith.constant 0 : index
    %204 = vector.load %arg29[%c0_203, %c0_204] : memref<36x512xbf16, #tpu.memory_space<vmem>>, vector<1x128xbf16>
    tpu.vector_store %arg29[%c0_203, %c0_204], %203 {strides = array<i32>} : memref<36x512xbf16, #tpu.memory_space<vmem>>, vector<1x128xbf16>,
    %c11_205 = arith.constant 11 : index
    %c0_206 = arith.constant 0 : index
    %205 = vector.load %arg29[%c11_205, %c0_206] : memref<36x512xbf16, #tpu.memory_space<vmem>>, vector<1x128xbf16>
    tpu.vector_store %arg29[%c11_205, %c0_206], %203 {strides = array<i32>} : memref<36x512xbf16, #tpu.memory_space<vmem>>, vector<1x128xbf16>,
    %c0_207 = arith.constant 0 : index
    %c0_208 = arith.constant 0 : index
    %206 = vector.load %arg26[%c0_207, %c0_208] : memref<10x1xf32, #tpu.memory_space<vmem>>, vector<10x1xf32>
    %c0_209 = arith.constant 0 : index
    %c0_210 = arith.constant 0 : index
    %207 = vector.load %arg29[%c0_209, %c0_210] : memref<36x512xbf16, #tpu.memory_space<vmem>>, vector<10x128xbf16>
    %c0_211 = arith.constant 0 : index
    %c0_212 = arith.constant 0 : index
    %c0_213 = arith.constant 0 : index
    %208 = vector.load %arg14[%c0_211, %c0_212, %c0_213] : memref<3x128x128xbf16, #tpu.memory_space<vmem>>, vector<1x128x128xbf16>
    %209 = vector.shape_cast %208 : vector<1x128x128xbf16> to vector<128x128xbf16>
    %cst_214 = arith.constant dense<0.000000e+00> : vector<10x128xf32>
    %210 = tpu.matmul %207, %209, %cst_214 {dimension_numbers = #tpu.dot_dimension_numbers<[1], [0], [0], [1], [0, 0, 1, 1], [], []>} : vector<10x128xbf16>, vector<128x128xbf16>, vector<10x128xf32> -> vector<10x128xf32>
    %c1_215 = arith.constant 1 : index
    %c0_216 = arith.constant 0 : index
    %211 = vector.load %arg29[%c1_215, %c0_216] : memref<36x512xbf16, #tpu.memory_space<vmem>>, vector<10x128xbf16>
    %c1_217 = arith.constant 1 : index
    %c0_218 = arith.constant 0 : index
    %c0_219 = arith.constant 0 : index
    %212 = vector.load %arg14[%c1_217, %c0_218, %c0_219] : memref<3x128x128xbf16, #tpu.memory_space<vmem>>, vector<1x128x128xbf16>
    %213 = vector.shape_cast %212 : vector<1x128x128xbf16> to vector<128x128xbf16>
    %cst_220 = arith.constant dense<0.000000e+00> : vector<10x128xf32>
    %214 = tpu.matmul %211, %213, %cst_220 {dimension_numbers = #tpu.dot_dimension_numbers<[1], [0], [0], [1], [0, 0, 1, 1], [], []>} : vector<10x128xbf16>, vector<128x128xbf16>, vector<10x128xf32> -> vector<10x128xf32>
    %215 = arith.addf %210, %214 : vector<10x128xf32>
    %c2_221 = arith.constant 2 : index
    %c0_222 = arith.constant 0 : index
    %216 = vector.load %arg29[%c2_221, %c0_222] : memref<36x512xbf16, #tpu.memory_space<vmem>>, vector<10x128xbf16>
    %c2_223 = arith.constant 2 : index
    %c0_224 = arith.constant 0 : index
    %c0_225 = arith.constant 0 : index
    %217 = vector.load %arg14[%c2_223, %c0_224, %c0_225] : memref<3x128x128xbf16, #tpu.memory_space<vmem>>, vector<1x128x128xbf16>
    %218 = vector.shape_cast %217 : vector<1x128x128xbf16> to vector<128x128xbf16>
    %cst_226 = arith.constant dense<0.000000e+00> : vector<10x128xf32>
    %219 = tpu.matmul %216, %218, %cst_226 {dimension_numbers = #tpu.dot_dimension_numbers<[1], [0], [0], [1], [0, 0, 1, 1], [], []>} : vector<10x128xbf16>, vector<128x128xbf16>, vector<10x128xf32> -> vector<10x128xf32>
    %220 = arith.addf %215, %219 : vector<10x128xf32>
    %c0_227 = arith.constant 0 : index
    %c0_228 = arith.constant 0 : index
    %221 = vector.load %arg15[%c0_227, %c0_228] : memref<1x128xf32, #tpu.memory_space<vmem>>, vector<1x128xf32>
    %222 = vector.broadcast %221 : vector<1x128xf32> to vector<10x128xf32>
    %223 = arith.addf %220, %222 : vector<10x128xf32>
    %cst_229 = arith.constant 0.000000e+00 : f32
    %224 = vector.broadcast %cst_229 : f32 to vector<10x128xf32>
    %225 = arith.maximumf %223, %224 : vector<10x128xf32>
    %226 = vector.broadcast %206 : vector<10x1xf32> to vector<10x128xf32>
    %227 = arith.mulf %225, %226 : vector<10x128xf32>
    %228 = arith.truncf %227 : vector<10x128xf32> to vector<10x128xbf16>
    %c1_230 = arith.constant 1 : index
    %c0_231 = arith.constant 0 : index
    %229 = vector.load %arg30[%c1_230, %c0_231] : memref<36x512xbf16, #tpu.memory_space<vmem>>, vector<10x128xbf16>
    tpu.vector_store %arg30[%c1_230, %c0_231], %228 {strides = array<i32>} : memref<36x512xbf16, #tpu.memory_space<vmem>>, vector<10x128xbf16>,
    %cst_232 = arith.constant 0.000000e+00 : bf16
    %230 = vector.broadcast %cst_232 : bf16 to vector<1x128xbf16>
    %c0_233 = arith.constant 0 : index
    %c0_234 = arith.constant 0 : index
    %231 = vector.load %arg30[%c0_233, %c0_234] : memref<36x512xbf16, #tpu.memory_space<vmem>>, vector<1x128xbf16>
    tpu.vector_store %arg30[%c0_233, %c0_234], %230 {strides = array<i32>} : memref<36x512xbf16, #tpu.memory_space<vmem>>, vector<1x128xbf16>,
    %c11_235 = arith.constant 11 : index
    %c0_236 = arith.constant 0 : index
    %232 = vector.load %arg30[%c11_235, %c0_236] : memref<36x512xbf16, #tpu.memory_space<vmem>>, vector<1x128xbf16>
    tpu.vector_store %arg30[%c11_235, %c0_236], %230 {strides = array<i32>} : memref<36x512xbf16, #tpu.memory_space<vmem>>, vector<1x128xbf16>,
    %cst_237 = arith.constant 0.000000e+00 : bf16
    %233 = vector.broadcast %cst_237 : bf16 to vector<8x128xbf16>
    %c0_238 = arith.constant 0 : index
    %c0_239 = arith.constant 0 : index
    %234 = vector.load %arg29[%c0_238, %c0_239] : memref<36x512xbf16, #tpu.memory_space<vmem>>, vector<8x128xbf16>
    tpu.vector_store %arg29[%c0_238, %c0_239], %233 {strides = array<i32>} : memref<36x512xbf16, #tpu.memory_space<vmem>>, vector<8x128xbf16>,
    %c1_240 = arith.constant 1 : index
    %c0_241 = arith.constant 0 : index
    %235 = vector.load %arg30[%c1_240, %c0_241] : memref<36x512xbf16, #tpu.memory_space<vmem>>, vector<4x128xbf16>
    %236 = vector.shape_cast %235 : vector<4x128xbf16> to vector<2x2x128xbf16>
    %237 = vector.extract_strided_slice %236 {offsets = [0, 0, 0], sizes = [2, 1, 128], strides = [1, 1, 1]} : vector<2x2x128xbf16> to vector<2x1x128xbf16>
    %238 = vector.shape_cast %237 : vector<2x1x128xbf16> to vector<2x128xbf16>
    %239 = vector.extract_strided_slice %236 {offsets = [0, 1, 0], sizes = [2, 1, 128], strides = [1, 1, 1]} : vector<2x2x128xbf16> to vector<2x1x128xbf16>
    %240 = vector.shape_cast %239 : vector<2x1x128xbf16> to vector<2x128xbf16>
    %241 = arith.maximumf %238, %240 : vector<2x128xbf16>
    %c1_242 = arith.constant 1 : index
    %c0_243 = arith.constant 0 : index
    %242 = vector.load %arg29[%c1_242, %c0_243] : memref<36x512xbf16, #tpu.memory_space<vmem>>, vector<2x128xbf16>
    tpu.vector_store %arg29[%c1_242, %c0_243], %241 {strides = array<i32>} : memref<36x512xbf16, #tpu.memory_space<vmem>>, vector<2x128xbf16>,
    %c7_244 = arith.constant 7 : index
    %c0_245 = arith.constant 0 : index
    %243 = vector.load %arg30[%c7_244, %c0_245] : memref<36x512xbf16, #tpu.memory_space<vmem>>, vector<4x128xbf16>
    %244 = vector.shape_cast %243 : vector<4x128xbf16> to vector<2x2x128xbf16>
    %245 = vector.extract_strided_slice %244 {offsets = [0, 0, 0], sizes = [2, 1, 128], strides = [1, 1, 1]} : vector<2x2x128xbf16> to vector<2x1x128xbf16>
    %246 = vector.shape_cast %245 : vector<2x1x128xbf16> to vector<2x128xbf16>
    %247 = vector.extract_strided_slice %244 {offsets = [0, 1, 0], sizes = [2, 1, 128], strides = [1, 1, 1]} : vector<2x2x128xbf16> to vector<2x1x128xbf16>
    %248 = vector.shape_cast %247 : vector<2x1x128xbf16> to vector<2x128xbf16>
    %249 = arith.maximumf %246, %248 : vector<2x128xbf16>
    %c5 = arith.constant 5 : index
    %c0_246 = arith.constant 0 : index
    %250 = vector.load %arg29[%c5, %c0_246] : memref<36x512xbf16, #tpu.memory_space<vmem>>, vector<2x128xbf16>
    tpu.vector_store %arg29[%c5, %c0_246], %249 {strides = array<i32>} : memref<36x512xbf16, #tpu.memory_space<vmem>>, vector<2x128xbf16>,
    %c0_247 = arith.constant 0 : index
    %c0_248 = arith.constant 0 : index
    %251 = vector.load %arg27[%c0_247, %c0_248] : memref<6x1xf32, #tpu.memory_space<vmem>>, vector<6x1xf32>
    %c0_249 = arith.constant 0 : index
    %c0_250 = arith.constant 0 : index
    %252 = vector.load %arg29[%c0_249, %c0_250] : memref<36x512xbf16, #tpu.memory_space<vmem>>, vector<6x128xbf16>
    %c0_251 = arith.constant 0 : index
    %c0_252 = arith.constant 0 : index
    %c0_253 = arith.constant 0 : index
    %253 = vector.load %arg16[%c0_251, %c0_252, %c0_253] : memref<3x128x256xbf16, #tpu.memory_space<vmem>>, vector<1x128x256xbf16>
    %254 = vector.shape_cast %253 : vector<1x128x256xbf16> to vector<128x256xbf16>
    %cst_254 = arith.constant dense<0.000000e+00> : vector<6x256xf32>
    %255 = tpu.matmul %252, %254, %cst_254 {dimension_numbers = #tpu.dot_dimension_numbers<[1], [0], [0], [1], [0, 0, 1, 1], [], []>} : vector<6x128xbf16>, vector<128x256xbf16>, vector<6x256xf32> -> vector<6x256xf32>
    %c1_255 = arith.constant 1 : index
    %c0_256 = arith.constant 0 : index
    %256 = vector.load %arg29[%c1_255, %c0_256] : memref<36x512xbf16, #tpu.memory_space<vmem>>, vector<6x128xbf16>
    %c1_257 = arith.constant 1 : index
    %c0_258 = arith.constant 0 : index
    %c0_259 = arith.constant 0 : index
    %257 = vector.load %arg16[%c1_257, %c0_258, %c0_259] : memref<3x128x256xbf16, #tpu.memory_space<vmem>>, vector<1x128x256xbf16>
    %258 = vector.shape_cast %257 : vector<1x128x256xbf16> to vector<128x256xbf16>
    %cst_260 = arith.constant dense<0.000000e+00> : vector<6x256xf32>
    %259 = tpu.matmul %256, %258, %cst_260 {dimension_numbers = #tpu.dot_dimension_numbers<[1], [0], [0], [1], [0, 0, 1, 1], [], []>} : vector<6x128xbf16>, vector<128x256xbf16>, vector<6x256xf32> -> vector<6x256xf32>
    %260 = arith.addf %255, %259 : vector<6x256xf32>
    %c2_261 = arith.constant 2 : index
    %c0_262 = arith.constant 0 : index
    %261 = vector.load %arg29[%c2_261, %c0_262] : memref<36x512xbf16, #tpu.memory_space<vmem>>, vector<6x128xbf16>
    %c2_263 = arith.constant 2 : index
    %c0_264 = arith.constant 0 : index
    %c0_265 = arith.constant 0 : index
    %262 = vector.load %arg16[%c2_263, %c0_264, %c0_265] : memref<3x128x256xbf16, #tpu.memory_space<vmem>>, vector<1x128x256xbf16>
    %263 = vector.shape_cast %262 : vector<1x128x256xbf16> to vector<128x256xbf16>
    %cst_266 = arith.constant dense<0.000000e+00> : vector<6x256xf32>
    %264 = tpu.matmul %261, %263, %cst_266 {dimension_numbers = #tpu.dot_dimension_numbers<[1], [0], [0], [1], [0, 0, 1, 1], [], []>} : vector<6x128xbf16>, vector<128x256xbf16>, vector<6x256xf32> -> vector<6x256xf32>
    %265 = arith.addf %260, %264 : vector<6x256xf32>
    %c0_267 = arith.constant 0 : index
    %c0_268 = arith.constant 0 : index
    %266 = vector.load %arg17[%c0_267, %c0_268] : memref<1x256xf32, #tpu.memory_space<vmem>>, vector<1x256xf32>
    %267 = vector.broadcast %266 : vector<1x256xf32> to vector<6x256xf32>
    %268 = arith.addf %265, %267 : vector<6x256xf32>
    %cst_269 = arith.constant 0.000000e+00 : f32
    %269 = vector.broadcast %cst_269 : f32 to vector<6x256xf32>
    %270 = arith.maximumf %268, %269 : vector<6x256xf32>
    %271 = vector.broadcast %251 : vector<6x1xf32> to vector<6x256xf32>
    %272 = arith.mulf %270, %271 : vector<6x256xf32>
    %273 = arith.truncf %272 : vector<6x256xf32> to vector<6x256xbf16>
    %c1_270 = arith.constant 1 : index
    %c0_271 = arith.constant 0 : index
    %274 = vector.load %arg30[%c1_270, %c0_271] : memref<36x512xbf16, #tpu.memory_space<vmem>>, vector<6x256xbf16>
    tpu.vector_store %arg30[%c1_270, %c0_271], %273 {strides = array<i32>} : memref<36x512xbf16, #tpu.memory_space<vmem>>, vector<6x256xbf16>,
    %cst_272 = arith.constant 0.000000e+00 : bf16
    %275 = vector.broadcast %cst_272 : bf16 to vector<1x256xbf16>
    %c0_273 = arith.constant 0 : index
    %c0_274 = arith.constant 0 : index
    %276 = vector.load %arg30[%c0_273, %c0_274] : memref<36x512xbf16, #tpu.memory_space<vmem>>, vector<1x256xbf16>
    tpu.vector_store %arg30[%c0_273, %c0_274], %275 {strides = array<i32>} : memref<36x512xbf16, #tpu.memory_space<vmem>>, vector<1x256xbf16>,
    %c7_275 = arith.constant 7 : index
    %c0_276 = arith.constant 0 : index
    %277 = vector.load %arg30[%c7_275, %c0_276] : memref<36x512xbf16, #tpu.memory_space<vmem>>, vector<1x256xbf16>
    tpu.vector_store %arg30[%c7_275, %c0_276], %275 {strides = array<i32>} : memref<36x512xbf16, #tpu.memory_space<vmem>>, vector<1x256xbf16>,
    %c0_277 = arith.constant 0 : index
    %c0_278 = arith.constant 0 : index
    %278 = vector.load %arg27[%c0_277, %c0_278] : memref<6x1xf32, #tpu.memory_space<vmem>>, vector<6x1xf32>
    %c0_279 = arith.constant 0 : index
    %c0_280 = arith.constant 0 : index
    %279 = vector.load %arg30[%c0_279, %c0_280] : memref<36x512xbf16, #tpu.memory_space<vmem>>, vector<6x256xbf16>
    %c0_281 = arith.constant 0 : index
    %c0_282 = arith.constant 0 : index
    %c0_283 = arith.constant 0 : index
    %280 = vector.load %arg18[%c0_281, %c0_282, %c0_283] : memref<3x256x256xbf16, #tpu.memory_space<vmem>>, vector<1x256x256xbf16>
    %281 = vector.shape_cast %280 : vector<1x256x256xbf16> to vector<256x256xbf16>
    %cst_284 = arith.constant dense<0.000000e+00> : vector<6x256xf32>
    %282 = tpu.matmul %279, %281, %cst_284 {dimension_numbers = #tpu.dot_dimension_numbers<[1], [0], [0], [1], [0, 0, 1, 1], [], []>} : vector<6x256xbf16>, vector<256x256xbf16>, vector<6x256xf32> -> vector<6x256xf32>
    %c1_285 = arith.constant 1 : index
    %c0_286 = arith.constant 0 : index
    %283 = vector.load %arg30[%c1_285, %c0_286] : memref<36x512xbf16, #tpu.memory_space<vmem>>, vector<6x256xbf16>
    %c1_287 = arith.constant 1 : index
    %c0_288 = arith.constant 0 : index
    %c0_289 = arith.constant 0 : index
    %284 = vector.load %arg18[%c1_287, %c0_288, %c0_289] : memref<3x256x256xbf16, #tpu.memory_space<vmem>>, vector<1x256x256xbf16>
    %285 = vector.shape_cast %284 : vector<1x256x256xbf16> to vector<256x256xbf16>
    %cst_290 = arith.constant dense<0.000000e+00> : vector<6x256xf32>
    %286 = tpu.matmul %283, %285, %cst_290 {dimension_numbers = #tpu.dot_dimension_numbers<[1], [0], [0], [1], [0, 0, 1, 1], [], []>} : vector<6x256xbf16>, vector<256x256xbf16>, vector<6x256xf32> -> vector<6x256xf32>
    %287 = arith.addf %282, %286 : vector<6x256xf32>
    %c2_291 = arith.constant 2 : index
    %c0_292 = arith.constant 0 : index
    %288 = vector.load %arg30[%c2_291, %c0_292] : memref<36x512xbf16, #tpu.memory_space<vmem>>, vector<6x256xbf16>
    %c2_293 = arith.constant 2 : index
    %c0_294 = arith.constant 0 : index
    %c0_295 = arith.constant 0 : index
    %289 = vector.load %arg18[%c2_293, %c0_294, %c0_295] : memref<3x256x256xbf16, #tpu.memory_space<vmem>>, vector<1x256x256xbf16>
    %290 = vector.shape_cast %289 : vector<1x256x256xbf16> to vector<256x256xbf16>
    %cst_296 = arith.constant dense<0.000000e+00> : vector<6x256xf32>
    %291 = tpu.matmul %288, %290, %cst_296 {dimension_numbers = #tpu.dot_dimension_numbers<[1], [0], [0], [1], [0, 0, 1, 1], [], []>} : vector<6x256xbf16>, vector<256x256xbf16>, vector<6x256xf32> -> vector<6x256xf32>
    %292 = arith.addf %287, %291 : vector<6x256xf32>
    %c0_297 = arith.constant 0 : index
    %c0_298 = arith.constant 0 : index
    %293 = vector.load %arg19[%c0_297, %c0_298] : memref<1x256xf32, #tpu.memory_space<vmem>>, vector<1x256xf32>
    %294 = vector.broadcast %293 : vector<1x256xf32> to vector<6x256xf32>
    %295 = arith.addf %292, %294 : vector<6x256xf32>
    %cst_299 = arith.constant 0.000000e+00 : f32
    %296 = vector.broadcast %cst_299 : f32 to vector<6x256xf32>
    %297 = arith.maximumf %295, %296 : vector<6x256xf32>
    %298 = vector.broadcast %278 : vector<6x1xf32> to vector<6x256xf32>
    %299 = arith.mulf %297, %298 : vector<6x256xf32>
    %300 = arith.truncf %299 : vector<6x256xf32> to vector<6x256xbf16>
    %c1_300 = arith.constant 1 : index
    %c0_301 = arith.constant 0 : index
    %301 = vector.load %arg29[%c1_300, %c0_301] : memref<36x512xbf16, #tpu.memory_space<vmem>>, vector<6x256xbf16>
    tpu.vector_store %arg29[%c1_300, %c0_301], %300 {strides = array<i32>} : memref<36x512xbf16, #tpu.memory_space<vmem>>, vector<6x256xbf16>,
    %cst_302 = arith.constant 0.000000e+00 : bf16
    %302 = vector.broadcast %cst_302 : bf16 to vector<1x256xbf16>
    %c0_303 = arith.constant 0 : index
    %c0_304 = arith.constant 0 : index
    %303 = vector.load %arg29[%c0_303, %c0_304] : memref<36x512xbf16, #tpu.memory_space<vmem>>, vector<1x256xbf16>
    tpu.vector_store %arg29[%c0_303, %c0_304], %302 {strides = array<i32>} : memref<36x512xbf16, #tpu.memory_space<vmem>>, vector<1x256xbf16>,
    %c7_305 = arith.constant 7 : index
    %c0_306 = arith.constant 0 : index
    %304 = vector.load %arg29[%c7_305, %c0_306] : memref<36x512xbf16, #tpu.memory_space<vmem>>, vector<1x256xbf16>
    tpu.vector_store %arg29[%c7_305, %c0_306], %302 {strides = array<i32>} : memref<36x512xbf16, #tpu.memory_space<vmem>>, vector<1x256xbf16>,
    %c0_307 = arith.constant 0 : index
    %c0_308 = arith.constant 0 : index
    %305 = vector.load %arg27[%c0_307, %c0_308] : memref<6x1xf32, #tpu.memory_space<vmem>>, vector<6x1xf32>
    %c0_309 = arith.constant 0 : index
    %c0_310 = arith.constant 0 : index
    %306 = vector.load %arg29[%c0_309, %c0_310] : memref<36x512xbf16, #tpu.memory_space<vmem>>, vector<6x256xbf16>
    %c0_311 = arith.constant 0 : index
    %c0_312 = arith.constant 0 : index
    %c0_313 = arith.constant 0 : index
    %307 = vector.load %arg20[%c0_311, %c0_312, %c0_313] : memref<3x256x512xbf16, #tpu.memory_space<vmem>>, vector<1x256x512xbf16>
    %308 = vector.shape_cast %307 : vector<1x256x512xbf16> to vector<256x512xbf16>
    %cst_314 = arith.constant dense<0.000000e+00> : vector<6x512xf32>
    %309 = tpu.matmul %306, %308, %cst_314 {dimension_numbers = #tpu.dot_dimension_numbers<[1], [0], [0], [1], [0, 0, 1, 1], [], []>} : vector<6x256xbf16>, vector<256x512xbf16>, vector<6x512xf32> -> vector<6x512xf32>
    %c1_315 = arith.constant 1 : index
    %c0_316 = arith.constant 0 : index
    %310 = vector.load %arg29[%c1_315, %c0_316] : memref<36x512xbf16, #tpu.memory_space<vmem>>, vector<6x256xbf16>
    %c1_317 = arith.constant 1 : index
    %c0_318 = arith.constant 0 : index
    %c0_319 = arith.constant 0 : index
    %311 = vector.load %arg20[%c1_317, %c0_318, %c0_319] : memref<3x256x512xbf16, #tpu.memory_space<vmem>>, vector<1x256x512xbf16>
    %312 = vector.shape_cast %311 : vector<1x256x512xbf16> to vector<256x512xbf16>
    %cst_320 = arith.constant dense<0.000000e+00> : vector<6x512xf32>
    %313 = tpu.matmul %310, %312, %cst_320 {dimension_numbers = #tpu.dot_dimension_numbers<[1], [0], [0], [1], [0, 0, 1, 1], [], []>} : vector<6x256xbf16>, vector<256x512xbf16>, vector<6x512xf32> -> vector<6x512xf32>
    %314 = arith.addf %309, %313 : vector<6x512xf32>
    %c2_321 = arith.constant 2 : index
    %c0_322 = arith.constant 0 : index
    %315 = vector.load %arg29[%c2_321, %c0_322] : memref<36x512xbf16, #tpu.memory_space<vmem>>, vector<6x256xbf16>
    %c2_323 = arith.constant 2 : index
    %c0_324 = arith.constant 0 : index
    %c0_325 = arith.constant 0 : index
    %316 = vector.load %arg20[%c2_323, %c0_324, %c0_325] : memref<3x256x512xbf16, #tpu.memory_space<vmem>>, vector<1x256x512xbf16>
    %317 = vector.shape_cast %316 : vector<1x256x512xbf16> to vector<256x512xbf16>
    %cst_326 = arith.constant dense<0.000000e+00> : vector<6x512xf32>
    %318 = tpu.matmul %315, %317, %cst_326 {dimension_numbers = #tpu.dot_dimension_numbers<[1], [0], [0], [1], [0, 0, 1, 1], [], []>} : vector<6x256xbf16>, vector<256x512xbf16>, vector<6x512xf32> -> vector<6x512xf32>
    %319 = arith.addf %314, %318 : vector<6x512xf32>
    %c0_327 = arith.constant 0 : index
    %c0_328 = arith.constant 0 : index
    %320 = vector.load %arg21[%c0_327, %c0_328] : memref<1x512xf32, #tpu.memory_space<vmem>>, vector<1x512xf32>
    %321 = vector.broadcast %320 : vector<1x512xf32> to vector<6x512xf32>
    %322 = arith.addf %319, %321 : vector<6x512xf32>
    %cst_329 = arith.constant 0.000000e+00 : f32
    %323 = vector.broadcast %cst_329 : f32 to vector<6x512xf32>
    %324 = arith.maximumf %322, %323 : vector<6x512xf32>
    %325 = vector.broadcast %305 : vector<6x1xf32> to vector<6x512xf32>
    %326 = arith.mulf %324, %325 : vector<6x512xf32>
    %327 = arith.truncf %326 : vector<6x512xf32> to vector<6x512xbf16>
    %c1_330 = arith.constant 1 : index
    %c0_331 = arith.constant 0 : index
    %328 = vector.load %arg30[%c1_330, %c0_331] : memref<36x512xbf16, #tpu.memory_space<vmem>>, vector<6x512xbf16>
    tpu.vector_store %arg30[%c1_330, %c0_331], %327 {strides = array<i32>} : memref<36x512xbf16, #tpu.memory_space<vmem>>, vector<6x512xbf16>,
    %cst_332 = arith.constant 0.000000e+00 : bf16
    %329 = vector.broadcast %cst_332 : bf16 to vector<1x512xbf16>
    %c0_333 = arith.constant 0 : index
    %c0_334 = arith.constant 0 : index
    %330 = vector.load %arg30[%c0_333, %c0_334] : memref<36x512xbf16, #tpu.memory_space<vmem>>, vector<1x512xbf16>
    tpu.vector_store %arg30[%c0_333, %c0_334], %329 {strides = array<i32>} : memref<36x512xbf16, #tpu.memory_space<vmem>>, vector<1x512xbf16>,
    %c7_335 = arith.constant 7 : index
    %c0_336 = arith.constant 0 : index
    %331 = vector.load %arg30[%c7_335, %c0_336] : memref<36x512xbf16, #tpu.memory_space<vmem>>, vector<1x512xbf16>
    tpu.vector_store %arg30[%c7_335, %c0_336], %329 {strides = array<i32>} : memref<36x512xbf16, #tpu.memory_space<vmem>>, vector<1x512xbf16>,
    %c1_337 = arith.constant 1 : index
    %c0_338 = arith.constant 0 : index
    %332 = vector.load %arg30[%c1_337, %c0_338] : memref<36x512xbf16, #tpu.memory_space<vmem>>, vector<2x512xbf16>
    %333 = arith.extf %332 : vector<2x512xbf16> to vector<2x512xf32>
    %334 = vector.shape_cast %333 : vector<2x512xf32> to vector<1x2x512xf32>
    %335 = vector.extract_strided_slice %334 {offsets = [0, 0, 0], sizes = [1, 1, 512], strides = [1, 1, 1]} : vector<1x2x512xf32> to vector<1x1x512xf32>
    %336 = vector.shape_cast %335 : vector<1x1x512xf32> to vector<1x512xf32>
    %337 = vector.extract_strided_slice %334 {offsets = [0, 1, 0], sizes = [1, 1, 512], strides = [1, 1, 1]} : vector<1x2x512xf32> to vector<1x1x512xf32>
    %338 = vector.shape_cast %337 : vector<1x1x512xf32> to vector<1x512xf32>
    %339 = arith.addf %336, %338 : vector<1x512xf32>
    %340 = arith.truncf %339 : vector<1x512xf32> to vector<1x512xbf16>
    %c0_339 = arith.constant 0 : index
    %c0_340 = arith.constant 0 : index
    %341 = vector.load %arg29[%c0_339, %c0_340] : memref<36x512xbf16, #tpu.memory_space<vmem>>, vector<1x512xbf16>
    tpu.vector_store %arg29[%c0_339, %c0_340], %340 {strides = array<i32>} : memref<36x512xbf16, #tpu.memory_space<vmem>>, vector<1x512xbf16>,
    %c5_341 = arith.constant 5 : index
    %c0_342 = arith.constant 0 : index
    %342 = vector.load %arg30[%c5_341, %c0_342] : memref<36x512xbf16, #tpu.memory_space<vmem>>, vector<2x512xbf16>
    %343 = arith.extf %342 : vector<2x512xbf16> to vector<2x512xf32>
    %344 = vector.shape_cast %343 : vector<2x512xf32> to vector<1x2x512xf32>
    %345 = vector.extract_strided_slice %344 {offsets = [0, 0, 0], sizes = [1, 1, 512], strides = [1, 1, 1]} : vector<1x2x512xf32> to vector<1x1x512xf32>
    %346 = vector.shape_cast %345 : vector<1x1x512xf32> to vector<1x512xf32>
    %347 = vector.extract_strided_slice %344 {offsets = [0, 1, 0], sizes = [1, 1, 512], strides = [1, 1, 1]} : vector<1x2x512xf32> to vector<1x1x512xf32>
    %348 = vector.shape_cast %347 : vector<1x1x512xf32> to vector<1x512xf32>
    %349 = arith.addf %346, %348 : vector<1x512xf32>
    %350 = arith.truncf %349 : vector<1x512xf32> to vector<1x512xbf16>
    %c1_343 = arith.constant 1 : index
    %c0_344 = arith.constant 0 : index
    %351 = vector.load %arg29[%c1_343, %c0_344] : memref<36x512xbf16, #tpu.memory_space<vmem>>, vector<1x512xbf16>
    tpu.vector_store %arg29[%c1_343, %c0_344], %350 {strides = array<i32>} : memref<36x512xbf16, #tpu.memory_space<vmem>>, vector<1x512xbf16>,
    %c0_345 = arith.constant 0 : index
    %c0_346 = arith.constant 0 : index
    %352 = vector.load %arg29[%c0_345, %c0_346] : memref<36x512xbf16, #tpu.memory_space<vmem>>, vector<2x512xbf16>
    %c0_347 = arith.constant 0 : index
    %c0_348 = arith.constant 0 : index
    %c0_349 = arith.constant 0 : index
    %353 = vector.load %arg22[%c0_347, %c0_348, %c0_349] : memref<1x512x128xbf16, #tpu.memory_space<vmem>>, vector<1x512x128xbf16>
    %354 = vector.shape_cast %353 : vector<1x512x128xbf16> to vector<512x128xbf16>
    %cst_350 = arith.constant dense<0.000000e+00> : vector<2x128xf32>
    %355 = tpu.matmul %352, %354, %cst_350 {dimension_numbers = #tpu.dot_dimension_numbers<[1], [0], [0], [1], [0, 0, 1, 1], [], []>} : vector<2x512xbf16>, vector<512x128xbf16>, vector<2x128xf32> -> vector<2x128xf32>
    %c0_351 = arith.constant 0 : index
    %c0_352 = arith.constant 0 : index
    %356 = vector.load %arg23[%c0_351, %c0_352] : memref<1x128xf32, #tpu.memory_space<vmem>>, vector<1x128xf32>
    %357 = vector.broadcast %356 : vector<1x128xf32> to vector<2x128xf32>
    %358 = arith.addf %355, %357 : vector<2x128xf32>
    %c0_353 = arith.constant 0 : index
    %c0_354 = arith.constant 0 : index
    %c0_355 = arith.constant 0 : index
    %359 = vector.load %arg28[%c0_353, %c0_354, %c0_355] : memref<1x2x128xf32, #tpu.memory_space<vmem>>, vector<1x2x128xf32>
    %360 = vector.shape_cast %359 : vector<1x2x128xf32> to vector<2x128xf32>
    %361 = vector.shape_cast %358 : vector<2x128xf32> to vector<1x2x128xf32>
    tpu.vector_store %arg28[%c0_353, %c0_354, %c0_355], %361 {strides = array<i32>} : memref<1x2x128xf32, #tpu.memory_space<vmem>>, vector<1x2x128xf32>,
    return
  }
  func.func @transform_0(%arg0: i32) -> (i32, i32, i32) {
    %c0_i32 = arith.constant 0 : i32
    %c0_i32_0 = arith.constant 0 : i32
    %c0_i32_1 = arith.constant 0 : i32
    return %arg0, %c0_i32, %c0_i32_0 : i32, i32, i32
  }
  func.func @transform_1(%arg0: i32) -> (i32, i32, i32) {
    %c0_i32 = arith.constant 0 : i32
    %c0_i32_0 = arith.constant 0 : i32
    %c0_i32_1 = arith.constant 0 : i32
    %c0_i32_2 = arith.constant 0 : i32
    return %c0_i32, %c0_i32_0, %c0_i32_1 : i32, i32, i32
  }
  func.func @transform_2(%arg0: i32) -> (i32, i32) {
    %c0_i32 = arith.constant 0 : i32
    %c0_i32_0 = arith.constant 0 : i32
    %c0_i32_1 = arith.constant 0 : i32
    return %c0_i32, %c0_i32_0 : i32, i32
  }
  func.func @transform_3(%arg0: i32) -> (i32, i32, i32) {
    %c0_i32 = arith.constant 0 : i32
    %c0_i32_0 = arith.constant 0 : i32
    %c0_i32_1 = arith.constant 0 : i32
    %c0_i32_2 = arith.constant 0 : i32
    return %c0_i32, %c0_i32_0, %c0_i32_1 : i32, i32, i32
  }
  func.func @transform_4(%arg0: i32) -> (i32, i32) {
    %c0_i32 = arith.constant 0 : i32
    %c0_i32_0 = arith.constant 0 : i32
    %c0_i32_1 = arith.constant 0 : i32
    return %c0_i32, %c0_i32_0 : i32, i32
  }
  func.func @transform_5(%arg0: i32) -> (i32, i32, i32) {
    %c0_i32 = arith.constant 0 : i32
    %c0_i32_0 = arith.constant 0 : i32
    %c0_i32_1 = arith.constant 0 : i32
    %c0_i32_2 = arith.constant 0 : i32
    return %c0_i32, %c0_i32_0, %c0_i32_1 : i32, i32, i32
  }
  func.func @transform_6(%arg0: i32) -> (i32, i32) {
    %c0_i32 = arith.constant 0 : i32
    %c0_i32_0 = arith.constant 0 : i32
    %c0_i32_1 = arith.constant 0 : i32
    return %c0_i32, %c0_i32_0 : i32, i32
  }
  func.func @transform_7(%arg0: i32) -> (i32, i32, i32) {
    %c0_i32 = arith.constant 0 : i32
    %c0_i32_0 = arith.constant 0 : i32
    %c0_i32_1 = arith.constant 0 : i32
    %c0_i32_2 = arith.constant 0 : i32
    return %c0_i32, %c0_i32_0, %c0_i32_1 : i32, i32, i32
  }
  func.func @transform_8(%arg0: i32) -> (i32, i32) {
    %c0_i32 = arith.constant 0 : i32
    %c0_i32_0 = arith.constant 0 : i32
    %c0_i32_1 = arith.constant 0 : i32
    return %c0_i32, %c0_i32_0 : i32, i32
  }
  func.func @transform_9(%arg0: i32) -> (i32, i32, i32) {
    %c0_i32 = arith.constant 0 : i32
    %c0_i32_0 = arith.constant 0 : i32
    %c0_i32_1 = arith.constant 0 : i32
    %c0_i32_2 = arith.constant 0 : i32
    return %c0_i32, %c0_i32_0, %c0_i32_1 : i32, i32, i32
  }
  func.func @transform_10(%arg0: i32) -> (i32, i32) {
    %c0_i32 = arith.constant 0 : i32
    %c0_i32_0 = arith.constant 0 : i32
    %c0_i32_1 = arith.constant 0 : i32
    return %c0_i32, %c0_i32_0 : i32, i32
  }
  func.func @transform_11(%arg0: i32) -> (i32, i32, i32) {
    %c0_i32 = arith.constant 0 : i32
    %c0_i32_0 = arith.constant 0 : i32
    %c0_i32_1 = arith.constant 0 : i32
    %c0_i32_2 = arith.constant 0 : i32
    return %c0_i32, %c0_i32_0, %c0_i32_1 : i32, i32, i32
  }
  func.func @transform_12(%arg0: i32) -> (i32, i32) {
    %c0_i32 = arith.constant 0 : i32
    %c0_i32_0 = arith.constant 0 : i32
    %c0_i32_1 = arith.constant 0 : i32
    return %c0_i32, %c0_i32_0 : i32, i32
  }
  func.func @transform_13(%arg0: i32) -> (i32, i32, i32) {
    %c0_i32 = arith.constant 0 : i32
    %c0_i32_0 = arith.constant 0 : i32
    %c0_i32_1 = arith.constant 0 : i32
    %c0_i32_2 = arith.constant 0 : i32
    return %c0_i32, %c0_i32_0, %c0_i32_1 : i32, i32, i32
  }
  func.func @transform_14(%arg0: i32) -> (i32, i32) {
    %c0_i32 = arith.constant 0 : i32
    %c0_i32_0 = arith.constant 0 : i32
    %c0_i32_1 = arith.constant 0 : i32
    return %c0_i32, %c0_i32_0 : i32, i32
  }
  func.func @transform_15(%arg0: i32) -> (i32, i32, i32) {
    %c0_i32 = arith.constant 0 : i32
    %c0_i32_0 = arith.constant 0 : i32
    %c0_i32_1 = arith.constant 0 : i32
    %c0_i32_2 = arith.constant 0 : i32
    return %c0_i32, %c0_i32_0, %c0_i32_1 : i32, i32, i32
  }
  func.func @transform_16(%arg0: i32) -> (i32, i32) {
    %c0_i32 = arith.constant 0 : i32
    %c0_i32_0 = arith.constant 0 : i32
    %c0_i32_1 = arith.constant 0 : i32
    return %c0_i32, %c0_i32_0 : i32, i32
  }
  func.func @transform_17(%arg0: i32) -> (i32, i32, i32) {
    %c0_i32 = arith.constant 0 : i32
    %c0_i32_0 = arith.constant 0 : i32
    %c0_i32_1 = arith.constant 0 : i32
    %c0_i32_2 = arith.constant 0 : i32
    return %c0_i32, %c0_i32_0, %c0_i32_1 : i32, i32, i32
  }
  func.func @transform_18(%arg0: i32) -> (i32, i32) {
    %c0_i32 = arith.constant 0 : i32
    %c0_i32_0 = arith.constant 0 : i32
    %c0_i32_1 = arith.constant 0 : i32
    return %c0_i32, %c0_i32_0 : i32, i32
  }
  func.func @transform_19(%arg0: i32) -> (i32, i32, i32) {
    %c0_i32 = arith.constant 0 : i32
    %c0_i32_0 = arith.constant 0 : i32
    %c0_i32_1 = arith.constant 0 : i32
    %c0_i32_2 = arith.constant 0 : i32
    return %c0_i32, %c0_i32_0, %c0_i32_1 : i32, i32, i32
  }
  func.func @transform_20(%arg0: i32) -> (i32, i32) {
    %c0_i32 = arith.constant 0 : i32
    %c0_i32_0 = arith.constant 0 : i32
    %c0_i32_1 = arith.constant 0 : i32
    return %c0_i32, %c0_i32_0 : i32, i32
  }
  func.func @transform_21(%arg0: i32) -> (i32, i32, i32) {
    %c0_i32 = arith.constant 0 : i32
    %c0_i32_0 = arith.constant 0 : i32
    %c0_i32_1 = arith.constant 0 : i32
    %c0_i32_2 = arith.constant 0 : i32
    return %c0_i32, %c0_i32_0, %c0_i32_1 : i32, i32, i32
  }
  func.func @transform_22(%arg0: i32) -> (i32, i32) {
    %c0_i32 = arith.constant 0 : i32
    %c0_i32_0 = arith.constant 0 : i32
    %c0_i32_1 = arith.constant 0 : i32
    return %c0_i32, %c0_i32_0 : i32, i32
  }
  func.func @transform_23(%arg0: i32) -> (i32, i32) {
    %c0_i32 = arith.constant 0 : i32
    %c0_i32_0 = arith.constant 0 : i32
    %c0_i32_1 = arith.constant 0 : i32
    return %c0_i32, %c0_i32_0 : i32, i32
  }
  func.func @transform_24(%arg0: i32) -> (i32, i32) {
    %c0_i32 = arith.constant 0 : i32
    %c0_i32_0 = arith.constant 0 : i32
    %c0_i32_1 = arith.constant 0 : i32
    return %c0_i32, %c0_i32_0 : i32, i32
  }
  func.func @transform_25(%arg0: i32) -> (i32, i32) {
    %c0_i32 = arith.constant 0 : i32
    %c0_i32_0 = arith.constant 0 : i32
    %c0_i32_1 = arith.constant 0 : i32
    return %c0_i32, %c0_i32_0 : i32, i32
  }
  func.func @transform_26(%arg0: i32) -> (i32, i32) {
    %c0_i32 = arith.constant 0 : i32
    %c0_i32_0 = arith.constant 0 : i32
    %c0_i32_1 = arith.constant 0 : i32
    return %c0_i32, %c0_i32_0 : i32, i32
  }
  func.func @transform_27(%arg0: i32) -> (i32, i32, i32) {
    %c0_i32 = arith.constant 0 : i32
    %c0_i32_0 = arith.constant 0 : i32
    %c0_i32_1 = arith.constant 0 : i32
    return %arg0, %c0_i32, %c0_i32_0 : i32, i32, i32
  }
}

</mosaic_0001>

<bundles_post_ra>
// kernel: unet_3dcnn_encoder.1
= control target key start
LH: loop header
LB: loop body
LE: loop exit
PB: predicated region body
PF: predicated region fallthrough
CT: control target
= control target key end

     0   :  { %s12026_s0 = inlined_call_operand.vmem [shape: bf16[4,16,16], index: 0, kind: input, shape index: {}]   ;;  %s12027_s1 = inlined_call_operand.vmem [shape: bf16[3,16,16], index: 1, kind: input, shape index: {}]   ;;  %s12028_s2 = inlined_call_operand.hbm [shape: f32[1,16], index: 2, kind: input, shape index: {}]   ;;  %s12029_s3 = inlined_call_operand.hbm [shape: bf16[3,16,32], index: 3, kind: input, shape index: {}]   ;;  %s12030_s4 = inlined_call_operand.hbm [shape: f32[1,32], index: 4, kind: input, shape index: {}]   ;;  %s12031_s5 = inlined_call_operand.vmem [shape: bf16[3,32,32], index: 5, kind: input, shape index: {}]   ;;  %s12032_s6 = inlined_call_operand.hbm [shape: f32[1,32], index: 6, kind: input, shape index: {}]   ;;  %s12033_s7 = inlined_call_operand.hbm [shape: bf16[3,32,64], index: 7, kind: input, shape index: {}]   ;;  %s12034_s8 = inlined_call_operand.hbm [shape: f32[1,64], index: 8, kind: input, shape index: {}]   ;;  %s12035_s9 = inlined_call_operand.vmem [shape: bf16[3,64,64], index: 9, kind: input, shape index: {}]   ;;  %s12036_s10 = inlined_call_operand.hbm [shape: f32[1,64], index: 10, kind: input, shape index: {}]   ;;  %s12037_s11 = inlined_call_operand.hbm [shape: bf16[3,64,128], index: 11, kind: input, shape index: {}]   ;;  %s12038_s12 = inlined_call_operand.hbm [shape: f32[1,128], index: 12, kind: input, shape index: {}]   ;;  %s12039_s13 = inlined_call_operand.hbm [shape: bf16[3,128,128], index: 13, kind: input, shape index: {}]   ;;  %s12040_s14 = inlined_call_operand.hbm [shape: f32[1,128], index: 14, kind: input, shape index: {}]   ;;  %s12041_s15 = inlined_call_operand.hbm [shape: bf16[3,128,256], index: 15, kind: input, shape index: {}]   ;;  %s12042_s16 = inlined_call_operand.hbm [shape: f32[1,256], index: 16, kind: input, shape index: {}]   ;;  %s12043_s17 = inlined_call_operand.hbm [shape: bf16[3,256,256], index: 17, kind: input, shape index: {}]   ;;  %s12044_s18 = inlined_call_operand.hbm [shape: f32[1,256], index: 18, kind: input, shape index: {}]   ;;  %s12045_s19 = inlined_call_operand.hbm [shape: bf16[3,256,512], index: 19, kind: input, shape index: {}]   ;;  %s12046_s20 = inlined_call_operand.hbm [shape: f32[1,512], index: 20, kind: input, shape index: {}]   ;;  %s12047_s21 = inlined_call_operand.hbm [shape: bf16[1,512,128], index: 21, kind: input, shape index: {}]   ;;  %s12048_s22 = inlined_call_operand.hbm [shape: f32[1,128], index: 22, kind: input, shape index: {}]   ;;  %s12049_s23 = inlined_call_operand.hbm [shape: f32[34,1], index: 23, kind: input, shape index: {}]   ;;  %s12050_s24 = inlined_call_operand.hbm [shape: f32[18,1], index: 24, kind: input, shape index: {}]   ;;  %s12051_s25 = inlined_call_operand.vmem [shape: f32[10,1], index: 25, kind: input, shape index: {}]   ;;  %s12052_s26 = inlined_call_operand.hbm [shape: f32[6,1], index: 26, kind: input, shape index: {}]   ;;  %s12053_s27 = inlined_call_operand.hbm [shape: f32[2,2,128], index: 27, kind: output, shape index: {}]  }
   0x1   :  { %12086 = sst [smem:[#allocation62_spill]] %s12026_s0 }
   0x2   :  { %12087 = sst [smem:[#allocation63_spill]] %s12027_s1 }
   0x3   :  { %12088 = sst [smem:[#allocation64_spill]] %s12028_s2 }
   0x4   :  { %12089 = sst [smem:[#allocation65_spill]] %s12029_s3 }
   0x5   :  { %12090 = sst [smem:[#allocation66_spill]] %s12030_s4 }
   0x6   :  { %12091 = sst [smem:[#allocation67_spill]] %s12031_s5 }
   0x7   :  { %12092 = sst [smem:[#allocation68_spill]] %s12032_s6 }
   0x8   :  { %12093 = sst [smem:[#allocation69_spill]] %s12033_s7 }
   0x9   :  { %12094 = sst [smem:[#allocation70_spill]] %s12034_s8 }
   0xa   :  { %12095 = sst [smem:[#allocation71_spill]] %s12035_s9 }
   0xb   :  { %12096 = sst [smem:[#allocation72_spill]] %s12036_s10 }
   0xc   :  { %12097 = sst [smem:[#allocation73_spill]] %s12037_s11 }
   0xd   :  { %12098 = sst [smem:[#allocation74_spill]] %s12039_s13 }
   0xe   :  { %12099 = sst [smem:[#allocation75_spill]] %s12051_s25 }
   0xf   :  { %12100 = sst [smem:[#allocation76_spill]] %s12052_s26 }
  0x10   :  { %12101 = sst [smem:[#allocation77_spill]] %s12053_s27 }
  0x11   :  { %32 = vsyncpa [#allocation5], 0 }
  0x12   :  { %33 = vsyncpa [#allocation8], 0 }
  0x13   :  { %34 = vsyncpa [#allocation11], 0 }
  0x14   :  { %35 = vsyncpa [#allocation14], 0 }
  0x15   :  { %36 = vsyncpa [#allocation17], 0 }
  0x16   :  { %37 = vsyncpa [#allocation20], 0 }
  0x17   :  { %38 = vsyncpa [#allocation23], 0 }
  0x18   :  { %39 = vsyncpa [#allocation26], 0 }
  0x19   :  { %40 = vsyncpa [#allocation29], 0 }
  0x1a   :  { %41 = vsyncpa [#allocation32], 0 }
  0x1b   :  { %42 = vsyncpa [#allocation35], 0 }
  0x1c   :  { %43 = vsyncpa [#allocation38], 0 }
  0x1d   :  { %44 = vsyncpa [#allocation6], 0 }
  0x1e   :  { %46 = vsyncpa [#allocation6 + $0x1], 0  ;;  %s11007_s7 = smov 0   ;;  %s11009_s4 = smov 0  }
  0x1f   :  { %s11011_s8 = smov 0   ;;  %s11013_s30 = smov 0  }
  0x20 LB: > { %12102 = sst [smem:[#allocation53_spill]] %s10824_s7  ;;  %s11028_s9 = sadd.s32 4294967295, %s10836_s30   ;;  %s10836_s30 = sphi %s11013_s30, %s12220_s30   ;;  %s10832_s8 = sphi %s11011_s8, %s12223_s8   ;;  %s10828_s4 = sphi %s11009_s4, %s12222_s4   ;;  %s10824_s7 = sphi %s11007_s7, %s12221_s7  }
  0x21   : > { %12103 = sst [smem:[#allocation54_spill]] %s10828_s4  ;;  %s7525_s5 = sadd.s32 4294967294, %s10836_s30  }
  0x22   : > { %12104 = sst [smem:[#allocation55_spill]] %s10832_s8  ;;  %s11032_s28 = sadd.s32 1, %s10836_s30  }
  0x23   : > { %12105 = sst [smem:[#allocation56_spill]] %s10836_s30  ;;  %s631_s0 = sadd.s32 1, %s10832_s8 }
  0x24   : > { %12106 = sst [smem:[#allocation57_spill]] %s11032_s28  ;;  %s628_s10 = ssub.s32 %s10836_s30, %s11032_s28 }
  0x25   : > { %p641_p0 = scmp.ne.s32.totalorder %s10832_s8, %s10828_s4  ;;  %p629_p1 = scmp.eq.s32.totalorder %s628_s10, 0 }
  0x26   : > { %p642_p2 = scmp.eq.s32.totalorder %s11028_s9, 1  ;;  %p647_p3 = scmp.ne.s32.totalorder %s10828_s4, %s10824_s7 }
  0x27   : > { %p648_p4 = scmp.eq.s32.totalorder %s7525_s5, 1  ;;  %p7526_p7 = scmp.ge.s32.totalorder %s10836_s30, 1 }
  0x28   : > { %s11043_s29 = scalar_select %p629_p1, %s10832_s8, %s631_s0  }
  0x29   : > { %p11045_p5 = por %p642_p2, %p641_p0  ;;  %p11049_p6 = por %p648_p4, %p647_p3 }
  0x2a   : > { %12107 = sst [smem:[#allocation58_spill]] %s11043_s29  ;;  %p655_p8 = scmp.lt.s32.totalorder %s10836_s30, 3 }
  0x2b   : > { %s12108_s1 = scalar_select %p11045_p5, 1, 0 }
  0x2c   : > { %s12110_s6 = scalar_select %p11049_p6, 1, 0 }
  0x2d   : > { %12109 = sst [smem:[#allocation59_spill]] %s12108_s1  ;;  %p11055_p9 = pnand %p7526_p7, %p655_p8 }
  0x2e   : > { %12111 = sst [smem:[#allocation60_spill]] %s12110_s6  ;;  %p9993_p10 = scmp.eq.s32.totalorder (!%p11055_p9), %s11028_s9, 0 }
  0x2f   : > { %s12112_s11 = scalar_select %p11055_p9, 1, 0 }
  0x30   : > { %659 = sbr.rel (%p11055_p9) target bundleno = 115 (0x73), region = 12  ;;  %s12114_s5 = sld [smem:[#allocation65_spill]] (!%p11055_p9) }
  0x31   : > { %12113 = sst [smem:[#allocation61_spill]] %s12112_s11  ;;  %s10838_s10 = smov (!%p11055_p9), [#allocation7]  }
  0x32   : > { %s683_s29 = sshll.u32 (!%p11055_p9), %s10838_s10, 4  ;;  %s12069_s8 = smov (!%p11055_p9), 64   ;;  %s684_s29 = int_to_ptr.vmem [resolvable:$true] %s683_s29 }
  0x33   : > { %s12073_s28 = smov (!%p11055_p9), 4   ;;  %s12115_s30 = sld [smem:[#allocation68_spill]] (!%p11055_p9) }
  0x34   : > { %s10841_s27 = smov (!%p11055_p9), [#allocation10]   ;;  %s12116_s10 = sld [smem:[#allocation70_spill]] (!%p11055_p9) }
  0x35   : > { %s713_s2 = sshll.u32 %s10841_s27, 4  ;;  %s10842_s25 = smov [#allocation13]   ;;  %s714_s2 = int_to_ptr.vmem [resolvable:$true] %s713_s2 }
  0x36   : > { %s681_s0 = sshll.u32 %s12114_s5, 4  ;;  %s739_s11 = sshll.u32 %s10842_s25, 4  ;;  %s682_s0 = int_to_ptr.hbm [resolvable:$true] %s681_s0  ;;  %s740_s11 = int_to_ptr.vmem [resolvable:$true] %s739_s11 }
  0x37   : > { %9902 = dma.hbm_to_vmem [thread:$0]  (%p9993_p10), %s682_s0, 384, %s684_s29, [#allocation8], %s12069_s8, %s12069_s8, %s12073_s28  }
  0x38   : > { %s12117_s0 = sld [smem:[#allocation73_spill]]  ;;  %s10843_s3 = smov [#allocation16]  }
  0x39   : > { %s711_s1 = sshll.u32 %s12115_s30, 4  ;;  %s12118_s13 = sld [smem:[#allocation74_spill]]  ;;  %s712_s1 = int_to_ptr.hbm [resolvable:$true] %s711_s1 }
  0x3a   : > { %s737_s4 = sshll.u32 %s12116_s10, 4  ;;  %s765_s5 = sshll.u32 %s10843_s3, 4  ;;  %s738_s4 = int_to_ptr.hbm [resolvable:$true] %s737_s4  ;;  %s766_s5 = int_to_ptr.vmem [resolvable:$true] %s765_s5 }
  0x3b   : > { %9906 = dma.hbm_to_vmem [thread:$0]  (%p9993_p10), %s712_s1, 16, %s714_s2, [#allocation11]  }
  0x3c   : > { %9910 = dma.hbm_to_vmem [thread:$0]  (%p9993_p10), %s738_s4, 16, %s740_s11, [#allocation14]  }
  0x3d   : > { %s10844_s25 = smov [#allocation19]   ;;  %s815_s4 = sshll.u32 %s12041_s15, 4  ;;  %s816_s4 = int_to_ptr.hbm [resolvable:$true] %s815_s4 }
  0x3e   : > { %s763_s7 = sshll.u32 %s12117_s0, 4  ;;  %s791_s26 = sshll.u32 %s10844_s25, 4  ;;  %s764_s7 = int_to_ptr.hbm [resolvable:$true] %s763_s7  ;;  %s792_s26 = int_to_ptr.vmem [resolvable:$true] %s791_s26 }
  0x3f   : > { %s789_s6 = sshll.u32 %s12118_s13, 4  ;;  %s10845_s11 = smov [#allocation22]   ;;  %s790_s6 = int_to_ptr.hbm [resolvable:$true] %s789_s6 }
  0x40   : > { %9914 = dma.hbm_to_vmem [thread:$0]  (%p9993_p10), %s764_s7, 1536, %s766_s5, [#allocation17], %s12069_s8, %s12069_s8, %s12073_s28  }
  0x41   : > { %9918 = dma.hbm_to_vmem [thread:$0]  (%p9993_p10), %s790_s6, 3072, %s792_s26, [#allocation20], %s12069_s8, %s12069_s8, %s12073_s28  }
  0x42   : > { %s817_s10 = sshll.u32 %s10845_s11, 4  ;;  %s841_s7 = sshll.u32 %s12043_s17, 4  ;;  %s818_s10 = int_to_ptr.vmem [resolvable:$true] %s817_s10  ;;  %s842_s7 = int_to_ptr.hbm [resolvable:$true] %s841_s7 }
  0x43   : > { %s12071_s27 = smov 128   ;;  %s10847_s30 = smov 8  }
  0x44   : > { %9922 = dma.hbm_to_vmem [thread:$0]  (%p9993_p10), %s816_s4, 6144, %s818_s10, [#allocation23], %s12071_s27, %s12071_s27, %s10847_s30  }
  0x45   : > { %s10848_s3 = smov [#allocation25]   ;;  %s867_s26 = sshll.u32 %s12045_s19, 4  ;;  %s868_s26 = int_to_ptr.hbm [resolvable:$true] %s867_s26 }
  0x46   : > { %s843_s5 = sshll.u32 %s10848_s3, 4  ;;  %s10849_s1 = smov [#allocation28]   ;;  %s844_s5 = int_to_ptr.vmem [resolvable:$true] %s843_s5 }
  0x47   : > { %9926 = dma.hbm_to_vmem [thread:$0]  (%p9993_p10), %s842_s7, 12288, %s844_s5, [#allocation26], %s12071_s27, %s12071_s27, %s10847_s30  }
  0x48   : > { %s869_s2 = sshll.u32 %s10849_s1, 4  ;;  %s893_s10 = sshll.u32 %s12047_s21, 4  ;;  %s870_s2 = int_to_ptr.vmem [resolvable:$true] %s869_s2  ;;  %s894_s10 = int_to_ptr.hbm [resolvable:$true] %s893_s10 }
  0x49   : > { %s10850_s29 = smov 256   ;;  %s10851_s0 = smov 16  }
  0x4a   : > { %9930 = dma.hbm_to_vmem [thread:$0]  (%p9993_p10), %s868_s26, 24576, %s870_s2, [#allocation29], %s10850_s29, %s10850_s29, %s10851_s0  }
  0x4b   : > { %s10852_s3 = smov [#allocation31]   ;;  %s919_s7 = sshll.u32 %s12049_s23, 4  ;;  %s920_s7 = int_to_ptr.hbm [resolvable:$true] %s919_s7 }
  0x4c   : > { %s895_s25 = sshll.u32 %s10852_s3, 4  ;;  %s12119_s5 = smov 64   ;;  %s896_s25 = int_to_ptr.vmem [resolvable:$true] %s895_s25 }
  0x4d   : > { %9934 = dma.hbm_to_vmem [thread:$0]  (%p9993_p10), %s894_s10, 4096, %s896_s25, [#allocation32], %s12119_s5, %s12119_s5, %s12073_s28  }
  0x4e   : > { %s10853_s1 = smov [#allocation34]   ;;  %s12120_s26 = sld [smem:[#allocation64_spill]] }
  0x4f   : > { %s921_s11 = sshll.u32 %s10853_s1, 4  ;;  %s12121_s8 = smov 128   ;;  %s922_s11 = int_to_ptr.vmem [resolvable:$true] %s921_s11 }
  0x50   : > { %9938 = dma.hbm_to_vmem [thread:$0]  (%p9993_p10), %s920_s7, 640, %s922_s11, [#allocation35], %s12121_s8, %s12121_s8, %s10847_s30  }
  0x51   : > { %s12122_s3 = sld [smem:[#allocation66_spill]]  ;;  %s10854_s13 = smov [#allocation4]  }
  0x52   : > { %s672_s10 = sshll.u32 %s10854_s13, 4  ;;  %s10855_s27 = smov [#allocation9]   ;;  %s673_s10 = int_to_ptr.vmem [resolvable:$true] %s672_s10 }
  0x53   : > { %s698_s25 = sshll.u32 %s10855_s27, 4  ;;  %s12124_s29 = sld [smem:[#allocation72_spill]]  ;;  %s699_s25 = int_to_ptr.vmem [resolvable:$true] %s698_s25 }
  0x54   : > { %s670_s2 = sshll.u32 %s12120_s26, 4  ;;  %s12123_s26 = sld [smem:[#allocation69_spill]]  ;;  %s671_s2 = int_to_ptr.hbm [resolvable:$true] %s670_s2 }
  0x55   : > { %9900 = dma.hbm_to_vmem [thread:$0]  (%p9993_p10), %s671_s2, 16, %s673_s10, [#allocation5]  }
  0x56   : > { %s10856_s13 = smov [#allocation12]   ;;  %s12125_s2 = smov 4  }
  0x57   : > { %s696_s6 = sshll.u32 %s12122_s3, 4  ;;  %s724_s3 = sshll.u32 %s10856_s13, 4  ;;  %s697_s6 = int_to_ptr.hbm [resolvable:$true] %s696_s6  ;;  %s725_s3 = int_to_ptr.vmem [resolvable:$true] %s724_s3 }
  0x58   : > { %9904 = dma.hbm_to_vmem [thread:$0]  (%p9993_p10), %s697_s6, 16, %s699_s25, [#allocation8]  }
  0x59   : > { %s752_s0 = sshll.u32 %s12124_s29, 4  ;;  %s10857_s10 = smov [#allocation15]   ;;  %s753_s0 = int_to_ptr.hbm [resolvable:$true] %s752_s0 }
  0x5a   : > { %s722_s28 = sshll.u32 %s12123_s26, 4  ;;  %s754_s27 = sshll.u32 %s10857_s10, 4  ;;  %s723_s28 = int_to_ptr.hbm [resolvable:$true] %s722_s28  ;;  %s755_s27 = int_to_ptr.vmem [resolvable:$true] %s754_s27 }
  0x5b   : > { %9908 = dma.hbm_to_vmem [thread:$0]  (%p9993_p10), %s723_s28, 768, %s725_s3, [#allocation11], %s12119_s5, %s12119_s5, %s12125_s2  }
  0x5c   : > { %s778_s6 = sshll.u32 %s12038_s12, 4  ;;  %s804_s7 = sshll.u32 %s12040_s14, 4  ;;  %s779_s6 = int_to_ptr.hbm [resolvable:$true] %s778_s6  ;;  %s805_s7 = int_to_ptr.hbm [resolvable:$true] %s804_s7 }
  0x5d   : > { %9912 = dma.hbm_to_vmem [thread:$0]  (%p9993_p10), %s753_s0, 16, %s755_s27, [#allocation14]  }
  0x5e   : > { %s10858_s11 = smov [#allocation18]   ;;  %s10859_s28 = smov [#allocation21]  }
  0x5f   : > { %s780_s29 = sshll.u32 %s10858_s11, 4  ;;  %s806_s5 = sshll.u32 %s10859_s28, 4  ;;  %s781_s29 = int_to_ptr.vmem [resolvable:$true] %s780_s29  ;;  %s807_s5 = int_to_ptr.vmem [resolvable:$true] %s806_s5 }
  0x60   : > { %9916 = dma.hbm_to_vmem [thread:$0]  (%p9993_p10), %s779_s6, 16, %s781_s29, [#allocation17]  }
  0x61   : > { %s830_s2 = sshll.u32 %s12042_s16, 4  ;;  %s856_s27 = sshll.u32 %s12044_s18, 4  ;;  %s831_s2 = int_to_ptr.hbm [resolvable:$true] %s830_s2  ;;  %s857_s27 = int_to_ptr.hbm [resolvable:$true] %s856_s27 }
  0x62   : > { %9920 = dma.hbm_to_vmem [thread:$0]  (%p9993_p10), %s805_s7, 16, %s807_s5, [#allocation20]  }
  0x63   : > { %s10860_s1 = smov [#allocation24]   ;;  %s10861_s6 = smov [#allocation27]  }
  0x64   : > { %s832_s4 = sshll.u32 %s10860_s1, 4  ;;  %s858_s25 = sshll.u32 %s10861_s6, 4  ;;  %s833_s4 = int_to_ptr.vmem [resolvable:$true] %s832_s4  ;;  %s859_s25 = int_to_ptr.vmem [resolvable:$true] %s858_s25 }
  0x65   : > { %9924 = dma.hbm_to_vmem [thread:$0]  (%p9993_p10), %s831_s2, 32, %s833_s4, [#allocation23]  }
  0x66   : > { %s882_s29 = sshll.u32 %s12046_s20, 4  ;;  %s908_s5 = sshll.u32 %s12048_s22, 4  ;;  %s883_s29 = int_to_ptr.hbm [resolvable:$true] %s882_s29  ;;  %s909_s5 = int_to_ptr.hbm [resolvable:$true] %s908_s5 }
  0x67   : > { %9928 = dma.hbm_to_vmem [thread:$0]  (%p9993_p10), %s857_s27, 32, %s859_s25, [#allocation26]  }
  0x68   : > { %s10862_s13 = smov [#allocation30]   ;;  %s10863_s2 = smov [#allocation33]  }
  0x69   : > { %s884_s3 = sshll.u32 %s10862_s13, 4  ;;  %s910_s0 = sshll.u32 %s10863_s2, 4  ;;  %s885_s3 = int_to_ptr.vmem [resolvable:$true] %s884_s3  ;;  %s911_s0 = int_to_ptr.vmem [resolvable:$true] %s910_s0 }
  0x6a   : > { %9932 = dma.hbm_to_vmem [thread:$0]  (%p9993_p10), %s883_s29, 64, %s885_s3, [#allocation29]  }
  0x6b   : > { %s933_s4 = sshll.u32 %s12050_s24, 4  ;;  %s12126_s25 = sld [smem:[#allocation76_spill]]  ;;  %s934_s4 = int_to_ptr.hbm [resolvable:$true] %s933_s4 }
  0x6c   : > { %9936 = dma.hbm_to_vmem [thread:$0]  (%p9993_p10), %s909_s5, 16, %s911_s0, [#allocation32]  }
  0x6d   : > { %s10864_s11 = smov [#allocation36]   ;;  %s10865_s29 = smov [#allocation37]  }
  0x6e   : > { %s935_s7 = sshll.u32 %s10864_s11, 4  ;;  %s953_s28 = sshll.u32 %s10865_s29, 4  ;;  %s936_s7 = int_to_ptr.vmem [resolvable:$true] %s935_s7  ;;  %s954_s28 = int_to_ptr.vmem [resolvable:$true] %s953_s28 }
  0x6f   : > { %9940 = dma.hbm_to_vmem [thread:$0]  (%p9993_p10), %s934_s4, 384, %s936_s7, [#allocation35], %s12121_s8, %s12121_s8, %s10847_s30  }
  0x71   : > { %s951_s26 = sshll.u32 %s12126_s25, 4  ;;  %s952_s26 = int_to_ptr.hbm [resolvable:$true] %s951_s26 }
  0x72   : > { %9942 = dma.hbm_to_vmem [thread:$0]  (%p9993_p10), %s952_s26, 128, %s954_s28, [#allocation38]  }
  0x73 PF: > { %976 = sbr.rel (%p11055_p9) target bundleno = 2528 (0x9e0), region = 128  ;;  %p10015_p11 = scmp.eq.s32.totalorder (!%p11055_p9), %s11028_s9, 0 }
  0x78   : > { %10771 = dma.done.wait (%p10015_p11), [#allocation5], 16  }
  0x79   : > { %10773 = vsyncadd (%p10015_p11), [#allocation5], 4294967280 }
  0x7a   : > { %10775 = dma.done.wait (%p10015_p11), [#allocation8], 400  }
  0x7b   : > { %10777 = vsyncadd (%p10015_p11), [#allocation8], 4294966896 }
  0x7c   : > { %10779 = dma.done.wait (%p10015_p11), [#allocation11], 784  }
  0x7d   : > { %10781 = vsyncadd (%p10015_p11), [#allocation11], 4294966512 }
  0x7e   : > { %10783 = dma.done.wait (%p10015_p11), [#allocation14], 32  }
  0x7f   : > { %10785 = vsyncadd (%p10015_p11), [#allocation14], 4294967264 }
  0x80   : > { %10787 = dma.done.wait (%p10015_p11), [#allocation17], 1552  }
  0x81   : > { %10789 = vsyncadd (%p10015_p11), [#allocation17], 4294965744 }
  0x82   : > { %10791 = dma.done.wait (%p10015_p11), [#allocation20], 3088  }
  0x83   : > { %10793 = vsyncadd (%p10015_p11), [#allocation20], 4294964208 }
  0x84   : > { %10795 = dma.done.wait (%p10015_p11), [#allocation23], 6176  }
  0x85   : > { %10797 = vsyncadd (%p10015_p11), [#allocation23], 4294961120 }
  0x86   : > { %10799 = dma.done.wait (%p10015_p11), [#allocation26], 12320  }
  0x87   : > { %10801 = vsyncadd (%p10015_p11), [#allocation26], 4294954976 }
  0x88   : > { %10803 = dma.done.wait (%p10015_p11), [#allocation29], 24640  }
  0x89   : > { %10805 = vsyncadd (%p10015_p11), [#allocation29], 4294942656 }
  0x8a   : > { %10807 = dma.done.wait (%p10015_p11), [#allocation32], 4112  }
  0x8b   : > { %10809 = vsyncadd (%p10015_p11), [#allocation32], 4294963184 }
  0x8c   : > { %10811 = dma.done.wait (%p10015_p11), [#allocation35], 1024  }
  0x8d   : > { %10813 = vsyncadd (%p10015_p11), [#allocation35], 4294966272 }
  0x8e   : > { %10815 = dma.done.wait (%p10015_p11), [#allocation38], 128  }
  0x8f   : > { %10817 = vsyncadd (%p10015_p11), [#allocation38], 4294967168  ;;  %s11251_s30 = sshll.u32 %s11028_s9, 1  ;;  %vm1163_vm0 = vcmask 125952   ;;  %v10866_v0 = vmov 0   ;;  %s12128_s2 = sld [smem:[#allocation62_spill]] }
  0x90   : > { %10099 = vset.pattern.permute.xlu0 %v10866_v0  ;;  %10100 = vset.pattern.permute.xlu1 %v10866_v0  ;;  %p1156_p12 = scmp.lt.s32.totalorder %s11251_s30, 3  ;;  %1164 = vst.msk [vmem:[#allocation2] sm:$0xf] %vm1163_vm0, %v10866_v0  ;;  %vm12077_vm1 = vsmask.f32 256  ;;  %v11269_v1 = vld [vmem:[#allocation34] sm:$0xff] }
  0x91   : > { %1165 = vst.msk [vmem:[#allocation2 + $0x10] sm:$0xf] %vm1163_vm0, %v10866_v0  ;;  %10101 = vset.pattern.permute.xlu2 %v10866_v0  ;;  %vm1173_vm2 = vsmask.f32 4368  ;;  %v11271_v2 = vld [vmem:[#allocation34 + $0x10] sm:$0xff]  ;;  %1450 = vperm.xlu0 %10099, %v11269_v1   ;;  %s12129_s4 = sld [smem:[#allocation63_spill]] }
  0x92   : > { %s1157_s8 = scalar_select %p1156_p12, %s11251_s30, 3  ;;  %1166 = vst.msk [vmem:[#allocation2 + $0x20] sm:$0xf] %vm1163_vm0, %v10866_v0  ;;  %vm12075_vm3 = vsmask.f32 7938  ;;  %1460 = vperm.xlu1 %10100, %v11271_v2   ;;  %vm1202_vm5 = vcmask 122880   ;;  %vm11301_vm12 = vmor %vm12077_vm1, %vm1173_vm2 }
  0x93   : > { %1167 = vst.msk [vmem:[#allocation2 + $0x30] sm:$0xf] %vm1163_vm0, %v10866_v0  ;;  %vm12074_vm4 = vsmask.f32 1280  ;;  %vm1211_vm6 = vsmask.f32 5392  ;;  %vm11284_vm9 = vmand %vm1202_vm5, %vm12077_vm1 }
  0x94   : > { %s9461_s9 = sshll.u32 %s1157_s8, 3  ;;  %vm12080_vm7 = vsmask.f32 7942  ;;  %vm1235_vm8 = vcmask 125953   ;;  %v11281_v12 = vld [vmem:[#allocation34 + $0x8] sm:$0xff]  ;;  %vm11293_vm10 = vmand %vm1163_vm0, %vm12075_vm3  ;;  %vm1168_vm11 = vcmask 123904  }
  0x95   : > { %s1160_s0 = scalar_lea.vmem %s12128_s2, %s9461_s9  ;;  %v11297_v24 = vld [vmem:[#allocation34 + $0x18] sm:$0xff]  ;;  %vm11309_vm13 = vmand %vm1235_vm8, %vm12080_vm7  ;;  %v1251_v39 = vld [vmem:[#allocation34 + $0x20] sm:$0x3]  ;;  %1169 = vst.msk [vmem:[#allocation2 + $0x40] sm:$0x3] %vm1168_vm11, %v10866_v0  ;;  %vm1306_vm5 = vcmask 130048  }
  0x96   : > { %v1170_v4 = vld [vmem:[%s1160_s0] sm:$0xf]  ;;  %v1171_v5 = vld [vmem:[%s1160_s0 + $0x4] sm:$0xf]  ;;  %v7577_v11 = vld [vmem:[%s1160_s0 + $0x8] sm:$0xf]  ;;  %1470 = vperm.xlu2 %10101, %v1251_v39  }
  0x97   : > { %s12130_s27 = smov %s12129_s4  ;;  %v9463_v3 = vld [vmem:[%s12129_s4] sm:$0xff]  ;;  %v1176_v6 = vshrl.u32 %v1170_v4, 16  ;;  %v1179_v7 = vshll.u32 %v1170_v4, 16  ;;  %v1184_v8 = vshrl.u32 %v1171_v5, 16  ;;  %v1187_v9 = vshll.u32 %v1171_v5, 16  ;;  %vm1212_vm14 = vmor %vm12074_vm4, %vm1211_vm6  ;;  %s12141_s28 = sld [smem:[#allocation75_spill]] }
  0x98   : > { %1362 = vmatpush.bf16.msra.mxu1 %v9463_v3  ;;  %v9465_v10 = vld [vmem:[%s12130_s27 + $0x10] sm:$0xff]  ;;  %v7578_v15 = vld [vmem:[%s1160_s0 + $0xc] sm:$0xf]  ;;  %v1214_v16 = vshrl.u32 %v7577_v11, 16  ;;  %v1217_v17 = vshll.u32 %v7577_v11, 16  ;;  %vm11329_vm15 = vmand %vm1168_vm11, %vm12074_vm4  ;;  %vm12078_vm6 = vcmask 1046528  }
  0x99   : > { %v1178_v13 = vrot.slane %v1176_v6, 7  ;;  %v9464_v18 = vld [vmem:[%s12130_s27 + $0x8] sm:$0xff]  ;;  %v1186_v19 = vrot.slane %v1184_v8, 7  ;;  %1413 = vmatpush.bf16.msra.mxu2 %v9465_v10  ;;  %v1223_v22 = vshrl.u32 %v7578_v15, 16  ;;  %v1226_v23 = vshll.u32 %v7578_v15, 16  ;;  %1455 = vperm.xlu0 %10099, %v11281_v12   ;;  %s12142_s0 = sld [smem:[#allocation67_spill]] }
  0x9a   : > { %v1198_v21 = vld [vmem:[#allocation2] sm:$0xf]  ;;  %v1216_v29 = vrot.slane %v1214_v16, 6  ;;  %v1219_v30 = vrot.slane %v1217_v17, 7  ;;  %1323 = vmatpush.bf16.msra.mxu0 %v9464_v18  ;;  %1465 = vperm.xlu1 %10100, %v11297_v24   ;;  %vm12076_vm8 = vsmask.f32 7424 }
  0x9b   : > { %v1181_v26 = vor.u32 %v1179_v7, %v1178_v13  ;;  %v1182_v27 = vrot.slane %v1178_v13, 4  ;;  %v1204_v28 = vld [vmem:[#allocation2 + $0x20] sm:$0x1]  ;;  %v1189_v31 = vor.u32 %v1187_v9, %v1186_v19  ;;  %v1191_v32 = vrot.slane %v1186_v19, 4  ;;  %v1238_v35 = vld [vmem:[#allocation2 + $0x20] sm:$0xe] }
  0x9c   : > { %v1225_v33 = vrot.slane %v1223_v22, 6  ;;  %v1228_v34 = vrot.slane %v1226_v23, 7  ;;  %v1220_v37 = vor.u32 %v1219_v30, %v1216_v29  ;;  %v1244_v48 = vld [vmem:[#allocation2 + $0x40] sm:$0x3]  ;;  %v2587_v19 = vld [vmem:[#allocation36 + $0x8] sm:$0xff]  ;;  %v2586_v29 = vld [vmem:[#allocation36] sm:$0xff] }
  0x9d   : > { %v1199_v36 = vsel %vm11293_vm10, %v1181_v26, %v1198_v21  ;;  %v1190_v40 = vsel %vm11301_vm12, %v1182_v27, %v1189_v31  ;;  %v1205_v41 = vsel %vm11284_vm9, %v1191_v32, %v1204_v28  ;;  %v1552_v63 = vld [vmem:[#allocation34 + $0x20] sm:$0x3]  ;;  %v2588_v21 = vld [vmem:[#allocation36 + $0x10] sm:$0x3]  ;;  %s12167_s13 = sld [smem:[#allocation71_spill]] }
  0x9e   : > { %1200 = vst [vmem:[#allocation2] sm:$0xf] %v1199_v36  ;;  %v1229_v42 = vor.u32 %v1228_v34, %v1225_v33  ;;  %v1221_v43 = vrot.slane %v1220_v37, 4  ;;  %v1239_v44 = vsel %vm11309_vm13, %v1220_v37, %v1238_v35  ;;  %1748 = vperm.xlu2 %10101, %v11269_v1   ;;  %v1857_v15 = vld [vmem:[#allocation34 + $0x20] sm:$0x3]  ;;  %v3328_v32 = vld [vmem:[%s12141_s28] sm:$0xff] }
  0x9f   : > { %1201 = vst.msk [vmem:[#allocation2 + $0x10] sm:$0xf] %vm1163_vm0, %v1190_v40  ;;  %v3565_v34 = vld [vmem:[%s12141_s28 + $0x8] sm:$0x3]  ;;  %vm1843_vm13 = vcmask 253952   ;;  %s12214_s11 = sld [smem:[#allocation54_spill]] }
  0xa0   : > { %1206 = vst [vmem:[#allocation2 + $0x20] sm:$0x1] %v1205_v41  ;;  %v1231_v45 = vrot.slane %v1229_v42, 4  ;;  %v1230_v46 = vsel %vm1212_vm14, %v1221_v43, %v1229_v42  ;;  %v3998_v35 = vld [vmem:[#allocation37] sm:$0x3f]  ;;  %vm11432_vm14 = vmand %vm1843_vm13, %vm12077_vm1  ;;  %s12215_s9 = sld [smem:[#allocation77_spill]] }
  0xa1   : > { %1240 = vst [vmem:[#allocation2 + $0x20] sm:$0xe] %v1239_v44  ;;  %1753 = vperm.xlu0 %10099, %v11281_v12   ;;  %v5251_v36 = vld [vmem:[#allocation37] sm:$0x3f] }
  0xa2   : > { %1241 = vst.msk [vmem:[#allocation2 + $0x30] sm:$0xf] %vm1163_vm0, %v1230_v46  ;;  %v1245_v51 = vsel %vm11329_vm15, %v1231_v45, %v1244_v48  ;;  %1758 = vperm.xlu1 %10100, %v11271_v2   ;;  %v4439_v37 = vld [vmem:[#allocation37] sm:$0x3f] }
  0xa3   : > { %1246 = vst [vmem:[#allocation2 + $0x40] sm:$0x3] %v1245_v51  ;;  %v11365_v42 = vld [vmem:[#allocation4] ss:$0 sm:$0xff]  ;;  %v9467_v45 = vld [vmem:[#allocation7] sm:$0xff] }
  0xa4   : > { %1661 = vmatpush.bf16.msrb.mxu0 %v9467_v45  ;;  %v8097_v25 = vld [vmem:[#allocation22 + $0x68] sm:$0xf0] }
  0xa5   : > { %v1252_v49 = vld [vmem:[#allocation2] sm:$0xf]  ;;  %s1152_s7 = sand.u32 1, %s12214_s11  }
  0xa6   : > { %v1378_v50 = vld [vmem:[#allocation2] sm:$0xe]  ;;  %v1253_v52 = vld [vmem:[#allocation2 + $0x10] sm:$0xf]  ;;  %v1268_v53 = vunpack.c.l.b16 %v1252_v49  ;;  %1763 = vperm.xlu2 %10101, %v11297_v24   ;;  %s7573_s29 = sshll.u32 %s1152_s7, 1  ;;  %s7249_s3 = scalar_lea.hbm %s12215_s9, %s11251_s30 }
  0xa7   : > { %v1383_v54 = vunpack.c.l.b16 %v1378_v50  ;;  %v1269_v55 = vunpack.c.l.b16 %v1253_v52  ;;  %s1154_s10 = scalar_lea.vmem [#allocation39], %s7573_s29  ;;  %s7253_s4 = sshll.u32 %s7249_s3, 4  ;;  %s7254_s4 = int_to_ptr.hbm [resolvable:$true] %s7253_s4 }
  0xa8   : > { %v7583_v56 = vld [vmem:[#allocation2 + $0x20] sm:$0xf]  ;;  %s7251_s1 = sshll.u32 %s1154_s10, 4  ;;  %s7239_s6 = scalar_lea.sflag [#allocation6], %s1152_s7  ;;  %s7252_s1 = int_to_ptr.vmem [resolvable:$true] %s7251_s1 }
  0xa9   : > { %v1273_v57 = vpack.c.b16 %v1269_v55, %v1268_v53  ;;  %v9462_v58 = vld [vmem:[#allocation2 + $0x2c] sm:$0xf0]  ;;  %v1384_v59 = vpack.c.b16 %v1269_v55, %v1383_v54  ;;  %1768 = vperm.xlu0 %10099, %v1552_v63   ;;  %s10740_s25 = sshra.s32 %s7254_s4, 4  ;;  %s10746_s29 = scalar_lea.hbm %s12215_s9, 4  ;;  %s10741_s25 = int_to_ptr.hbm [resolvable:$true] %s10740_s25 }
  0xaa   : > { %v7584_v60 = vor.u32 %v9462_v58, %v7583_v56  ;;  %v1259_v7 = vld [vmem:[#allocation2 + $0x40] sm:$0x3]  ;;  %2078 = vperm.xlu1 %10100, %v11269_v1   ;;  %s10742_s26 = scalar_lea.hbm %s10741_s25, 2  ;;  %p10747_p2 = scmp.lt.s32.totalorder %s10741_s25, %s12215_s9 }
  0xab   : > { %v1280_v61 = vshll.u32 %v1273_v57, 16  ;;  %7596 = vmatmul.msk.bf16.vlgmr.msra.gmra.mxu1 %vm1306_vm5, %v1273_v57  ;;  %v1386_v62 = vrot.slane %v1384_v59, 1  ;;  %v1278_v3 = vshrl.u32 %v1273_v57, 16  ;;  %v1272_v11 = vunpack.c.l.b16 %v1259_v7  ;;  %p10743_p13 = scmp.ne.s32.totalorder %s10741_s25, %s10742_s26  ;;  %p10748_p3 = scmp.lt.s32.totalorder %s10746_s29, %s10742_s26 }
  0xac   : > { %v1387_v4 = vrot.slane %v7584_v60, 1  ;;  %v1285_v5 = vshll.u32 %v7584_v60, 16  ;;  %v1289_v17 = vshrl.u32 %v7584_v60, 16 }
  0xad   : > { %v1282_v6 = vrot.slane %v1280_v61, 1  ;;  %v1275_v16 = vpack.c.b16 %v1272_v11, %v1272_v11  ;;  %p10744_p0 = pnand %p10743_p13, %p11045_p5  ;;  %p10749_p4 = por %p10748_p3, %p10747_p2 }
  0xae   : > { %v1388_v8 = vsel %vm12078_vm6, %v1386_v62, %v1387_v4  ;;  %v1287_v9 = vrot.slane %v1285_v5, 1  ;;  %2093 = vperm.xlu2 %10101, %v11297_v24   ;;  %v2833_v24 = vld [vmem:[#allocation36 + $0x10] sm:$0x3] }
  0xaf   : > { %7605 = vmatmul.msk.bf16.vlgmr.msra.gmra.mxu2 %vm1306_vm5, %v1388_v8  ;;  %v1283_v10 = vor.u32 %v1282_v6, %v1278_v3  ;;  %v1293_v18 = vshll.u32 %v1275_v16, 16  ;;  %v1389_v1 = vrot.slane %v1275_v16, 1  ;;  %v1297_v31 = vshrl.u32 %v1275_v16, 16  ;;  %v1531_v3 = vld [vmem:[#allocation3] sm:$0xf]  ;;  %p10745_p1 = pneg %p10744_p0 }
  0xb0   : > { %v1291_v22 = vor.u32 %v1289_v17, %v1287_v9 }
  0xb1   : > { %v1288_v13 = vsel %vm12076_vm8, %v1283_v10, %v1287_v9  ;;  %2098 = vperm.xlu0 %10099, %v1857_v15   ;;  %v1295_v23 = vrot.slane %v1293_v18, 1  ;;  %v1390_v26 = vsel %vm12078_vm6, %v1387_v4, %v1389_v1  ;;  %v9468_v18 = vld [vmem:[#allocation7 + $0x8] sm:$0xff]  ;;  %p10750_p7 = pnand %p10749_p4, %p10745_p1 }
  0xb2   : > { %7589 = vmatmul.msk.bf16.vlgmr.msra.gmra.mxu0 %vm1306_vm5, %v1288_v13  ;;  %2083 = vperm.xlu1 %10100, %v11281_v12   ;;  %v1256_v12 = vld [vmem:[#allocation2 + $0x40] sm:$0x1]  ;;  %v9469_v13 = vld [vmem:[#allocation7 + $0x10] sm:$0xff] }
  0xb3   : > { %v1296_v27 = vsel %vm12076_vm8, %v1291_v22, %v1295_v23  ;;  %v1340_v28 = vunpack.c.l.b16 %v1256_v12  ;;  %v1299_v33 = vor.u32 %v1297_v31, %v1295_v23  ;;  %1711 = vmatpush.bf16.msrb.mxu1 %v9469_v13  ;;  %1622 = vmatpush.bf16.msra.mxu3 %v9468_v18 }
  0xb5   : > { %v1341_v30 = vpack.c.b16 %v1340_v28, %v1340_v28 }
  0xb6   : > { %2088 = vperm.xlu2 %10101, %v11271_v2   ;;  %v3329_v2 = vld [vmem:[%s12141_s28 + $0x8] sm:$0x3] }
  0xb9   : > { %2767 = vperm.xlu0 %10099, %v2587_v19  }
  0xba   : > { %2772 = vperm.xlu1 %10100, %v2588_v21  }
  0xbb   : > { %7597 = vmatmul.msk.bf16.gmra.mxu1 %vm1306_vm5, %v7584_v60 }
  0xbe   : > { %2762 = vperm.xlu2 %10101, %v2586_v29  }
  0xbf   : > { %7606 = vmatmul.msk.bf16.gmra.mxu2 %vm1306_vm5, %v1390_v26 }
  0xc1   : > { %3061 = vperm.xlu0 %10099, %v2587_v19  }
  0xc2   : > { %7590 = vmatmul.msk.bf16.gmra.mxu0 %vm1306_vm5, %v1296_v27  ;;  %3066 = vperm.xlu1 %10100, %v2833_v24  }
  0xc6   : > { %3056 = vperm.xlu2 %10101, %v2586_v29  }
  0xc9   : > { %3514 = vperm.xlu0 %10099, %v3328_v32  }
  0xca   : > { %3519 = vperm.xlu1 %10100, %v3329_v2  }
  0xcb   : > { %7598 = vmatmul.msk.bf16.gmra.mxu1 %vm1306_vm5, %v1341_v30 }
  0xce   : > { %3840 = vperm.xlu2 %10101, %v3328_v32  }
  0xcf   : > { %7607 = vmatmul.msk.bf16.gmra.mxu2 %vm1306_vm5, %v1389_v1 }
  0xd1   : > { %3845 = vperm.xlu0 %10099, %v3565_v34  }
  0xd2   : > { %7591 = vmatmul.msk.bf16.gmra.mxu0 %vm1306_vm5, %v1299_v33  ;;  %4400 = vperm.xlu1 %10100, %v3998_v35  }
  0xd6   : > { %5228 = vperm.xlu2 %10101, %v4439_v37  }
  0xd9   : > { %6782 = vperm.xlu0 %10099, %v5251_v36  }
 0x103   : > { %v1451_v48 = vpop.permute.xlu0 %1450 }
 0x104   : > { %v1461_v17 = vpop.permute.xlu1 %1460 }
 0x10b   : > { %v1456_v63 = vpop.permute.xlu0 %1455 }
 0x128   : > { %v1364_v38 = vpop.f32.mrf.mxu1 }
 0x12f   : > { %v1325_v39 = vpop.f32.mrf.mxu0 }
 0x130   : > { %v1365_v40 = vadd.f32 %v1364_v38, %v1325_v39  ;;  %v1366_v41 = vpop.f32.mrf.mxu1  ;;  %v1466_v38 = vpop.permute.xlu1 %1465 }
 0x132   : > { %v1415_v43 = vpop.f32.mrf.mxu2 }
 0x133   : > { %v1429_v44 = vadd.f32 %v1415_v43, %v1365_v40 }
 0x135   : > { %v1438_v46 = vadd.f32 %v11365_v42, %v1429_v44 }
 0x137   : > { %v1443_v49 = vmax.f32 %v1438_v46, 0.0  ;;  %v1327_v50 = vpop.f32.mrf.mxu0 }
 0x138   : > { %v1367_v51 = vadd.f32 %v1366_v41, %v1327_v50  ;;  %v1369_v52 = vpop.f32.mrf.mxu1 }
 0x139   : > { %v1473_v53 = vmul.f32 %v1451_v48, %v1443_v49 }
 0x13a   : > { %v1417_v54 = vpop.f32.mrf.mxu2 }
 0x13b   : > { %v1478_v55 = vpack.c.bf16 %v1473_v53, %v1473_v53  ;;  %v1430_v56 = vadd.f32 %v1417_v54, %v1367_v51 }
 0x13d   : > { %v1484_v57 = vshrl.u32 %v1478_v55, 16  ;;  %v1439_v58 = vadd.f32 %v11365_v42, %v1430_v56  ;;  %v1487_v60 = vshll.u32 %v1478_v55, 16 }
 0x13f   : > { %v1486_v59 = vrot.slane %v1484_v57, 7  ;;  %v1444_v61 = vmax.f32 %v1439_v58, 0.0  ;;  %v1330_v62 = vpop.f32.mrf.mxu0 }
 0x140   : > { %v1370_v4 = vadd.f32 %v1369_v52, %v1330_v62  ;;  %v1371_v5 = vpop.f32.mrf.mxu1 }
 0x141   : > { %v1489_v6 = vor.u32 %v1487_v60, %v1486_v59  ;;  %v1474_v7 = vmul.f32 %v1456_v63, %v1444_v61  ;;  %v1490_v27 = vrot.slane %v1486_v59, 4  ;;  %v1471_v60 = vpop.permute.xlu2 %1470 }
 0x142   : > { %v1420_v8 = vpop.f32.mrf.mxu2 }
 0x143   : > { %v1532_v9 = vsel %vm11293_vm10, %v1489_v6, %v1531_v3  ;;  %v1479_v10 = vpack.c.bf16 %v1474_v7, %v1474_v7  ;;  %v1431_v11 = vadd.f32 %v1420_v8, %v1370_v4  ;;  %vm1829_vm10 = vcmask 257024  }
 0x144   : > { %1533 = vst [vmem:[#allocation3] sm:$0xf] %v1532_v9  ;;  %vm11419_vm11 = vmand %vm1829_vm10, %vm12075_vm3 }
 0x145   : > { %v1492_v15 = vshrl.u32 %v1479_v10, 16  ;;  %v1440_v16 = vadd.f32 %v11365_v42, %v1431_v11  ;;  %v1495_v19 = vshll.u32 %v1479_v10, 16 }
 0x147   : > { %v1494_v1 = vrot.slane %v1492_v15, 7  ;;  %v1445_v21 = vmax.f32 %v1440_v16, 0.0  ;;  %v1332_v22 = vpop.f32.mrf.mxu0  ;;  %v1537_v15 = vld [vmem:[#allocation3 + $0x40] sm:$0x3] }
 0x148   : > { %v1372_v23 = vadd.f32 %v1371_v5, %v1332_v22  ;;  %v1374_v26 = vpop.f32.mrf.mxu1 }
 0x149   : > { %v1497_v20 = vor.u32 %v1495_v19, %v1494_v1  ;;  %v1475_v12 = vmul.f32 %v1461_v17, %v1445_v21  ;;  %v1499_v41 = vrot.slane %v1494_v1, 4 }
 0x14a   : > { %v1422_v24 = vpop.f32.mrf.mxu2 }
 0x14b   : > { %v1540_v28 = vld [vmem:[#allocation3] sm:$0x1]  ;;  %v1498_v29 = vsel %vm11301_vm12, %v1490_v27, %v1497_v20  ;;  %v1480_v30 = vpack.c.bf16 %v1475_v12, %v1475_v12  ;;  %v1432_v31 = vadd.f32 %v1422_v24, %v1372_v23  ;;  %v1677_v6 = vld [vmem:[#allocation3] sm:$0xe] }
 0x14c   : > { %v1541_v32 = vsel %vm11284_vm9, 0, %v1540_v28  ;;  %1534 = vst.msk [vmem:[#allocation3 + $0x10] sm:$0xf] %vm1163_vm0, %v1498_v29  ;;  %v1682_v9 = vunpack.c.l.b16 %v1677_v6 }
 0x14d   : > { %1542 = vst [vmem:[#allocation3] sm:$0x1] %v1541_v32  ;;  %v1501_v2 = vshrl.u32 %v1480_v30, 16  ;;  %v1441_v33 = vadd.f32 %v11365_v42, %v1432_v31  ;;  %v1504_v35 = vshll.u32 %v1480_v30, 16 }
 0x14f   : > { %v1503_v34 = vrot.slane %v1501_v2, 7  ;;  %v1446_v36 = vmax.f32 %v1441_v33, 0.0  ;;  %v1335_v37 = vpop.f32.mrf.mxu0 }
 0x150   : > { %v1375_v39 = vadd.f32 %v1374_v26, %v1335_v37  ;;  %v1376_v40 = vpop.f32.mrf.mxu1 }
 0x151   : > { %v1506_v43 = vor.u32 %v1504_v35, %v1503_v34  ;;  %v1476_v44 = vmul.f32 %v1466_v38, %v1446_v36  ;;  %v1508_v61 = vrot.slane %v1503_v34, 4 }
 0x152   : > { %v1425_v45 = vpop.f32.mrf.mxu2 }
 0x153   : > { %v1507_v14 = vsel %vm11301_vm12, %v1499_v41, %v1506_v43  ;;  %v1481_v46 = vpack.c.bf16 %v1476_v44, %v1476_v44  ;;  %v1433_v48 = vadd.f32 %v1425_v45, %v1375_v39  ;;  %v1554_v49 = vld [vmem:[#allocation3 + $0x10] sm:$0xf] }
 0x154   : > { %1535 = vst.msk [vmem:[#allocation3 + $0x20] sm:$0xf] %vm1163_vm0, %v1507_v14  ;;  %v1553_v50 = vld [vmem:[#allocation3] sm:$0xf]  ;;  %v1570_v51 = vunpack.c.l.b16 %v1554_v49 }
 0x155   : > { %v1510_v52 = vshrl.u32 %v1481_v46, 16  ;;  %v1442_v53 = vadd.f32 %v11365_v42, %v1433_v48  ;;  %v1569_v54 = vunpack.c.l.b16 %v1553_v50  ;;  %v1513_v56 = vshll.u32 %v1481_v46, 16 }
 0x156   : > { %v1683_v16 = vpack.c.b16 %v1570_v51, %v1682_v9 }
 0x157   : > { %v1512_v55 = vrot.slane %v1510_v52, 7  ;;  %v1447_v57 = vmax.f32 %v1442_v53, 0.0  ;;  %v1337_v58 = vpop.f32.mrf.mxu0  ;;  %v1574_v59 = vpack.c.b16 %v1570_v51, %v1569_v54  ;;  %v11405_v53 = vld [vmem:[#allocation9] ss:$0 sm:$0xff]  ;;  %v9472_v54 = vld [vmem:[%s12142_s0 + $0x8] sm:$0xff] }
 0x158   : > { %v1684_v23 = vrot.slane %v1683_v16, 1  ;;  %1982 = vmatpush.bf16.msrb.mxu3 %v9472_v54  ;;  %v9471_v58 = vld [vmem:[%s12142_s0] sm:$0xff] }
 0x159   : > { %v1515_v62 = vor.u32 %v1513_v56, %v1512_v55  ;;  %v1477_v63 = vmul.f32 %v1471_v60, %v1447_v57  ;;  %7623 = vmatmul.msk.bf16.vlgmr.msrb.gmra.mxu0 %vm1306_vm5, %v1574_v59  ;;  %v1580_v10 = vshll.u32 %v1574_v59, 16  ;;  %v1517_v11 = vrot.slane %v1512_v55, 4 }
 0x15a   : > { %v1427_v3 = vpop.f32.mrf.mxu2  ;;  %v1578_v27 = vshrl.u32 %v1574_v59, 16  ;;  %v1749_v59 = vpop.permute.xlu2 %1748 }
 0x15b   : > { %v1516_v4 = vsel %vm11301_vm12, %v1508_v61, %v1515_v62  ;;  %v1482_v5 = vpack.c.bf16 %v1477_v63, %v1477_v63  ;;  %v7610_v18 = vld [vmem:[#allocation3 + $0x20] sm:$0xf]  ;;  %v1582_v22 = vrot.slane %v1580_v10, 1 }
 0x15c   : > { %1536 = vst.msk [vmem:[#allocation3 + $0x30] sm:$0xf] %vm1163_vm0, %v1516_v4  ;;  %vm1543_vm0 = vcmask 123905   ;;  %1983 = vmatpush.bf16.msrb.mxu3 %v9471_v58 }
 0x15d   : > { %v1519_v42 = vshrl.u32 %v1482_v5, 16  ;;  %v1522_v8 = vshll.u32 %v1482_v5, 16  ;;  %v1583_v24 = vor.u32 %v1582_v22, %v1578_v27  ;;  %vm1544_vm9 = vmand %vm1543_vm0, %vm12080_vm7  ;;  %v9476_v27 = vld [vmem:[%s12142_s0 + $0x28] sm:$0xff] }
 0x15e   : > { %2040 = vmatpush.bf16.msra.mxu0 %v9476_v27 }
 0x15f   : > { %v1521_v7 = vrot.slane %v1519_v42, 7 }
 0x161   : > { %v1524_v13 = vor.u32 %v1522_v8, %v1521_v7 }
 0x163   : > { %v1525_v17 = vsel %vm11301_vm12, %v1517_v11, %v1524_v13  ;;  %v9466_v1 = vld [vmem:[#allocation3 + $0x2c] sm:$0xf0]  ;;  %v1754_v11 = vpop.permute.xlu0 %1753  ;;  %v12143_v13 = vmov 0 }
 0x164   : > { %v1538_v19 = vsel %vm11329_vm15, %v1525_v17, %v1537_v15  ;;  %v7611_v21 = vor.u32 %v9466_v1, %v7610_v18  ;;  %v12144_v13 = vsel %vm11419_vm11, 4294967295, %v12143_v13  ;;  %v1831_v15 = vld [vmem:[#allocation2] sm:$0xf]  ;;  %vm12079_vm15 = vcmask 261120  }
 0x165   : > { %1539 = vst [vmem:[#allocation3 + $0x40] sm:$0x3] %v1538_v19 }
 0x166   : > { %v1685_v26 = vrot.slane %v7611_v21, 1  ;;  %v1585_v20 = vshll.u32 %v7611_v21, 16  ;;  %v1589_v37 = vshrl.u32 %v7611_v21, 16 }
 0x168   : > { %v1686_v12 = vsel %vm12078_vm6, %v1684_v23, %v1685_v26  ;;  %v1587_v28 = vrot.slane %v1585_v20, 1 }
 0x169   : > { %7624 = vmatmul.msk.bf16.gmra.mxu0 %vm1306_vm5, %v7611_v21  ;;  %7630 = vmatmul.msk.bf16.vlgmr.msrb.gmra.mxu1 %vm1306_vm5, %v1686_v12 }
 0x16a   : > { %v1588_v47 = vsel %vm12076_vm8, %v1583_v24, %v1587_v28  ;;  %v1591_v40 = vor.u32 %v1589_v37, %v1587_v28  ;;  %v9474_v28 = vld [vmem:[%s12142_s0 + $0x18] sm:$0xff] }
 0x16b   : > { %7616 = vmatmul.msk.bf16.vlgmr.msra.gmra.mxu3 %vm1306_vm5, %v1588_v47  ;;  %1937 = vmatpush.bf16.msrb.mxu2 %v9474_v28 }
 0x16c   : > { %v1545_v29 = vld [vmem:[#allocation3 + $0x40] sm:$0x2]  ;;  %v1557_v31 = vld [vmem:[#allocation3 + $0x40] sm:$0x1] }
 0x16d   : > { %v1546_v30 = vsel %vm1544_vm9, 0, %v1545_v29  ;;  %v1639_v32 = vunpack.c.l.b16 %v1557_v31  ;;  %vm1848_vm9 = vcmask 254977  }
 0x16e   : > { %1547 = vst [vmem:[#allocation3 + $0x40] sm:$0x2] %v1546_v30  ;;  %vm11477_vm13 = vmand %vm1848_vm9, %vm12080_vm7  ;;  %vm2195_vm7 = vcmask 1042434  }
 0x16f   : > { %v1640_v34 = vpack.c.b16 %v1639_v32, %v1639_v32  ;;  %v9475_v32 = vld [vmem:[%s12142_s0 + $0x20] sm:$0xff] }
 0x170   : > { %2041 = vmatpush.bf16.msra.mxu0 %v9475_v32 }
 0x175   : > { %v1560_v2 = vld [vmem:[#allocation3 + $0x40] sm:$0x3] }
 0x176   : > { %v1573_v33 = vunpack.c.l.b16 %v1560_v2  ;;  %v1759_v2 = vpop.permute.xlu1 %1758 }
 0x178   : > { %v1576_v35 = vpack.c.b16 %v1573_v33, %v1573_v33 }
 0x179   : > { %7625 = vmatmul.msk.bf16.gmra.mxu0 %vm1306_vm5, %v1640_v34 }
 0x17a   : > { %v1687_v36 = vrot.slane %v1576_v35, 1  ;;  %v1593_v38 = vshll.u32 %v1576_v35, 16  ;;  %v1597_v44 = vshrl.u32 %v1576_v35, 16 }
 0x17c   : > { %v1688_v39 = vsel %vm12078_vm6, %v1685_v26, %v1687_v36  ;;  %v1595_v41 = vrot.slane %v1593_v38, 1 }
 0x17d   : > { %7631 = vmatmul.msk.bf16.gmra.mxu1 %vm1306_vm5, %v1688_v39 }
 0x17e   : > { %v1596_v43 = vsel %vm12076_vm8, %v1591_v40, %v1595_v41  ;;  %v1599_v45 = vor.u32 %v1597_v44, %v1595_v41 }
 0x17f   : > { %7617 = vmatmul.msk.bf16.gmra.mxu3 %vm1306_vm5, %v1596_v43 }
 0x18d   : > { %7632 = vmatmul.msk.bf16.gmra.mxu1 %vm1306_vm5, %v1687_v36  ;;  %v9473_v36 = vld [vmem:[%s12142_s0 + $0x10] sm:$0xff] }
 0x18e   : > { %1938 = vmatpush.bf16.msrb.mxu2 %v9473_v36 }
 0x18f   : > { %7618 = vmatmul.msk.bf16.gmra.mxu3 %vm1306_vm5, %v1599_v45  ;;  %vm1838_vm5 = vcmask 254976  }
 0x190   : > { %vm11465_vm0 = vmand %vm1838_vm5, %vm12074_vm4  ;;  %vm2220_vm4 = vsmask.f32 2312 }
 0x1d6   : > { %v1663_v14 = vpop.f32.mrf.mxu0 }
 0x1de   : > { %v1665_v46 = vpop.f32.mrf.mxu0 }
 0x1e6   : > { %v1668_v48 = vpop.f32.mrf.mxu0  ;;  %v1713_v49 = vpop.f32.mrf.mxu1 }
 0x1ee   : > { %v1624_v50 = vpop.f32.mrf.mxu3  ;;  %v11403_v51 = vpop.f32.mrf.mxu0 }
 0x1ef   : > { %v1664_v52 = vadd.f32 %v1663_v14, %v1624_v50  ;;  %v1715_v56 = vpop.f32.mrf.mxu1 }
 0x1f1   : > { %v1727_v55 = vadd.f32 %v1713_v49, %v1664_v52 }
 0x1f3   : > { %v1736_v57 = vadd.f32 %v11405_v53, %v1727_v55 }
 0x1f5   : > { %v1741_v60 = vmax.f32 %v1736_v57, 0.0 }
 0x1f6   : > { %v1626_v61 = vpop.f32.mrf.mxu3  ;;  %v11414_v62 = vpop.f32.mrf.mxu0 }
 0x1f7   : > { %v1771_v63 = vmul.f32 %v1749_v59, %v1741_v60  ;;  %v1666_v3 = vadd.f32 %v1665_v46, %v1626_v61  ;;  %v1764_v46 = vpop.permute.xlu2 %1763 }
 0x1f9   : > { %v1776_v4 = vpack.c.bf16 %v1771_v63, %v1771_v63  ;;  %v1728_v5 = vadd.f32 %v1715_v56, %v1666_v3 }
 0x1fa   : > { %v1718_v42 = vpop.f32.mrf.mxu1 }
 0x1fb   : > { %v1782_v6 = vshrl.u32 %v1776_v4, 16  ;;  %v1737_v7 = vadd.f32 %v11405_v53, %v1728_v5  ;;  %v1785_v9 = vshll.u32 %v1776_v4, 16 }
 0x1fd   : > { %v1784_v8 = vrot.slane %v1782_v6, 7  ;;  %v1742_v10 = vmax.f32 %v1737_v7, 0.0 }
 0x1fe   : > { %v1675_v16 = vpop.f32.mrf.mxu0 }
 0x1ff   : > { %v1787_v17 = vor.u32 %v1785_v9, %v1784_v8  ;;  %v1772_v18 = vmul.f32 %v1754_v11, %v1742_v10  ;;  %v1788_v47 = vrot.slane %v1784_v8, 4  ;;  %v1769_v10 = vpop.permute.xlu0 %1768 }
 0x201   : > { %v1832_v1 = vsel %vm11419_vm11, %v1787_v17, %v1831_v15  ;;  %v1777_v19 = vpack.c.bf16 %v1772_v18, %v1772_v18 }
 0x202   : > { %1833 = vst [vmem:[#allocation2] sm:$0xf] %v1832_v1  ;;  %v1629_v21 = vpop.f32.mrf.mxu3  ;;  %v1720_v22 = vpop.f32.mrf.mxu1 }
 0x203   : > { %v1790_v23 = vshrl.u32 %v1777_v19, 16  ;;  %v1669_v26 = vadd.f32 %v1668_v48, %v1629_v21  ;;  %v1793_v12 = vshll.u32 %v1777_v19, 16 }
 0x205   : > { %v1792_v20 = vrot.slane %v1790_v23, 7  ;;  %v1729_v24 = vadd.f32 %v1718_v42, %v1669_v26 }
 0x207   : > { %v1795_v30 = vor.u32 %v1793_v12, %v1792_v20  ;;  %v1738_v31 = vadd.f32 %v11405_v53, %v1729_v24  ;;  %v1840_v24 = vld [vmem:[#allocation2 + $0x40] sm:$0x3] }
 0x209   : > { %v1845_v33 = vld [vmem:[#allocation2] sm:$0x1]  ;;  %v1796_v34 = vsel %vm11301_vm12, %v1788_v47, %v1795_v30  ;;  %v1743_v35 = vmax.f32 %v1738_v31, 0.0  ;;  %v1999_v58 = vld [vmem:[#allocation2] sm:$0xe] }
 0x20a   : > { %v1846_v37 = vsel %vm11432_vm14, 0, %v1845_v33  ;;  %1835 = vst.msk [vmem:[#allocation2 + $0x10] sm:$0xf] %vm1829_vm10, %v1796_v34  ;;  %v1631_v38 = vpop.f32.mrf.mxu3  ;;  %v1723_v39 = vpop.f32.mrf.mxu1  ;;  %v2006_v23 = vunpack.c.l.b16 %v1999_v58 }
 0x20b   : > { %1847 = vst [vmem:[#allocation2] sm:$0x1] %v1846_v37  ;;  %v1773_v40 = vmul.f32 %v1759_v2, %v1743_v35  ;;  %v1671_v41 = vadd.f32 %v11403_v51, %v1631_v38  ;;  %v1797_v51 = vrot.slane %v1792_v20, 4 }
 0x20d   : > { %v1778_v43 = vpack.c.bf16 %v1773_v40, %v1773_v40  ;;  %v1730_v44 = vadd.f32 %v1720_v22, %v1671_v41 }
 0x20f   : > { %v1799_v45 = vshrl.u32 %v1778_v43, 16  ;;  %v1739_v14 = vadd.f32 %v11405_v53, %v1730_v44  ;;  %v1802_v49 = vshll.u32 %v1778_v43, 16 }
 0x211   : > { %v1801_v48 = vrot.slane %v1799_v45, 7  ;;  %v1744_v50 = vmax.f32 %v1739_v14, 0.0  ;;  %v1859_v52 = vld [vmem:[#allocation2 + $0x10] sm:$0xf] }
 0x212   : > { %v1634_v54 = vpop.f32.mrf.mxu3  ;;  %v1725_v55 = vpop.f32.mrf.mxu1  ;;  %v1858_v56 = vld [vmem:[#allocation2] sm:$0xf]  ;;  %v1879_v57 = vunpack.c.l.b16 %v1859_v52  ;;  %2175 = vst.msk [vmem:[#allocation2 + $0x10] sm:$0xf] %vm1829_vm10, %v10866_v0 }
 0x213   : > { %v1804_v59 = vor.u32 %v1802_v49, %v1801_v48  ;;  %v1774_v60 = vmul.f32 %v1764_v46, %v1744_v50  ;;  %v1674_v61 = vadd.f32 %v11414_v62, %v1634_v54  ;;  %2174 = vst.msk [vmem:[#allocation2] sm:$0xf] %vm1829_vm10, %v10866_v0  ;;  %v1878_v63 = vunpack.c.l.b16 %v1858_v56 }
 0x214   : > { %v1806_v15 = vrot.slane %v1801_v48, 4  ;;  %v2007_v28 = vpack.c.b16 %v1879_v57, %v2006_v23 }
 0x215   : > { %v1805_v3 = vsel %vm11301_vm12, %v1797_v51, %v1804_v59  ;;  %v1779_v4 = vpack.c.bf16 %v1774_v60, %v1774_v60  ;;  %v1731_v5 = vadd.f32 %v1723_v39, %v1674_v61  ;;  %v1883_v42 = vpack.c.b16 %v1879_v57, %v1878_v63 }
 0x216   : > { %1836 = vst.msk [vmem:[#allocation2 + $0x20] sm:$0xf] %vm1829_vm10, %v1805_v3  ;;  %v2008_v33 = vrot.slane %v2007_v28, 1 }
 0x217   : > { %v1808_v6 = vshrl.u32 %v1779_v4, 16  ;;  %v1740_v7 = vadd.f32 %v11405_v53, %v1731_v5  ;;  %7660 = vmatmul.msk.bf16.vlgmr.msrb.gmra.mxu3 %vm12079_vm15, %v1883_v42  ;;  %v1811_v62 = vshll.u32 %v1779_v4, 16  ;;  %v1889_v26 = vshll.u32 %v1883_v42, 16 }
 0x218   : > { %v1887_v35 = vshrl.u32 %v1883_v42, 16 }
 0x219   : > { %v1810_v8 = vrot.slane %v1808_v6, 7  ;;  %v1745_v9 = vmax.f32 %v1740_v7, 0.0  ;;  %v1891_v2 = vrot.slane %v1889_v26, 1  ;;  %v11492_v6 = vld [vmem:[#allocation10] ss:$0 sm:$0xff] }
 0x21a   : > { %v1636_v11 = vpop.f32.mrf.mxu3  ;;  %v2394_v29 = vld [vmem:[#allocation2] sm:$0xf] }
 0x21b   : > { %v1813_v16 = vor.u32 %v1811_v62, %v1810_v8  ;;  %v1775_v17 = vmul.f32 %v1769_v10, %v1745_v9  ;;  %v1815_v27 = vrot.slane %v1810_v8, 4  ;;  %v1892_v38 = vor.u32 %v1891_v2, %v1887_v35  ;;  %v2079_v10 = vpop.permute.xlu1 %2078 }
 0x21d   : > { %v1814_v18 = vsel %vm11301_vm12, %v1806_v15, %v1813_v16  ;;  %v1780_v1 = vpack.c.bf16 %v1775_v17, %v1775_v17  ;;  %v7639_v19 = vld [vmem:[#allocation2 + $0x20] sm:$0xf] }
 0x21e   : > { %1837 = vst.msk [vmem:[#allocation2 + $0x30] sm:$0xf] %vm1829_vm10, %v1814_v18 }
 0x21f   : > { %v1817_v21 = vshrl.u32 %v1780_v1, 16  ;;  %2177 = vst.msk [vmem:[#allocation2 + $0x20] sm:$0x3] %vm1838_vm5, %v10866_v0  ;;  %v1820_v22 = vshll.u32 %v1780_v1, 16  ;;  %vm2218_vm5 = vsmask.f32 1284 }
 0x220   : > { %vm2219_vm9 = vmor %vm12077_vm1, %vm2218_vm5  ;;  %vm2227_vm1 = vsmask.f32 6424 }
 0x221   : > { %v1819_v53 = vrot.slane %v1817_v21, 7  ;;  %vm2221_vm3 = vmor %vm2219_vm9, %vm2220_vm4  ;;  %vm2225_vm9 = vsmask.f32 5396 }
 0x223   : > { %v1822_v20 = vor.u32 %v1820_v22, %v1819_v53 }
 0x225   : > { %v1823_v47 = vsel %vm11301_vm12, %v1815_v27, %v1822_v20  ;;  %v9470_v30 = vld [vmem:[#allocation2 + $0x2c] sm:$0xf0]  ;;  %v2084_v20 = vpop.permute.xlu1 %2083 }
 0x226   : > { %v1841_v31 = vsel %vm11465_vm0, %v1823_v47, %v1840_v24  ;;  %v7640_v32 = vor.u32 %v9470_v30, %v7639_v19  ;;  %v2094_v24 = vpop.permute.xlu2 %2093  ;;  %v2159_v30 = vld [vmem:[#allocation3] sm:$0xf] }
 0x227   : > { %1842 = vst [vmem:[#allocation2 + $0x40] sm:$0x3] %v1841_v31 }
 0x228   : > { %7661 = vmatmul.msk.bf16.gmra.mxu3 %vm12079_vm15, %v7640_v32  ;;  %v2009_v34 = vrot.slane %v7640_v32, 1  ;;  %v1894_v36 = vshll.u32 %v7640_v32, 16  ;;  %v1898_v54 = vshrl.u32 %v7640_v32, 16 }
 0x22a   : > { %v2010_v37 = vsel %vm12078_vm6, %v2008_v33, %v2009_v34  ;;  %v1896_v39 = vrot.slane %v1894_v36, 1 }
 0x22b   : > { %7675 = vmatmul.msk.bf16.vlgmr.msra.gmra.mxu0 %vm12079_vm15, %v2010_v37 }
 0x22c   : > { %v1897_v41 = vsel %vm12076_vm8, %v1892_v38, %v1896_v39  ;;  %v1900_v57 = vor.u32 %v1898_v54, %v1896_v39 }
 0x22d   : > { %7649 = vmatmul.msk.bf16.vlgmr.msrb.gmra.mxu2 %vm12079_vm15, %v1897_v41 }
 0x22e   : > { %v1850_v43 = vld [vmem:[#allocation2 + $0x40] sm:$0x2]  ;;  %v1862_v45 = vld [vmem:[#allocation2 + $0x40] sm:$0x1] }
 0x22f   : > { %v1851_v44 = vsel %vm11477_vm13, 0, %v1850_v43  ;;  %v1955_v14 = vunpack.c.l.b16 %v1862_v45  ;;  %v2089_v45 = vpop.permute.xlu2 %2088 }
 0x230   : > { %1852 = vst [vmem:[#allocation2 + $0x40] sm:$0x2] %v1851_v44 }
 0x231   : > { %v1956_v46 = vpack.c.b16 %v1955_v14, %v1955_v14 }
 0x237   : > { %v1867_v48 = vld [vmem:[#allocation2 + $0x40] sm:$0x3] }
 0x238   : > { %7662 = vmatmul.msk.bf16.gmra.mxu3 %vm12079_vm15, %v1956_v46  ;;  %v1882_v49 = vunpack.c.l.b16 %v1867_v48 }
 0x23a   : > { %v1885_v50 = vpack.c.b16 %v1882_v49, %v1882_v49 }
 0x23c   : > { %v2011_v52 = vrot.slane %v1885_v50, 1  ;;  %v1902_v55 = vshll.u32 %v1885_v50, 16  ;;  %v1906_v59 = vshrl.u32 %v1885_v50, 16 }
 0x23e   : > { %v2012_v56 = vsel %vm12078_vm6, %v2009_v34, %v2011_v52  ;;  %v1904_v58 = vrot.slane %v1902_v55, 1  ;;  %vm2187_vm6 = vcmask 1040384  }
 0x23f   : > { %7676 = vmatmul.msk.bf16.gmra.mxu0 %vm12079_vm15, %v2012_v56 }
 0x240   : > { %v1905_v51 = vsel %vm12076_vm8, %v1900_v57, %v1904_v58  ;;  %v1908_v60 = vor.u32 %v1906_v59, %v1904_v58  ;;  %vm2222_vm8 = vsmask.f32 3340 }
 0x241   : > { %7650 = vmatmul.msk.bf16.gmra.mxu2 %vm12079_vm15, %v1905_v51  ;;  %vm2223_vm5 = vmor %vm2221_vm3, %vm2222_vm8  ;;  %vm2199_vm3 = vcmask 1043459   ;;  %vm2229_vm8 = vsmask.f32 7452 }
 0x242   : > { %vm2224_vm4 = vmor %vm2223_vm5, %vm1173_vm2  ;;  %vm12082_vm5 = vcmask 1046534  }
 0x24f   : > { %7677 = vmatmul.msk.bf16.gmra.mxu0 %vm12079_vm15, %v2011_v52 }
 0x251   : > { %7651 = vmatmul.msk.bf16.gmra.mxu2 %vm12079_vm15, %v1908_v60  ;;  %vm2191_vm15 = vcmask 1041409  }
 0x29a   : > { %v1985_v61 = vpop.f32.mrf.mxu3 }
 0x2a2   : > { %v1987_v63 = vpop.f32.mrf.mxu3 }
 0x2a8   : > { %v2043_v3 = vpop.f32.mrf.mxu0 }
 0x2ab   : > { %v1990_v4 = vpop.f32.mrf.mxu3 }
 0x2b0   : > { %v1940_v5 = vpop.f32.mrf.mxu2  ;;  %v2045_v62 = vpop.f32.mrf.mxu0 }
 0x2b1   : > { %v1986_v42 = vadd.f32 %v1985_v61, %v1940_v5 }
 0x2b3   : > { %v2057_v7 = vadd.f32 %v2043_v3, %v1986_v42  ;;  %v1992_v8 = vpop.f32.mrf.mxu3 }
 0x2b5   : > { %v2066_v9 = vadd.f32 %v11492_v6, %v2057_v7 }
 0x2b7   : > { %v2071_v11 = vmax.f32 %v2066_v9, 0.0 }
 0x2b8   : > { %v1942_v15 = vpop.f32.mrf.mxu2 }
 0x2b9   : > { %v2101_v16 = vmul.f32 %v2079_v10, %v2071_v11  ;;  %v1988_v17 = vadd.f32 %v1987_v63, %v1942_v15 }
 0x2bb   : > { %v2106_v18 = vpack.c.bf16 %v2101_v16, %v2101_v16  ;;  %v2058_v1 = vadd.f32 %v2045_v62, %v1988_v17  ;;  %v11495_v19 = vpop.f32.mrf.mxu3 }
 0x2bc   : > { %v2048_v21 = vpop.f32.mrf.mxu0 }
 0x2bd   : > { %v2112_v53 = vshrl.u32 %v2106_v18, 16  ;;  %v2067_v22 = vadd.f32 %v11492_v6, %v2058_v1  ;;  %v2115_v26 = vshll.u32 %v2106_v18, 16 }
 0x2bf   : > { %v2114_v23 = vrot.slane %v2112_v53, 7  ;;  %v2072_v27 = vmax.f32 %v2067_v22, 0.0 }
 0x2c1   : > { %v2117_v28 = vor.u32 %v2115_v26, %v2114_v23  ;;  %v2102_v47 = vmul.f32 %v2084_v20, %v2072_v27  ;;  %v2118_v41 = vrot.slane %v2114_v23, 4 }
 0x2c3   : > { %v2160_v31 = vsel %vm11419_vm11, %v2117_v28, %v2159_v30  ;;  %v2107_v32 = vpack.c.bf16 %v2102_v47, %v2102_v47  ;;  %v1997_v2 = vpop.f32.mrf.mxu3  ;;  %vm11509_vm11 = vmor %vm2224_vm4, %vm2225_vm9  ;;  %vm2388_vm4 = vcmask 1047559   ;;  %vm4433_vm9 = vsmask.f32 7966 }
 0x2c4   : > { %2161 = vst [vmem:[#allocation3] sm:$0xf] %v2160_v31  ;;  %v1945_v33 = vpop.f32.mrf.mxu2  ;;  %v2050_v34 = vpop.f32.mrf.mxu0  ;;  %vm2228_vm2 = vmor %vm11509_vm11, %vm2227_vm1  ;;  %vm2382_vm11 = vcmask 1045509  }
 0x2c5   : > { %v2120_v35 = vshrl.u32 %v2107_v32, 16  ;;  %v1991_v36 = vadd.f32 %v1990_v4, %v1945_v33  ;;  %v2123_v38 = vshll.u32 %v2107_v32, 16  ;;  %vm11530_vm1 = vmor %vm2228_vm2, %vm2229_vm8 }
 0x2c6   : > { %vm4434_vm2 = vmand %vm2388_vm4, %vm4433_vm9  ;;  %vm2578_vm9 = vcmask 257025  }
 0x2c7   : > { %v2122_v37 = vrot.slane %v2120_v35, 7  ;;  %v2059_v39 = vadd.f32 %v2048_v21, %v1991_v36 }
 0x2c9   : > { %v2125_v43 = vor.u32 %v2123_v38, %v2122_v37  ;;  %v2068_v44 = vadd.f32 %v11492_v6, %v2059_v39 }
 0x2cb   : > { %v2168_v14 = vld [vmem:[#allocation3] sm:$0x1]  ;;  %v2126_v46 = vsel %vm11301_vm12, %v2118_v41, %v2125_v43  ;;  %v2073_v48 = vmax.f32 %v2068_v44, 0.0 }
 0x2cc   : > { %v2169_v49 = vsel %vm11432_vm14, 0, %v2168_v14  ;;  %2162 = vst.msk [vmem:[#allocation3 + $0x10] sm:$0xf] %vm1829_vm10, %v2126_v46  ;;  %v1947_v50 = vpop.f32.mrf.mxu2  ;;  %v2053_v52 = vpop.f32.mrf.mxu0 }
 0x2cd   : > { %2170 = vst [vmem:[#allocation3] sm:$0x1] %v2169_v49  ;;  %v2103_v54 = vmul.f32 %v2089_v45, %v2073_v48  ;;  %v1993_v55 = vadd.f32 %v1992_v8, %v1947_v50  ;;  %v2127_v8 = vrot.slane %v2122_v37, 4  ;;  %v9478_v48 = vld [vmem:[#allocation12 + $0x8] sm:$0xff] }
 0x2ce   : > { %2687 = vmatpush.bf16.msra.mxu2 %v9478_v48 }
 0x2cf   : > { %v2108_v56 = vpack.c.bf16 %v2103_v54, %v2103_v54  ;;  %v2060_v57 = vadd.f32 %v2050_v34, %v1993_v55 }
 0x2d1   : > { %v2129_v58 = vshrl.u32 %v2108_v56, 16  ;;  %v2069_v51 = vadd.f32 %v11492_v6, %v2060_v57  ;;  %v2132_v63 = vshll.u32 %v2108_v56, 16 }
 0x2d3   : > { %v2179_v60 = vld [vmem:[#allocation3 + $0x10] sm:$0xf]  ;;  %v11513_v61 = vrot.slane %v2129_v58, 7  ;;  %v2074_v3 = vmax.f32 %v2069_v51, 0.0 }
 0x2d4   : > { %v2178_v4 = vld [vmem:[#allocation3] sm:$0xf]  ;;  %v2185_v5 = vrot.slane %v2179_v60, 3  ;;  %v1950_v42 = vpop.f32.mrf.mxu2  ;;  %v2055_v7 = vpop.f32.mrf.mxu0 }
 0x2d5   : > { %v2134_v62 = vor.u32 %v2132_v63, %v11513_v61  ;;  %v2184_v9 = vrot.slane %v2178_v4, 3  ;;  %v2104_v10 = vmul.f32 %v2094_v24, %v2074_v3  ;;  %v2136_v1 = vrot.slane %v11513_v61, 4 }
 0x2d6   : > { %v2205_v11 = vsel %vm2187_vm6, %v2179_v60, %v2185_v5  ;;  %v2206_v15 = vsel %vm2191_vm15, %v2179_v60, %v2185_v5  ;;  %v2209_v16 = vsel %vm2195_vm7, %v2179_v60, %v2185_v5  ;;  %v2212_v17 = vsel %vm2199_vm3, %v2179_v60, %v2185_v5  ;;  %v2099_v60 = vpop.permute.xlu0 %2098 }
 0x2d7   : > { %v2135_v18 = vsel %vm11301_vm12, %v2127_v8, %v2134_v62  ;;  %v2190_v21 = vsel %vm2187_vm6, %v2178_v4, %v2184_v9  ;;  %v2200_v53 = vsel %vm2199_vm3, %v2178_v4, %v2184_v9  ;;  %v2208_v23 = vrot.slane %v2206_v15, 1 }
 0x2d8   : > { %2163 = vst.msk [vmem:[#allocation3 + $0x20] sm:$0xf] %vm1829_vm10, %v2135_v18  ;;  %v2202_v22 = vrot.slane %v2200_v53, 3  ;;  %v2211_v26 = vrot.slane %v2209_v16, 2  ;;  %v2214_v27 = vrot.slane %v2212_v17, 3  ;;  %v2231_v24 = vshrl.u32 %v2190_v21, 16 }
 0x2d9   : > { %v2259_v28 = vshll.u32 %v2205_v11, 16  ;;  %v2109_v47 = vpack.c.bf16 %v2104_v10, %v2104_v10  ;;  %v1996_v30 = vadd.f32 %v11495_v19, %v1950_v42  ;;  %v2262_v32 = vshrl.u32 %v2205_v11, 16 }
 0x2da   : > { %v2252_v31 = vshll.u32 %v2202_v22, 16  ;;  %v2278_v2 = vshrl.u32 %v2211_v26, 16  ;;  %v2283_v33 = vshll.u32 %v2214_v27, 16  ;;  %v2275_v34 = vshll.u32 %v2211_v26, 16 }
 0x2db   : > { %v2286_v35 = vshrl.u32 %v2214_v27, 16  ;;  %v2138_v36 = vshrl.u32 %v2109_v47, 16  ;;  %v2061_v37 = vadd.f32 %v2053_v52, %v1996_v30  ;;  %v2192_v41 = vsel %vm2191_vm15, %v2178_v4, %v2184_v9 }
 0x2dc   : > { %v2285_v38 = vsel %vm11530_vm1, %v2278_v2, %v2283_v33  ;;  %v1952_v39 = vpop.f32.mrf.mxu2  ;;  %v2196_v43 = vsel %vm2195_vm7, %v2178_v4, %v2184_v9  ;;  %v2255_v44 = vshrl.u32 %v2202_v22, 16  ;;  %v2141_v19 = vshll.u32 %v2109_v47, 16 }
 0x2dd   : > { %v11539_v45 = vrot.slane %v2138_v36, 7  ;;  %v2070_v14 = vadd.f32 %v11492_v6, %v2061_v37  ;;  %v2194_v46 = vrot.slane %v2192_v41, 1  ;;  %v2198_v49 = vrot.slane %v2196_v43, 2  ;;  %v9477_v6 = vld [vmem:[#allocation12] sm:$0xff] }
 0x2de   : > { %v2261_v50 = vsel %vm11530_vm1, %v2255_v44, %v2259_v28  ;;  %v2267_v52 = vshll.u32 %v2208_v23, 16  ;;  %v2270_v54 = vshrl.u32 %v2208_v23, 16  ;;  %v2307_v56 = vunpack.c.l.bf16 %v2285_v38  ;;  %2688 = vmatpush.bf16.msra.mxu2 %v9477_v6 }
 0x2df   : > { %v2180_v55 = vld [vmem:[#allocation3 + $0x20] sm:$0x1]  ;;  %v2400_v57 = vld [vmem:[#allocation3 + $0x20] sm:$0xe]  ;;  %v2143_v58 = vor.u32 %v2141_v19, %v11539_v45  ;;  %v2075_v51 = vmax.f32 %v2070_v14, 0.0  ;;  %v2304_v59 = vunpack.c.l.bf16 %v2261_v50  ;;  %v2236_v63 = vshll.u32 %v2194_v46, 16 }
 0x2e0   : > { %v2186_v61 = vrot.slane %v2180_v55, 3  ;;  %2404 = vst [vmem:[#allocation1] sm:$0xff] %v2400_v57  ;;  %v2239_v3 = vshrl.u32 %v2194_v46, 16  ;;  %v2244_v4 = vshll.u32 %v2198_v49, 16  ;;  %v2247_v7 = vshrl.u32 %v2198_v49, 16 }
 0x2e1   : > { %v2144_v5 = vsel %vm11301_vm12, %v2136_v1, %v2143_v58  ;;  %v2105_v42 = vmul.f32 %v2099_v60, %v2075_v51  ;;  %v2269_v8 = vsel %vm11530_vm1, %v2262_v32, %v2267_v52  ;;  %v2238_v9 = vsel %vm11530_vm1, %v2231_v24, %v2236_v63  ;;  %v2165_v50 = vld [vmem:[#allocation3 + $0x40] sm:$0x3] }
 0x2e2   : > { %v2217_v62 = vsel %vm2187_vm6, %v2180_v55, %v2186_v61  ;;  %2164 = vst.msk [vmem:[#allocation3 + $0x30] sm:$0xf] %vm1829_vm10, %v2144_v5  ;;  %v2246_v10 = vsel %vm11530_vm1, %v2239_v3, %v2244_v4  ;;  %v2277_v11 = vsel %vm11530_vm1, %v2270_v54, %v2275_v34  ;;  %v2254_v17 = vsel %vm11530_vm1, %v2247_v7, %v2252_v31 }
 0x2e3   : > { %v2290_v15 = vshll.u32 %v2217_v62, 16  ;;  %v2110_v16 = vpack.c.bf16 %v2105_v42, %v2105_v42  ;;  %v2301_v18 = vunpack.c.l.bf16 %v2238_v9  ;;  %v2302_v1 = vunpack.c.l.bf16 %v2246_v10 }
 0x2e4   : > { %v2303_v21 = vunpack.c.l.bf16 %v2254_v17  ;;  %v2305_v53 = vunpack.c.l.bf16 %v2269_v8  ;;  %v2306_v22 = vunpack.c.l.bf16 %v2277_v11  ;;  %v2145_v26 = vrot.slane %v11539_v45, 4  ;;  %v2397_v11 = vld [vmem:[#allocation2 + $0x10] sm:$0x1] }
 0x2e5   : > { %v2292_v23 = vsel %vm11530_vm1, %v2286_v35, %v2290_v15  ;;  %v2147_v27 = vshrl.u32 %v2110_v16, 16  ;;  %v7686_v24 = vrot.slane %v2301_v18, 9  ;;  %v7687_v47 = vrot.slane %v2302_v1, 9 }
 0x2e6   : > { %v2308_v28 = vunpack.c.l.bf16 %v2292_v23  ;;  %v7688_v30 = vrot.slane %v2303_v21, 9  ;;  %v7689_v32 = vrot.slane %v2304_v59, 9  ;;  %v2150_v33 = vshll.u32 %v2110_v16, 16 }
 0x2e7   : > { %v2149_v2 = vrot.slane %v2147_v27, 7  ;;  %v7690_v31 = vrot.slane %v2305_v53, 9  ;;  %v2341_v34 = vmax.f32 %v2301_v18, %v7686_v24  ;;  %v7691_v37 = vrot.slane %v2306_v22, 9  ;;  %v2410_v7 = vld [vmem:[#allocation1 + $0x2] ss:$4 sm:$0xff] }
 0x2e8   : > { %v7693_v36 = vrot.slane %v2308_v28, 9  ;;  %v7692_v38 = vrot.slane %v2307_v56, 9  ;;  %v2342_v39 = vmax.f32 %v2302_v1, %v7687_v47  ;;  %v2343_v44 = vmax.f32 %v2303_v21, %v7688_v30  ;;  %v2412_v15 = vld [vmem:[#allocation1 + $0x3] ss:$4 sm:$0xff] }
 0x2e9   : > { %v2401_v41 = vld [vmem:[#allocation3 + $0x30] sm:$0xf]  ;;  %v2152_v43 = vor.u32 %v2150_v33, %v2149_v2  ;;  %v2344_v35 = vmax.f32 %v2304_v59, %v7689_v32  ;;  %v2345_v19 = vmax.f32 %v2305_v53, %v7690_v31  ;;  %v2346_v14 = vmax.f32 %v2306_v22, %v7691_v37 }
 0x2ea   : > { %v2348_v45 = vmax.f32 %v2308_v28, %v7693_v36  ;;  %2406 = vst [vmem:[#allocation1 + $0x20] sm:$0xff] %v2401_v41  ;;  %v2347_v46 = vmax.f32 %v2307_v56, %v7692_v38  ;;  %v2349_v48 = vpack.c.bf16 %v2341_v34, %v2341_v34  ;;  %v2350_v52 = vpack.c.bf16 %v2342_v39, %v2342_v39  ;;  %v2408_v56 = vld [vmem:[#allocation1 + $0x1] ss:$4 sm:$0xff] }
 0x2eb   : > { %v2153_v49 = vsel %vm11301_vm12, %v2145_v26, %v2152_v43  ;;  %v2351_v54 = vpack.c.bf16 %v2343_v44, %v2343_v44  ;;  %v2352_v55 = vpack.c.bf16 %v2344_v35, %v2344_v35  ;;  %v2353_v51 = vpack.c.bf16 %v2345_v19, %v2345_v19 }
 0x2ec   : > { %v2356_v57 = vpack.c.bf16 %v2348_v45, %v2348_v45  ;;  %v2166_v58 = vsel %vm11465_vm0, %v2153_v49, %v2165_v50  ;;  %v2354_v60 = vpack.c.bf16 %v2346_v14, %v2346_v14  ;;  %v2355_v59 = vpack.c.bf16 %v2347_v46, %v2347_v46  ;;  %v9480_v49 = vld [vmem:[#allocation12 + $0x18] sm:$0xff] }
 0x2ed   : > { %2167 = vst [vmem:[#allocation3 + $0x40] sm:$0x3] %v2166_v58  ;;  %v2365_v61 = vunpack.c.l.b16 %v2349_v48  ;;  %v2366_v6 = vunpack.c.l.b16 %v2350_v52  ;;  %v2367_v63 = vunpack.c.l.b16 %v2351_v54  ;;  %v2368_v3 = vunpack.c.l.b16 %v2352_v55  ;;  %v9482_v48 = vld [vmem:[#allocation12 + $0x28] sm:$0xff]  ;;  %2649 = vmatpush.bf16.msra.mxu1 %v9480_v49 }
 0x2ee   : > { %v2369_v4 = vunpack.c.l.b16 %v2353_v51  ;;  %v2370_v5 = vunpack.c.l.b16 %v2354_v60  ;;  %v2372_v42 = vunpack.c.l.b16 %v2356_v57  ;;  %v2371_v8 = vunpack.c.l.b16 %v2355_v59  ;;  %2735 = vmatpush.bf16.msra.mxu3 %v9482_v48 }
 0x2ef   : > { %v2373_v62 = vrot.slane %v2365_v61, 7  ;;  %v2374_v9 = vrot.slane %v2366_v6, 6  ;;  %v2376_v10 = vrot.slane %v2367_v63, 5  ;;  %v2378_v16 = vrot.slane %v2368_v3, 4 }
 0x2f0   : > { %vm12083_vm10 = vcmask 1044484   ;;  %v2381_v17 = vrot.slane %v2369_v4, 3  ;;  %v2384_v1 = vrot.slane %v2370_v5, 2  ;;  %v2387_v21 = vrot.slane %v2371_v8, 1 }
 0x2f1   : > { %v2375_v18 = vsel %vm2195_vm7, %v2374_v9, %v2373_v62  ;;  %v2414_v53 = vld [vmem:[#allocation1 + $0x20] ss:$4 sm:$0xff]  ;;  %v2391_v23 = vpack.c.b16 %v2372_v42, %v2372_v42  ;;  %v2425_v26 = vshrl.u32 %v2408_v56, 16  ;;  %v2416_v24 = vld [vmem:[#allocation1 + $0x21] ss:$4 sm:$0xff]  ;;  %v2429_v28 = vshll.u32 %v2410_v7, 16 }
 0x2f2   : > { %v2377_v22 = vsel %vm2199_vm3, %v2376_v10, %v2375_v18  ;;  %v2432_v47 = vshrl.u32 %v2410_v7, 16  ;;  %v2436_v30 = vshll.u32 %v2412_v15, 16  ;;  %v2418_v31 = vld [vmem:[#allocation1 + $0x22] ss:$4 sm:$0xff]  ;;  %v2439_v34 = vshrl.u32 %v2412_v15, 16 }
 0x2f3   : > { %v2380_v27 = vsel %vm12083_vm10, %v2378_v16, %v2377_v22  ;;  %v2398_v33 = vsel %vm11432_vm14, %v2391_v23, %v2397_v11  ;;  %v2443_v36 = vshll.u32 %v2414_v53, 16  ;;  %v2431_v39 = vsel %vm11530_vm1, %v2425_v26, %v2429_v28  ;;  %v2420_v6 = vld [vmem:[#allocation1 + $0x23] ss:$4 sm:$0xff] }
 0x2f4   : > { %v2171_v32 = vld [vmem:[#allocation3 + $0x40] sm:$0x2]  ;;  %v2383_v2 = vsel %vm2382_vm11, %v2381_v17, %v2380_v27  ;;  %2399 = vst [vmem:[#allocation2 + $0x10] sm:$0x1] %v2398_v33  ;;  %v2438_v41 = vsel %vm11530_vm1, %v2432_v47, %v2436_v30  ;;  %v2446_v35 = vshrl.u32 %v2414_v53, 16  ;;  %v2450_v19 = vshll.u32 %v2416_v24, 16 }
 0x2f5   : > { %v2172_v37 = vsel %vm11477_vm13, 0, %v2171_v32  ;;  %v2386_v38 = vsel %vm12082_vm5, %v2384_v1, %v2383_v2  ;;  %v2445_v44 = vsel %vm11530_vm1, %v2439_v34, %v2443_v36  ;;  %v2453_v45 = vshrl.u32 %v2416_v24, 16 }
 0x2f6   : > { %2173 = vst [vmem:[#allocation3 + $0x40] sm:$0x2] %v2172_v37  ;;  %v2389_v43 = vsel %vm2388_vm4, %v2387_v21, %v2386_v38  ;;  %v2457_v14 = vshll.u32 %v2418_v31, 16  ;;  %v2489_v46 = vunpack.c.l.bf16 %v2431_v39  ;;  %v2452_v50 = vsel %vm11530_vm1, %v2446_v35, %v2450_v19  ;;  %v2580_v37 = vld [vmem:[#allocation2 + $0x10] sm:$0xe] }
 0x2f7   : > { %v2390_v40 = vpack.c.b16 %v2389_v43, %v2389_v43  ;;  %v2490_v52 = vunpack.c.l.bf16 %v2438_v41  ;;  %v2491_v54 = vunpack.c.l.bf16 %v2445_v44  ;;  %vm12155_vm14 = vnez %v12144_v13  ;;  %v9481_v44 = vld [vmem:[#allocation12 + $0x20] sm:$0xff]  ;;  %v9479_v35 = vld [vmem:[#allocation12 + $0x10] sm:$0xff] }
 0x2f8   : > { %v2459_v57 = vsel %vm11530_vm1, %v2453_v45, %v2457_v14  ;;  %v2492_v58 = vunpack.c.l.bf16 %v2452_v50  ;;  %v7702_v51 = vrot.slane %v2489_v46, 9  ;;  %vm12084_vm13 = vsmask.f32 7950  ;;  %2736 = vmatpush.bf16.msra.mxu3 %v9481_v44  ;;  %2650 = vmatpush.bf16.msra.mxu1 %v9479_v35 }
 0x2f9   : > { %v2395_v55 = vsel %vm12155_vm14, %v2390_v40, %v2394_v29  ;;  %v2493_v60 = vunpack.c.l.bf16 %v2459_v57  ;;  %v7703_v59 = vrot.slane %v2490_v52, 9  ;;  %v7704_v61 = vrot.slane %v2491_v54, 9  ;;  %vm4431_vm8 = vmand %vm2199_vm3, %vm12084_vm13 }
 0x2fa   : > { %2396 = vst [vmem:[#allocation2] sm:$0xf] %v2395_v55  ;;  %v7705_v63 = vrot.slane %v2492_v58, 9  ;;  %v2529_v56 = vmax.f32 %v2489_v46, %v7702_v51  ;;  %v2460_v5 = vshrl.u32 %v2418_v31, 16  ;;  %v2464_v62 = vshll.u32 %v2420_v6, 16  ;;  %vm11591_vm14 = vmor %vm4434_vm2, %vm4431_vm8 }
 0x2fb   : > { %v7706_v3 = vrot.slane %v2493_v60, 9  ;;  %v2530_v4 = vmax.f32 %v2490_v52, %v7703_v59  ;;  %v2531_v13 = vmax.f32 %v2491_v54, %v7704_v61  ;;  %v2467_v34 = vshrl.u32 %v2420_v6, 16 }
 0x2fc   : > { %v2532_v7 = vmax.f32 %v2492_v58, %v7705_v63  ;;  %v2537_v8 = vpack.c.bf16 %v2529_v56, %v2529_v56  ;;  %v2466_v53 = vsel %vm11530_vm1, %v2460_v5, %v2464_v62  ;;  %vm12158_vm8 = vsmask.f32 7942 }
 0x2fd   : > { %v2402_v42 = vld [vmem:[#allocation3 + $0x40] sm:$0x3]  ;;  %v2533_v9 = vmax.f32 %v2493_v60, %v7706_v3  ;;  %v2538_v10 = vpack.c.bf16 %v2530_v4, %v2530_v4  ;;  %v2539_v11 = vpack.c.bf16 %v2531_v13, %v2531_v13  ;;  %v2494_v47 = vunpack.c.l.bf16 %v2466_v53  ;;  %vm2579_vm2 = vmand %vm2578_vm9, %vm12158_vm8 }
 0x2fe   : > { %2422 = vst [vmem:[#allocation1] sm:$0xff] %v2402_v42  ;;  %v2540_v15 = vpack.c.bf16 %v2532_v7, %v2532_v7  ;;  %v2553_v16 = vunpack.c.l.b16 %v2537_v8  ;;  %v2583_v8 = vld [vmem:[#allocation2 + $0x20] sm:$0x3]  ;;  %vm12161_vm9 = vcmask 1046528   ;;  %vm12163_vm8 = vsmask.f32 7424 }
 0x2ff   : > { %v2541_v18 = vpack.c.bf16 %v2533_v9, %v2533_v9  ;;  %v2554_v1 = vunpack.c.l.b16 %v2538_v10  ;;  %v2555_v21 = vunpack.c.l.b16 %v2539_v11  ;;  %v7707_v29 = vrot.slane %v2494_v47, 9 }
 0x300   : > { %v2556_v22 = vunpack.c.l.b16 %v2540_v15  ;;  %v2561_v23 = vrot.slane %v2553_v16, 5 }
 0x301   : > { %v2557_v26 = vunpack.c.l.b16 %v2541_v18  ;;  %v2562_v27 = vrot.slane %v2554_v1, 4  ;;  %v2564_v24 = vrot.slane %v2555_v21, 3  ;;  %v2534_v52 = vmax.f32 %v2494_v47, %v7707_v29  ;;  %v2589_v57 = vld [vmem:[#allocation2] sm:$0xf]  ;;  %v9486_v29 = vld [vmem:[%s12167_s13 + $0x18] sm:$0xff] }
 0x302   : > { %v2566_v28 = vrot.slane %v2556_v22, 2  ;;  %v2605_v63 = vunpack.c.l.b16 %v2589_v57  ;;  %v2699_v10 = vld [vmem:[#allocation2] sm:$0xe]  ;;  %2963 = vmatpush.bf16.msrb.mxu2 %v9486_v29 }
 0x303   : > { %v2563_v30 = vsel %vm12083_vm10, %v2562_v27, %v2561_v23  ;;  %v2568_v2 = vrot.slane %v2557_v26, 1  ;;  %v2542_v58 = vpack.c.bf16 %v2534_v52, %v2534_v52  ;;  %v2706_v11 = vunpack.c.l.b16 %v2699_v10  ;;  %v9484_v52 = vld [vmem:[%s12167_s13 + $0x8] sm:$0xff] }
 0x304   : > { %v2565_v32 = vsel %vm2382_vm11, %v2564_v24, %v2563_v30  ;;  %vm12159_vm11 = vcmask 261120   ;;  %vm12177_vm10 = vsmask.f32 7942 }
 0x305   : > { %v2423_v33 = vld [vmem:[#allocation1] ss:$4 sm:$0xff]  ;;  %v2424_v31 = vld [vmem:[#allocation1 + $0x1] ss:$4 sm:$0xff]  ;;  %v2567_v36 = vsel %vm12082_vm5, %v2566_v28, %v2565_v32  ;;  %v2558_v3 = vunpack.c.l.b16 %v2542_v58 }
 0x306   : > { %v2471_v38 = vshll.u32 %v2423_v33, 16  ;;  %v2474_v39 = vshrl.u32 %v2423_v33, 16  ;;  %v2478_v41 = vshll.u32 %v2424_v31, 16  ;;  %v2569_v43 = vsel %vm2388_vm4, %v2568_v2, %v2567_v36  ;;  %vm12160_vm4 = vmmov %vm12159_vm11 }
 0x307   : > { %v2574_v19 = vpack.c.b16 %v2569_v43, %v2569_v43 }
 0x308   : > { %v2473_v40 = vsel %vm11530_vm1, %v2467_v34, %v2471_v38  ;;  %v2480_v45 = vsel %vm11530_vm1, %v2474_v39, %v2478_v41  ;;  %v10105_v41 = vld [vmem:[#allocation13] ss:$0 sm:$0xff] }
 0x309   : > { %v2495_v14 = vunpack.c.l.bf16 %v2473_v40  ;;  %v2496_v46 = vunpack.c.l.bf16 %v2480_v45  ;;  %v2581_v48 = vsel %vm2579_vm2, %v2574_v19, %v2580_v37  ;;  %v9485_v40 = vld [vmem:[%s12167_s13 + $0x10] sm:$0xff] }
 0x30a   : > { %2582 = vst [vmem:[#allocation2 + $0x10] sm:$0xe] %v2581_v48  ;;  %2964 = vmatpush.bf16.msrb.mxu2 %v9485_v40 }
 0x30b   : > { %v7708_v49 = vrot.slane %v2495_v14, 9  ;;  %v7709_v50 = vrot.slane %v2496_v46, 9 }
 0x30d   : > { %v2535_v54 = vmax.f32 %v2495_v14, %v7708_v49  ;;  %v2536_v55 = vmax.f32 %v2496_v46, %v7709_v50  ;;  %v2763_v14 = vpop.permute.xlu2 %2762 }
 0x30e   : > { %2965 = vmatpush.bf16.msrb.mxu2 %v9484_v52 }
 0x30f   : > { %v2543_v51 = vpack.c.bf16 %v2535_v54, %v2535_v54  ;;  %v2544_v60 = vpack.c.bf16 %v2536_v55, %v2536_v55 }
 0x311   : > { %v2559_v59 = vunpack.c.l.b16 %v2543_v51  ;;  %v2560_v61 = vunpack.c.l.b16 %v2544_v60  ;;  %v2590_v6 = vld [vmem:[#allocation2 + $0x10] sm:$0xf]  ;;  %v9483_v60 = vld [vmem:[%s12167_s13] sm:$0xff] }
 0x312   : > { %v2606_v56 = vunpack.c.l.b16 %v2590_v6  ;;  %2966 = vmatpush.bf16.msrb.mxu2 %v9483_v60 }
 0x313   : > { %v2570_v4 = vrot.slane %v2559_v59, 7  ;;  %v2572_v13 = vrot.slane %v2560_v61, 6  ;;  %v9494_v59 = vld [vmem:[%s12167_s13 + $0x58] sm:$0xff] }
 0x314   : > { %v2608_v5 = vpack.c.b16 %v2606_v56, %v2605_v63  ;;  %v2707_v53 = vpack.c.b16 %v2606_v56, %v2706_v11  ;;  %v9490_v61 = vld [vmem:[%s12167_s13 + $0x38] sm:$0xff]  ;;  %3027 = vmatpush.bf16.msrb.mxu3 %v9494_v59 }
 0x315   : > { %v2571_v42 = vsel %vm2191_vm15, %v2570_v4, %v2558_v3  ;;  %v2768_v3 = vpop.permute.xlu0 %2767  ;;  %2913 = vmatpush.bf16.msrb.mxu1 %v9490_v61 }
 0x316   : > { %v2573_v7 = vsel %vm2195_vm7, %v2572_v13, %v2571_v42  ;;  %7728 = vmatmul.msk.bf16.vlgmr.msra.gmra.mxu2 %vm12159_vm11, %v2608_v5  ;;  %v2613_v15 = vshll.u32 %v2608_v5, 16  ;;  %v2708_v27 = vrot.slane %v2707_v53, 1  ;;  %v2611_v28 = vshrl.u32 %v2608_v5, 16  ;;  %v9493_v13 = vld [vmem:[%s12167_s13 + $0x50] sm:$0xff] }
 0x317   : > { %v2575_v62 = vpack.c.b16 %v2573_v7, %v2573_v7 }
 0x318   : > { %v2615_v26 = vrot.slane %v2613_v15, 1  ;;  %3028 = vmatpush.bf16.msrb.mxu3 %v9493_v13 }
 0x319   : > { %v2584_v9 = vsel %vm11465_vm0, %v2575_v62, %v2583_v8  ;;  %vm12162_vm0 = vmmov %vm12160_vm4  ;;  %v9489_v8 = vld [vmem:[%s12167_s13 + $0x30] sm:$0xff]  ;;  %v2811_v62 = vld [vmem:[#allocation3] sm:$0xf] }
 0x31a   : > { %2585 = vst [vmem:[#allocation2 + $0x20] sm:$0x3] %v2584_v9  ;;  %v2616_v30 = vor.u32 %v2615_v26, %v2611_v28  ;;  %vm12164_vm2 = vmmov %vm12162_vm0  ;;  %2914 = vmatpush.bf16.msrb.mxu1 %v9489_v8 }
 0x31b   : > { %vm12165_vm11 = vmmov %vm12162_vm0 }
 0x31c   : > { %vm12166_vm5 = vmmov %vm12162_vm0 }
 0x321   : > { %v2591_v16 = vld [vmem:[#allocation2 + $0x20] sm:$0x1] }
 0x322   : > { %v2596_v18 = vld [vmem:[#allocation2 + $0x20] sm:$0x3]  ;;  %v2662_v1 = vunpack.c.l.b16 %v2591_v16 }
 0x323   : > { %v2607_v21 = vunpack.c.l.b16 %v2596_v18  ;;  %v9492_v16 = vld [vmem:[%s12167_s13 + $0x48] sm:$0xff] }
 0x324   : > { %v2663_v22 = vpack.c.b16 %v2662_v1, %v2662_v1  ;;  %3029 = vmatpush.bf16.msrb.mxu3 %v9492_v16 }
 0x325   : > { %v2609_v23 = vpack.c.b16 %v2607_v21, %v2607_v21  ;;  %v9488_v21 = vld [vmem:[%s12167_s13 + $0x28] sm:$0xff] }
 0x326   : > { %7729 = vmatmul.msk.bf16.gmra.mxu2 %vm12160_vm4, %v2663_v22  ;;  %vm12168_vm4 = vsmask.f32 7938  ;;  %2915 = vmatpush.bf16.msrb.mxu1 %v9488_v21 }
 0x327   : > { %v2709_v24 = vrot.slane %v2609_v23, 1  ;;  %v2618_v47 = vshll.u32 %v2609_v23, 16  ;;  %v2622_v33 = vshrl.u32 %v2609_v23, 16 }
 0x329   : > { %v2710_v12 = vsel %vm12161_vm9, %v2708_v27, %v2709_v24  ;;  %v2620_v32 = vrot.slane %v2618_v47, 1  ;;  %v2773_v27 = vpop.permute.xlu1 %2772 }
 0x32a   : > { %7738 = vmatmul.msk.bf16.vlgmr.msra.gmra.mxu3 %vm12162_vm0, %v2710_v12  ;;  %vm2821_vm0 = vcmask 516096  }
 0x32b   : > { %v2621_v2 = vsel %vm12163_vm8, %v2616_v30, %v2620_v32  ;;  %v2624_v31 = vor.u32 %v2622_v33, %v2620_v32  ;;  %vm12171_vm8 = vsmask.f32 256  ;;  %v9491_v30 = vld [vmem:[%s12167_s13 + $0x40] sm:$0xff] }
 0x32c   : > { %7718 = vmatmul.msk.bf16.vlgmr.msra.gmra.mxu1 %vm12164_vm2, %v2621_v2  ;;  %vm11657_vm2 = vmand %vm2821_vm0, %vm12171_vm8  ;;  %v9487_v32 = vld [vmem:[%s12167_s13 + $0x20] sm:$0xff]  ;;  %3030 = vmatpush.bf16.msrb.mxu3 %v9491_v30  ;;  %vm2902_vm8 = vcmask 523264  }
 0x32d   : > { %2916 = vmatpush.bf16.msrb.mxu1 %v9487_v32 }
 0x33a   : > { %7739 = vmatmul.msk.bf16.gmra.mxu3 %vm12165_vm11, %v2709_v24  ;;  %vm2816_vm11 = vcmask 517120  }
 0x33c   : > { %7719 = vmatmul.msk.bf16.gmra.mxu1 %vm12166_vm5, %v2624_v31  ;;  %vm2809_vm5 = vcmask 519168  }
 0x33d   : > { %vm11638_vm9 = vmand %vm2809_vm5, %vm12168_vm4  ;;  %vm12174_vm4 = vsmask.f32 1280 }
 0x33e   : > { %vm11673_vm0 = vmand %vm2816_vm11, %vm12174_vm4  ;;  %vm2826_vm4 = vcmask 517121  }
 0x33f   : > { %vm11686_vm13 = vmand %vm2826_vm4, %vm12177_vm10  ;;  %vm12180_vm10 = vcmask 1046528  }
 0x399   : > { %v2690_v34 = vpop.f32.mrf.mxu2 }
 0x3a1   : > { %v2692_v36 = vpop.f32.mrf.mxu2 }
 0x3a9   : > { %v2652_v37 = vpop.f32.mrf.mxu1  ;;  %v2695_v38 = vpop.f32.mrf.mxu2 }
 0x3aa   : > { %v2691_v39 = vadd.f32 %v2690_v34, %v2652_v37 }
 0x3ad   : > { %v2738_v43 = vpop.f32.mrf.mxu3 }
 0x3ae   : > { %v2747_v44 = vadd.f32 %v2738_v43, %v2691_v39 }
 0x3b0   : > { %v2754_v35 = vadd.f32 %v10105_v41, %v2747_v44 }
 0x3b1   : > { %v2654_v19 = vpop.f32.mrf.mxu1  ;;  %v2697_v46 = vpop.f32.mrf.mxu2 }
 0x3b2   : > { %v2757_v45 = vmax.f32 %v2754_v35, 0.0  ;;  %v2693_v49 = vadd.f32 %v2692_v36, %v2654_v19  ;;  %v2818_v35 = vld [vmem:[#allocation3 + $0x20] sm:$0x3] }
 0x3b4   : > { %v2775_v48 = vmul.f32 %v2763_v14, %v2757_v45 }
 0x3b5   : > { %v2740_v50 = vpop.f32.mrf.mxu3 }
 0x3b6   : > { %v2778_v54 = vpack.c.bf16 %v2775_v48, %v2775_v48  ;;  %v2748_v55 = vadd.f32 %v2740_v50, %v2693_v49 }
 0x3b8   : > { %v2782_v57 = vshrl.u32 %v2778_v54, 16  ;;  %v2755_v58 = vadd.f32 %v10105_v41, %v2748_v55  ;;  %v2785_v63 = vshll.u32 %v2778_v54, 16 }
 0x3b9   : > { %v2657_v51 = vpop.f32.mrf.mxu1 }
 0x3ba   : > { %v2784_v6 = vrot.slane %v2782_v57, 7  ;;  %v2758_v56 = vmax.f32 %v2755_v58, 0.0  ;;  %v2696_v7 = vadd.f32 %v2695_v38, %v2657_v51 }
 0x3bc   : > { %v2787_v5 = vor.u32 %v2785_v63, %v2784_v6  ;;  %v2776_v42 = vmul.f32 %v2768_v3, %v2758_v56  ;;  %v2788_v24 = vrot.slane %v2784_v6, 4 }
 0x3bd   : > { %v2743_v9 = vpop.f32.mrf.mxu3 }
 0x3be   : > { %v2812_v10 = vsel %vm11638_vm9, %v2787_v5, %v2811_v62  ;;  %v2779_v11 = vpack.c.bf16 %v2776_v42, %v2776_v42  ;;  %v2749_v15 = vadd.f32 %v2743_v9, %v2696_v7 }
 0x3bf   : > { %2813 = vst [vmem:[#allocation3] sm:$0xf] %v2812_v10 }
 0x3c0   : > { %v2790_v18 = vshrl.u32 %v2779_v11, 16  ;;  %v2756_v1 = vadd.f32 %v10105_v41, %v2749_v15  ;;  %v2793_v23 = vshll.u32 %v2779_v11, 16 }
 0x3c1   : > { %v2659_v53 = vpop.f32.mrf.mxu1 }
 0x3c2   : > { %v2792_v22 = vrot.slane %v2790_v18, 7  ;;  %v2759_v26 = vmax.f32 %v2756_v1, 0.0  ;;  %v10106_v53 = vld [vmem:[#allocation15] ss:$0 sm:$0xff] }
 0x3c4   : > { %v2795_v28 = vor.u32 %v2793_v23, %v2792_v22  ;;  %v2777_v47 = vmul.f32 %v2773_v27, %v2759_v26  ;;  %v2797_v41 = vrot.slane %v2792_v22, 4 }
 0x3c5   : > { %v2745_v2 = vpop.f32.mrf.mxu3 }
 0x3c6   : > { %v2823_v33 = vld [vmem:[#allocation3] sm:$0x1]  ;;  %v2796_v31 = vsel %vm11301_vm12, %v2788_v24, %v2795_v28  ;;  %v2780_v34 = vpack.c.bf16 %v2777_v47, %v2777_v47  ;;  %v2977_v48 = vld [vmem:[#allocation3] sm:$0xe]  ;;  %v3057_v47 = vpop.permute.xlu2 %3056 }
 0x3c7   : > { %2815 = vst.msk [vmem:[#allocation3 + $0x10] sm:$0xf] %vm2809_vm5, %v2796_v31  ;;  %v2824_v36 = vsel %vm11657_vm2, 0, %v2823_v33  ;;  %v2988_v58 = vunpack.c.l.b16 %v2977_v48 }
 0x3c8   : > { %v2799_v37 = vshrl.u32 %v2780_v34, 16  ;;  %2825 = vst [vmem:[#allocation3] sm:$0x1] %v2824_v36  ;;  %v2802_v39 = vshll.u32 %v2780_v34, 16 }
 0x3ca   : > { %v2801_v38 = vrot.slane %v2799_v37, 7 }
 0x3cc   : > { %v2804_v43 = vor.u32 %v2802_v39, %v2801_v38 }
 0x3ce   : > { %v2805_v44 = vsel %vm11301_vm12, %v2797_v41, %v2804_v43  ;;  %v2835_v19 = vld [vmem:[#allocation3 + $0x10] sm:$0xf]  ;;  %v3062_v43 = vpop.permute.xlu0 %3061 }
 0x3cf   : > { %v2819_v40 = vsel %vm11673_vm0, %v2805_v44, %v2818_v35  ;;  %v2834_v45 = vld [vmem:[#allocation3] sm:$0xf]  ;;  %v2859_v14 = vunpack.c.l.b16 %v2835_v19  ;;  %3118 = vst.msk [vmem:[#allocation3 + $0x10] sm:$0x3] %vm2816_vm11, %v10866_v0  ;;  %vm12181_vm11 = vsmask.f32 7424 }
 0x3d0   : > { %2820 = vst [vmem:[#allocation3 + $0x20] sm:$0x3] %v2819_v40  ;;  %v2858_v46 = vunpack.c.l.b16 %v2834_v45  ;;  %v3103_v40 = vld [vmem:[#allocation2] sm:$0xf] }
 0x3d1   : > { %3116 = vst.msk [vmem:[#allocation3] sm:$0xf] %vm2809_vm5, %v10866_v0  ;;  %v2989_v61 = vpack.c.b16 %v2859_v14, %v2988_v58 }
 0x3d2   : > { %v2861_v49 = vpack.c.b16 %v2859_v14, %v2858_v46 }
 0x3d3   : > { %v2990_v3 = vrot.slane %v2989_v61, 1 }
 0x3d4   : > { %7782 = vmatmul.msk.bf16.vlgmr.msrb.gmra.mxu2 %vm2902_vm8, %v2861_v49  ;;  %v2866_v51 = vshll.u32 %v2861_v49, 16  ;;  %v2864_v5 = vshrl.u32 %v2861_v49, 16 }
 0x3d6   : > { %v2868_v56 = vrot.slane %v2866_v51, 1  ;;  %v3067_v51 = vpop.permute.xlu1 %3066 }
 0x3d7   : > { %v2828_v52 = vld [vmem:[#allocation3 + $0x20] sm:$0x2]  ;;  %v2836_v55 = vld [vmem:[#allocation3 + $0x20] sm:$0x1] }
 0x3d8   : > { %v2829_v54 = vsel %vm11686_vm13, 0, %v2828_v52  ;;  %v2928_v57 = vunpack.c.l.b16 %v2836_v55  ;;  %v2869_v8 = vor.u32 %v2868_v56, %v2864_v5  ;;  %v9502_v5 = vld [vmem:[#allocation16 + $0x38] sm:$0xff] }
 0x3d9   : > { %2830 = vst [vmem:[#allocation3 + $0x20] sm:$0x2] %v2829_v54  ;;  %3393 = vmatpush.bf16.msrb.mxu0 %v9502_v5 }
 0x3da   : > { %v2929_v6 = vpack.c.b16 %v2928_v57, %v2928_v57 }
 0x3e0   : > { %v2845_v60 = vld [vmem:[#allocation3 + $0x20] sm:$0x3] }
 0x3e1   : > { %v2860_v59 = vunpack.c.l.b16 %v2845_v60 }
 0x3e3   : > { %v2862_v63 = vpack.c.b16 %v2860_v59, %v2860_v59 }
 0x3e4   : > { %7783 = vmatmul.msk.bf16.gmra.mxu2 %vm2902_vm8, %v2929_v6 }
 0x3e5   : > { %v2991_v13 = vrot.slane %v2862_v63, 1  ;;  %v2871_v42 = vshll.u32 %v2862_v63, 16  ;;  %v2875_v10 = vshrl.u32 %v2862_v63, 16 }
 0x3e7   : > { %v2992_v7 = vsel %vm12180_vm10, %v2990_v3, %v2991_v13  ;;  %v2873_v62 = vrot.slane %v2871_v42, 1  ;;  %vm12185_vm10 = vcmask 1044484  }
 0x3e8   : > { %7808 = vmatmul.msk.bf16.vlgmr.msrb.gmra.mxu3 %vm2902_vm8, %v2992_v7  ;;  %v9505_v7 = vld [vmem:[#allocation16 + $0x50] sm:$0xff] }
 0x3e9   : > { %v2874_v9 = vsel %vm12181_vm11, %v2869_v8, %v2873_v62  ;;  %v2877_v11 = vor.u32 %v2875_v10, %v2873_v62  ;;  %v9501_v8 = vld [vmem:[#allocation16 + $0x30] sm:$0xff] }
 0x3ea   : > { %7764 = vmatmul.msk.bf16.vlgmr.msrb.gmra.mxu1 %vm2902_vm8, %v2874_v9  ;;  %3394 = vmatpush.bf16.msrb.mxu0 %v9501_v8 }
 0x3f8   : > { %7809 = vmatmul.msk.bf16.gmra.mxu3 %vm2902_vm8, %v2991_v13  ;;  %v9506_v13 = vld [vmem:[#allocation16 + $0x58] sm:$0xff] }
 0x3f9   : > { %3492 = vmatpush.bf16.msra.mxu1 %v9506_v13 }
 0x3fa   : > { %7765 = vmatmul.msk.bf16.gmra.mxu1 %vm2902_vm8, %v2877_v11 }
 0x3fd   : > { %3493 = vmatpush.bf16.msra.mxu1 %v9505_v7 }
 0x457   : > { %v2968_v15 = vpop.f32.mrf.mxu2 }
 0x45f   : > { %v2970_v16 = vpop.f32.mrf.mxu2 }
 0x467   : > { %v2918_v18 = vpop.f32.mrf.mxu1  ;;  %v2973_v1 = vpop.f32.mrf.mxu2 }
 0x468   : > { %v2969_v21 = vadd.f32 %v2968_v15, %v2918_v18  ;;  %v9504_v15 = vld [vmem:[#allocation16 + $0x48] sm:$0xff] }
 0x469   : > { %3494 = vmatpush.bf16.msra.mxu1 %v9504_v15 }
 0x46b   : > { %v3032_v22 = vpop.f32.mrf.mxu3 }
 0x46c   : > { %v3041_v23 = vadd.f32 %v3032_v22, %v2969_v21  ;;  %v3107_v21 = vld [vmem:[#allocation2 + $0x20] sm:$0x3] }
 0x46e   : > { %v3048_v26 = vadd.f32 %v10106_v53, %v3041_v23 }
 0x46f   : > { %v2920_v27 = vpop.f32.mrf.mxu1  ;;  %v2975_v24 = vpop.f32.mrf.mxu2 }
 0x470   : > { %v3051_v28 = vmax.f32 %v3048_v26, 0.0  ;;  %v2971_v32 = vadd.f32 %v2970_v16, %v2920_v27  ;;  %v9500_v16 = vld [vmem:[#allocation16 + $0x28] sm:$0xff]  ;;  %v9503_v24 = vld [vmem:[#allocation16 + $0x40] sm:$0xff] }
 0x471   : > { %3395 = vmatpush.bf16.msrb.mxu0 %v9500_v16  ;;  %3495 = vmatpush.bf16.msra.mxu1 %v9503_v24 }
 0x472   : > { %v3069_v30 = vmul.f32 %v3057_v47, %v3051_v28 }
 0x473   : > { %v3034_v2 = vpop.f32.mrf.mxu3 }
 0x474   : > { %v3072_v33 = vpack.c.bf16 %v3069_v30, %v3069_v30  ;;  %v3042_v31 = vadd.f32 %v3034_v2, %v2971_v32 }
 0x476   : > { %v3076_v34 = vshrl.u32 %v3072_v33, 16  ;;  %v3049_v36 = vadd.f32 %v10106_v53, %v3042_v31  ;;  %v3079_v39 = vshll.u32 %v3072_v33, 16 }
 0x477   : > { %v2923_v37 = vpop.f32.mrf.mxu1 }
 0x478   : > { %v3078_v38 = vrot.slane %v3076_v34, 7  ;;  %v3052_v41 = vmax.f32 %v3049_v36, 0.0  ;;  %v2974_v19 = vadd.f32 %v2973_v1, %v2923_v37 }
 0x47a   : > { %v3081_v44 = vor.u32 %v3079_v39, %v3078_v38  ;;  %v3070_v35 = vmul.f32 %v3062_v43, %v3052_v41  ;;  %v3082_v60 = vrot.slane %v3078_v38, 4 }
 0x47b   : > { %v3037_v45 = vpop.f32.mrf.mxu3 }
 0x47c   : > { %v3104_v14 = vsel %vm11638_vm9, %v3081_v44, %v3103_v40  ;;  %v3073_v46 = vpack.c.bf16 %v3070_v35, %v3070_v35  ;;  %v3043_v48 = vadd.f32 %v3037_v45, %v2974_v19  ;;  %vm3221_vm9 = vsmask.f32 2306 }
 0x47d   : > { %3105 = vst [vmem:[#allocation2] sm:$0xf] %v3104_v14 }
 0x47e   : > { %v3084_v49 = vshrl.u32 %v3073_v46, 16  ;;  %v3050_v52 = vadd.f32 %v10106_v53, %v3043_v48  ;;  %v3087_v57 = vshll.u32 %v3073_v46, 16 }
 0x47f   : > { %v2925_v54 = vpop.f32.mrf.mxu1 }
 0x480   : > { %v3086_v55 = vrot.slane %v3084_v49, 7  ;;  %v3053_v58 = vmax.f32 %v3050_v52, 0.0 }
 0x482   : > { %v3089_v59 = vor.u32 %v3087_v57, %v3086_v55  ;;  %v3071_v61 = vmul.f32 %v3067_v51, %v3053_v58  ;;  %v3091_v10 = vrot.slane %v3086_v55, 4 }
 0x483   : > { %v3039_v6 = vpop.f32.mrf.mxu3 }
 0x484   : > { %v3110_v63 = vld [vmem:[#allocation2] sm:$0x1]  ;;  %v3090_v56 = vsel %vm11301_vm12, %v3082_v60, %v3089_v59  ;;  %v3074_v4 = vpack.c.bf16 %v3071_v61, %v3071_v61 }
 0x485   : > { %v3111_v3 = vsel %vm11657_vm2, 0, %v3110_v63  ;;  %3106 = vst.msk [vmem:[#allocation2 + $0x10] sm:$0xf] %vm2809_vm5, %v3090_v56  ;;  %vm3220_vm5 = vcmask 518144   ;;  %vm12182_vm2 = vsmask.f32 7950 }
 0x486   : > { %3112 = vst [vmem:[#allocation2] sm:$0x1] %v3111_v3  ;;  %v3093_v42 = vshrl.u32 %v3074_v4, 16  ;;  %v3096_v9 = vshll.u32 %v3074_v4, 16  ;;  %vm3222_vm11 = vmand %vm3220_vm5, %vm3221_vm9  ;;  %vm12189_vm5 = vsmask.f32 256 }
 0x487   : > { %vm11760_vm9 = vmand %vm2187_vm6, %vm12189_vm5  ;;  %vm4416_vm5 = vcmask 1047556  }
 0x488   : > { %v3095_v62 = vrot.slane %v3093_v42, 7 }
 0x48a   : > { %v3098_v11 = vor.u32 %v3096_v9, %v3095_v62 }
 0x48c   : > { %v3120_v12 = vld [vmem:[#allocation2 + $0x10] sm:$0x1]  ;;  %v3226_v18 = vld [vmem:[#allocation2 + $0x10] sm:$0xe]  ;;  %v3099_v1 = vsel %vm11301_vm12, %v3091_v10, %v3098_v11 }
 0x48d   : > { %v3119_v53 = vld [vmem:[#allocation2] sm:$0xf]  ;;  %v3124_v22 = vrot.slane %v3120_v12, 3  ;;  %3229 = vst [vmem:[#allocation1] sm:$0xff] %v3226_v18  ;;  %v3108_v23 = vsel %vm11673_vm0, %v3099_v1, %v3107_v21 }
 0x48e   : > { %v3123_v26 = vrot.slane %v3119_v53, 3  ;;  %3109 = vst [vmem:[#allocation2 + $0x20] sm:$0x3] %v3108_v23 }
 0x48f   : > { %v3139_v27 = vsel %vm2187_vm6, %v3120_v12, %v3124_v22 }
 0x490   : > { %v3127_v28 = vsel %vm2187_vm6, %v3119_v53, %v3123_v26  ;;  %v3128_v47 = vsel %vm2191_vm15, %v3119_v53, %v3123_v26  ;;  %v3131_v30 = vsel %vm2195_vm7, %v3119_v53, %v3123_v26  ;;  %v3134_v32 = vsel %vm2199_vm3, %v3119_v53, %v3123_v26 }
 0x491   : > { %v3130_v2 = vrot.slane %v3128_v47, 1  ;;  %v3133_v33 = vrot.slane %v3131_v30, 2  ;;  %v3136_v31 = vrot.slane %v3134_v32, 3  ;;  %v3140_v34 = vshrl.u32 %v3127_v28, 16 }
 0x492   : > { %v3168_v36 = vshll.u32 %v3139_v27, 16 }
 0x493   : > { %v3145_v37 = vshll.u32 %v3130_v2, 16  ;;  %v3148_v38 = vshrl.u32 %v3130_v2, 16  ;;  %v3153_v39 = vshll.u32 %v3133_v33, 16  ;;  %v3156_v41 = vshrl.u32 %v3133_v33, 16 }
 0x494   : > { %v3161_v43 = vshll.u32 %v3136_v31, 16  ;;  %v3164_v44 = vshrl.u32 %v3136_v31, 16  ;;  %v3233_v35 = vld [vmem:[#allocation1 + $0x1] ss:$4 sm:$0xff]  ;;  %v3235_v19 = vld [vmem:[#allocation1 + $0x2] ss:$4 sm:$0xff] }
 0x495   : > { %v3147_v40 = vsel %vm11530_vm1, %v3140_v34, %v3145_v37  ;;  %v3155_v45 = vsel %vm11530_vm1, %v3148_v38, %v3153_v39  ;;  %v3113_v14 = vld [vmem:[#allocation2 + $0x20] sm:$0x2]  ;;  %v3242_v46 = vshrl.u32 %v3233_v35, 16  ;;  %v3246_v48 = vshll.u32 %v3235_v19, 16  ;;  %v3237_v42 = vld [vmem:[#allocation1 + $0x3] ss:$4 sm:$0xff] }
 0x496   : > { %v3163_v49 = vsel %vm11530_vm1, %v3156_v41, %v3161_v43  ;;  %v3170_v52 = vsel %vm11530_vm1, %v3164_v44, %v3168_v36  ;;  %v3175_v54 = vunpack.c.l.bf16 %v3147_v40  ;;  %v3176_v55 = vunpack.c.l.bf16 %v3155_v45  ;;  %v3223_v31 = vld [vmem:[#allocation3] sm:$0x7]  ;;  %v3322_v34 = vld [vmem:[#allocation3] sm:$0x8] }
 0x497   : > { %v3177_v57 = vunpack.c.l.bf16 %v3163_v49  ;;  %v3178_v58 = vunpack.c.l.bf16 %v3170_v52  ;;  %v3114_v51 = vsel %vm11686_vm13, 0, %v3113_v14  ;;  %v3248_v60 = vsel %vm11530_vm1, %v3242_v46, %v3246_v48  ;;  %v9499_v49 = vld [vmem:[#allocation16 + $0x20] sm:$0xff] }
 0x498   : > { %v7814_v59 = vrot.slane %v3175_v54, 9  ;;  %v7815_v61 = vrot.slane %v3176_v55, 9  ;;  %3115 = vst [vmem:[#allocation2 + $0x20] sm:$0x2] %v3114_v51  ;;  %v3274_v56 = vunpack.c.l.bf16 %v3248_v60  ;;  %v3249_v16 = vshrl.u32 %v3235_v19, 16  ;;  %3396 = vmatpush.bf16.msrb.mxu0 %v9499_v49  ;;  %v9498_v51 = vld [vmem:[#allocation16 + $0x18] sm:$0xff] }
 0x499   : > { %v7816_v6 = vrot.slane %v3177_v57, 9  ;;  %v7817_v63 = vrot.slane %v3178_v58, 9  ;;  %v3253_v12 = vshll.u32 %v3237_v42, 16  ;;  %vm3319_vm13 = vcmask 519171  }
 0x49a   : > { %v3195_v4 = vmax.f32 %v3175_v54, %v7814_v59  ;;  %v3196_v3 = vmax.f32 %v3176_v55, %v7815_v61  ;;  %v7822_v7 = vrot.slane %v3274_v56, 9  ;;  %vm11731_vm4 = vmand %vm3319_vm13, %vm12182_vm2  ;;  %v3256_v35 = vshrl.u32 %v3237_v42, 16  ;;  %v9497_v61 = vld [vmem:[#allocation16 + $0x10] sm:$0xff] }
 0x49b   : > { %v3197_v13 = vmax.f32 %v3177_v57, %v7816_v6  ;;  %v3198_v5 = vmax.f32 %v3178_v58, %v7817_v63  ;;  %v3255_v47 = vsel %vm11530_vm1, %v3249_v16, %v3253_v12  ;;  %vm3549_vm13 = vcmask 1041408  }
 0x49c   : > { %v3199_v8 = vpack.c.bf16 %v3195_v4, %v3195_v4  ;;  %v3200_v62 = vpack.c.bf16 %v3196_v3, %v3196_v3  ;;  %v3294_v10 = vmax.f32 %v3274_v56, %v7822_v7  ;;  %v3275_v37 = vunpack.c.l.bf16 %v3255_v47  ;;  %3437 = vmatpush.bf16.msra.mxu0 %v9498_v51 }
 0x49d   : > { %v3201_v9 = vpack.c.bf16 %v3197_v13, %v3197_v13  ;;  %v3202_v50 = vpack.c.bf16 %v3198_v5, %v3198_v5  ;;  %v9496_v13 = vld [vmem:[#allocation16 + $0x8] sm:$0xff]  ;;  %vm12192_vm2 = vsmask.f32 1280 }
 0x49e   : > { %v3207_v11 = vunpack.c.l.b16 %v3199_v8  ;;  %v3208_v15 = vunpack.c.l.b16 %v3200_v62  ;;  %v3298_v53 = vpack.c.bf16 %v3294_v10, %v3294_v10  ;;  %v7823_v14 = vrot.slane %v3275_v37, 9 }
 0x49f   : > { %v3209_v18 = vunpack.c.l.b16 %v3201_v9  ;;  %v3210_v1 = vunpack.c.l.b16 %v3202_v50  ;;  %v3227_v21 = vld [vmem:[#allocation2 + $0x20] sm:$0x3]  ;;  %v9495_v50 = vld [vmem:[#allocation16] sm:$0xff] }
 0x4a0   : > { %v3211_v22 = vrot.slane %v3207_v11, 7  ;;  %v3212_v23 = vrot.slane %v3208_v15, 6  ;;  %3231 = vst [vmem:[#allocation1 + $0x20] sm:$0xff] %v3227_v21  ;;  %v3306_v27 = vunpack.c.l.b16 %v3298_v53  ;;  %v3295_v58 = vmax.f32 %v3275_v37, %v7823_v14  ;;  %3438 = vmatpush.bf16.msra.mxu0 %v9497_v61  ;;  %v3325_v9 = vld [vmem:[#allocation3 + $0x10] sm:$0x3]  ;;  %v9511_v37 = vld [vmem:[#allocation19 + $0x20] sm:$0xff] }
 0x4a1   : > { %v3214_v26 = vrot.slane %v3209_v18, 5  ;;  %v3216_v28 = vrot.slane %v3210_v1, 4 }
 0x4a2   : > { %v3213_v24 = vsel %vm2195_vm7, %v3212_v23, %v3211_v22  ;;  %v3310_v2 = vrot.slane %v3306_v27, 1  ;;  %v3299_v6 = vpack.c.bf16 %v3295_v58, %v3295_v58  ;;  %v3515_v58 = vpop.permute.xlu0 %3514 }
 0x4a3   : > { %v3215_v32 = vsel %vm2199_vm3, %v3214_v26, %v3213_v24  ;;  %vm3544_vm3 = vcmask 1043456  }
 0x4a4   : > { %v3217_v33 = vsel %vm12185_vm10, %v3216_v28, %v3215_v32  ;;  %v3315_v38 = vpack.c.b16 %v3310_v2, %v3310_v2  ;;  %v3307_v5 = vunpack.c.l.b16 %v3299_v6  ;;  %3439 = vmatpush.bf16.msra.mxu0 %v9496_v13  ;;  %v9514_v2 = vld [vmem:[#allocation19 + $0x38] sm:$0xff]  ;;  %vm12195_vm10 = vsmask.f32 7942 }
 0x4a5   : > { %v3218_v36 = vpack.c.b16 %v3217_v33, %v3217_v33  ;;  %3729 = vmatpush.bf16.msra.mxu3 %v9514_v2  ;;  %v9513_v33 = vld [vmem:[#allocation19 + $0x30] sm:$0xff]  ;;  %v9526_v6 = vld [vmem:[#allocation19 + $0x98] sm:$0xff] }
 0x4a6   : > { %v3323_v44 = vsel %vm11731_vm4, %v3315_v38, %v3322_v34  ;;  %v9512_v34 = vld [vmem:[#allocation19 + $0x28] sm:$0xff]  ;;  %v9522_v38 = vld [vmem:[#allocation19 + $0x78] sm:$0xff]  ;;  %vm11766_vm4 = vmand %vm3549_vm13, %vm12192_vm2  ;;  %vm4417_vm2 = vsmask.f32 7442 }
 0x4a7   : > { %v3224_v39 = vsel %vm3222_vm11, %v3218_v36, %v3223_v31  ;;  %v3239_v41 = vld [vmem:[#allocation1 + $0x20] ss:$4 sm:$0xff]  ;;  %v3241_v43 = vld [vmem:[#allocation1 + $0x21] ss:$4 sm:$0xff]  ;;  %3324 = vst [vmem:[#allocation3] sm:$0x8] %v3323_v44  ;;  %3663 = vmatpush.bf16.msra.mxu2 %v9522_v38  ;;  %vm11778_vm11 = vmand %vm2191_vm15, %vm12195_vm10 }
 0x4a8   : > { %3225 = vst [vmem:[#allocation3] sm:$0x7] %v3224_v39  ;;  %v3260_v19 = vshll.u32 %v3239_v41, 16  ;;  %v3263_v40 = vshrl.u32 %v3239_v41, 16  ;;  %v3267_v45 = vshll.u32 %v3241_v43, 16  ;;  %3440 = vmatpush.bf16.msra.mxu0 %v9495_v50  ;;  %v9530_v36 = vld [vmem:[#allocation19 + $0xb8] sm:$0xff]  ;;  %v3520_v50 = vpop.permute.xlu1 %3519  ;;  %vm11835_vm10 = vmand %vm4416_vm5, %vm4417_vm2 }
 0x4a9   : > { %3730 = vmatpush.bf16.msra.mxu3 %v9513_v33  ;;  %v9529_v39 = vld [vmem:[#allocation19 + $0xb0] sm:$0xff]  ;;  %v9510_v41 = vld [vmem:[#allocation19 + $0x18] sm:$0xff] }
 0x4aa   : > { %v3262_v46 = vsel %vm11530_vm1, %v3256_v35, %v3260_v19  ;;  %v3269_v48 = vsel %vm11530_vm1, %v3263_v40, %v3267_v45  ;;  %v9521_v43 = vld [vmem:[#allocation19 + $0x70] sm:$0xff]  ;;  %v10107_v40 = vld [vmem:[#allocation18] ss:$0 sm:$0xff]  ;;  %v9528_v45 = vld [vmem:[#allocation19 + $0xa8] sm:$0xff] }
 0x4ab   : > { %v3276_v52 = vunpack.c.l.bf16 %v3262_v46  ;;  %v3277_v54 = vunpack.c.l.bf16 %v3269_v48  ;;  %3664 = vmatpush.bf16.msra.mxu2 %v9521_v43  ;;  %v9509_v46 = vld [vmem:[#allocation19 + $0x10] sm:$0xff]  ;;  %v9520_v48 = vld [vmem:[#allocation19 + $0x68] sm:$0xff] }
 0x4ad   : > { %v7824_v55 = vrot.slane %v3276_v52, 9  ;;  %v7825_v57 = vrot.slane %v3277_v54, 9  ;;  %3731 = vmatpush.bf16.msra.mxu3 %v9512_v34 }
 0x4af   : > { %v3296_v60 = vmax.f32 %v3276_v52, %v7824_v55  ;;  %v3297_v59 = vmax.f32 %v3277_v54, %v7825_v57  ;;  %v3447_v15 = vld [vmem:[#allocation3] sm:$0xe]  ;;  %v9527_v52 = vld [vmem:[#allocation19 + $0xa0] sm:$0xff]  ;;  %3665 = vmatpush.bf16.msra.mxu2 %v9520_v48  ;;  %v9508_v55 = vld [vmem:[#allocation19 + $0x8] sm:$0xff] }
 0x4b0   : > { %v3330_v16 = vld [vmem:[#allocation3] sm:$0xf]  ;;  %v3458_v1 = vunpack.c.l.b16 %v3447_v15  ;;  %v9519_v57 = vld [vmem:[#allocation19 + $0x60] sm:$0xff] }
 0x4b1   : > { %v3300_v63 = vpack.c.bf16 %v3296_v60, %v3296_v60  ;;  %v3301_v56 = vpack.c.bf16 %v3297_v59, %v3297_v59  ;;  %v3352_v21 = vunpack.c.l.b16 %v3330_v16  ;;  %3732 = vmatpush.bf16.msra.mxu3 %v9511_v37  ;;  %v3546_v16 = vld [vmem:[#allocation2] sm:$0xf] }
 0x4b3   : > { %v3308_v4 = vunpack.c.l.b16 %v3300_v63  ;;  %v3309_v3 = vunpack.c.l.b16 %v3301_v56  ;;  %3666 = vmatpush.bf16.msra.mxu2 %v9519_v57 }
 0x4b5   : > { %v3311_v42 = vrot.slane %v3308_v4, 7  ;;  %v3313_v7 = vrot.slane %v3309_v3, 6  ;;  %3733 = vmatpush.bf16.msra.mxu3 %v9510_v41  ;;  %v9507_v4 = vld [vmem:[#allocation19] sm:$0xff]  ;;  %v9518_v3 = vld [vmem:[#allocation19 + $0x58] sm:$0xff] }
 0x4b7   : > { %v3312_v8 = vsel %vm2191_vm15, %v3311_v42, %v3307_v5  ;;  %v9525_v42 = vld [vmem:[#allocation19 + $0x90] sm:$0xff]  ;;  %3667 = vmatpush.bf16.msra.mxu2 %v9518_v3 }
 0x4b8   : > { %v3314_v62 = vsel %vm2195_vm7, %v3313_v7, %v3312_v8 }
 0x4b9   : > { %v3316_v10 = vpack.c.b16 %v3314_v62, %v3314_v62  ;;  %3734 = vmatpush.bf16.msra.mxu3 %v9509_v46 }
 0x4bb   : > { %v3326_v11 = vsel %vm11673_vm0, %v3316_v10, %v3325_v9  ;;  %v9517_v9 = vld [vmem:[#allocation19 + $0x50] sm:$0xff]  ;;  %vm12186_vm0 = vsmask.f32 7938 }
 0x4bc   : > { %3327 = vst [vmem:[#allocation3 + $0x10] sm:$0x3] %v3326_v11  ;;  %3668 = vmatpush.bf16.msra.mxu2 %v9517_v9 }
 0x4bd   : > { %3735 = vmatpush.bf16.msra.mxu3 %v9508_v55 }
 0x4c1   : > { %3736 = vmatpush.bf16.msra.mxu3 %v9507_v4 }
 0x4c3   : > { %v3340_v12 = vld [vmem:[#allocation3 + $0x10] sm:$0x3] }
 0x4c4   : > { %v3353_v18 = vunpack.c.l.b16 %v3340_v12  ;;  %v3331_v29 = vld [vmem:[#allocation3 + $0x10] sm:$0x1] }
 0x4c5   : > { %v3404_v47 = vunpack.c.l.b16 %v3331_v29  ;;  %v9524_v12 = vld [vmem:[#allocation19 + $0x88] sm:$0xff] }
 0x4c6   : > { %v3459_v53 = vpack.c.b16 %v3353_v18, %v3458_v1  ;;  %v3354_v22 = vpack.c.b16 %v3353_v18, %v3352_v21 }
 0x4c7   : > { %v3405_v30 = vpack.c.b16 %v3404_v47, %v3352_v21  ;;  %v9516_v21 = vld [vmem:[#allocation19 + $0x48] sm:$0xff] }
 0x4c8   : > { %v3460_v23 = vrot.slane %v3459_v53, 1  ;;  %v3358_v26 = vshll.u32 %v3354_v22, 16  ;;  %v3356_v27 = vshrl.u32 %v3354_v22, 16  ;;  %v9523_v22 = vld [vmem:[#allocation19 + $0x80] sm:$0xff]  ;;  %3669 = vmatpush.bf16.msra.mxu2 %v9516_v21 }
 0x4ca   : > { %7876 = vmatmul.msk.bf16.vlgmr.msra.gmra.mxu1 %vm2902_vm8, %v3460_v23  ;;  %v3360_v24 = vrot.slane %v3358_v26, 1 }
 0x4cc   : > { %v3361_v28 = vor.u32 %v3360_v24, %v3356_v27  ;;  %v9515_v27 = vld [vmem:[#allocation19 + $0x40] sm:$0xff] }
 0x4cd   : > { %3670 = vmatpush.bf16.msra.mxu2 %v9515_v27  ;;  %v9561_v27 = vld [vmem:[#allocation22 + $0xf4] sm:$0xf] }
 0x4ce   : > { %7842 = vmatmul.msk.bf16.vlgmr.msrb.gmra.mxu0 %vm2902_vm8, %v3361_v28 }
 0x4cf   : > { %3814 = vmatpush.bf16.msrb.mxu0 %v9530_v36 }
 0x4d3   : > { %3815 = vmatpush.bf16.msrb.mxu0 %v9529_v39 }
 0x4d7   : > { %3816 = vmatpush.bf16.msrb.mxu0 %v9528_v45 }
 0x4db   : > { %3817 = vmatpush.bf16.msrb.mxu0 %v9527_v52 }
 0x4de   : > { %7859 = vmatmul.msk.bf16.vlgmr.msra.gmra.mxu0 %vm2902_vm8, %v3405_v30  ;;  %vm11752_vm8 = vmand %vm3544_vm3, %vm12186_vm0  ;;  %vm12198_vm0 = vcmask 1046534  }
 0x4df   : > { %3818 = vmatpush.bf16.msrb.mxu0 %v9526_v6  ;;  %v3841_v6 = vpop.permute.xlu2 %3840 }
 0x4e3   : > { %3819 = vmatpush.bf16.msrb.mxu0 %v9525_v42 }
 0x4e7   : > { %3820 = vmatpush.bf16.msrb.mxu0 %v9524_v12 }
 0x4eb   : > { %3821 = vmatpush.bf16.msrb.mxu0 %v9523_v22  ;;  %v8039_v22 = vld [vmem:[#allocation22 + $0xf0] sm:$0xf] }
 0x547   : > { %v3497_v44 = vpop.f32.mrf.mxu1 }
 0x54b   : > { %v3398_v32 = vpop.f32.mrf.mxu0 }
 0x54f   : > { %v3499_v61 = vpop.f32.mrf.mxu1 }
 0x553   : > { %v3400_v31 = vpop.f32.mrf.mxu0 }
 0x55b   : > { %v3442_v35 = vpop.f32.mrf.mxu0 }
 0x55c   : > { %v3443_v19 = vadd.f32 %v3442_v35, %v3398_v32  ;;  %v3551_v32 = vld [vmem:[#allocation2 + $0x10] sm:$0x3] }
 0x55e   : > { %v3502_v14 = vadd.f32 %v3497_v44, %v3443_v19 }
 0x560   : > { %v3508_v49 = vadd.f32 %v10107_v40, %v3502_v14 }
 0x562   : > { %v3510_v54 = vmax.f32 %v3508_v49, 0.0 }
 0x563   : > { %v3444_v51 = vpop.f32.mrf.mxu0 }
 0x564   : > { %v3522_v60 = vmul.f32 %v3515_v58, %v3510_v54  ;;  %v3445_v59 = vadd.f32 %v3444_v51, %v3400_v31 }
 0x566   : > { %v3524_v63 = vpack.c.bf16 %v3522_v60, %v3522_v60  ;;  %v3503_v56 = vadd.f32 %v3499_v61, %v3445_v59  ;;  %v10108_v59 = vld [vmem:[#allocation21] ss:$0 sm:$0xff] }
 0x568   : > { %v3527_v13 = vshrl.u32 %v3524_v63, 16  ;;  %v3509_v5 = vadd.f32 %v10107_v40, %v3503_v56  ;;  %v3530_v8 = vshll.u32 %v3524_v63, 16 }
 0x56a   : > { %v3529_v7 = vrot.slane %v3527_v13, 7  ;;  %v3511_v62 = vmax.f32 %v3509_v5, 0.0 }
 0x56c   : > { %v3532_v11 = vor.u32 %v3530_v8, %v3529_v7  ;;  %v3523_v15 = vmul.f32 %v3520_v50, %v3511_v62  ;;  %v3533_v28 = vrot.slane %v3529_v7, 4 }
 0x56e   : > { %v3547_v18 = vsel %vm11752_vm8, %v3532_v11, %v3546_v16  ;;  %v3525_v1 = vpack.c.bf16 %v3523_v15, %v3523_v15  ;;  %v3846_v15 = vpop.permute.xlu0 %3845 }
 0x56f   : > { %3548 = vst [vmem:[#allocation2] sm:$0xf] %v3547_v18  ;;  %v3870_v18 = vld [vmem:[#allocation3] sm:$0xf] }
 0x570   : > { %v3535_v53 = vshrl.u32 %v3525_v1, 16  ;;  %v3538_v26 = vshll.u32 %v3525_v1, 16 }
 0x572   : > { %v3537_v23 = vrot.slane %v3535_v53, 7 }
 0x574   : > { %v3540_v29 = vor.u32 %v3538_v26, %v3537_v23  ;;  %v9562_v23 = vld [vmem:[#allocation22 + $0xf4] sm:$0xf0] }
 0x575   : > { %v8040_v26 = vor.u32 %v9562_v23, %v8039_v22  ;;  %v9554_v22 = vld [vmem:[#allocation22 + $0xb4] sm:$0xf0]  ;;  %v9553_v23 = vld [vmem:[#allocation22 + $0xb4] sm:$0xf] }
 0x576   : > { %v3541_v30 = vsel %vm11301_vm12, %v3533_v28, %v3540_v29  ;;  %v3556_v2 = vld [vmem:[#allocation2] sm:$0x1]  ;;  %v3743_v44 = vld [vmem:[#allocation2] sm:$0xe]  ;;  %v8041_v28 = vld [vmem:[#allocation22 + $0xf8] sm:$0xf0] }
 0x577   : > { %v3552_v33 = vsel %vm11766_vm4, %v3541_v30, %v3551_v32  ;;  %v3557_v31 = vsel %vm11760_vm9, 0, %v3556_v2  ;;  %v3762_v45 = vunpack.c.l.b16 %v3743_v44  ;;  %v8044_v2 = vor.u32 %v9561_v27, %v8041_v28  ;;  %4125 = vmatpush.bf16.msrb.mxu1 %v8040_v26 }
 0x578   : > { %3553 = vst [vmem:[#allocation2 + $0x10] sm:$0x3] %v3552_v33  ;;  %v8103_v33 = vld [vmem:[#allocation22 + $0x70] sm:$0xf] }
 0x579   : > { %3558 = vst [vmem:[#allocation2] sm:$0x1] %v3557_v31  ;;  %v9546_v31 = vld [vmem:[#allocation22 + $0x74] sm:$0xf0]  ;;  %4138 = vmatpush.bf16.msrb.mxu2 %v8044_v2  ;;  %v8071_v2 = vld [vmem:[#allocation22 + $0x30] sm:$0xf] }
 0x57a   : > { %v8104_v10 = vor.u32 %v9546_v31, %v8103_v33  ;;  %v9538_v33 = vld [vmem:[#allocation22 + $0x34] sm:$0xf0] }
 0x57b   : > { %v8072_v34 = vor.u32 %v9538_v33, %v8071_v2 }
 0x57c   : > { %4231 = vmatpush.bf16.msrb.mxu3 %v8104_v10  ;;  %v9537_v10 = vld [vmem:[#allocation22 + $0x34] sm:$0xf] }
 0x57f   : > { %v3567_v36 = vld [vmem:[#allocation2 + $0x10] sm:$0x1]  ;;  %v3561_v37 = vld [vmem:[#allocation2 + $0x10] sm:$0x2] }
 0x580   : > { %v3566_v38 = vld [vmem:[#allocation2] sm:$0xf]  ;;  %v3678_v39 = vunpack.c.l.b16 %v3567_v36  ;;  %v3562_v41 = vsel %vm11778_vm11, 0, %v3561_v37  ;;  %v9545_v36 = vld [vmem:[#allocation22 + $0x74] sm:$0xf] }
 0x581   : > { %v3604_v43 = vunpack.c.l.b16 %v3566_v38  ;;  %3563 = vst [vmem:[#allocation2 + $0x10] sm:$0x2] %v3562_v41  ;;  %v8105_v38 = vld [vmem:[#allocation22 + $0x78] sm:$0xf0]  ;;  %v9560_v41 = vld [vmem:[#allocation22 + $0xe4] sm:$0xf0] }
 0x582   : > { %3882 = vst [vmem:[#allocation2] sm:$0xf] %v10866_v0 }
 0x583   : > { %v3679_v35 = vpack.c.b16 %v3678_v39, %v3604_v43  ;;  %v8031_v39 = vld [vmem:[#allocation22 + $0xe0] sm:$0xf] }
 0x584   : > { %v8032_v44 = vor.u32 %v9560_v41, %v8031_v39 }
 0x585   : > { %3737 = vmatmul.bf16.vlgmr.msra.gmra.mxu3 %v3679_v35  ;;  %v9559_v35 = vld [vmem:[#allocation22 + $0xe4] sm:$0xf] }
 0x586   : > { %4126 = vmatpush.bf16.msrb.mxu1 %v8032_v44  ;;  %v7999_v44 = vld [vmem:[#allocation22 + $0xa0] sm:$0xf] }
 0x588   : > { %v3584_v19 = vld [vmem:[#allocation2 + $0x10] sm:$0x3] }
 0x589   : > { %v3605_v40 = vunpack.c.l.b16 %v3584_v19  ;;  %v8033_v19 = vld [vmem:[#allocation22 + $0xe8] sm:$0xf0] }
 0x58b   : > { %v3763_v14 = vpack.c.b16 %v3605_v40, %v3762_v45  ;;  %v3606_v46 = vpack.c.b16 %v3605_v40, %v3604_v43  ;;  %v8108_v43 = vor.u32 %v9545_v36, %v8105_v38  ;;  %v8073_v38 = vld [vmem:[#allocation22 + $0x38] sm:$0xf0] }
 0x58d   : > { %v3764_v48 = vrot.slane %v3763_v14, 1  ;;  %v3610_v49 = vshll.u32 %v3606_v46, 16  ;;  %v3608_v52 = vshrl.u32 %v3606_v46, 16  ;;  %v3873_v46 = vld [vmem:[#allocation3 + $0x10] sm:$0x3]  ;;  %4244 = vmatpush.bf16.msra.mxu0 %v8108_v43 }
 0x58f   : > { %3822 = vmatmul.bf16.vlgmr.msrb.gmra.mxu0 %v3764_v48  ;;  %v3612_v54 = vrot.slane %v3610_v49, 1  ;;  %v8036_v48 = vor.u32 %v9559_v35, %v8033_v19  ;;  %v8076_v35 = vor.u32 %v9537_v10, %v8073_v38  ;;  %v9552_v19 = vld [vmem:[#allocation22 + $0xa4] sm:$0xf0]  ;;  %v8049_v10 = vld [vmem:[#allocation22 + $0x8] sm:$0xf0] }
 0x590   : > { %v8159_v38 = vld [vmem:[#allocation22 + $0x160] sm:$0xf] }
 0x591   : > { %v3613_v55 = vor.u32 %v3612_v54, %v3608_v52  ;;  %v8095_v54 = vld [vmem:[#allocation22 + $0x60] sm:$0xf]  ;;  %4139 = vmatpush.bf16.msrb.mxu2 %v8036_v48 }
 0x593   : > { %3671 = vmatmul.bf16.vlgmr.msra.gmra.mxu2 %v3613_v55  ;;  %v9544_v55 = vld [vmem:[#allocation22 + $0x64] sm:$0xf0] }
 0x608   : > { %v3738_v57 = vpop.f32.mrf.mxu3 }
 0x60c   : > { %v3823_v58 = vpop.f32.mrf.mxu0 }
 0x610   : > { %v3740_v56 = vpop.f32.mrf.mxu3 }
 0x614   : > { %v3825_v5 = vpop.f32.mrf.mxu0 }
 0x616   : > { %v3672_v51 = vpop.f32.mrf.mxu2 }
 0x617   : > { %v3739_v60 = vadd.f32 %v3738_v57, %v3672_v51  ;;  %v8096_v57 = vor.u32 %v9544_v55, %v8095_v54  ;;  %v9536_v55 = vld [vmem:[#allocation22 + $0x24] sm:$0xf0] }
 0x619   : > { %v3828_v0 = vadd.f32 %v3823_v58, %v3739_v60  ;;  %v9543_v58 = vld [vmem:[#allocation22 + $0x64] sm:$0xf]  ;;  %v8023_v60 = vld [vmem:[#allocation22 + $0xd0] sm:$0xf]  ;;  %4232 = vmatpush.bf16.msrb.mxu3 %v8096_v57 }
 0x61a   : > { %v8100_v51 = vor.u32 %v9543_v58, %v8097_v25  ;;  %v9535_v57 = vld [vmem:[#allocation22 + $0x24] sm:$0xf]  ;;  %v8065_v58 = vld [vmem:[#allocation22 + $0x28] sm:$0xf0] }
 0x61b   : > { %v3834_v61 = vadd.f32 %v10108_v59, %v3828_v0 }
 0x61c   : > { %4245 = vmatpush.bf16.msra.mxu0 %v8100_v51 }
 0x61d   : > { %v3836_v63 = vmax.f32 %v3834_v61, 0.0  ;;  %v9557_v61 = vld [vmem:[#allocation22 + $0xd4] sm:$0xf] }
 0x61e   : > { %v3674_v4 = vpop.f32.mrf.mxu2 }
 0x61f   : > { %v3848_v3 = vmul.f32 %v3841_v6, %v3836_v63  ;;  %v3741_v13 = vadd.f32 %v3740_v56, %v3674_v4  ;;  %v8025_v6 = vld [vmem:[#allocation22 + $0xd8] sm:$0xf0]  ;;  %v8087_v63 = vld [vmem:[#allocation22 + $0x50] sm:$0xf]  ;;  %v9542_v56 = vld [vmem:[#allocation22 + $0x54] sm:$0xf0] }
 0x620   : > { %v8028_v47 = vor.u32 %v9557_v61, %v8025_v6  ;;  %v9541_v4 = vld [vmem:[#allocation22 + $0x54] sm:$0xf]  ;;  %v9550_v61 = vld [vmem:[#allocation22 + $0x94] sm:$0xf0] }
 0x621   : > { %v3850_v42 = vpack.c.bf16 %v3848_v3, %v3848_v3  ;;  %v3829_v7 = vadd.f32 %v3825_v5, %v3741_v13  ;;  %v8089_v3 = vld [vmem:[#allocation22 + $0x58] sm:$0xf0]  ;;  %v8088_v13 = vor.u32 %v9542_v56, %v8087_v63  ;;  %v9549_v6 = vld [vmem:[#allocation22 + $0x94] sm:$0xf] }
 0x622   : > { %v8092_v5 = vor.u32 %v9541_v4, %v8089_v3  ;;  %4140 = vmatpush.bf16.msrb.mxu2 %v8028_v47  ;;  %v7993_v4 = vld [vmem:[#allocation22 + $0x98] sm:$0xf0]  ;;  %v8055_v3 = vld [vmem:[#allocation22 + $0x10] sm:$0xf] }
 0x623   : > { %v3853_v8 = vshrl.u32 %v3850_v42, 16  ;;  %v3835_v62 = vadd.f32 %v10108_v59, %v3829_v7  ;;  %v3856_v50 = vshll.u32 %v3850_v42, 16  ;;  %v9558_v59 = vld [vmem:[#allocation22 + $0xd4] sm:$0xf0]  ;;  %v8015_v42 = vld [vmem:[#allocation22 + $0xc0] sm:$0xf]  ;;  %4233 = vmatpush.bf16.msrb.mxu3 %v8088_v13 }
 0x624   : > { %v8024_v0 = vor.u32 %v9558_v59, %v8023_v60  ;;  %v9556_v7 = vld [vmem:[#allocation22 + $0xc4] sm:$0xf0]  ;;  %4246 = vmatpush.bf16.msra.mxu0 %v8092_v5  ;;  %v8068_v59 = vor.u32 %v9535_v57, %v8065_v58  ;;  %v9534_v13 = vld [vmem:[#allocation22 + $0x14] sm:$0xf0] }
 0x625   : > { %v3855_v9 = vrot.slane %v3853_v8, 7  ;;  %v3837_v11 = vmax.f32 %v3835_v62, 0.0  ;;  %v9555_v8 = vld [vmem:[#allocation22 + $0xc4] sm:$0xf]  ;;  %v8016_v62 = vor.u32 %v9556_v7, %v8015_v42  ;;  %v7996_v42 = vor.u32 %v9549_v6, %v7993_v4  ;;  %v9533_v7 = vld [vmem:[#allocation22 + $0x14] sm:$0xf] }
 0x626   : > { %4127 = vmatpush.bf16.msrb.mxu1 %v8024_v0  ;;  %v7991_v0 = vld [vmem:[#allocation22 + $0x90] sm:$0xf]  ;;  %v9574_v58 = vld [vmem:[#allocation22 + $0x154] sm:$0xf0] }
 0x627   : > { %v3858_v16 = vor.u32 %v3856_v50, %v3855_v9  ;;  %v3849_v12 = vmul.f32 %v3846_v15, %v3837_v11  ;;  %v3859_v29 = vrot.slane %v3855_v9, 4  ;;  %v8017_v9 = vld [vmem:[#allocation22 + $0xc8] sm:$0xf0]  ;;  %v8079_v50 = vld [vmem:[#allocation22 + $0x40] sm:$0xf]  ;;  %v7992_v56 = vor.u32 %v9550_v61, %v7991_v0 }
 0x628   : > { %v9540_v11 = vld [vmem:[#allocation22 + $0x44] sm:$0xf0]  ;;  %v8020_v15 = vor.u32 %v9555_v8, %v8017_v9  ;;  %v8057_v8 = vld [vmem:[#allocation22 + $0x18] sm:$0xf0] }
 0x629   : > { %v3871_v1 = vsel %vm11752_vm8, %v3858_v16, %v3870_v18  ;;  %v3851_v21 = vpack.c.bf16 %v3849_v12, %v3849_v12  ;;  %v8080_v16 = vor.u32 %v9540_v11, %v8079_v50  ;;  %v9539_v12 = vld [vmem:[#allocation22 + $0x44] sm:$0xf]  ;;  %v8081_v18 = vld [vmem:[#allocation22 + $0x48] sm:$0xf0]  ;;  %v8056_v50 = vor.u32 %v9534_v13, %v8055_v3  ;;  %v7983_v11 = vld [vmem:[#allocation22 + $0x80] sm:$0xf] }
 0x62a   : > { %3872 = vst [vmem:[#allocation3] sm:$0xf] %v3871_v1  ;;  %v8007_v1 = vld [vmem:[#allocation22 + $0xb0] sm:$0xf]  ;;  %4128 = vmatpush.bf16.msrb.mxu1 %v8016_v62  ;;  %4141 = vmatpush.bf16.msrb.mxu2 %v8020_v15  ;;  %v8060_v15 = vor.u32 %v9533_v7, %v8057_v8  ;;  %v8153_v61 = vld [vmem:[#allocation22 + $0x158] sm:$0xf0] }
 0x62b   : > { %v3861_v53 = vshrl.u32 %v3851_v21, 16  ;;  %v3864_v32 = vshll.u32 %v3851_v21, 16  ;;  %v8008_v28 = vor.u32 %v9554_v22, %v8007_v1  ;;  %4234 = vmatpush.bf16.msrb.mxu3 %v8080_v16  ;;  %v9548_v16 = vld [vmem:[#allocation22 + $0x84] sm:$0xf0]  ;;  %v8167_v22 = vld [vmem:[#allocation22 + $0x170] sm:$0xf] }
 0x62c   : > { %v8143_v13 = vld [vmem:[#allocation22 + $0x140] sm:$0xf]  ;;  %v9571_v8 = vld [vmem:[#allocation22 + $0x144] sm:$0xf] }
 0x62d   : > { %v3863_v30 = vrot.slane %v3861_v53, 7  ;;  %v8084_v53 = vor.u32 %v9539_v12, %v8081_v18  ;;  %v9547_v12 = vld [vmem:[#allocation22 + $0x84] sm:$0xf]  ;;  %v7985_v18 = vld [vmem:[#allocation22 + $0x88] sm:$0xf0] }
 0x62e   : > { %4129 = vmatpush.bf16.msrb.mxu1 %v8008_v28 }
 0x62f   : > { %v3866_v37 = vor.u32 %v3864_v32, %v3863_v30  ;;  %4247 = vmatpush.bf16.msra.mxu0 %v8084_v53  ;;  %4235 = vmatpush.bf16.msrb.mxu3 %v8072_v34  ;;  %v7984_v53 = vor.u32 %v9548_v16, %v7983_v11  ;;  %v8161_v34 = vld [vmem:[#allocation22 + $0x168] sm:$0xf0]  ;;  %v8135_v16 = vld [vmem:[#allocation22 + $0x130] sm:$0xf] }
 0x631   : > { %v3876_v40 = vld [vmem:[#allocation3] sm:$0x1]  ;;  %v3941_v45 = vld [vmem:[#allocation3] sm:$0x8]  ;;  %v3867_v14 = vsel %vm11301_vm12, %v3859_v29, %v3866_v37  ;;  %vm3936_vm12 = vsmask.f32 1282 }
 0x632   : > { %v3877_v49 = vsel %vm11760_vm9, 0, %v3876_v40  ;;  %3944 = vst [vmem:[#allocation1] sm:$0xff] %v3941_v45  ;;  %v3874_v52 = vsel %vm11766_vm4, %v3867_v14, %v3873_v46  ;;  %v8009_v29 = vld [vmem:[#allocation22 + $0xb8] sm:$0xf0]  ;;  %v9551_v40 = vld [vmem:[#allocation22 + $0xa4] sm:$0xf] }
 0x633   : > { %3878 = vst [vmem:[#allocation3] sm:$0x1] %v3877_v49  ;;  %v8012_v32 = vor.u32 %v9553_v23, %v8009_v29  ;;  %v8001_v45 = vld [vmem:[#allocation22 + $0xa8] sm:$0xf0]  ;;  %v8000_v49 = vor.u32 %v9552_v19, %v7999_v44  ;;  %4248 = vmatpush.bf16.msra.mxu0 %v8076_v35  ;;  %v9578_v23 = vld [vmem:[#allocation22 + $0x174] sm:$0xf0] }
 0x634   : > { %3875 = vst [vmem:[#allocation3 + $0x10] sm:$0x3] %v3874_v52  ;;  %v8063_v52 = vld [vmem:[#allocation22 + $0x20] sm:$0xf]  ;;  %v8004_v54 = vor.u32 %v9551_v40, %v8001_v45  ;;  %v8168_v28 = vor.u32 %v9578_v23, %v8167_v22  ;;  %v8169_v29 = vld [vmem:[#allocation22 + $0x178] sm:$0xf0] }
 0x635   : > { %4142 = vmatpush.bf16.msrb.mxu2 %v8012_v32  ;;  %v8064_v60 = vor.u32 %v9536_v55, %v8063_v52  ;;  %4130 = vmatpush.bf16.msrb.mxu1 %v8000_v49  ;;  %v9532_v32 = vld [vmem:[#allocation22 + $0x4] sm:$0xf0]  ;;  %v8151_v40 = vld [vmem:[#allocation22 + $0x150] sm:$0xf] }
 0x637   : > { %4236 = vmatpush.bf16.msrb.mxu3 %v8064_v60  ;;  %4249 = vmatpush.bf16.msra.mxu0 %v8068_v59  ;;  %v3938_v59 = vld [vmem:[#allocation2] sm:$0x3] }
 0x639   : > { %4143 = vmatpush.bf16.msrb.mxu2 %v8004_v54  ;;  %4131 = vmatpush.bf16.msrb.mxu1 %v7992_v56  ;;  %v3948_v19 = vld [vmem:[#allocation1 + $0x3] ss:$4 sm:$0xff]  ;;  %v8152_v56 = vor.u32 %v9574_v58, %v8151_v40 }
 0x63a   : > { %v3883_v21 = vld [vmem:[#allocation3] sm:$0x7]  ;;  %v3953_v49 = vshrl.u32 %v3948_v19, 16  ;;  %v8111_v40 = vld [vmem:[#allocation22 + $0x100] sm:$0xf] }
 0x63b   : > { %v3885_v26 = vrot.slane %v3883_v21, 3  ;;  %v3879_v27 = vld [vmem:[#allocation3 + $0x10] sm:$0x2]  ;;  %4237 = vmatpush.bf16.msrb.mxu3 %v8056_v50  ;;  %4250 = vmatpush.bf16.msra.mxu0 %v8060_v15 }
 0x63c   : > { %v3880_v30 = vsel %vm11778_vm11, 0, %v3879_v27  ;;  %v7988_v27 = vor.u32 %v9547_v12, %v7985_v18  ;;  %v9570_v12 = vld [vmem:[#allocation22 + $0x134] sm:$0xf0]  ;;  %vm4424_vm11 = vsmask.f32 4352 }
 0x63d   : > { %v3888_v31 = vsel %vm2187_vm6, %v3883_v21, %v3885_v26  ;;  %v3889_v36 = vsel %vm2191_vm15, %v3883_v21, %v3885_v26  ;;  %v3892_v37 = vsel %vm2195_vm7, %v3883_v21, %v3885_v26  ;;  %3881 = vst [vmem:[#allocation3 + $0x10] sm:$0x2] %v3880_v30  ;;  %v9577_v26 = vld [vmem:[#allocation22 + $0x174] sm:$0xf]  ;;  %4144 = vmatpush.bf16.msrb.mxu2 %v7996_v42  ;;  %v8047_v30 = vld [vmem:[#allocation22] sm:$0xf]  ;;  %vm3937_vm15 = vmand %vm3549_vm13, %vm3936_vm12 }
 0x63e   : > { %v3891_v39 = vrot.slane %v3889_v36, 1  ;;  %v3894_v41 = vrot.slane %v3892_v37, 2  ;;  %v3895_v43 = vshrl.u32 %v3888_v31, 16  ;;  %v8172_v31 = vor.u32 %v9577_v26, %v8169_v29  ;;  %v9531_v37 = vld [vmem:[#allocation22 + $0x4] sm:$0xf]  ;;  %4132 = vmatpush.bf16.msrb.mxu1 %v7984_v53 }
 0x63f   : > { %v8048_v36 = vor.u32 %v9532_v32, %v8047_v30  ;;  %v8136_v23 = vor.u32 %v9570_v12, %v8135_v16  ;;  %v9568_v29 = vld [vmem:[#allocation22 + $0x124] sm:$0xf0]  ;;  %v9567_v32 = vld [vmem:[#allocation22 + $0x124] sm:$0xf]  ;;  %vm4414_vm13 = vsmask.f32 3330 }
 0x640   : > { %v3900_v14 = vshll.u32 %v3891_v39, 16  ;;  %v3903_v46 = vshrl.u32 %v3891_v39, 16  ;;  %v3908_v48 = vshll.u32 %v3894_v41, 16  ;;  %v8052_v39 = vor.u32 %v9531_v37, %v8049_v10  ;;  %v9576_v41 = vld [vmem:[#allocation22 + $0x164] sm:$0xf0]  ;;  %vm11829_vm4 = vmand %vm3544_vm3, %vm4414_vm13 }
 0x641   : > { %4145 = vmatpush.bf16.msrb.mxu2 %v7988_v27  ;;  %4238 = vmatpush.bf16.msrb.mxu3 %v8048_v36  ;;  %v9640_v16 = vld [vmem:[#allocation25 + $0x1e4] sm:$0xf0]  ;;  %v9623_v12 = vld [vmem:[#allocation25 + $0x164] sm:$0xf]  ;;  %vm11843_vm3 = vmor %vm11835_vm10, %vm11829_vm4  ;;  %vm12205_vm12 = vcmask 1044484  }
 0x642   : > { %v3902_v25 = vsel %vm11530_vm1, %v3895_v43, %v3900_v14  ;;  %v3910_v51 = vsel %vm11530_vm1, %v3903_v46, %v3908_v48  ;;  %v9575_v43 = vld [vmem:[#allocation22 + $0x164] sm:$0xf]  ;;  %4360 = vmatpush.bf16.msra.mxu1 %v8168_v28  ;;  %v8160_v46 = vor.u32 %v9576_v41, %v8159_v38  ;;  %4251 = vmatpush.bf16.msra.mxu0 %v8052_v39  ;;  %v8127_v28 = vld [vmem:[#allocation22 + $0x120] sm:$0xf]  ;;  %v8119_v38 = vld [vmem:[#allocation22 + $0x110] sm:$0xf] }
 0x643   : > { %v3913_v63 = vunpack.c.l.bf16 %v3902_v25  ;;  %v3914_v47 = vunpack.c.l.bf16 %v3910_v51  ;;  %v8164_v48 = vor.u32 %v9575_v43, %v8161_v34  ;;  %v9573_v51 = vld [vmem:[#allocation22 + $0x154] sm:$0xf]  ;;  %v8128_v36 = vor.u32 %v9568_v29, %v8127_v28  ;;  %v9566_v39 = vld [vmem:[#allocation22 + $0x114] sm:$0xf0]  ;;  %v8121_v34 = vld [vmem:[#allocation22 + $0x118] sm:$0xf0] }
 0x644   : > { %v3942_v5 = vld [vmem:[#allocation3 + $0x10] sm:$0x3]  ;;  %v8156_v3 = vor.u32 %v9573_v51, %v8153_v61  ;;  %v9565_v43 = vld [vmem:[#allocation22 + $0x114] sm:$0xf]  ;;  %v9622_v28 = vld [vmem:[#allocation25 + $0x154] sm:$0xf0] }
 0x645   : > { %v7975_v62 = vrot.slane %v3913_v63, 9  ;;  %v7976_v9 = vrot.slane %v3914_v47, 9  ;;  %3946 = vst [vmem:[#allocation1 + $0x20] sm:$0xff] %v3942_v5  ;;  %4373 = vmatpush.bf16.msra.mxu2 %v8172_v31  ;;  %v9572_v5 = vld [vmem:[#allocation22 + $0x144] sm:$0xf0]  ;;  %v8124_v19 = vor.u32 %v9565_v43, %v8121_v34 }
 0x646   : > { %4361 = vmatpush.bf16.msra.mxu1 %v8160_v46  ;;  %v8144_v11 = vor.u32 %v9572_v5, %v8143_v13  ;;  %v3995_v31 = vld [vmem:[#allocation2] sm:$0xc]  ;;  %v9625_v13 = vld [vmem:[#allocation25 + $0x174] sm:$0xf]  ;;  %v8233_v5 = vld [vmem:[#allocation25 + $0x178] sm:$0xf0] }
 0x647   : > { %v3923_v1 = vmax.f32 %v3913_v63, %v7975_v62  ;;  %v3924_v21 = vmax.f32 %v3914_v47, %v7976_v9  ;;  %v8145_v62 = vld [vmem:[#allocation22 + $0x148] sm:$0xf0]  ;;  %v8279_v29 = vld [vmem:[#allocation25 + $0x1d0] sm:$0xf]  ;;  %v11814_v34 = vld [vmem:[#allocation24] sm:$0x3] }
 0x648   : > { %v8148_v20 = vor.u32 %v9571_v8, %v8145_v62  ;;  %v8113_v46 = vld [vmem:[#allocation22 + $0x108] sm:$0xf0]  ;;  %v9641_v8 = vld [vmem:[#allocation25 + $0x1f4] sm:$0xf]  ;;  %v8297_v62 = vld [vmem:[#allocation25 + $0x1f8] sm:$0xf0] }
 0x649   : > { %v3925_v2 = vpack.c.bf16 %v3923_v1, %v3923_v1  ;;  %v3926_v33 = vpack.c.bf16 %v3924_v21, %v3924_v21  ;;  %4374 = vmatpush.bf16.msra.mxu2 %v8164_v48  ;;  %v9569_v1 = vld [vmem:[#allocation22 + $0x134] sm:$0xf]  ;;  %v8137_v21 = vld [vmem:[#allocation22 + $0x138] sm:$0xf0] }
 0x64a   : > { %4362 = vmatpush.bf16.msra.mxu1 %v8152_v56  ;;  %v8140_v27 = vor.u32 %v9569_v1, %v8137_v21  ;;  %v8295_v56 = vld [vmem:[#allocation25 + $0x1f0] sm:$0xf] }
 0x64b   : > { %v3929_v44 = vunpack.c.l.b16 %v3925_v2  ;;  %v3930_v35 = vunpack.c.l.b16 %v3926_v33  ;;  %v8129_v2 = vld [vmem:[#allocation22 + $0x128] sm:$0xf0] }
 0x64c   : > { %v3950_v45 = vld [vmem:[#allocation1 + $0x20] ss:$4 sm:$0xff]  ;;  %v3952_v14 = vld [vmem:[#allocation1 + $0x21] ss:$4 sm:$0xff]  ;;  %v8132_v10 = vor.u32 %v9567_v32, %v8129_v2 }
 0x64d   : > { %v3931_v52 = vrot.slane %v3929_v44, 7  ;;  %v3932_v54 = vrot.slane %v3930_v35, 6  ;;  %v3957_v55 = vshll.u32 %v3950_v45, 16  ;;  %v3960_v57 = vshrl.u32 %v3950_v45, 16  ;;  %4375 = vmatpush.bf16.msra.mxu2 %v8156_v3  ;;  %v9564_v45 = vld [vmem:[#allocation22 + $0x104] sm:$0xf0] }
 0x64e   : > { %v3964_v25 = vshll.u32 %v3952_v14, 16  ;;  %4363 = vmatpush.bf16.msra.mxu1 %v8144_v11  ;;  %v8120_v35 = vor.u32 %v9566_v39, %v8119_v38  ;;  %v9563_v14 = vld [vmem:[#allocation22 + $0x104] sm:$0xf]  ;;  %v8112_v48 = vor.u32 %v9564_v45, %v8111_v40  ;;  %v9642_v3 = vld [vmem:[#allocation25 + $0x1f4] sm:$0xf0] }
 0x64f   : > { %v3933_v60 = vsel %vm2195_vm7, %v3932_v54, %v3931_v52  ;;  %v3959_v0 = vsel %vm11530_vm1, %v3953_v49, %v3957_v55  ;;  %vm3993_vm7 = vsmask.f32 3338  ;;  %v8116_v49 = vor.u32 %v9563_v14, %v8113_v46  ;;  %v9624_v11 = vld [vmem:[#allocation25 + $0x164] sm:$0xf0]  ;;  %v9638_v32 = vld [vmem:[#allocation25 + $0x1d4] sm:$0xf0] }
 0x650   : > { %v3934_v6 = vpack.c.b16 %v3933_v60, %v3933_v60  ;;  %v3966_v63 = vsel %vm11530_vm1, %v3960_v57, %v3964_v25  ;;  %v3969_v47 = vunpack.c.l.bf16 %v3959_v0  ;;  %vm3992_vm1 = vcmask 1043458   ;;  %v9621_v2 = vld [vmem:[#allocation25 + $0x154] sm:$0xf]  ;;  %v9636_v14 = vld [vmem:[#allocation25 + $0x1c4] sm:$0xf0] }
 0x651   : > { %v3970_v4 = vunpack.c.l.bf16 %v3966_v63  ;;  %4376 = vmatpush.bf16.msra.mxu2 %v8148_v20  ;;  %vm3994_vm8 = vmand %vm3992_vm1, %vm3993_vm7  ;;  %v8231_v63 = vld [vmem:[#allocation25 + $0x170] sm:$0xf]  ;;  %v9619_v46 = vld [vmem:[#allocation25 + $0x144] sm:$0xf]  ;;  %vm12208_vm1 = vsmask.f32 7938 }
 0x652   : > { %v3939_v42 = vsel %vm3937_vm15, %v3934_v6, %v3938_v59  ;;  %v7979_v7 = vrot.slane %v3969_v47, 9  ;;  %4364 = vmatpush.bf16.msra.mxu1 %v8136_v23  ;;  %vm4425_vm15 = vmand %vm12205_vm12, %vm4424_vm11 }
 0x653   : > { %3940 = vst [vmem:[#allocation2] sm:$0x3] %v3939_v42  ;;  %v7980_v9 = vrot.slane %v3970_v4, 9  ;;  %v8296_v42 = vor.u32 %v9642_v3, %v8295_v56  ;;  %v9633_v3 = vld [vmem:[#allocation25 + $0x1b4] sm:$0xf]  ;;  %vm11852_vm7 = vmor %vm4425_vm15, %vm11760_vm9 }
 0x654   : > { %v3979_v50 = vmax.f32 %v3969_v47, %v7979_v7  ;;  %v9626_v47 = vld [vmem:[#allocation25 + $0x174] sm:$0xf0]  ;;  %v8236_v7 = vor.u32 %v9625_v13, %v8233_v5  ;;  %v8265_v13 = vld [vmem:[#allocation25 + $0x1b8] sm:$0xf0]  ;;  %vm6900_vm9 = vsmask.f32 7954 }
 0x655   : > { %v3980_v15 = vmax.f32 %v3970_v4, %v7980_v9  ;;  %4377 = vmatpush.bf16.msra.mxu2 %v8140_v27  ;;  %v8232_v4 = vor.u32 %v9626_v47, %v8231_v63  ;;  %v8300_v9 = vor.u32 %v9641_v8, %v8297_v62  ;;  %4701 = vmatpush.bf16.msrb.mxu0 %v8296_v42  ;;  %v8215_v27 = vld [vmem:[#allocation25 + $0x150] sm:$0xf]  ;;  %v9634_v63 = vld [vmem:[#allocation25 + $0x1b4] sm:$0xf0]  ;;  %v9617_v47 = vld [vmem:[#allocation25 + $0x134] sm:$0xf] }
 0x656   : > { %v3981_v18 = vpack.c.bf16 %v3979_v50, %v3979_v50  ;;  %4365 = vmatpush.bf16.msra.mxu1 %v8128_v36  ;;  %v8223_v50 = vld [vmem:[#allocation25 + $0x160] sm:$0xf]  ;;  %v8268_v42 = vor.u32 %v9633_v3, %v8265_v13  ;;  %v9616_v8 = vld [vmem:[#allocation25 + $0x124] sm:$0xf0] }
 0x657   : > { %v3982_v53 = vpack.c.bf16 %v3980_v15, %v3980_v15  ;;  %4688 = vmatpush.bf16.msra.mxu3 %v8232_v4  ;;  %v8287_v15 = vld [vmem:[#allocation25 + $0x1e0] sm:$0xf]  ;;  %v8224_v20 = vor.u32 %v9624_v11, %v8223_v50  ;;  %v8201_v4 = vld [vmem:[#allocation25 + $0x138] sm:$0xf0]  ;;  %v9632_v50 = vld [vmem:[#allocation25 + $0x1a4] sm:$0xf0] }
 0x658   : > { %v3985_v22 = vunpack.c.l.b16 %v3981_v18  ;;  %v8225_v18 = vld [vmem:[#allocation25 + $0x168] sm:$0xf0]  ;;  %v8288_v1 = vor.u32 %v9640_v16, %v8287_v15  ;;  %v8204_v5 = vor.u32 %v9617_v47, %v8201_v4  ;;  %v8255_v62 = vld [vmem:[#allocation25 + $0x1a0] sm:$0xf]  ;;  %v9615_v11 = vld [vmem:[#allocation25 + $0x124] sm:$0xf] }
 0x659   : > { %v3986_v26 = vunpack.c.l.b16 %v3982_v53  ;;  %4378 = vmatpush.bf16.msra.mxu2 %v8132_v10  ;;  %v8228_v21 = vor.u32 %v9623_v12, %v8225_v18  ;;  %v9639_v53 = vld [vmem:[#allocation25 + $0x1e4] sm:$0xf]  ;;  %v8281_v10 = vld [vmem:[#allocation25 + $0x1d8] sm:$0xf0]  ;;  %v8193_v15 = vld [vmem:[#allocation25 + $0x128] sm:$0xf0] }
 0x65a   : > { %v3987_v30 = vrot.slane %v3985_v22, 3  ;;  %4366 = vmatpush.bf16.msra.mxu1 %v8120_v35  ;;  %v8289_v22 = vld [vmem:[#allocation25 + $0x1e8] sm:$0xf0]  ;;  %4702 = vmatpush.bf16.msrb.mxu0 %v8288_v1  ;;  %v9620_v35 = vld [vmem:[#allocation25 + $0x144] sm:$0xf0]  ;;  %v8196_v16 = vor.u32 %v9615_v11, %v8193_v15 }
 0x65b   : > { %v3988_v33 = vrot.slane %v3986_v26, 2  ;;  %4689 = vmatpush.bf16.msra.mxu3 %v8224_v20  ;;  %v8292_v23 = vor.u32 %v9639_v53, %v8289_v22  ;;  %v8256_v20 = vor.u32 %v9632_v50, %v8255_v62  ;;  %v9631_v12 = vld [vmem:[#allocation25 + $0x1a4] sm:$0xf]  ;;  %v8257_v18 = vld [vmem:[#allocation25 + $0x1a8] sm:$0xf0] }
 0x65c   : > { %v8183_v1 = vld [vmem:[#allocation25 + $0x110] sm:$0xf]  ;;  %v9614_v53 = vld [vmem:[#allocation25 + $0x114] sm:$0xf0]  ;;  %v9592_v13 = vld [vmem:[#allocation25 + $0x64] sm:$0xf0] }
 0x65d   : > { %v3989_v37 = vsel %vm12198_vm0, %v3988_v33, %v3987_v30  ;;  %4379 = vmatpush.bf16.msra.mxu2 %v8124_v19  ;;  %v8216_v30 = vor.u32 %v9622_v28, %v8215_v27  ;;  %v8217_v33 = vld [vmem:[#allocation25 + $0x158] sm:$0xf0]  ;;  %v8271_v19 = vld [vmem:[#allocation25 + $0x1c0] sm:$0xf]  ;;  %v8247_v22 = vld [vmem:[#allocation25 + $0x190] sm:$0xf]  ;;  %v8184_v28 = vor.u32 %v9614_v53, %v8183_v1 }
 0x65e   : > { %v3990_v41 = vpack.c.b16 %v3989_v37, %v3989_v37  ;;  %4367 = vmatpush.bf16.msra.mxu1 %v8112_v48  ;;  %v8220_v36 = vor.u32 %v9621_v2, %v8217_v33  ;;  %v9637_v37 = vld [vmem:[#allocation25 + $0x1d4] sm:$0xf]  ;;  %v8209_v48 = vld [vmem:[#allocation25 + $0x148] sm:$0xf0]  ;;  %v9591_v62 = vld [vmem:[#allocation25 + $0x64] sm:$0xf] }
 0x65f   : > { %4690 = vmatpush.bf16.msra.mxu3 %v8216_v30  ;;  %v8284_v38 = vor.u32 %v9637_v37, %v8281_v10  ;;  %v8185_v30 = vld [vmem:[#allocation25 + $0x118] sm:$0xf0]  ;;  %v9612_v37 = vld [vmem:[#allocation25 + $0x104] sm:$0xf0]  ;;  %v9607_v15 = vld [vmem:[#allocation25 + $0xe4] sm:$0xf] }
 0x660   : > { %v3996_v44 = vsel %vm3994_vm8, %v3990_v41, %v3995_v31  ;;  %v8280_v31 = vor.u32 %v9638_v32, %v8279_v29  ;;  %v9613_v29 = vld [vmem:[#allocation25 + $0x114] sm:$0xf]  ;;  %v9606_v53 = vld [vmem:[#allocation25 + $0xd4] sm:$0xf0]  ;;  %vm11965_vm0 = vmand %vm2187_vm6, %vm12208_vm1 }
 0x661   : > { %3997 = vst [vmem:[#allocation2] sm:$0xc] %v3996_v44  ;;  %4380 = vmatpush.bf16.msra.mxu2 %v8116_v49  ;;  %v8207_v44 = vld [vmem:[#allocation25 + $0x140] sm:$0xf]  ;;  %v8272_v49 = vor.u32 %v9636_v14, %v8271_v19  ;;  %v9629_v32 = vld [vmem:[#allocation25 + $0x194] sm:$0xf]  ;;  %vm12211_vm8 = vmmov %vm12205_vm12 }
 0x662   : > { %4703 = vmatpush.bf16.msrb.mxu0 %v8280_v31  ;;  %v8208_v45 = vor.u32 %v9620_v35, %v8207_v44  ;;  %v8249_v31 = vld [vmem:[#allocation25 + $0x198] sm:$0xf0]  ;;  %v9628_v44 = vld [vmem:[#allocation25 + $0x184] sm:$0xf0]  ;;  %v9611_v35 = vld [vmem:[#allocation25 + $0x104] sm:$0xf] }
 0x663   : > { %v9627_v14 = vld [vmem:[#allocation25 + $0x184] sm:$0xf]  ;;  %vm11970_vm13 = vmand %vm12211_vm8, %vm6900_vm9 }
 0x664   : > { %4691 = vmatpush.bf16.msra.mxu3 %v8208_v45  ;;  %v8177_v45 = vld [vmem:[#allocation25 + $0x108] sm:$0xf0]  ;;  %vm6902_vm5 = vmor %vm11970_vm13, %vm11965_vm0 }
 0x666   : > { %4704 = vmatpush.bf16.msrb.mxu0 %v8272_v49  ;;  %v8423_v49 = vld [vmem:[#allocation25 + $0xf0] sm:$0xf] }
 0x668   : > { %v3999_v52 = vld [vmem:[#allocation2] sm:$0x7] }
 0x669   : > { %v4016_v54 = vld [vmem:[#allocation2] sm:$0xf]  ;;  %4239 = vmatmul.bf16.vlgmr.msrb.gmra.mxu3 %v3999_v52  ;;  %4252 = vmatmul.bf16.vlgmr.msra.gmra.mxu0 %v3999_v52  ;;  %v8212_v52 = vor.u32 %v9619_v46, %v8209_v48  ;;  %v8241_v46 = vld [vmem:[#allocation25 + $0x188] sm:$0xf0] }
 0x66a   : > { %v4035_v55 = vunpack.c.l.b16 %v4016_v54  ;;  %v4257_v59 = vld [vmem:[#allocation2] sm:$0xe]  ;;  %v9635_v54 = vld [vmem:[#allocation25 + $0x1c4] sm:$0xf]  ;;  %v8244_v4 = vor.u32 %v9627_v14, %v8241_v46  ;;  %v8401_v46 = vld [vmem:[#allocation25 + $0xc8] sm:$0xf0] }
 0x66b   : > { %v4276_v0 = vunpack.c.l.b16 %v4257_v59  ;;  %v9618_v59 = vld [vmem:[#allocation25 + $0x134] sm:$0xf0]  ;;  %v9603_v14 = vld [vmem:[#allocation25 + $0xc4] sm:$0xf] }
 0x66c   : > { %v4036_v57 = vpack.c.b16 %v4035_v55, %v4035_v55 }
 0x66d   : > { %v4277_v61 = vpack.c.b16 %v4276_v0, %v4276_v0 }
 0x66e   : > { %v4040_v58 = vshll.u32 %v4036_v57, 16  ;;  %v4038_v25 = vshrl.u32 %v4036_v57, 16  ;;  %v8273_v57 = vld [vmem:[#allocation25 + $0x1c8] sm:$0xf0] }
 0x66f   : > { %v4278_v6 = vrot.slane %v4277_v61, 1 }
 0x670   : > { %v4042_v51 = vrot.slane %v4040_v58, 1  ;;  %v4390_v58 = vperm.slane %v11814_v34, 0 }
 0x672   : > { %v4043_v60 = vor.u32 %v4042_v51, %v4038_v25  ;;  %v4391_v25 = vperm.slane %v11814_v34, 1  ;;  %v8276_v51 = vor.u32 %v9635_v54, %v8273_v57  ;;  %v9610_v57 = vld [vmem:[#allocation25 + $0xf4] sm:$0xf0]  ;;  %v8335_v34 = vld [vmem:[#allocation25 + $0x40] sm:$0xf] }
 0x674   : > { %4133 = vmatmul.bf16.vlgmr.msrb.gmra.mxu1 %v4043_v60  ;;  %4146 = vmatmul.bf16.vlgmr.msrb.gmra.mxu2 %v4043_v60  ;;  %v8199_v60 = vld [vmem:[#allocation25 + $0x130] sm:$0xf] }
 0x675   : > { %4714 = vmatpush.bf16.msrb.mxu1 %v8236_v7  ;;  %4727 = vmatpush.bf16.msrb.mxu2 %v8300_v9  ;;  %v8200_v61 = vor.u32 %v9618_v59, %v8199_v60  ;;  %v8191_v7 = vld [vmem:[#allocation25 + $0x120] sm:$0xf]  ;;  %v8361_v60 = vld [vmem:[#allocation25 + $0x78] sm:$0xf0]  ;;  %v8180_v59 = vor.u32 %v9611_v35, %v8177_v45  ;;  %v9587_v35 = vld [vmem:[#allocation25 + $0x44] sm:$0xf] }
 0x676   : > { %v8192_v9 = vor.u32 %v9616_v8, %v8191_v7  ;;  %v9608_v8 = vld [vmem:[#allocation25 + $0xe4] sm:$0xf0] }
 0x677   : > { %4692 = vmatpush.bf16.msra.mxu3 %v8200_v61  ;;  %v9609_v61 = vld [vmem:[#allocation25 + $0xf4] sm:$0xf] }
 0x679   : > { %4715 = vmatpush.bf16.msrb.mxu1 %v8228_v21  ;;  %4728 = vmatpush.bf16.msrb.mxu2 %v8292_v23  ;;  %v8260_v21 = vor.u32 %v9631_v12, %v8257_v18  ;;  %v9630_v23 = vld [vmem:[#allocation25 + $0x194] sm:$0xf0] }
 0x67a   : > { %v8248_v33 = vor.u32 %v9630_v23, %v8247_v22  ;;  %v9589_v23 = vld [vmem:[#allocation25 + $0x54] sm:$0xf] }
 0x67b   : > { %4693 = vmatpush.bf16.msra.mxu3 %v8192_v9  ;;  %v8353_v9 = vld [vmem:[#allocation25 + $0x68] sm:$0xf0] }
 0x67c   : > { %v8356_v1 = vor.u32 %v9591_v62, %v8353_v9  ;;  %v8383_v62 = vld [vmem:[#allocation25 + $0xa0] sm:$0xf]  ;;  %v9600_v9 = vld [vmem:[#allocation25 + $0xa4] sm:$0xf0] }
 0x67d   : > { %4716 = vmatpush.bf16.msrb.mxu1 %v8220_v36  ;;  %4729 = vmatpush.bf16.msrb.mxu2 %v8284_v38  ;;  %v8175_v36 = vld [vmem:[#allocation25 + $0x100] sm:$0xf]  ;;  %v8188_v38 = vor.u32 %v9613_v29, %v8185_v30  ;;  %v9605_v30 = vld [vmem:[#allocation25 + $0xd4] sm:$0xf] }
 0x67e   : > { %v8176_v48 = vor.u32 %v9612_v37, %v8175_v36 }
 0x67f   : > { %4694 = vmatpush.bf16.msra.mxu3 %v8184_v28 }
 0x681   : > { %4717 = vmatpush.bf16.msrb.mxu1 %v8212_v52  ;;  %4730 = vmatpush.bf16.msrb.mxu2 %v8276_v51  ;;  %v9593_v51 = vld [vmem:[#allocation25 + $0x74] sm:$0xf] }
 0x682   : > { %v8364_v3 = vor.u32 %v9593_v51, %v8361_v60  ;;  %v8391_v51 = vld [vmem:[#allocation25 + $0xb0] sm:$0xf]  ;;  %v9602_v60 = vld [vmem:[#allocation25 + $0xb4] sm:$0xf0] }
 0x683   : > { %4695 = vmatpush.bf16.msra.mxu3 %v8176_v48 }
 0x684   : > { %4368 = vmatmul.bf16.vlgmr.msra.gmra.mxu1 %v4278_v6  ;;  %4381 = vmatmul.bf16.vlgmr.msra.gmra.mxu2 %v4278_v6  ;;  %v8263_v6 = vld [vmem:[#allocation25 + $0x1b0] sm:$0xf] }
 0x685   : > { %v8264_v56 = vor.u32 %v9634_v63, %v8263_v6  ;;  %4718 = vmatpush.bf16.msrb.mxu1 %v8204_v5  ;;  %4731 = vmatpush.bf16.msrb.mxu2 %v8268_v42  ;;  %v8425_v6 = vld [vmem:[#allocation25 + $0xf8] sm:$0xf0]  ;;  %v8351_v63 = vld [vmem:[#allocation25 + $0x60] sm:$0xf] }
 0x686   : > { %v8415_v5 = vld [vmem:[#allocation25 + $0xe0] sm:$0xf]  ;;  %v8428_v7 = vor.u32 %v9609_v61, %v8425_v6  ;;  %v8352_v11 = vor.u32 %v9592_v13, %v8351_v63  ;;  %v8329_v61 = vld [vmem:[#allocation25 + $0x38] sm:$0xf0]  ;;  %v8392_v13 = vor.u32 %v9602_v60, %v8391_v51  ;;  %v8487_v51 = vld [vmem:[#allocation25 + $0x270] sm:$0xf] }
 0x687   : > { %4705 = vmatpush.bf16.msrb.mxu0 %v8264_v56  ;;  %v9658_v60 = vld [vmem:[#allocation25 + $0x274] sm:$0xf0] }
 0x689   : > { %4719 = vmatpush.bf16.msrb.mxu1 %v8196_v16  ;;  %4732 = vmatpush.bf16.msrb.mxu2 %v8260_v21  ;;  %v9590_v16 = vld [vmem:[#allocation25 + $0x54] sm:$0xf0]  ;;  %v8407_v21 = vld [vmem:[#allocation25 + $0xd0] sm:$0xf] }
 0x68b   : > { %4706 = vmatpush.bf16.msrb.mxu0 %v8256_v20  ;;  %v8343_v20 = vld [vmem:[#allocation25 + $0x50] sm:$0xf] }
 0x68c   : > { %v8344_v29 = vor.u32 %v9590_v16, %v8343_v20  ;;  %v9599_v20 = vld [vmem:[#allocation25 + $0xa4] sm:$0xf]  ;;  %v8385_v16 = vld [vmem:[#allocation25 + $0xa8] sm:$0xf0] }
 0x68d   : > { %4720 = vmatpush.bf16.msrb.mxu1 %v8188_v38  ;;  %v9604_v38 = vld [vmem:[#allocation25 + $0xc4] sm:$0xf0] }
 0x68f   : > { %4707 = vmatpush.bf16.msrb.mxu0 %v8248_v33  ;;  %v8408_v33 = vor.u32 %v9606_v53, %v8407_v21  ;;  %v8375_v53 = vld [vmem:[#allocation25 + $0x90] sm:$0xf] }
 0x691   : > { %4721 = vmatpush.bf16.msrb.mxu1 %v8180_v59  ;;  %v8404_v59 = vor.u32 %v9603_v14, %v8401_v46 }
 0x695   : > { %4933 = vmatpush.bf16.msra.mxu1 %v8364_v3  ;;  %v9886_v3 = vld [vmem:[#allocation31 + $0x98] sm:$0xff] }
 0x699   : > { %4934 = vmatpush.bf16.msra.mxu1 %v8356_v1  ;;  %v9582_v1 = vld [vmem:[#allocation25 + $0x14] sm:$0xf0] }
 0x6e6   : > { %v11810_v26 = vpop.f32.mrf.mxu0 }
 0x6ec   : > { %v11812_v39 = vpop.f32.mrf.mxu3 }
 0x6ee   : > { %v4255_v41 = vpop.f32.mrf.mxu0 }
 0x6ef   : > { %v8239_v41 = vld [vmem:[#allocation25 + $0x180] sm:$0xf] }
 0x6f0   : > { %v8240_v52 = vor.u32 %v9628_v44, %v8239_v41 }
 0x6f1   : > { %v4134_v43 = vpop.f32.mrf.mxu1 }
 0x6f2   : > { %v4241_v2 = vadd.f32 %v11812_v39, %v4134_v43  ;;  %v8359_v39 = vld [vmem:[#allocation25 + $0x70] sm:$0xf]  ;;  %v9594_v43 = vld [vmem:[#allocation25 + $0x74] sm:$0xf0]  ;;  %4708 = vmatpush.bf16.msrb.mxu0 %v8240_v52 }
 0x6f3   : > { %v8360_v54 = vor.u32 %v9594_v43, %v8359_v39  ;;  %v8327_v43 = vld [vmem:[#allocation25 + $0x30] sm:$0xf] }
 0x6f4   : > { %v4242_v40 = vpop.f32.mrf.mxu3 }
 0x6f5   : > { %v8252_v40 = vor.u32 %v9629_v32, %v8249_v31  ;;  %4907 = vmatpush.bf16.msrb.mxu3 %v8360_v54  ;;  %v8409_v32 = vld [vmem:[#allocation25 + $0xd8] sm:$0xf0] }
 0x6f6   : > { %v8412_v44 = vor.u32 %v9605_v30, %v8409_v32  ;;  %v9597_v30 = vld [vmem:[#allocation25 + $0x94] sm:$0xf]  ;;  %v8377_v32 = vld [vmem:[#allocation25 + $0x98] sm:$0xf0] }
 0x6f7   : > { %v11816_v55 = vpop.f32.mrf.mxu2  ;;  %4733 = vmatpush.bf16.msrb.mxu2 %v8252_v40 }
 0x6f8   : > { %v4254_v47 = vadd.f32 %v11810_v26, %v11816_v55  ;;  %v8417_v26 = vld [vmem:[#allocation25 + $0xe8] sm:$0xf0] }
 0x6f9   : > { %v4136_v0 = vpop.f32.mrf.mxu1  ;;  %v8420_v22 = vor.u32 %v9607_v15, %v8417_v26  ;;  %4908 = vmatpush.bf16.msrb.mxu3 %v8352_v11  ;;  %v9583_v15 = vld [vmem:[#allocation25 + $0x24] sm:$0xf]  ;;  %v8321_v26 = vld [vmem:[#allocation25 + $0x28] sm:$0xf0] }
 0x6fa   : > { %v8424_v0 = vor.u32 %v9610_v57, %v8423_v49  ;;  %v9586_v49 = vld [vmem:[#allocation25 + $0x34] sm:$0xf0]  ;;  %v8324_v21 = vor.u32 %v9583_v15, %v8321_v26  ;;  %v9656_v15 = vld [vmem:[#allocation25 + $0x264] sm:$0xf0] }
 0x6fb   : > { %4734 = vmatpush.bf16.msrb.mxu2 %v8244_v4  ;;  %v8393_v4 = vld [vmem:[#allocation25 + $0xb8] sm:$0xf0] }
 0x6fc   : > { %4920 = vmatpush.bf16.msra.mxu0 %v8424_v0  ;;  %v9585_v0 = vld [vmem:[#allocation25 + $0x34] sm:$0xf] }
 0x6fd   : > { %4909 = vmatpush.bf16.msrb.mxu3 %v8344_v29 }
 0x6ff   : > { %v4149_v27 = vpop.f32.mrf.mxu2  ;;  %4946 = vmatpush.bf16.msra.mxu2 %v8428_v7 }
 0x700   : > { %v8345_v27 = vld [vmem:[#allocation25 + $0x58] sm:$0xf0] }
 0x701   : > { %v4369_v10 = vpop.f32.mrf.mxu1  ;;  %v8348_v37 = vor.u32 %v9589_v23, %v8345_v27  ;;  %v8388_v23 = vor.u32 %v9599_v20, %v8385_v16  ;;  %v9581_v27 = vld [vmem:[#allocation25 + $0x14] sm:$0xf]  ;;  %v9672_v20 = vld [vmem:[#allocation25 + $0x2e4] sm:$0xf0]  ;;  %v9655_v16 = vld [vmem:[#allocation25 + $0x264] sm:$0xf] }
 0x702   : > { %v4386_v19 = vadd.f32 %v4369_v10, %v4241_v2  ;;  %v4401_v2 = vpop.permute.xlu1 %4400  ;;  %v8399_v10 = vld [vmem:[#allocation25 + $0xc0] sm:$0xf] }
 0x703   : > { %4947 = vmatpush.bf16.msra.mxu2 %v8420_v22  ;;  %v8400_v39 = vor.u32 %v9604_v38, %v8399_v10  ;;  %4935 = vmatpush.bf16.msra.mxu1 %v8348_v37  ;;  %v9598_v22 = vld [vmem:[#allocation25 + $0x94] sm:$0xf0]  ;;  %v9596_v37 = vld [vmem:[#allocation25 + $0x84] sm:$0xf0]  ;;  %v8380_v10 = vor.u32 %v9597_v30, %v8377_v32  ;;  %v9579_v38 = vld [vmem:[#allocation25 + $0x4] sm:$0xf] }
 0x704   : > { %v4394_v56 = vadd.f32 %v4390_v58, %v4386_v19  ;;  %v8416_v58 = vor.u32 %v9608_v8, %v8415_v5  ;;  %v8337_v19 = vld [vmem:[#allocation25 + $0x48] sm:$0xf0]  ;;  %v8319_v5 = vld [vmem:[#allocation25 + $0x20] sm:$0xf]  ;;  %v8332_v8 = vor.u32 %v9585_v0, %v8329_v61  ;;  %v8551_v61 = vld [vmem:[#allocation25 + $0x2f0] sm:$0xf] }
 0x705   : > { %v8340_v57 = vor.u32 %v9587_v35, %v8337_v19  ;;  %v9670_v30 = vld [vmem:[#allocation25 + $0x2d4] sm:$0xf0]  ;;  %v9653_v32 = vld [vmem:[#allocation25 + $0x254] sm:$0xf] }
 0x706   : > { %v4396_v12 = vmax.f32 %v4394_v56, 0.0  ;;  %4921 = vmatpush.bf16.msra.mxu0 %v8416_v58  ;;  %v9601_v56 = vld [vmem:[#allocation25 + $0xb4] sm:$0xf] }
 0x707   : > { %v4382_v42 = vpop.f32.mrf.mxu2  ;;  %4948 = vmatpush.bf16.msra.mxu2 %v8412_v44  ;;  %4936 = vmatpush.bf16.msra.mxu1 %v8340_v57  ;;  %v8396_v11 = vor.u32 %v9601_v56, %v8393_v4  ;;  %v9595_v44 = vld [vmem:[#allocation25 + $0x84] sm:$0xf]  ;;  %v9673_v56 = vld [vmem:[#allocation25 + $0x2f4] sm:$0xf] }
 0x708   : > { %v4387_v50 = vadd.f32 %v4382_v42, %v4254_v47  ;;  %v4403_v31 = vmul.f32 %v4401_v2, %v4396_v12  ;;  %v8328_v47 = vor.u32 %v9586_v49, %v8327_v43  ;;  %v9584_v42 = vld [vmem:[#allocation25 + $0x24] sm:$0xf0]  ;;  %v8384_v12 = vor.u32 %v9600_v9, %v8383_v62 }
 0x709   : > { %v4371_v55 = vpop.f32.mrf.mxu1  ;;  %v8320_v58 = vor.u32 %v9584_v42, %v8319_v5  ;;  %v8488_v9 = vor.u32 %v9658_v60, %v8487_v51  ;;  %v8519_v51 = vld [vmem:[#allocation25 + $0x2b0] sm:$0xf]  ;;  %v9666_v60 = vld [vmem:[#allocation25 + $0x2b4] sm:$0xf0] }
 0x70a   : > { %v4395_v18 = vadd.f32 %v4391_v25, %v4387_v50  ;;  %v9588_v25 = vld [vmem:[#allocation25 + $0x44] sm:$0xf0]  ;;  %4922 = vmatpush.bf16.msra.mxu0 %v8408_v33  ;;  %v4420_v50 = vld [vmem:[#allocation3] sm:$0xff]  ;;  %v8303_v33 = vld [vmem:[#allocation25] sm:$0xf] }
 0x70b   : > { %v8336_v45 = vor.u32 %v9588_v25, %v8335_v34  ;;  %4949 = vmatpush.bf16.msra.mxu2 %v8404_v59  ;;  %4937 = vmatpush.bf16.msra.mxu1 %v8332_v8  ;;  %v9580_v34 = vld [vmem:[#allocation25 + $0x4] sm:$0xf0] }
 0x70c   : > { %v4397_v28 = vmax.f32 %v4395_v18, 0.0  ;;  %v8311_v18 = vld [vmem:[#allocation25 + $0x10] sm:$0xf] }
 0x70d   : > { %4910 = vmatpush.bf16.msrb.mxu3 %v8336_v45  ;;  %v8312_v29 = vor.u32 %v9582_v1, %v8311_v18  ;;  %v8369_v45 = vld [vmem:[#allocation25 + $0x88] sm:$0xf0]  ;;  %v9671_v18 = vld [vmem:[#allocation25 + $0x2e4] sm:$0xf] }
 0x70e   : > { %v4404_v36 = vmul.f32 %v4401_v2, %v4397_v28  ;;  %4923 = vmatpush.bf16.msra.mxu0 %v8400_v39  ;;  %v8313_v28 = vld [vmem:[#allocation25 + $0x18] sm:$0xf0]  ;;  %v8376_v2 = vor.u32 %v9598_v22, %v8375_v53  ;;  %v8372_v39 = vor.u32 %v9595_v44, %v8369_v45  ;;  %v8545_v1 = vld [vmem:[#allocation25 + $0x2e8] sm:$0xf0]  ;;  %v8471_v22 = vld [vmem:[#allocation25 + $0x250] sm:$0xf] }
 0x70f   : > { %v4384_v41 = vpop.f32.mrf.mxu2  ;;  %4950 = vmatpush.bf16.msra.mxu2 %v8396_v11  ;;  %4938 = vmatpush.bf16.msra.mxu1 %v8324_v21  ;;  %v8316_v25 = vor.u32 %v9581_v27, %v8313_v28  ;;  %v8479_v11 = vld [vmem:[#allocation25 + $0x260] sm:$0xf]  ;;  %v8548_v28 = vor.u32 %v9671_v18, %v8545_v1  ;;  %v8465_v45 = vld [vmem:[#allocation25 + $0x248] sm:$0xf0]  ;;  %v8503_v1 = vld [vmem:[#allocation25 + $0x290] sm:$0xf] }
 0x710   : > { %v4405_v40 = vpack.c.bf16 %v4404_v36, %v4403_v31  ;;  %v8367_v36 = vld [vmem:[#allocation25 + $0x80] sm:$0xf]  ;;  %v8305_v41 = vld [vmem:[#allocation25 + $0x8] sm:$0xf0]  ;;  %v8480_v21 = vor.u32 %v9656_v15, %v8479_v11  ;;  %v9663_v11 = vld [vmem:[#allocation25 + $0x2a4] sm:$0xf] }
 0x711   : > { %4911 = vmatpush.bf16.msrb.mxu3 %v8328_v47  ;;  %v8368_v46 = vor.u32 %v9596_v37, %v8367_v36  ;;  %v8308_v48 = vor.u32 %v9579_v38, %v8305_v41  ;;  %v8489_v47 = vld [vmem:[#allocation25 + $0x278] sm:$0xf0]  ;;  %v8463_v37 = vld [vmem:[#allocation25 + $0x240] sm:$0xf]  ;;  %v8513_v15 = vld [vmem:[#allocation25 + $0x2a8] sm:$0xf0] }
 0x712   : > { %v4407_v52 = vshrl.u32 %v4405_v40, 16  ;;  %v4410_v63 = vshll.u32 %v4405_v40, 16  ;;  %4924 = vmatpush.bf16.msra.mxu0 %v8392_v13  ;;  %v8304_v40 = vor.u32 %v9580_v34, %v8303_v33  ;;  %v9669_v33 = vld [vmem:[#allocation25 + $0x2d4] sm:$0xf]  ;;  %v8537_v34 = vld [vmem:[#allocation25 + $0x2d8] sm:$0xf0]  ;;  %v8516_v18 = vor.u32 %v9663_v11, %v8513_v15 }
 0x713   : > { %4951 = vmatpush.bf16.msra.mxu2 %v8388_v23  ;;  %4939 = vmatpush.bf16.msra.mxu1 %v8316_v25  ;;  %v9654_v23 = vld [vmem:[#allocation25 + $0x254] sm:$0xf0]  ;;  %v8527_v38 = vld [vmem:[#allocation25 + $0x2c0] sm:$0xf]  ;;  %v8540_v44 = vor.u32 %v9669_v33, %v8537_v34 }
 0x714   : > { %v4409_v6 = vrot.slane %v4407_v52, 7  ;;  %v8472_v25 = vor.u32 %v9654_v23, %v8471_v22  ;;  %v8441_v22 = vld [vmem:[#allocation25 + $0x218] sm:$0xf0]  ;;  %v9661_v23 = vld [vmem:[#allocation25 + $0x294] sm:$0xf] }
 0x715   : > { %4912 = vmatpush.bf16.msrb.mxu3 %v8320_v58  ;;  %v8543_v58 = vld [vmem:[#allocation25 + $0x2e0] sm:$0xf]  ;;  %v8785_v11 = vld [vmem:[#allocation28 + $0x3d0] sm:$0xf0] }
 0x716   : > { %v4412_v7 = vor.u32 %v4410_v63, %v4409_v6  ;;  %4925 = vmatpush.bf16.msra.mxu0 %v8384_v12  ;;  %v9674_v6 = vld [vmem:[#allocation25 + $0x2f4] sm:$0xf0]  ;;  %v9657_v63 = vld [vmem:[#allocation25 + $0x274] sm:$0xf]  ;;  %v8481_v12 = vld [vmem:[#allocation25 + $0x268] sm:$0xf0]  ;;  %v8544_v53 = vor.u32 %v9672_v20, %v8543_v58 }
 0x717   : > { %4952 = vmatpush.bf16.msra.mxu2 %v8380_v10  ;;  %4940 = vmatpush.bf16.msra.mxu1 %v8308_v48  ;;  %v8492_v26 = vor.u32 %v9657_v63, %v8489_v47  ;;  %v8484_v27 = vor.u32 %v9655_v16, %v8481_v12  ;;  %v9652_v10 = vld [vmem:[#allocation25 + $0x244] sm:$0xf0]  ;;  %v8439_v58 = vld [vmem:[#allocation25 + $0x210] sm:$0xf]  ;;  %v9646_v20 = vld [vmem:[#allocation25 + $0x214] sm:$0xf0] }
 0x718   : > { %v4421_v55 = vsel %vm11843_vm3, %v4412_v7, %v4420_v50  ;;  %v8553_v7 = vld [vmem:[#allocation25 + $0x2f8] sm:$0xf0]  ;;  %v8552_v50 = vor.u32 %v9674_v6, %v8551_v61  ;;  %v9665_v61 = vld [vmem:[#allocation25 + $0x2b4] sm:$0xf] }
 0x719   : > { %4422 = vst [vmem:[#allocation3] sm:$0xff] %v4421_v55  ;;  %4913 = vmatpush.bf16.msrb.mxu3 %v8312_v29  ;;  %v8556_v55 = vor.u32 %v9673_v56, %v8553_v7  ;;  %v8535_v29 = vld [vmem:[#allocation25 + $0x2d0] sm:$0xf]  ;;  %v8521_v6 = vld [vmem:[#allocation25 + $0x2b8] sm:$0xf0] }
 0x71a   : > { %4926 = vmatpush.bf16.msra.mxu0 %v8376_v2  ;;  %v8473_v2 = vld [vmem:[#allocation25 + $0x258] sm:$0xf0]  ;;  %v8536_v36 = vor.u32 %v9670_v30, %v8535_v29  ;;  %v8524_v7 = vor.u32 %v9665_v61, %v8521_v6  ;;  %v8431_v30 = vld [vmem:[#allocation25 + $0x200] sm:$0xf]  ;;  %v8801_v61 = vld [vmem:[#allocation28 + $0x3f0] sm:$0xf0] }
 0x71b   : > { %4953 = vmatpush.bf16.msra.mxu2 %v8372_v39  ;;  %v8476_v41 = vor.u32 %v9653_v32, %v8473_v2  ;;  %v9644_v32 = vld [vmem:[#allocation25 + $0x204] sm:$0xf0] }
 0x71d   : > { %4914 = vmatpush.bf16.msrb.mxu3 %v8304_v40 }
 0x71e   : > { %4927 = vmatpush.bf16.msra.mxu0 %v8368_v46  ;;  %v8464_v46 = vor.u32 %v9652_v10, %v8463_v37  ;;  %v9643_v37 = vld [vmem:[#allocation25 + $0x204] sm:$0xf] }
 0x720   : > { %v4427_v35 = vld [vmem:[#allocation3] sm:$0x11]  ;;  %v4436_v19 = vld [vmem:[#allocation3] sm:$0x88] }
 0x721   : > { %v4428_v24 = vsel %vm11852_vm7, 0, %v4427_v35  ;;  %v4437_v14 = vsel %vm11591_vm14, 0, %v4436_v19  ;;  %v9668_v35 = vld [vmem:[#allocation25 + $0x2c4] sm:$0xf0]  ;;  %v9651_v19 = vld [vmem:[#allocation25 + $0x244] sm:$0xf] }
 0x722   : > { %4429 = vst [vmem:[#allocation3] sm:$0x11] %v4428_v24  ;;  %v9667_v24 = vld [vmem:[#allocation25 + $0x2c4] sm:$0xf]  ;;  %v8528_v48 = vor.u32 %v9668_v35, %v8527_v38  ;;  %v8433_v38 = vld [vmem:[#allocation25 + $0x208] sm:$0xf0]  ;;  %v8432_v35 = vor.u32 %v9644_v32, %v8431_v30 }
 0x723   : > { %4438 = vst [vmem:[#allocation3] sm:$0x88] %v4437_v14  ;;  %v8529_v14 = vld [vmem:[#allocation25 + $0x2c8] sm:$0xf0] }
 0x729   : > { %v4440_v40 = vld [vmem:[#allocation3] sm:$0x77] }
 0x72a   : > { %v4473_v43 = vld [vmem:[#allocation3] sm:$0xff]  ;;  %v4741_v39 = vunpack.c.l.b16 %v4440_v40 }
 0x72b   : > { %v4508_v49 = vunpack.c.l.b16 %v4473_v43  ;;  %v4509_v52 = vunpack.c.h.b16 %v4473_v43  ;;  %v4742_v43 = vunpack.c.h.b16 %v4440_v40  ;;  %v4959_v16 = vld [vmem:[#allocation3] sm:$0xee] }
 0x72c   : > { %v4743_v47 = vpack.c.b16 %v4741_v39, %v4741_v39  ;;  %v4994_v2 = vunpack.c.l.b16 %v4959_v16  ;;  %v4995_v10 = vunpack.c.h.b16 %v4959_v16  ;;  %v8671_v39 = vld [vmem:[#allocation28 + $0x2e0] sm:$0xf]  ;;  %v9793_v16 = vld [vmem:[#allocation28 + $0x3ac] sm:$0xf0] }
 0x72d   : > { %v4510_v54 = vpack.c.b16 %v4508_v49, %v4508_v49  ;;  %v4511_v57 = vpack.c.b16 %v4509_v52, %v4509_v52  ;;  %v8455_v49 = vld [vmem:[#allocation25 + $0x230] sm:$0xf]  ;;  %v9650_v52 = vld [vmem:[#allocation25 + $0x234] sm:$0xf0]  ;;  %v4744_v56 = vpack.c.b16 %v4742_v43, %v4742_v43 }
 0x72e   : > { %v8456_v63 = vor.u32 %v9650_v52, %v8455_v49  ;;  %v4996_v40 = vpack.c.b16 %v4994_v2, %v4994_v2  ;;  %v9769_v43 = vld [vmem:[#allocation28 + $0x2ec] sm:$0xf0]  ;;  %v8799_v49 = vld [vmem:[#allocation28 + $0x3e0] sm:$0xf] }
 0x72f   : > { %v4515_v59 = vshll.u32 %v4510_v54, 16  ;;  %v4522_v0 = vshll.u32 %v4511_v57, 16  ;;  %v4513_v4 = vshrl.u32 %v4510_v54, 16  ;;  %v4520_v5 = vshrl.u32 %v4511_v57, 16 }
 0x730   : > { %v8468_v54 = vor.u32 %v9651_v19, %v8465_v45  ;;  %v8532_v57 = vor.u32 %v9667_v24, %v8529_v14  ;;  %v8436_v45 = vor.u32 %v9643_v37, %v8433_v38  ;;  %v4997_v14 = vpack.c.b16 %v4995_v10, %v4995_v10  ;;  %v8751_v37 = vld [vmem:[#allocation28 + $0x380] sm:$0xf]  ;;  %v9789_v38 = vld [vmem:[#allocation28 + $0x38c] sm:$0xf0] }
 0x731   : > { %v4517_v13 = vrot.slane %v4515_v59, 1  ;;  %v4524_v42 = vrot.slane %v4522_v0, 1  ;;  %v9649_v59 = vld [vmem:[#allocation25 + $0x234] sm:$0xf]  ;;  %v8457_v0 = vld [vmem:[#allocation25 + $0x238] sm:$0xf0]  ;;  %v8672_v52 = vor.u32 %v9769_v43, %v8671_v39 }
 0x732   : > { %v8607_v39 = vld [vmem:[#allocation28 + $0x260] sm:$0xf]  ;;  %v9753_v43 = vld [vmem:[#allocation28 + $0x26c] sm:$0xf0] }
 0x733   : > { %v4518_v8 = vor.u32 %v4517_v13, %v4513_v4  ;;  %v4525_v62 = vor.u32 %v4524_v42, %v4520_v5  ;;  %v8520_v4 = vor.u32 %v9666_v60, %v8519_v51  ;;  %v8447_v13 = vld [vmem:[#allocation25 + $0x220] sm:$0xf]  ;;  %v9648_v5 = vld [vmem:[#allocation25 + $0x224] sm:$0xf0]  ;;  %v8460_v42 = vor.u32 %v9649_v59, %v8457_v0  ;;  %v8673_v51 = vld [vmem:[#allocation28 + $0x2f0] sm:$0xf0] }
 0x734   : > { %v9799_v0 = vld [vmem:[#allocation28 + $0x3e4] sm:$0xf] }
 0x735   : > { %4696 = vmatmul.bf16.vlgmr.msra.gmra.mxu3 %v4518_v8  ;;  %4709 = vmatmul.bf16.vlgmr.msrb.gmra.mxu0 %v4525_v62  ;;  %v8804_v6 = vor.u32 %v9799_v0, %v8801_v61 }
 0x736   : > { %4722 = vmatmul.bf16.vlgmr.msrb.gmra.mxu1 %v4518_v8  ;;  %4735 = vmatmul.bf16.vlgmr.msrb.gmra.mxu2 %v4525_v62  ;;  %v8511_v8 = vld [vmem:[#allocation25 + $0x2a0] sm:$0xf]  ;;  %v9664_v62 = vld [vmem:[#allocation25 + $0x2a4] sm:$0xf0] }
 0x737   : > { %5162 = vmatpush.bf16.msra.mxu3 %v8488_v9  ;;  %5175 = vmatpush.bf16.msrb.mxu0 %v8552_v50  ;;  %v9647_v9 = vld [vmem:[#allocation25 + $0x224] sm:$0xf]  ;;  %v8449_v50 = vld [vmem:[#allocation25 + $0x228] sm:$0xf0] }
 0x738   : > { %5188 = vmatpush.bf16.msrb.mxu1 %v8492_v26  ;;  %5201 = vmatpush.bf16.msrb.mxu2 %v8556_v55  ;;  %v8448_v26 = vor.u32 %v9648_v5, %v8447_v13  ;;  %v8512_v55 = vor.u32 %v9664_v62, %v8511_v8  ;;  %v8452_v12 = vor.u32 %v9647_v9, %v8449_v50  ;;  %v9797_v5 = vld [vmem:[#allocation28 + $0x3cc] sm:$0xf0]  ;;  %v9795_v50 = vld [vmem:[#allocation28 + $0x3c4] sm:$0xf] }
 0x739   : > { %v8788_v15 = vor.u32 %v9795_v50, %v8785_v11  ;;  %v8593_v50 = vld [vmem:[#allocation28 + $0x250] sm:$0xf0] }
 0x73b   : > { %5163 = vmatpush.bf16.msra.mxu3 %v8480_v21  ;;  %5176 = vmatpush.bf16.msrb.mxu0 %v8544_v53  ;;  %v9662_v21 = vld [vmem:[#allocation25 + $0x294] sm:$0xf0]  ;;  %v9645_v53 = vld [vmem:[#allocation25 + $0x214] sm:$0xf] }
 0x73c   : > { %5189 = vmatpush.bf16.msrb.mxu1 %v8484_v27  ;;  %5202 = vmatpush.bf16.msrb.mxu2 %v8548_v28  ;;  %v8505_v27 = vld [vmem:[#allocation25 + $0x298] sm:$0xf0]  ;;  %v8440_v28 = vor.u32 %v9646_v20, %v8439_v58  ;;  %v8504_v29 = vor.u32 %v9662_v21, %v8503_v1  ;;  %v8444_v33 = vor.u32 %v9645_v53, %v8441_v22  ;;  %v8767_v58 = vld [vmem:[#allocation28 + $0x3a0] sm:$0xf]  ;;  %v9791_v53 = vld [vmem:[#allocation28 + $0x3a4] sm:$0xf] }
 0x73d   : > { %v8508_v34 = vor.u32 %v9661_v23, %v8505_v27  ;;  %v8768_v1 = vor.u32 %v9793_v16, %v8767_v58  ;;  %v8769_v22 = vld [vmem:[#allocation28 + $0x3b0] sm:$0xf0]  ;;  %v8575_v58 = vld [vmem:[#allocation28 + $0x220] sm:$0xf] }
 0x73e   : > { %v8772_v23 = vor.u32 %v9791_v53, %v8769_v22 }
 0x73f   : > { %5164 = vmatpush.bf16.msra.mxu3 %v8472_v25  ;;  %5177 = vmatpush.bf16.msrb.mxu0 %v8536_v36  ;;  %v8495_v25 = vld [vmem:[#allocation25 + $0x280] sm:$0xf]  ;;  %v9660_v36 = vld [vmem:[#allocation25 + $0x284] sm:$0xf0] }
 0x740   : > { %5190 = vmatpush.bf16.msrb.mxu1 %v8476_v41  ;;  %5203 = vmatpush.bf16.msrb.mxu2 %v8540_v44  ;;  %v9659_v41 = vld [vmem:[#allocation25 + $0x284] sm:$0xf]  ;;  %v8497_v44 = vld [vmem:[#allocation25 + $0x288] sm:$0xf0]  ;;  %v8496_v19 = vor.u32 %v9660_v36, %v8495_v25  ;;  %v9757_v36 = vld [vmem:[#allocation28 + $0x28c] sm:$0xf0] }
 0x741   : > { %v8500_v24 = vor.u32 %v9659_v41, %v8497_v44  ;;  %v8623_v25 = vld [vmem:[#allocation28 + $0x280] sm:$0xf]  ;;  %v9755_v41 = vld [vmem:[#allocation28 + $0x284] sm:$0xf]  ;;  %v8625_v44 = vld [vmem:[#allocation28 + $0x290] sm:$0xf0] }
 0x742   : > { %v8624_v10 = vor.u32 %v9757_v36, %v8623_v25  ;;  %v8559_v25 = vld [vmem:[#allocation28 + $0x200] sm:$0xf]  ;;  %v9741_v36 = vld [vmem:[#allocation28 + $0x20c] sm:$0xf0] }
 0x743   : > { %5165 = vmatpush.bf16.msra.mxu3 %v8464_v46  ;;  %5178 = vmatpush.bf16.msrb.mxu0 %v8528_v48  ;;  %v4998_v46 = vrot.slane %v4996_v40, 1  ;;  %v4999_v48 = vrot.slane %v4997_v14, 1  ;;  %v9787_v40 = vld [vmem:[#allocation28 + $0x384] sm:$0xf]  ;;  %v11874_v14 = vld [vmem:[#allocation27] sm:$0x3] }
 0x744   : > { %5191 = vmatpush.bf16.msrb.mxu1 %v8468_v54  ;;  %5204 = vmatpush.bf16.msrb.mxu2 %v8532_v57  ;;  %v9801_v54 = vld [vmem:[#allocation28 + $0x3ec] sm:$0xf0]  ;;  %v9767_v57 = vld [vmem:[#allocation28 + $0x2e4] sm:$0xf] }
 0x745   : > { %4915 = vmatmul.bf16.vlgmr.msrb.gmra.mxu3 %v4743_v47  ;;  %4928 = vmatmul.bf16.vlgmr.msra.gmra.mxu0 %v4744_v56  ;;  %v8800_v60 = vor.u32 %v9801_v54, %v8799_v49  ;;  %v8676_v59 = vor.u32 %v9767_v57, %v8673_v51  ;;  %v8735_v49 = vld [vmem:[#allocation28 + $0x360] sm:$0xf]  ;;  %v8608_v54 = vor.u32 %v9753_v43, %v8607_v39  ;;  %v9785_v57 = vld [vmem:[#allocation28 + $0x36c] sm:$0xf0]  ;;  %v9751_v51 = vld [vmem:[#allocation28 + $0x264] sm:$0xf] }
 0x746   : > { %4941 = vmatmul.bf16.vlgmr.msra.gmra.mxu1 %v4743_v47  ;;  %4954 = vmatmul.bf16.vlgmr.msra.gmra.mxu2 %v4744_v56  ;;  %v9765_v47 = vld [vmem:[#allocation28 + $0x2cc] sm:$0xf0]  ;;  %v8783_v56 = vld [vmem:[#allocation28 + $0x3c0] sm:$0xf]  ;;  %v8736_v0 = vor.u32 %v9785_v57, %v8735_v49  ;;  %v8689_v39 = vld [vmem:[#allocation28 + $0x310] sm:$0xf0] }
 0x747   : > { %5166 = vmatpush.bf16.msra.mxu3 %v8456_v63  ;;  %5179 = vmatpush.bf16.msrb.mxu0 %v8520_v4  ;;  %v8655_v63 = vld [vmem:[#allocation28 + $0x2c0] sm:$0xf]  ;;  %v8784_v62 = vor.u32 %v9797_v5, %v8783_v56  ;;  %v9749_v5 = vld [vmem:[#allocation28 + $0x24c] sm:$0xf0]  ;;  %v9770_v57 = vld [vmem:[#allocation28 + $0x2f4] sm:$0xf0] }
 0x748   : > { %5192 = vmatpush.bf16.msrb.mxu1 %v8460_v42  ;;  %5205 = vmatpush.bf16.msrb.mxu2 %v8524_v7  ;;  %v8656_v13 = vor.u32 %v9765_v47, %v8655_v63  ;;  %v9763_v42 = vld [vmem:[#allocation28 + $0x2c4] sm:$0xf]  ;;  %v8657_v7 = vld [vmem:[#allocation28 + $0x2d0] sm:$0xf0]  ;;  %v5218_v47 = vperm.slane %v11874_v14, 0 }
 0x749   : > { %v8660_v9 = vor.u32 %v9763_v42, %v8657_v7  ;;  %v8737_v63 = vld [vmem:[#allocation28 + $0x370] sm:$0xf0]  ;;  %v8719_v42 = vld [vmem:[#allocation28 + $0x340] sm:$0xf] }
 0x74b   : > { %5167 = vmatpush.bf16.msra.mxu3 %v8448_v26  ;;  %5180 = vmatpush.bf16.msrb.mxu0 %v8512_v55  ;;  %v8639_v26 = vld [vmem:[#allocation28 + $0x2a0] sm:$0xf]  ;;  %v9761_v55 = vld [vmem:[#allocation28 + $0x2ac] sm:$0xf0] }
 0x74c   : > { %5193 = vmatpush.bf16.msrb.mxu1 %v8452_v12  ;;  %5206 = vmatpush.bf16.msrb.mxu2 %v8516_v18  ;;  %v8640_v20 = vor.u32 %v9761_v55, %v8639_v26  ;;  %v9759_v12 = vld [vmem:[#allocation28 + $0x2a4] sm:$0xf]  ;;  %v8641_v18 = vld [vmem:[#allocation28 + $0x2b0] sm:$0xf0] }
 0x74d   : > { %v8644_v21 = vor.u32 %v9759_v12, %v8641_v18  ;;  %v9779_v26 = vld [vmem:[#allocation28 + $0x344] sm:$0xf]  ;;  %v8721_v55 = vld [vmem:[#allocation28 + $0x350] sm:$0xf0]  ;;  %v9745_v12 = vld [vmem:[#allocation28 + $0x22c] sm:$0xf0] }
 0x74e   : > { %v8724_v16 = vor.u32 %v9779_v26, %v8721_v55  ;;  %v8703_v18 = vld [vmem:[#allocation28 + $0x320] sm:$0xf]  ;;  %v8576_v53 = vor.u32 %v9745_v12, %v8575_v58  ;;  %v5219_v58 = vperm.slane %v11874_v14, 1 }
 0x74f   : > { %5168 = vmatpush.bf16.msra.mxu3 %v8440_v28  ;;  %5181 = vmatpush.bf16.msrb.mxu0 %v8504_v29 }
 0x750   : > { %5194 = vmatpush.bf16.msrb.mxu1 %v8444_v33  ;;  %5207 = vmatpush.bf16.msrb.mxu2 %v8508_v34 }
 0x753   : > { %5169 = vmatpush.bf16.msra.mxu3 %v8432_v35  ;;  %5182 = vmatpush.bf16.msrb.mxu0 %v8496_v19  ;;  %v8752_v35 = vor.u32 %v9789_v38, %v8751_v37  ;;  %v8628_v19 = vor.u32 %v9755_v41, %v8625_v44  ;;  %v8687_v38 = vld [vmem:[#allocation28 + $0x300] sm:$0xf]  ;;  %v9773_v41 = vld [vmem:[#allocation28 + $0x30c] sm:$0xf0]  ;;  %v9739_v44 = vld [vmem:[#allocation28 + $0x204] sm:$0xf] }
 0x754   : > { %5195 = vmatpush.bf16.msrb.mxu1 %v8436_v45  ;;  %5208 = vmatpush.bf16.msrb.mxu2 %v8500_v24  ;;  %v8753_v45 = vld [vmem:[#allocation28 + $0x390] sm:$0xf0]  ;;  %v8688_v49 = vor.u32 %v9773_v41, %v8687_v38  ;;  %v8631_v41 = vld [vmem:[#allocation28 + $0x288] sm:$0xf] }
 0x756   : > { %5170 = vmatmul.bf16.vlgmr.msra.gmra.mxu3 %v4998_v46  ;;  %5183 = vmatmul.bf16.vlgmr.msrb.gmra.mxu0 %v4999_v48 }
 0x757   : > { %5196 = vmatmul.bf16.vlgmr.msrb.gmra.mxu1 %v4998_v46  ;;  %5209 = vmatmul.bf16.vlgmr.msrb.gmra.mxu2 %v4999_v48  ;;  %v8756_v46 = vor.u32 %v9787_v40, %v8753_v45  ;;  %v8560_v40 = vor.u32 %v9741_v36, %v8559_v25  ;;  %v8561_v45 = vld [vmem:[#allocation28 + $0x210] sm:$0xf0]  ;;  %v9792_v36 = vld [vmem:[#allocation28 + $0x3ac] sm:$0xf] }
 0x758   : > { %5724 = vmatpush.bf16.msrb.mxu3 %v8672_v52  ;;  %5737 = vmatpush.bf16.msra.mxu0 %v8800_v60  ;;  %v8609_v60 = vld [vmem:[#allocation28 + $0x270] sm:$0xf0] }
 0x759   : > { %5750 = vmatpush.bf16.msra.mxu1 %v8676_v59  ;;  %5763 = vmatpush.bf16.msra.mxu2 %v8804_v6  ;;  %v8612_v61 = vor.u32 %v9751_v51, %v8609_v60  ;;  %v9783_v6 = vld [vmem:[#allocation28 + $0x364] sm:$0xf]  ;;  %v8807_v51 = vld [vmem:[#allocation28 + $0x3e8] sm:$0xf] }
 0x75a   : > { %v8740_v56 = vor.u32 %v9783_v6, %v8737_v63 }
 0x75c   : > { %5725 = vmatpush.bf16.msrb.mxu3 %v8656_v13  ;;  %5738 = vmatpush.bf16.msra.mxu0 %v8784_v62  ;;  %v8591_v13 = vld [vmem:[#allocation28 + $0x240] sm:$0xf]  ;;  %v9781_v62 = vld [vmem:[#allocation28 + $0x34c] sm:$0xf0] }
 0x75d   : > { %5751 = vmatpush.bf16.msra.mxu1 %v8660_v9  ;;  %5764 = vmatpush.bf16.msra.mxu2 %v8788_v15  ;;  %v8592_v7 = vor.u32 %v9749_v5, %v8591_v13  ;;  %v9747_v9 = vld [vmem:[#allocation28 + $0x244] sm:$0xf]  ;;  %v8720_v11 = vor.u32 %v9781_v62, %v8719_v42  ;;  %v8663_v13 = vld [vmem:[#allocation28 + $0x2c8] sm:$0xf]  ;;  %v9766_v42 = vld [vmem:[#allocation28 + $0x2d4] sm:$0xf0] }
 0x75e   : > { %v8596_v15 = vor.u32 %v9747_v9, %v8593_v50  ;;  %v9798_v62 = vld [vmem:[#allocation28 + $0x3d4] sm:$0xf0]  ;;  %v9764_v50 = vld [vmem:[#allocation28 + $0x2cc] sm:$0xf] }
 0x760   : > { %5726 = vmatpush.bf16.msrb.mxu3 %v8640_v20  ;;  %5739 = vmatpush.bf16.msra.mxu0 %v8768_v1  ;;  %v9777_v1 = vld [vmem:[#allocation28 + $0x32c] sm:$0xf0] }
 0x761   : > { %5752 = vmatpush.bf16.msra.mxu1 %v8644_v21  ;;  %5765 = vmatpush.bf16.msra.mxu2 %v8772_v23  ;;  %v8704_v22 = vor.u32 %v9777_v1, %v8703_v18  ;;  %v9743_v23 = vld [vmem:[#allocation28 + $0x224] sm:$0xf] }
 0x764   : > { %5727 = vmatpush.bf16.msrb.mxu3 %v8624_v10  ;;  %5740 = vmatpush.bf16.msra.mxu0 %v8752_v35 }
 0x765   : > { %5753 = vmatpush.bf16.msra.mxu1 %v8628_v19  ;;  %5766 = vmatpush.bf16.msra.mxu2 %v8756_v46  ;;  %v9771_v46 = vld [vmem:[#allocation28 + $0x304] sm:$0xf] }
 0x768   : > { %5728 = vmatpush.bf16.msrb.mxu3 %v8608_v54  ;;  %5741 = vmatpush.bf16.msra.mxu0 %v8736_v0  ;;  %v8679_v54 = vld [vmem:[#allocation28 + $0x2e8] sm:$0xf]  ;;  %v9768_v0 = vld [vmem:[#allocation28 + $0x2ec] sm:$0xf] }
 0x769   : > { %5754 = vmatpush.bf16.msra.mxu1 %v8612_v61  ;;  %5767 = vmatpush.bf16.msra.mxu2 %v8740_v56  ;;  %v8681_v61 = vld [vmem:[#allocation28 + $0x2f8] sm:$0xf0] }
 0x76a   : > { %v8684_v56 = vor.u32 %v9768_v0, %v8681_v61 }
 0x76c   : > { %5729 = vmatpush.bf16.msrb.mxu3 %v8592_v7  ;;  %5742 = vmatpush.bf16.msra.mxu0 %v8720_v11  ;;  %v8791_v7 = vld [vmem:[#allocation28 + $0x3c8] sm:$0xf]  ;;  %v8665_v11 = vld [vmem:[#allocation28 + $0x2d8] sm:$0xf0] }
 0x76d   : > { %5755 = vmatpush.bf16.msra.mxu1 %v8596_v15  ;;  %5768 = vmatpush.bf16.msra.mxu2 %v8724_v16  ;;  %v9796_v15 = vld [vmem:[#allocation28 + $0x3cc] sm:$0xf]  ;;  %v8793_v16 = vld [vmem:[#allocation28 + $0x3d8] sm:$0xf0]  ;;  %v8668_v1 = vor.u32 %v9764_v50, %v8665_v11 }
 0x770   : > { %5730 = vmatpush.bf16.msrb.mxu3 %v8576_v53  ;;  %5743 = vmatpush.bf16.msra.mxu0 %v8704_v22  ;;  %v9762_v53 = vld [vmem:[#allocation28 + $0x2b4] sm:$0xf0]  ;;  %v8775_v22 = vld [vmem:[#allocation28 + $0x3a8] sm:$0xf] }
 0x774   : > { %5731 = vmatpush.bf16.msrb.mxu3 %v8560_v40  ;;  %5744 = vmatpush.bf16.msra.mxu0 %v8688_v49  ;;  %v9758_v40 = vld [vmem:[#allocation28 + $0x294] sm:$0xf0]  ;;  %v9756_v49 = vld [vmem:[#allocation28 + $0x28c] sm:$0xf] }
 0x7b2   : > { %v11860_v4 = vpop.f32.mrf.mxu0 }
 0x7b3   : > { %v11862_v8 = vpop.f32.mrf.mxu1 }
 0x7b8   : > { %v11864_v27 = vpop.f32.mrf.mxu3 }
 0x7b9   : > { %v11866_v28 = vpop.f32.mrf.mxu2  ;;  %v4711_v35 = vadd.f32 %v11860_v4, %v11864_v27  ;;  %v8692_v4 = vor.u32 %v9771_v46, %v8689_v39  ;;  %v8680_v27 = vor.u32 %v9770_v57, %v8679_v54  ;;  %v9790_v46 = vld [vmem:[#allocation28 + $0x394] sm:$0xf0]  ;;  %v5229_v54 = vpop.permute.xlu2 %5228 }
 0x7ba   : > { %v4712_v29 = vpop.f32.mrf.mxu0  ;;  %v4737_v43 = vadd.f32 %v11866_v28, %v11862_v8  ;;  %v9800_v8 = vld [vmem:[#allocation28 + $0x3ec] sm:$0xf]  ;;  %v8809_v28 = vld [vmem:[#allocation28 + $0x3f8] sm:$0xf0] }
 0x7bb   : > { %v4725_v30 = vpop.f32.mrf.mxu1  ;;  %v8577_v29 = vld [vmem:[#allocation28 + $0x230] sm:$0xf0]  ;;  %v8812_v5 = vor.u32 %v9800_v8, %v8809_v28  ;;  %5776 = vmatpush.bf16.msra.mxu3 %v8680_v27  ;;  %v8632_v27 = vor.u32 %v9758_v40, %v8631_v41  ;;  %v9786_v28 = vld [vmem:[#allocation28 + $0x374] sm:$0xf0]  ;;  %v8713_v41 = vld [vmem:[#allocation28 + $0x338] sm:$0xf0] }
 0x7bc   : > { %v9775_v30 = vld [vmem:[#allocation28 + $0x324] sm:$0xf]  ;;  %v8567_v40 = vld [vmem:[#allocation28 + $0x208] sm:$0xf] }
 0x7c0   : > { %v4699_v32 = vpop.f32.mrf.mxu3 }
 0x7c1   : > { %v4738_v2 = vpop.f32.mrf.mxu2  ;;  %v8580_v32 = vor.u32 %v9743_v23, %v8577_v29 }
 0x7c2   : > { %v11868_v33 = vpop.f32.mrf.mxu0  ;;  %v8705_v2 = vld [vmem:[#allocation28 + $0x330] sm:$0xf0] }
 0x7c3   : > { %v11870_v34 = vpop.f32.mrf.mxu1  ;;  %v8708_v10 = vor.u32 %v9775_v30, %v8705_v2  ;;  %5756 = vmatpush.bf16.msra.mxu1 %v8580_v32  ;;  %v9794_v30 = vld [vmem:[#allocation28 + $0x3b4] sm:$0xf0]  ;;  %v9760_v32 = vld [vmem:[#allocation28 + $0x2ac] sm:$0xf]  ;;  %v8649_v2 = vld [vmem:[#allocation28 + $0x2b8] sm:$0xf0] }
 0x7c4   : > { %v4943_v6 = vadd.f32 %v11870_v34, %v4737_v43 }
 0x7c5   : > { %5769 = vmatpush.bf16.msra.mxu2 %v8708_v10 }
 0x7c8   : > { %v11872_v24 = vpop.f32.mrf.mxu3 }
 0x7c9   : > { %v11876_v48 = vpop.f32.mrf.mxu2  ;;  %v4917_v60 = vadd.f32 %v11872_v24, %v4711_v35  ;;  %5770 = vmatpush.bf16.msra.mxu2 %v8692_v4  ;;  %v8776_v35 = vor.u32 %v9794_v30, %v8775_v22  ;;  %v9746_v30 = vld [vmem:[#allocation28 + $0x234] sm:$0xf0] }
 0x7ca   : > { %v4931_v52 = vpop.f32.mrf.mxu0  ;;  %v4956_v24 = vadd.f32 %v11876_v48, %v4943_v6  ;;  %v8792_v48 = vor.u32 %v9798_v62, %v8791_v7  ;;  %v8615_v6 = vld [vmem:[#allocation28 + $0x268] sm:$0xf]  ;;  %v9784_v7 = vld [vmem:[#allocation28 + $0x36c] sm:$0xf]  ;;  %v8745_v62 = vld [vmem:[#allocation28 + $0x378] sm:$0xf0] }
 0x7cb   : > { %v4944_v59 = vpop.f32.mrf.mxu1  ;;  %v8564_v52 = vor.u32 %v9739_v44, %v8561_v45  ;;  %v4930_v34 = vadd.f32 %v11868_v33, %v4917_v60  ;;  %v8796_v33 = vor.u32 %v9796_v15, %v8793_v16  ;;  %v8759_v45 = vld [vmem:[#allocation28 + $0x388] sm:$0xf]  ;;  %v8601_v16 = vld [vmem:[#allocation28 + $0x258] sm:$0xf0] }
 0x7cc   : > { %v9802_v59 = vld [vmem:[#allocation28 + $0x3f4] sm:$0xf0]  ;;  %v8760_v0 = vor.u32 %v9790_v46, %v8759_v45  ;;  %v8695_v46 = vld [vmem:[#allocation28 + $0x308] sm:$0xf] }
 0x7cd   : > { %v8808_v63 = vor.u32 %v9802_v59, %v8807_v51  ;;  %5757 = vmatpush.bf16.msra.mxu1 %v8564_v52  ;;  %5815 = vmatpush.bf16.msrb.mxu2 %v8812_v5  ;;  %v8633_v52 = vld [vmem:[#allocation28 + $0x298] sm:$0xf0]  ;;  %v9742_v45 = vld [vmem:[#allocation28 + $0x214] sm:$0xf0] }
 0x7ce   : > { %v8761_v51 = vld [vmem:[#allocation28 + $0x398] sm:$0xf0]  ;;  %v8636_v61 = vor.u32 %v9756_v49, %v8633_v52  ;;  %v9740_v49 = vld [vmem:[#allocation28 + $0x20c] sm:$0xf] }
 0x7cf   : > { %5789 = vmatpush.bf16.msrb.mxu0 %v8808_v63  ;;  %v9754_v63 = vld [vmem:[#allocation28 + $0x274] sm:$0xf0]  ;;  %v8617_v5 = vld [vmem:[#allocation28 + $0x278] sm:$0xf0] }
 0x7d0   : > { %v4918_v20 = vpop.f32.mrf.mxu3  ;;  %v8569_v52 = vld [vmem:[#allocation28 + $0x218] sm:$0xf0] }
 0x7d1   : > { %v4957_v21 = vpop.f32.mrf.mxu2  ;;  %v8664_v20 = vor.u32 %v9766_v42, %v8663_v13  ;;  %5802 = vmatpush.bf16.msrb.mxu1 %v8684_v56  ;;  %5816 = vmatpush.bf16.msrb.mxu2 %v8796_v33  ;;  %v8743_v56 = vld [vmem:[#allocation28 + $0x368] sm:$0xf]  ;;  %v9752_v13 = vld [vmem:[#allocation28 + $0x26c] sm:$0xf] }
 0x7d2   : > { %v8647_v21 = vld [vmem:[#allocation28 + $0x2a8] sm:$0xf]  ;;  %v8744_v11 = vor.u32 %v9786_v28, %v8743_v56  ;;  %v8620_v15 = vor.u32 %v9752_v13, %v8617_v5  ;;  %v8927_v28 = vld [vmem:[#allocation28 + $0xe0] sm:$0xf]  ;;  %v9705_v13 = vld [vmem:[#allocation28 + $0xec] sm:$0xf0] }
 0x7d3   : > { %v5184_v37 = vpop.f32.mrf.mxu0  ;;  %5777 = vmatpush.bf16.msra.mxu3 %v8664_v20  ;;  %v8648_v38 = vor.u32 %v9762_v53, %v8647_v21  ;;  %5790 = vmatpush.bf16.msrb.mxu0 %v8792_v48  ;;  %v9748_v20 = vld [vmem:[#allocation28 + $0x24c] sm:$0xf]  ;;  %v8583_v33 = vld [vmem:[#allocation28 + $0x228] sm:$0xf] }
 0x7d4   : > { %v5197_v19 = vpop.f32.mrf.mxu1  ;;  %v9780_v48 = vld [vmem:[#allocation28 + $0x34c] sm:$0xf] }
 0x7d5   : > { %5803 = vmatpush.bf16.msrb.mxu1 %v8668_v1  ;;  %v8729_v1 = vld [vmem:[#allocation28 + $0x358] sm:$0xf0]  ;;  %v5242_v21 = vld [vmem:[#allocation2] sm:$0xff] }
 0x7d7   : > { %5778 = vmatpush.bf16.msra.mxu3 %v8648_v38  ;;  %5791 = vmatpush.bf16.msrb.mxu0 %v8776_v35  ;;  %v9776_v38 = vld [vmem:[#allocation28 + $0x32c] sm:$0xf] }
 0x7d9   : > { %v5171_v9 = vpop.f32.mrf.mxu3 }
 0x7da   : > { %v5185_v26 = vadd.f32 %v5184_v37, %v5171_v9  ;;  %v5210_v55 = vpop.f32.mrf.mxu2  ;;  %v8777_v37 = vld [vmem:[#allocation28 + $0x3b8] sm:$0xf0]  ;;  %v8599_v9 = vld [vmem:[#allocation28 + $0x248] sm:$0xf] }
 0x7db   : > { %v5211_v12 = vadd.f32 %v5210_v55, %v5197_v19  ;;  %v5186_v18 = vpop.f32.mrf.mxu0  ;;  %v8652_v19 = vor.u32 %v9760_v32, %v8649_v2  ;;  %v8780_v43 = vor.u32 %v9792_v36, %v8777_v37  ;;  %5779 = vmatpush.bf16.msra.mxu3 %v8632_v27  ;;  %5792 = vmatpush.bf16.msrb.mxu0 %v8760_v0  ;;  %v8711_v32 = vld [vmem:[#allocation28 + $0x328] sm:$0xf]  ;;  %v9744_v36 = vld [vmem:[#allocation28 + $0x22c] sm:$0xf]  ;;  %v8585_v37 = vld [vmem:[#allocation28 + $0x238] sm:$0xf0] }
 0x7dc   : > { %v5214_v23 = vadd.f32 %v5185_v26, %v4930_v34  ;;  %v5199_v29 = vpop.f32.mrf.mxu1  ;;  %v9750_v34 = vld [vmem:[#allocation28 + $0x254] sm:$0xf0]  ;;  %v8727_v26 = vld [vmem:[#allocation28 + $0x348] sm:$0xf]  ;;  %v8748_v55 = vor.u32 %v9784_v7, %v8745_v62  ;;  %v8732_v2 = vor.u32 %v9780_v48, %v8729_v1  ;;  %v9055_v7 = vld [vmem:[#allocation28 + $0x1e0] sm:$0xf] }
 0x7dd   : > { %v5215_v25 = vadd.f32 %v5211_v12, %v4956_v24  ;;  %5804 = vmatpush.bf16.msrb.mxu1 %v8652_v19  ;;  %5817 = vmatpush.bf16.msrb.mxu2 %v8780_v43  ;;  %v8616_v24 = vor.u32 %v9754_v63, %v8615_v6  ;;  %v8600_v53 = vor.u32 %v9750_v34, %v8599_v9  ;;  %v9774_v43 = vld [vmem:[#allocation28 + $0x314] sm:$0xf0]  ;;  %v9737_v62 = vld [vmem:[#allocation28 + $0x1ec] sm:$0xf0]  ;;  %v8929_v9 = vld [vmem:[#allocation28 + $0xf0] sm:$0xf0] }
 0x7de   : > { %v5222_v10 = vadd.f32 %v5218_v47, %v5214_v23  ;;  %v9788_v47 = vld [vmem:[#allocation28 + $0x38c] sm:$0xf]  ;;  %v8604_v29 = vor.u32 %v9748_v20, %v8601_v16  ;;  %v8588_v19 = vor.u32 %v9744_v36, %v8585_v37  ;;  %v8928_v16 = vor.u32 %v9705_v13, %v8927_v28  ;;  %v9701_v48 = vld [vmem:[#allocation28 + $0xcc] sm:$0xf0]  ;;  %v8865_v28 = vld [vmem:[#allocation28 + $0x70] sm:$0xf0] }
 0x7df   : > { %v5223_v44 = vadd.f32 %v5219_v58, %v5215_v25  ;;  %v8764_v8 = vor.u32 %v9788_v47, %v8761_v51  ;;  %v9782_v58 = vld [vmem:[#allocation28 + $0x354] sm:$0xf0]  ;;  %5780 = vmatpush.bf16.msra.mxu3 %v8616_v24  ;;  %5793 = vmatpush.bf16.msrb.mxu0 %v8744_v11  ;;  %v8696_v47 = vor.u32 %v9774_v43, %v8695_v46  ;;  %v9703_v24 = vld [vmem:[#allocation28 + $0xe4] sm:$0xf]  ;;  %v9697_v36 = vld [vmem:[#allocation28 + $0xac] sm:$0xf0] }
 0x7e0   : > { %v5224_v39 = vmax.f32 %v5222_v10, 0.0  ;;  %v8728_v23 = vor.u32 %v9782_v58, %v8727_v26  ;;  %v9778_v25 = vld [vmem:[#allocation28 + $0x334] sm:$0xf0]  ;;  %v8572_v51 = vor.u32 %v9740_v49, %v8569_v52  ;;  %v8932_v1 = vor.u32 %v9703_v24, %v8929_v9  ;;  %v9693_v43 = vld [vmem:[#allocation28 + $0x8c] sm:$0xf0] }
 0x7e1   : > { %v5225_v57 = vmax.f32 %v5223_v44, 0.0  ;;  %v5173_v14 = vpop.f32.mrf.mxu3  ;;  %5805 = vmatpush.bf16.msrb.mxu1 %v8636_v61  ;;  %5818 = vmatpush.bf16.msrb.mxu2 %v8764_v8  ;;  %v8584_v44 = vor.u32 %v9746_v30, %v8583_v33  ;;  %v8712_v35 = vor.u32 %v9778_v25, %v8711_v32  ;;  %v9731_v33 = vld [vmem:[#allocation28 + $0x1c4] sm:$0xf]  ;;  %v9041_v30 = vld [vmem:[#allocation28 + $0x1d0] sm:$0xf0] }
 0x7e2   : > { %v5231_v60 = vmul.f32 %v5229_v54, %v5224_v39  ;;  %v5212_v4 = vpop.f32.mrf.mxu2  ;;  %v8716_v39 = vor.u32 %v9776_v38, %v8713_v41  ;;  %v8568_v14 = vor.u32 %v9742_v45, %v8567_v40  ;;  %v8895_v25 = vld [vmem:[#allocation28 + $0xa0] sm:$0xf]  ;;  %v9729_v41 = vld [vmem:[#allocation28 + $0x1ac] sm:$0xf0]  ;;  %v9025_v40 = vld [vmem:[#allocation28 + $0x1b0] sm:$0xf0] }
 0x7e3   : > { %v5232_v59 = vmul.f32 %v5229_v54, %v5225_v57  ;;  %5781 = vmatpush.bf16.msra.mxu3 %v8600_v53  ;;  %5794 = vmatpush.bf16.msrb.mxu0 %v8728_v23  ;;  %v9772_v54 = vld [vmem:[#allocation28 + $0x30c] sm:$0xf]  ;;  %v8697_v57 = vld [vmem:[#allocation28 + $0x318] sm:$0xf0]  ;;  %v9039_v53 = vld [vmem:[#allocation28 + $0x1c0] sm:$0xf]  ;;  %v8896_v45 = vor.u32 %v9697_v36, %v8895_v25 }
 0x7e4   : > { %v9699_v23 = vld [vmem:[#allocation28 + $0xc4] sm:$0xf]  ;;  %v9023_v38 = vld [vmem:[#allocation28 + $0x1a0] sm:$0xf]  ;;  %v9685_v24 = vld [vmem:[#allocation28 + $0x4c] sm:$0xf0] }
 0x7e5   : > { %v5233_v42 = vpack.c.bf16 %v5232_v59, %v5231_v60  ;;  %5806 = vmatpush.bf16.msrb.mxu1 %v8620_v15  ;;  %5819 = vmatpush.bf16.msrb.mxu2 %v8748_v55  ;;  %v8700_v60 = vor.u32 %v9772_v54, %v8697_v57  ;;  %v9057_v55 = vld [vmem:[#allocation28 + $0x1f0] sm:$0xf0]  ;;  %v9024_v46 = vor.u32 %v9729_v41, %v9023_v38  ;;  %v9007_v54 = vld [vmem:[#allocation28 + $0x180] sm:$0xf]  ;;  %v9725_v57 = vld [vmem:[#allocation28 + $0x18c] sm:$0xf0] }
 0x7e6   : > { %v9719_v13 = vld [vmem:[#allocation28 + $0x164] sm:$0xf]  ;;  %v9677_v25 = vld [vmem:[#allocation28 + $0xc] sm:$0xf0]  ;;  %v8943_v36 = vld [vmem:[#allocation28 + $0x100] sm:$0xf] }
 0x7e7   : > { %v5235_v50 = vshrl.u32 %v5233_v42, 16  ;;  %v5238_v18 = vshll.u32 %v5233_v42, 16  ;;  %5782 = vmatpush.bf16.msra.mxu3 %v8584_v44  ;;  %5795 = vmatpush.bf16.msrb.mxu0 %v8712_v35  ;;  %v9695_v44 = vld [vmem:[#allocation28 + $0xa4] sm:$0xf]  ;;  %v8897_v35 = vld [vmem:[#allocation28 + $0xb0] sm:$0xf0] }
 0x7e8   : > { %v8900_v49 = vor.u32 %v9695_v44, %v8897_v35  ;;  %v9675_v44 = vld [vmem:[#allocation28 + $0x4] sm:$0xf]  ;;  %v8817_v35 = vld [vmem:[#allocation28 + $0x10] sm:$0xf0] }
 0x7e9   : > { %v5237_v12 = vrot.slane %v5235_v50, 7  ;;  %5807 = vmatpush.bf16.msrb.mxu1 %v8604_v29  ;;  %5820 = vmatpush.bf16.msrb.mxu2 %v8732_v2  ;;  %v9735_v50 = vld [vmem:[#allocation28 + $0x1e4] sm:$0xf]  ;;  %v8913_v29 = vld [vmem:[#allocation28 + $0xd0] sm:$0xf0] }
 0x7ea   : > { %v8916_v37 = vor.u32 %v9699_v23, %v8913_v29  ;;  %v9713_v23 = vld [vmem:[#allocation28 + $0x12c] sm:$0xf0]  ;;  %v9679_v29 = vld [vmem:[#allocation28 + $0x24] sm:$0xf] }
 0x7eb   : > { %v5240_v22 = vor.u32 %v5238_v18, %v5237_v12  ;;  %5783 = vmatpush.bf16.msra.mxu3 %v8568_v14  ;;  %5796 = vmatpush.bf16.msrb.mxu0 %v8696_v47  ;;  %v9056_v12 = vor.u32 %v9737_v62, %v9055_v7  ;;  %v8911_v18 = vld [vmem:[#allocation28 + $0xc0] sm:$0xf]  ;;  %v9691_v14 = vld [vmem:[#allocation28 + $0x84] sm:$0xf]  ;;  %v8881_v47 = vld [vmem:[#allocation28 + $0x90] sm:$0xf0] }
 0x7ec   : > { %v8912_v32 = vor.u32 %v9701_v48, %v8911_v18  ;;  %v8847_v62 = vld [vmem:[#allocation28 + $0x40] sm:$0xf] }
 0x7ed   : > { %v5243_v10 = vsel %vm11843_vm3, %v5240_v22, %v5242_v21  ;;  %5808 = vmatpush.bf16.msrb.mxu1 %v8588_v19  ;;  %5821 = vmatpush.bf16.msrb.mxu2 %v8716_v39  ;;  %v9060_v21 = vor.u32 %v9735_v50, %v9057_v55  ;;  %v9733_v22 = vld [vmem:[#allocation28 + $0x1cc] sm:$0xf0]  ;;  %v9727_v19 = vld [vmem:[#allocation28 + $0x1a4] sm:$0xf]  ;;  %v8879_v39 = vld [vmem:[#allocation28 + $0x80] sm:$0xf] }
 0x7ee   : > { %5244 = vst [vmem:[#allocation2] sm:$0xff] %v5243_v10  ;;  %v9040_v2 = vor.u32 %v9733_v22, %v9039_v53  ;;  %v9044_v10 = vor.u32 %v9731_v33, %v9041_v30  ;;  %v9028_v52 = vor.u32 %v9727_v19, %v9025_v40  ;;  %v9715_v55 = vld [vmem:[#allocation28 + $0x144] sm:$0xf]  ;;  %v8831_v48 = vld [vmem:[#allocation28 + $0x20] sm:$0xf] }
 0x7ef   : > { %v8959_v22 = vld [vmem:[#allocation28 + $0x120] sm:$0xf]  ;;  %v8833_v33 = vld [vmem:[#allocation28 + $0x30] sm:$0xf0]  ;;  %v9711_v30 = vld [vmem:[#allocation28 + $0x124] sm:$0xf] }
 0x7f0   : > { %v8836_v38 = vor.u32 %v9679_v29, %v8833_v33  ;;  %v9707_v19 = vld [vmem:[#allocation28 + $0x104] sm:$0xf]  ;;  %v8945_v40 = vld [vmem:[#allocation28 + $0x110] sm:$0xf0] }
 0x7f1   : > { %5809 = vmatpush.bf16.msrb.mxu1 %v8572_v51  ;;  %5822 = vmatpush.bf16.msrb.mxu2 %v8700_v60  ;;  %v9723_v51 = vld [vmem:[#allocation28 + $0x184] sm:$0xf]  ;;  %v9009_v60 = vld [vmem:[#allocation28 + $0x190] sm:$0xf0] }
 0x7f5   : > { %v5245_v4 = vld [vmem:[#allocation2] sm:$0x11]  ;;  %v5248_v27 = vld [vmem:[#allocation2] sm:$0x88] }
 0x7f6   : > { %v5246_v59 = vsel %vm11852_vm7, 0, %v5245_v4  ;;  %v5249_v0 = vsel %vm11591_vm14, 0, %v5248_v27  ;;  %v8880_v4 = vor.u32 %v9693_v43, %v8879_v39  ;;  %v9008_v27 = vor.u32 %v9725_v57, %v9007_v54  ;;  %v9063_v39 = vld [vmem:[#allocation28 + $0x1e8] sm:$0xf]  ;;  %v9738_v43 = vld [vmem:[#allocation28 + $0x1f4] sm:$0xf0] }
 0x7f7   : > { %5247 = vst [vmem:[#allocation2] sm:$0x11] %v5246_v59  ;;  %v8863_v59 = vld [vmem:[#allocation28 + $0x60] sm:$0xf]  ;;  %v8937_v57 = vld [vmem:[#allocation28 + $0xf8] sm:$0xf0] }
 0x7f8   : > { %5250 = vst [vmem:[#allocation2] sm:$0x88] %v5249_v0  ;;  %v9689_v0 = vld [vmem:[#allocation28 + $0x6c] sm:$0xf0] }
 0x7ff   : > { %v5317_v61 = vld [vmem:[#allocation2] sm:$0xff] }
 0x800   : > { %v5384_v6 = vunpack.c.l.b16 %v5317_v61  ;;  %v5385_v63 = vunpack.c.h.b16 %v5317_v61  ;;  %v8884_v61 = vor.u32 %v9691_v14, %v8881_v47  ;;  %v9736_v14 = vld [vmem:[#allocation28 + $0x1ec] sm:$0xf]  ;;  %v9065_v47 = vld [vmem:[#allocation28 + $0x1f8] sm:$0xf0] }
 0x802   : > { %v5386_v56 = vpack.c.b16 %v5384_v6, %v5384_v6  ;;  %v5387_v8 = vpack.c.b16 %v5385_v63, %v5385_v63  ;;  %v9012_v6 = vor.u32 %v9723_v51, %v9009_v60  ;;  %v8991_v63 = vld [vmem:[#allocation28 + $0x160] sm:$0xf]  ;;  %v8820_v51 = vor.u32 %v9675_v44, %v8817_v35  ;;  %v8999_v35 = vld [vmem:[#allocation28 + $0x168] sm:$0xf] }
 0x803   : > { %v8948_v60 = vor.u32 %v9707_v19, %v8945_v40  ;;  %v9722_v19 = vld [vmem:[#allocation28 + $0x174] sm:$0xf0]  ;;  %v9688_v40 = vld [vmem:[#allocation28 + $0x6c] sm:$0xf] }
 0x804   : > { %v5391_v5 = vshll.u32 %v5386_v56, 16  ;;  %v5398_v42 = vshll.u32 %v5387_v8, 16  ;;  %v5389_v11 = vshrl.u32 %v5386_v56, 16  ;;  %v5396_v34 = vshrl.u32 %v5387_v8, 16  ;;  %v9721_v56 = vld [vmem:[#allocation28 + $0x16c] sm:$0xf0] }
 0x805   : > { %v9687_v8 = vld [vmem:[#allocation28 + $0x64] sm:$0xf]  ;;  %v8992_v7 = vor.u32 %v9721_v56, %v8991_v63  ;;  %v9068_v56 = vor.u32 %v9736_v14, %v9065_v47  ;;  %v8983_v47 = vld [vmem:[#allocation28 + $0x148] sm:$0xf] }
 0x806   : > { %v5393_v15 = vrot.slane %v5391_v5, 1  ;;  %v5400_v26 = vrot.slane %v5398_v42, 1  ;;  %v8993_v5 = vld [vmem:[#allocation28 + $0x170] sm:$0xf0]  ;;  %v8864_v42 = vor.u32 %v9689_v0, %v8863_v59  ;;  %v8868_v9 = vor.u32 %v9687_v8, %v8865_v28  ;;  %v9047_v8 = vld [vmem:[#allocation28 + $0x1c8] sm:$0xf] }
 0x807   : > { %v8996_v50 = vor.u32 %v9719_v13, %v8993_v5  ;;  %v9064_v59 = vor.u32 %v9738_v43, %v9063_v39  ;;  %v9734_v28 = vld [vmem:[#allocation28 + $0x1d4] sm:$0xf0]  ;;  %v9700_v13 = vld [vmem:[#allocation28 + $0xcc] sm:$0xf]  ;;  %v8921_v5 = vld [vmem:[#allocation28 + $0xd8] sm:$0xf0] }
 0x808   : > { %v11896_v58 = vor.u32 %v5393_v15, %v5389_v11  ;;  %v11898_v20 = vor.u32 %v5400_v26, %v5396_v34  ;;  %v8975_v11 = vld [vmem:[#allocation28 + $0x140] sm:$0xf]  ;;  %v9717_v15 = vld [vmem:[#allocation28 + $0x14c] sm:$0xf0]  ;;  %v9683_v34 = vld [vmem:[#allocation28 + $0x44] sm:$0xf] }
 0x809   : > { %v8849_v26 = vld [vmem:[#allocation28 + $0x50] sm:$0xf0]  ;;  %v8976_v18 = vor.u32 %v9717_v15, %v8975_v11  ;;  %v8903_v11 = vld [vmem:[#allocation28 + $0xa8] sm:$0xf]  ;;  %v9698_v15 = vld [vmem:[#allocation28 + $0xb4] sm:$0xf0] }
 0x80a   : > { %5732 = vmatmul.bf16.vlgmr.msrb.gmra.mxu3 %v11896_v58  ;;  %5745 = vmatmul.bf16.vlgmr.msra.gmra.mxu0 %v11898_v20  ;;  %v9001_v39 = vld [vmem:[#allocation28 + $0x178] sm:$0xf0] }
 0x80b   : > { %5758 = vmatmul.bf16.vlgmr.msra.gmra.mxu1 %v11896_v58  ;;  %5771 = vmatmul.bf16.vlgmr.msra.gmra.mxu2 %v11898_v20 }
 0x80c   : > { %6155 = vmatpush.bf16.msrb.mxu3 %v8928_v16  ;;  %6168 = vmatpush.bf16.msra.mxu0 %v9056_v12  ;;  %v8977_v16 = vld [vmem:[#allocation28 + $0x150] sm:$0xf0]  ;;  %v8848_v12 = vor.u32 %v9685_v24, %v8847_v62 }
 0x80d   : > { %6181 = vmatpush.bf16.msra.mxu1 %v8932_v1  ;;  %6194 = vmatpush.bf16.msra.mxu2 %v9060_v21  ;;  %v9681_v1 = vld [vmem:[#allocation28 + $0x2c] sm:$0xf0]  ;;  %v8852_v21 = vor.u32 %v9683_v34, %v8849_v26  ;;  %v8980_v53 = vor.u32 %v9715_v55, %v8977_v16  ;;  %v8924_v34 = vor.u32 %v9700_v13, %v8921_v5  ;;  %v9031_v55 = vld [vmem:[#allocation28 + $0x1a8] sm:$0xf]  ;;  %v9730_v16 = vld [vmem:[#allocation28 + $0x1b4] sm:$0xf0] }
 0x80e   : > { %v9714_v13 = vld [vmem:[#allocation28 + $0x134] sm:$0xf0]  ;;  %v9680_v5 = vld [vmem:[#allocation28 + $0x2c] sm:$0xf] }
 0x810   : > { %6156 = vmatpush.bf16.msrb.mxu3 %v8912_v32  ;;  %6169 = vmatpush.bf16.msra.mxu0 %v9040_v2  ;;  %v8961_v32 = vld [vmem:[#allocation28 + $0x130] sm:$0xf0]  ;;  %v8815_v2 = vld [vmem:[#allocation28] sm:$0xf] }
 0x811   : > { %6182 = vmatpush.bf16.msra.mxu1 %v8916_v37  ;;  %6195 = vmatpush.bf16.msra.mxu2 %v9044_v10  ;;  %v9709_v37 = vld [vmem:[#allocation28 + $0x10c] sm:$0xf0]  ;;  %v5252_v10 = vld [vmem:[#allocation2] sm:$0x77]  ;;  %v8964_v41 = vor.u32 %v9711_v30, %v8961_v32  ;;  %v9726_v32 = vld [vmem:[#allocation28 + $0x194] sm:$0xf0] }
 0x812   : > { %v8944_v54 = vor.u32 %v9709_v37, %v8943_v36  ;;  %v5830_v0 = vunpack.c.h.b16 %v5252_v10  ;;  %v9015_v30 = vld [vmem:[#allocation28 + $0x188] sm:$0xf] }
 0x813   : > { %v9016_v37 = vor.u32 %v9726_v32, %v9015_v30 }
 0x814   : > { %6157 = vmatpush.bf16.msrb.mxu3 %v8896_v45  ;;  %6170 = vmatpush.bf16.msra.mxu0 %v9024_v46  ;;  %v8935_v45 = vld [vmem:[#allocation28 + $0xe8] sm:$0xf]  ;;  %v9706_v46 = vld [vmem:[#allocation28 + $0xf4] sm:$0xf0]  ;;  %v11910_v24 = vpack.c.b16 %v5830_v0, %v5830_v0 }
 0x815   : > { %6183 = vmatpush.bf16.msra.mxu1 %v8900_v49  ;;  %6196 = vmatpush.bf16.msra.mxu2 %v9028_v52  ;;  %v9704_v49 = vld [vmem:[#allocation28 + $0xec] sm:$0xf]  ;;  %v8816_v52 = vor.u32 %v9677_v25, %v8815_v2  ;;  %v9017_v25 = vld [vmem:[#allocation28 + $0x198] sm:$0xf0] }
 0x816   : > { %v8940_v63 = vor.u32 %v9704_v49, %v8937_v57  ;;  %v9692_v2 = vld [vmem:[#allocation28 + $0x8c] sm:$0xf]  ;;  %v9000_v49 = vor.u32 %v9722_v19, %v8999_v35  ;;  %v9295_v19 = vld [vmem:[#allocation28 + $0x5c0] sm:$0xf] }
 0x818   : > { %6158 = vmatpush.bf16.msrb.mxu3 %v8880_v4  ;;  %6171 = vmatpush.bf16.msra.mxu0 %v9008_v27  ;;  %v5829_v4 = vunpack.c.l.b16 %v5252_v10  ;;  %v8936_v27 = vor.u32 %v9706_v46, %v8935_v45  ;;  %v8871_v10 = vld [vmem:[#allocation28 + $0x68] sm:$0xf]  ;;  %v8873_v45 = vld [vmem:[#allocation28 + $0x78] sm:$0xf0]  ;;  %v9720_v46 = vld [vmem:[#allocation28 + $0x16c] sm:$0xf] }
 0x819   : > { %6184 = vmatpush.bf16.msra.mxu1 %v8884_v61  ;;  %6197 = vmatpush.bf16.msra.mxu2 %v9012_v6  ;;  %v8919_v61 = vld [vmem:[#allocation28 + $0xc8] sm:$0xf]  ;;  %v9702_v6 = vld [vmem:[#allocation28 + $0xd4] sm:$0xf0]  ;;  %v8876_v57 = vor.u32 %v9688_v40, %v8873_v45  ;;  %v9004_v14 = vor.u32 %v9720_v46, %v9001_v39  ;;  %v9861_v40 = vld [vmem:[#allocation28 + $0x5cc] sm:$0xf0] }
 0x81a   : > { %5784 = vmatmul.bf16.vlgmr.msra.gmra.mxu3 %v11896_v58  ;;  %5797 = vmatmul.bf16.vlgmr.msrb.gmra.mxu0 %v11898_v20  ;;  %v11908_v62 = vpack.c.b16 %v5829_v4, %v5829_v4  ;;  %v8857_v4 = vld [vmem:[#allocation28 + $0x58] sm:$0xf0]  ;;  %v9827_v45 = vld [vmem:[#allocation28 + $0x4c4] sm:$0xf]  ;;  %v9169_v46 = vld [vmem:[#allocation28 + $0x4d0] sm:$0xf0] }
 0x81b   : > { %5810 = vmatmul.bf16.vlgmr.msrb.gmra.mxu1 %v11896_v58  ;;  %5823 = vmatmul.bf16.vlgmr.msrb.gmra.mxu2 %v11898_v20  ;;  %v8832_v58 = vor.u32 %v9681_v1, %v8831_v48  ;;  %v8960_v20 = vor.u32 %v9713_v23, %v8959_v22  ;;  %v9728_v48 = vld [vmem:[#allocation28 + $0x1ac] sm:$0xf]  ;;  %v9033_v1 = vld [vmem:[#allocation28 + $0x1b8] sm:$0xf0]  ;;  %v8887_v22 = vld [vmem:[#allocation28 + $0x88] sm:$0xf] }
 0x81c   : > { %6159 = vmatpush.bf16.msrb.mxu3 %v8864_v42  ;;  %6172 = vmatpush.bf16.msra.mxu0 %v8992_v7  ;;  %v9732_v42 = vld [vmem:[#allocation28 + $0x1cc] sm:$0xf]  ;;  %v9049_v7 = vld [vmem:[#allocation28 + $0x1d8] sm:$0xf0]  ;;  %v9694_v23 = vld [vmem:[#allocation28 + $0x94] sm:$0xf0]  ;;  %v9036_v33 = vor.u32 %v9728_v48, %v9033_v1 }
 0x81d   : > { %6185 = vmatpush.bf16.msra.mxu1 %v8868_v9  ;;  %6198 = vmatpush.bf16.msra.mxu2 %v8996_v50  ;;  %v8920_v9 = vor.u32 %v9702_v6, %v8919_v61  ;;  %v9048_v50 = vor.u32 %v9734_v28, %v9047_v8  ;;  %v9052_v26 = vor.u32 %v9732_v42, %v9049_v7  ;;  %v8839_v6 = vld [vmem:[#allocation28 + $0x28] sm:$0xf]  ;;  %v8841_v42 = vld [vmem:[#allocation28 + $0x38] sm:$0xf0]  ;;  %v9712_v7 = vld [vmem:[#allocation28 + $0x12c] sm:$0xf] }
 0x81e   : > { %v8888_v36 = vor.u32 %v9694_v23, %v8887_v22  ;;  %v8967_v28 = vld [vmem:[#allocation28 + $0x128] sm:$0xf]  ;;  %v8825_v48 = vld [vmem:[#allocation28 + $0x18] sm:$0xf0]  ;;  %v9708_v1 = vld [vmem:[#allocation28 + $0x10c] sm:$0xf] }
 0x81f   : > { %v9833_v22 = vld [vmem:[#allocation28 + $0x4ec] sm:$0xf0]  ;;  %v9311_v23 = vld [vmem:[#allocation28 + $0x5e0] sm:$0xf]  ;;  %v9859_v39 = vld [vmem:[#allocation28 + $0x5c4] sm:$0xf] }
 0x820   : > { %6160 = vmatpush.bf16.msrb.mxu3 %v8848_v12  ;;  %6173 = vmatpush.bf16.msra.mxu0 %v8976_v18  ;;  %v9696_v12 = vld [vmem:[#allocation28 + $0xac] sm:$0xf]  ;;  %v8905_v18 = vld [vmem:[#allocation28 + $0xb8] sm:$0xf0] }
 0x821   : > { %6186 = vmatpush.bf16.msra.mxu1 %v8852_v21  ;;  %6199 = vmatpush.bf16.msra.mxu2 %v8980_v53  ;;  %v8904_v21 = vor.u32 %v9698_v15, %v8903_v11  ;;  %v9032_v53 = vor.u32 %v9730_v16, %v9031_v55  ;;  %v8908_v29 = vor.u32 %v9696_v12, %v8905_v18  ;;  %v9710_v55 = vld [vmem:[#allocation28 + $0x114] sm:$0xf0]  ;;  %v9676_v18 = vld [vmem:[#allocation28 + $0xc] sm:$0xf] }
 0x822   : > { %v8968_v15 = vor.u32 %v9714_v13, %v8967_v28  ;;  %v8844_v16 = vor.u32 %v9680_v5, %v8841_v42  ;;  %v9263_v13 = vld [vmem:[#allocation28 + $0x580] sm:$0xf]  ;;  %v9853_v5 = vld [vmem:[#allocation28 + $0x58c] sm:$0xf0]  ;;  %v9819_v42 = vld [vmem:[#allocation28 + $0x484] sm:$0xf] }
 0x824   : > { %6161 = vmatpush.bf16.msrb.mxu3 %v8832_v58  ;;  %6174 = vmatpush.bf16.msra.mxu0 %v8960_v20  ;;  %v8889_v58 = vld [vmem:[#allocation28 + $0x98] sm:$0xf0]  ;;  %v9724_v20 = vld [vmem:[#allocation28 + $0x18c] sm:$0xf] }
 0x825   : > { %6187 = vmatpush.bf16.msra.mxu1 %v8836_v38  ;;  %6200 = vmatpush.bf16.msra.mxu2 %v8964_v41  ;;  %v9690_v38 = vld [vmem:[#allocation28 + $0x74] sm:$0xf0]  ;;  %v8892_v41 = vor.u32 %v9692_v2, %v8889_v58  ;;  %v9020_v44 = vor.u32 %v9724_v20, %v9017_v25  ;;  %v9185_v2 = vld [vmem:[#allocation28 + $0x4f0] sm:$0xf0]  ;;  %v9863_v58 = vld [vmem:[#allocation28 + $0x5e4] sm:$0xf]  ;;  %v8828_v25 = vor.u32 %v9676_v18, %v8825_v48 }
 0x826   : > { %v8872_v43 = vor.u32 %v9690_v38, %v8871_v10  ;;  %v9313_v20 = vld [vmem:[#allocation28 + $0x5f0] sm:$0xf0]  ;;  %v9167_v38 = vld [vmem:[#allocation28 + $0x4c0] sm:$0xf]  ;;  %v9847_v48 = vld [vmem:[#allocation28 + $0x564] sm:$0xf] }
 0x827   : > { %v9316_v35 = vor.u32 %v9863_v58, %v9313_v20  ;;  %v9121_v18 = vld [vmem:[#allocation28 + $0x470] sm:$0xf0]  ;;  %v9843_v20 = vld [vmem:[#allocation28 + $0x544] sm:$0xf] }
 0x828   : > { %6162 = vmatpush.bf16.msrb.mxu3 %v8816_v52  ;;  %6175 = vmatpush.bf16.msra.mxu0 %v8944_v54  ;;  %v8855_v52 = vld [vmem:[#allocation28 + $0x48] sm:$0xf]  ;;  %v9686_v54 = vld [vmem:[#allocation28 + $0x54] sm:$0xf0]  ;;  %v9105_v58 = vld [vmem:[#allocation28 + $0x450] sm:$0xf0] }
 0x829   : > { %6188 = vmatpush.bf16.msra.mxu1 %v8820_v51  ;;  %6201 = vmatpush.bf16.msra.mxu2 %v8948_v60  ;;  %v9718_v51 = vld [vmem:[#allocation28 + $0x154] sm:$0xf0]  ;;  %v9684_v60 = vld [vmem:[#allocation28 + $0x4c] sm:$0xf]  ;;  %v8856_v0 = vor.u32 %v9686_v54, %v8855_v52  ;;  %v9296_v52 = vor.u32 %v9861_v40, %v9295_v19  ;;  %v9151_v54 = vld [vmem:[#allocation28 + $0x4a0] sm:$0xf] }
 0x82a   : > { %v8984_v61 = vor.u32 %v9718_v51, %v8983_v47  ;;  %v9279_v51 = vld [vmem:[#allocation28 + $0x5a0] sm:$0xf]  ;;  %v9841_v19 = vld [vmem:[#allocation28 + $0x52c] sm:$0xf0]  ;;  %v9807_v40 = vld [vmem:[#allocation28 + $0x424] sm:$0xf] }
 0x82b   : > { %6163 = vmatmul.bf16.vlgmr.msrb.gmra.mxu3 %v11908_v62  ;;  %6176 = vmatmul.bf16.vlgmr.msra.gmra.mxu0 %v11910_v24 }
 0x82c   : > { %6207 = vmatpush.bf16.msra.mxu3 %v8936_v27  ;;  %6220 = vmatpush.bf16.msrb.mxu0 %v9064_v59  ;;  %v9716_v27 = vld [vmem:[#allocation28 + $0x14c] sm:$0xf]  ;;  %v8985_v59 = vld [vmem:[#allocation28 + $0x158] sm:$0xf0] }
 0x82d   : > { %6233 = vmatpush.bf16.msrb.mxu1 %v8940_v63  ;;  %6246 = vmatpush.bf16.msrb.mxu2 %v9068_v56  ;;  %v9682_v63 = vld [vmem:[#allocation28 + $0x34] sm:$0xf0]  ;;  %v8860_v56 = vor.u32 %v9684_v60, %v8857_v4  ;;  %v8988_v8 = vor.u32 %v9716_v27, %v8985_v59  ;;  %v9857_v60 = vld [vmem:[#allocation28 + $0x5ac] sm:$0xf0]  ;;  %v9823_v4 = vld [vmem:[#allocation28 + $0x4a4] sm:$0xf] }
 0x82e   : > { %6189 = vmatmul.bf16.vlgmr.msra.gmra.mxu1 %v11908_v62  ;;  %6202 = vmatmul.bf16.vlgmr.msra.gmra.mxu2 %v11910_v24  ;;  %v8840_v11 = vor.u32 %v9682_v63, %v8839_v6  ;;  %v9153_v27 = vld [vmem:[#allocation28 + $0x4b0] sm:$0xf0]  ;;  %v9855_v59 = vld [vmem:[#allocation28 + $0x5a4] sm:$0xf]  ;;  %v9280_v6 = vor.u32 %v9857_v60, %v9279_v51  ;;  %v9135_v63 = vld [vmem:[#allocation28 + $0x480] sm:$0xf] }
 0x830   : > { %6208 = vmatpush.bf16.msra.mxu3 %v8920_v9  ;;  %6221 = vmatpush.bf16.msrb.mxu0 %v9048_v50  ;;  %v8969_v9 = vld [vmem:[#allocation28 + $0x138] sm:$0xf0]  ;;  %v8823_v50 = vld [vmem:[#allocation28 + $0x8] sm:$0xf] }
 0x831   : > { %6234 = vmatpush.bf16.msrb.mxu1 %v8924_v34  ;;  %6247 = vmatpush.bf16.msrb.mxu2 %v9052_v26  ;;  %v9678_v34 = vld [vmem:[#allocation28 + $0x14] sm:$0xf0]  ;;  %v8951_v26 = vld [vmem:[#allocation28 + $0x108] sm:$0xf]  ;;  %v8972_v12 = vor.u32 %v9712_v7, %v8969_v9  ;;  %v9137_v7 = vld [vmem:[#allocation28 + $0x490] sm:$0xf0] }
 0x832   : > { %v8824_v30 = vor.u32 %v9678_v34, %v8823_v50  ;;  %v8952_v32 = vor.u32 %v9710_v55, %v8951_v26  ;;  %v9851_v9 = vld [vmem:[#allocation28 + $0x584] sm:$0xf]  ;;  %v9265_v50 = vld [vmem:[#allocation28 + $0x590] sm:$0xf0]  ;;  %v9140_v34 = vor.u32 %v9819_v42, %v9137_v7  ;;  %v9247_v55 = vld [vmem:[#allocation28 + $0x560] sm:$0xf] }
 0x833   : > { %v9268_v26 = vor.u32 %v9851_v9, %v9265_v50  ;;  %v9193_v7 = vld [vmem:[#allocation28 + $0x4f8] sm:$0xf0]  ;;  %v9864_v9 = vld [vmem:[#allocation28 + $0x5ec] sm:$0xf] }
 0x834   : > { %6209 = vmatpush.bf16.msra.mxu3 %v8904_v21  ;;  %6222 = vmatpush.bf16.msrb.mxu0 %v9032_v53  ;;  %v8953_v21 = vld [vmem:[#allocation28 + $0x118] sm:$0xf0]  ;;  %v9183_v53 = vld [vmem:[#allocation28 + $0x4e0] sm:$0xf] }
 0x835   : > { %6235 = vmatpush.bf16.msrb.mxu1 %v8908_v29  ;;  %6248 = vmatpush.bf16.msrb.mxu2 %v9036_v33  ;;  %v9865_v29 = vld [vmem:[#allocation28 + $0x5ec] sm:$0xf0]  ;;  %v9831_v33 = vld [vmem:[#allocation28 + $0x4e4] sm:$0xf]  ;;  %v9321_v50 = vld [vmem:[#allocation28 + $0x5f8] sm:$0xf0] }
 0x836   : > { %v9312_v10 = vor.u32 %v9865_v29, %v9311_v23  ;;  %v9813_v23 = vld [vmem:[#allocation28 + $0x44c] sm:$0xf0] }
 0x838   : > { %6210 = vmatpush.bf16.msra.mxu3 %v8888_v36  ;;  %6223 = vmatpush.bf16.msrb.mxu0 %v9016_v37  ;;  %v8956_v36 = vor.u32 %v9708_v1, %v8953_v21  ;;  %v9184_v37 = vor.u32 %v9833_v22, %v9183_v53  ;;  %v9249_v1 = vld [vmem:[#allocation28 + $0x570] sm:$0xf0]  ;;  %v9103_v22 = vld [vmem:[#allocation28 + $0x440] sm:$0xf] }
 0x839   : > { %6236 = vmatpush.bf16.msrb.mxu1 %v8892_v41  ;;  %6249 = vmatpush.bf16.msrb.mxu2 %v9020_v44  ;;  %v9829_v41 = vld [vmem:[#allocation28 + $0x4cc] sm:$0xf0]  ;;  %v9188_v44 = vor.u32 %v9831_v33, %v9185_v2  ;;  %v9252_v33 = vor.u32 %v9847_v48, %v9249_v1  ;;  %v9811_v2 = vld [vmem:[#allocation28 + $0x444] sm:$0xf]  ;;  %v9303_v48 = vld [vmem:[#allocation28 + $0x5c8] sm:$0xf] }
 0x83a   : > { %v9862_v1 = vld [vmem:[#allocation28 + $0x5d4] sm:$0xf0] }
 0x83c   : > { %6211 = vmatpush.bf16.msra.mxu3 %v8872_v43  ;;  %6224 = vmatpush.bf16.msrb.mxu0 %v9000_v49  ;;  %v9297_v43 = vld [vmem:[#allocation28 + $0x5d0] sm:$0xf0]  ;;  %v9168_v49 = vor.u32 %v9829_v41, %v9167_v38  ;;  %v9809_v38 = vld [vmem:[#allocation28 + $0x42c] sm:$0xf0]  ;;  %v9108_v41 = vor.u32 %v9811_v2, %v9105_v58  ;;  %v9159_v2 = vld [vmem:[#allocation28 + $0x4a8] sm:$0xf] }
 0x83d   : > { %6237 = vmatpush.bf16.msrb.mxu1 %v8876_v57  ;;  %6250 = vmatpush.bf16.msrb.mxu2 %v9004_v14  ;;  %v9825_v57 = vld [vmem:[#allocation28 + $0x4ac] sm:$0xf0]  ;;  %v9172_v14 = vor.u32 %v9827_v45, %v9169_v46  ;;  %v9300_v47 = vor.u32 %v9859_v39, %v9297_v43  ;;  %v9089_v45 = vld [vmem:[#allocation28 + $0x430] sm:$0xf0]  ;;  %v9839_v46 = vld [vmem:[#allocation28 + $0x524] sm:$0xf] }
 0x83e   : > { %v9217_v39 = vld [vmem:[#allocation28 + $0x530] sm:$0xf0]  ;;  %v9071_v43 = vld [vmem:[#allocation28 + $0x400] sm:$0xf]  ;;  %v9092_v51 = vor.u32 %v9807_v40, %v9089_v45  ;;  %v9826_v58 = vld [vmem:[#allocation28 + $0x4b4] sm:$0xf0] }
 0x83f   : > { %v9220_v60 = vor.u32 %v9839_v46, %v9217_v39  ;;  %v9143_v40 = vld [vmem:[#allocation28 + $0x488] sm:$0xf]  ;;  %v9822_v45 = vld [vmem:[#allocation28 + $0x494] sm:$0xf0] }
 0x840   : > { %6212 = vmatpush.bf16.msra.mxu3 %v8856_v0  ;;  %6225 = vmatpush.bf16.msrb.mxu0 %v8984_v61  ;;  %v9281_v0 = vld [vmem:[#allocation28 + $0x5b0] sm:$0xf0]  ;;  %v9152_v61 = vor.u32 %v9825_v57, %v9151_v54  ;;  %v9805_v57 = vld [vmem:[#allocation28 + $0x40c] sm:$0xf0] }
 0x841   : > { %6238 = vmatpush.bf16.msrb.mxu1 %v8860_v56  ;;  %6251 = vmatpush.bf16.msrb.mxu2 %v8988_v8  ;;  %v9821_v56 = vld [vmem:[#allocation28 + $0x48c] sm:$0xf0]  ;;  %v9156_v8 = vor.u32 %v9823_v4, %v9153_v27  ;;  %v9284_v28 = vor.u32 %v9855_v59, %v9281_v0  ;;  %v9803_v4 = vld [vmem:[#allocation28 + $0x404] sm:$0xf]  ;;  %v9073_v27 = vld [vmem:[#allocation28 + $0x410] sm:$0xf0] }
 0x842   : > { %v9835_v59 = vld [vmem:[#allocation28 + $0x504] sm:$0xf]  ;;  %v9201_v0 = vld [vmem:[#allocation28 + $0x510] sm:$0xf0] }
 0x844   : > { %6213 = vmatpush.bf16.msra.mxu3 %v8840_v11  ;;  %6226 = vmatpush.bf16.msrb.mxu0 %v8968_v15  ;;  %v9119_v11 = vld [vmem:[#allocation28 + $0x460] sm:$0xf]  ;;  %v9817_v15 = vld [vmem:[#allocation28 + $0x46c] sm:$0xf0] }
 0x845   : > { %6239 = vmatpush.bf16.msrb.mxu1 %v8844_v16  ;;  %6252 = vmatpush.bf16.msrb.mxu2 %v8972_v12  ;;  %v9849_v16 = vld [vmem:[#allocation28 + $0x56c] sm:$0xf0]  ;;  %v9815_v12 = vld [vmem:[#allocation28 + $0x464] sm:$0xf]  ;;  %v9120_v21 = vor.u32 %v9817_v15, %v9119_v11 }
 0x846   : > { %v9248_v53 = vor.u32 %v9849_v16, %v9247_v55  ;;  %v9124_v29 = vor.u32 %v9815_v12, %v9121_v18  ;;  %v9175_v55 = vld [vmem:[#allocation28 + $0x4c8] sm:$0xf]  ;;  %v9830_v16 = vld [vmem:[#allocation28 + $0x4d4] sm:$0xf0]  ;;  %v9324_v18 = vor.u32 %v9864_v9, %v9321_v50 }
 0x847   : > { %v9239_v50 = vld [vmem:[#allocation28 + $0x548] sm:$0xf] }
 0x848   : > { %6214 = vmatpush.bf16.msra.mxu3 %v8824_v30  ;;  %6227 = vmatpush.bf16.msrb.mxu0 %v8952_v32  ;;  %v9231_v30 = vld [vmem:[#allocation28 + $0x540] sm:$0xf]  ;;  %v9845_v32 = vld [vmem:[#allocation28 + $0x54c] sm:$0xf0] }
 0x849   : > { %6240 = vmatpush.bf16.msrb.mxu1 %v8828_v25  ;;  %6253 = vmatpush.bf16.msrb.mxu2 %v8956_v36  ;;  %v9233_v25 = vld [vmem:[#allocation28 + $0x550] sm:$0xf0]  ;;  %v9104_v36 = vor.u32 %v9813_v23, %v9103_v22  ;;  %v9860_v22 = vld [vmem:[#allocation28 + $0x5cc] sm:$0xf]  ;;  %v9305_v23 = vld [vmem:[#allocation28 + $0x5d8] sm:$0xf0] }
 0x84b   : > { %6215 = vmatmul.bf16.vlgmr.msra.gmra.mxu3 %v11908_v62  ;;  %6228 = vmatmul.bf16.vlgmr.msrb.gmra.mxu0 %v11910_v24 }
 0x84c   : > { %6654 = vmatpush.bf16.msrb.mxu3 %v9184_v37  ;;  %6667 = vmatpush.bf16.msra.mxu0 %v9312_v10  ;;  %v9232_v37 = vor.u32 %v9845_v32, %v9231_v30  ;;  %v9087_v10 = vld [vmem:[#allocation28 + $0x420] sm:$0xf]  ;;  %v9176_v30 = vor.u32 %v9830_v16, %v9175_v55  ;;  %v9304_v32 = vor.u32 %v9862_v1, %v9303_v48  ;;  %v9095_v16 = vld [vmem:[#allocation28 + $0x428] sm:$0xf] }
 0x84d   : > { %6680 = vmatpush.bf16.msra.mxu1 %v9188_v44  ;;  %6693 = vmatpush.bf16.msra.mxu2 %v9316_v35  ;;  %v9236_v44 = vor.u32 %v9843_v20, %v9233_v25  ;;  %v9215_v35 = vld [vmem:[#allocation28 + $0x520] sm:$0xf]  ;;  %v9308_v25 = vor.u32 %v9860_v22, %v9305_v23  ;;  %v9223_v1 = vld [vmem:[#allocation28 + $0x528] sm:$0xf]  ;;  %v9097_v22 = vld [vmem:[#allocation28 + $0x438] sm:$0xf0] }
 0x84e   : > { %6241 = vmatmul.bf16.vlgmr.msrb.gmra.mxu1 %v11908_v62  ;;  %6254 = vmatmul.bf16.vlgmr.msrb.gmra.mxu2 %v11910_v24  ;;  %v9136_v62 = vor.u32 %v9821_v56, %v9135_v63  ;;  %v9264_v24 = vor.u32 %v9853_v5, %v9263_v13  ;;  %v9216_v54 = vor.u32 %v9841_v19, %v9215_v35  ;;  %v9832_v13 = vld [vmem:[#allocation28 + $0x4ec] sm:$0xf] }
 0x84f   : > { %v9072_v5 = vor.u32 %v9805_v57, %v9071_v43  ;;  %v9196_v12 = vor.u32 %v9832_v13, %v9193_v7  ;;  %v9160_v35 = vor.u32 %v9826_v58, %v9159_v2  ;;  %v9271_v43 = vld [vmem:[#allocation28 + $0x588] sm:$0xf]  ;;  %v9852_v57 = vld [vmem:[#allocation28 + $0x58c] sm:$0xf] }
 0x850   : > { %6655 = vmatpush.bf16.msrb.mxu3 %v9168_v49  ;;  %6668 = vmatpush.bf16.msra.mxu0 %v9296_v52  ;;  %v6259_v49 = vld [vmem:[#allocation2] sm:$0xee]  ;;  %v9088_v52 = vor.u32 %v9809_v38, %v9087_v10  ;;  %v9161_v38 = vld [vmem:[#allocation28 + $0x4b8] sm:$0xf0] }
 0x851   : > { %6681 = vmatpush.bf16.msra.mxu1 %v9172_v14  ;;  %6694 = vmatpush.bf16.msra.mxu2 %v9300_v47  ;;  %v9199_v14 = vld [vmem:[#allocation28 + $0x500] sm:$0xf]  ;;  %v9837_v47 = vld [vmem:[#allocation28 + $0x50c] sm:$0xf0]  ;;  %v6326_v63 = vunpack.c.l.b16 %v6259_v49  ;;  %v6327_v56 = vunpack.c.h.b16 %v6259_v49  ;;  %v9824_v10 = vld [vmem:[#allocation28 + $0x4ac] sm:$0xf] }
 0x852   : > { %v9200_v42 = vor.u32 %v9837_v47, %v9199_v14  ;;  %v9164_v46 = vor.u32 %v9824_v10, %v9161_v38  ;;  %v9854_v49 = vld [vmem:[#allocation28 + $0x594] sm:$0xf0]  ;;  %v9273_v14 = vld [vmem:[#allocation28 + $0x598] sm:$0xf0]  ;;  %v9144_v47 = vor.u32 %v9822_v45, %v9143_v40  ;;  %v9840_v23 = vld [vmem:[#allocation28 + $0x52c] sm:$0xf] }
 0x853   : > { %v9079_v58 = vld [vmem:[#allocation28 + $0x408] sm:$0xf]  ;;  %v9838_v10 = vld [vmem:[#allocation28 + $0x514] sm:$0xf0]  ;;  %v9804_v38 = vld [vmem:[#allocation28 + $0x40c] sm:$0xf] }
 0x854   : > { %6656 = vmatpush.bf16.msrb.mxu3 %v9152_v61  ;;  %6669 = vmatpush.bf16.msra.mxu0 %v9280_v6  ;;  %v9191_v61 = vld [vmem:[#allocation28 + $0x4e8] sm:$0xf]  ;;  %v9834_v6 = vld [vmem:[#allocation28 + $0x4f4] sm:$0xf0] }
 0x855   : > { %6682 = vmatpush.bf16.msra.mxu1 %v9156_v8  ;;  %6695 = vmatpush.bf16.msra.mxu2 %v9284_v28  ;;  %v9319_v8 = vld [vmem:[#allocation28 + $0x5e8] sm:$0xf]  ;;  %v9866_v28 = vld [vmem:[#allocation28 + $0x5f4] sm:$0xf0]  ;;  %v9192_v11 = vor.u32 %v9834_v6, %v9191_v61  ;;  %v9816_v6 = vld [vmem:[#allocation28 + $0x46c] sm:$0xf] }
 0x856   : > { %v9320_v15 = vor.u32 %v9866_v28, %v9319_v8  ;;  %v9850_v61 = vld [vmem:[#allocation28 + $0x574] sm:$0xf0]  ;;  %v9257_v8 = vld [vmem:[#allocation28 + $0x578] sm:$0xf0] }
 0x858   : > { %6657 = vmatpush.bf16.msrb.mxu3 %v9136_v62  ;;  %6670 = vmatpush.bf16.msra.mxu0 %v9264_v24  ;;  %v9076_v62 = vor.u32 %v9803_v4, %v9073_v27  ;;  %v9204_v24 = vor.u32 %v9835_v59, %v9201_v0  ;;  %v9818_v4 = vld [vmem:[#allocation28 + $0x474] sm:$0xf0]  ;;  %v9276_v59 = vor.u32 %v9852_v57, %v9273_v14  ;;  %v9255_v0 = vld [vmem:[#allocation28 + $0x568] sm:$0xf] }
 0x859   : > { %6683 = vmatpush.bf16.msra.mxu1 %v9140_v34  ;;  %6696 = vmatpush.bf16.msra.mxu2 %v9268_v26  ;;  %v6328_v34 = vpack.c.b16 %v6326_v63, %v6326_v63  ;;  %v6329_v26 = vpack.c.b16 %v6327_v56, %v6327_v56  ;;  %v9129_v63 = vld [vmem:[#allocation28 + $0x478] sm:$0xf0]  ;;  %v9848_v56 = vld [vmem:[#allocation28 + $0x56c] sm:$0xf]  ;;  %v9256_v13 = vor.u32 %v9850_v61, %v9255_v0 }
 0x85a   : > { %v9132_v7 = vor.u32 %v9816_v6, %v9129_v63  ;;  %v9260_v9 = vor.u32 %v9848_v56, %v9257_v8 }
 0x85c   : > { %6658 = vmatpush.bf16.msrb.mxu3 %v9120_v21  ;;  %6671 = vmatpush.bf16.msra.mxu0 %v9248_v53  ;;  %v9828_v21 = vld [vmem:[#allocation28 + $0x4cc] sm:$0xf]  ;;  %v9177_v53 = vld [vmem:[#allocation28 + $0x4d8] sm:$0xf0] }
 0x85d   : > { %6684 = vmatpush.bf16.msra.mxu1 %v9124_v29  ;;  %6697 = vmatpush.bf16.msra.mxu2 %v9252_v33  ;;  %v11920_v29 = vrot.slane %v6328_v34, 1  ;;  %v11922_v33 = vrot.slane %v6329_v26, 1  ;;  %v9180_v20 = vor.u32 %v9828_v21, %v9177_v53  ;;  %v9241_v34 = vld [vmem:[#allocation28 + $0x558] sm:$0xf0]  ;;  %v9842_v21 = vld [vmem:[#allocation28 + $0x534] sm:$0xf0] }
 0x85e   : > { %v9808_v53 = vld [vmem:[#allocation28 + $0x42c] sm:$0xf]  ;;  %v9224_v2 = vor.u32 %v9842_v21, %v9223_v1 }
 0x860   : > { %6659 = vmatpush.bf16.msrb.mxu3 %v9104_v36  ;;  %6672 = vmatpush.bf16.msra.mxu0 %v9232_v37  ;;  %v9287_v36 = vld [vmem:[#allocation28 + $0x5a8] sm:$0xf]  ;;  %v9858_v37 = vld [vmem:[#allocation28 + $0x5b4] sm:$0xf0] }
 0x861   : > { %6685 = vmatpush.bf16.msra.mxu1 %v9108_v41  ;;  %6698 = vmatpush.bf16.msra.mxu2 %v9236_v44  ;;  %v9856_v41 = vld [vmem:[#allocation28 + $0x5ac] sm:$0xf]  ;;  %v9289_v44 = vld [vmem:[#allocation28 + $0x5b8] sm:$0xf0]  ;;  %v9288_v19 = vor.u32 %v9858_v37, %v9287_v36  ;;  %v9207_v37 = vld [vmem:[#allocation28 + $0x508] sm:$0xf] }
 0x862   : > { %v9292_v39 = vor.u32 %v9856_v41, %v9289_v44  ;;  %v9081_v41 = vld [vmem:[#allocation28 + $0x418] sm:$0xf0]  ;;  %v9836_v44 = vld [vmem:[#allocation28 + $0x50c] sm:$0xf]  ;;  %v9208_v40 = vor.u32 %v9838_v10, %v9207_v37 }
 0x863   : > { %v9084_v45 = vor.u32 %v9804_v38, %v9081_v41 }
 0x864   : > { %6660 = vmatpush.bf16.msrb.mxu3 %v9088_v52  ;;  %6673 = vmatpush.bf16.msra.mxu0 %v9216_v54  ;;  %v9820_v52 = vld [vmem:[#allocation28 + $0x48c] sm:$0xf]  ;;  %v9145_v54 = vld [vmem:[#allocation28 + $0x498] sm:$0xf0] }
 0x865   : > { %6686 = vmatpush.bf16.msra.mxu1 %v9092_v51  ;;  %6699 = vmatpush.bf16.msra.mxu2 %v9220_v60  ;;  %v9272_v51 = vor.u32 %v9854_v49, %v9271_v43  ;;  %v9127_v60 = vld [vmem:[#allocation28 + $0x468] sm:$0xf]  ;;  %v9148_v27 = vor.u32 %v9820_v52, %v9145_v54 }
 0x866   : > { %v9128_v28 = vor.u32 %v9818_v4, %v9127_v60 }
 0x868   : > { %6661 = vmatpush.bf16.msrb.mxu3 %v9072_v5  ;;  %6674 = vmatpush.bf16.msra.mxu0 %v9200_v42  ;;  %v9111_v5 = vld [vmem:[#allocation28 + $0x448] sm:$0xf]  ;;  %v9814_v42 = vld [vmem:[#allocation28 + $0x454] sm:$0xf0] }
 0x869   : > { %6687 = vmatpush.bf16.msra.mxu1 %v9076_v62  ;;  %6700 = vmatpush.bf16.msra.mxu2 %v9204_v24  ;;  %v9846_v62 = vld [vmem:[#allocation28 + $0x554] sm:$0xf0]  ;;  %v9812_v24 = vld [vmem:[#allocation28 + $0x44c] sm:$0xf]  ;;  %v9112_v26 = vor.u32 %v9814_v42, %v9111_v5 }
 0x86a   : > { %v9240_v55 = vor.u32 %v9846_v62, %v9239_v50 }
 0x86b   : > { %6662 = vmatmul.bf16.vlgmr.msrb.gmra.mxu3 %v11920_v29  ;;  %6675 = vmatmul.bf16.vlgmr.msra.gmra.mxu0 %v11922_v33 }
 0x86c   : > { %6706 = vmatpush.bf16.msra.mxu3 %v9192_v11  ;;  %6719 = vmatpush.bf16.msrb.mxu0 %v9320_v15  ;;  %v9113_v11 = vld [vmem:[#allocation28 + $0x458] sm:$0xf0]  ;;  %v9844_v15 = vld [vmem:[#allocation28 + $0x54c] sm:$0xf] }
 0x86d   : > { %6732 = vmatpush.bf16.msrb.mxu1 %v9196_v12  ;;  %6745 = vmatpush.bf16.msrb.mxu2 %v9324_v18  ;;  %v9810_v12 = vld [vmem:[#allocation28 + $0x434] sm:$0xf0]  ;;  %v9116_v18 = vor.u32 %v9812_v24, %v9113_v11  ;;  %v9244_v48 = vor.u32 %v9844_v15, %v9241_v34 }
 0x86e   : > { %6688 = vmatmul.bf16.vlgmr.msra.gmra.mxu1 %v11920_v29  ;;  %6701 = vmatmul.bf16.vlgmr.msra.gmra.mxu2 %v11922_v33 }
 0x870   : > { %6707 = vmatpush.bf16.msra.mxu3 %v9176_v30  ;;  %6720 = vmatpush.bf16.msrb.mxu0 %v9304_v32  ;;  %v9225_v30 = vld [vmem:[#allocation28 + $0x538] sm:$0xf0]  ;;  %v9096_v32 = vor.u32 %v9810_v12, %v9095_v16 }
 0x871   : > { %6733 = vmatpush.bf16.msrb.mxu1 %v9180_v20  ;;  %6746 = vmatpush.bf16.msrb.mxu2 %v9308_v25  ;;  %v9806_v20 = vld [vmem:[#allocation28 + $0x414] sm:$0xf0]  ;;  %v9100_v25 = vor.u32 %v9808_v53, %v9097_v22  ;;  %v9228_v36 = vor.u32 %v9840_v23, %v9225_v30  ;;  %v11938_v23 = vld [vmem:[#allocation30] sm:$0xf] }
 0x874   : > { %6708 = vmatpush.bf16.msra.mxu3 %v9160_v35  ;;  %6721 = vmatpush.bf16.msrb.mxu0 %v9288_v19  ;;  %v9209_v35 = vld [vmem:[#allocation28 + $0x518] sm:$0xf0]  ;;  %v9080_v19 = vor.u32 %v9806_v20, %v9079_v58 }
 0x875   : > { %6734 = vmatpush.bf16.msrb.mxu1 %v9164_v46  ;;  %6747 = vmatpush.bf16.msrb.mxu2 %v9292_v39  ;;  %v9212_v46 = vor.u32 %v9836_v44, %v9209_v35 }
 0x878   : > { %6709 = vmatpush.bf16.msra.mxu3 %v9144_v47  ;;  %6722 = vmatpush.bf16.msrb.mxu0 %v9272_v51 }
 0x879   : > { %6735 = vmatpush.bf16.msrb.mxu1 %v9148_v27  ;;  %6748 = vmatpush.bf16.msrb.mxu2 %v9276_v59 }
 0x87c   : > { %6710 = vmatpush.bf16.msra.mxu3 %v9128_v28  ;;  %6723 = vmatpush.bf16.msrb.mxu0 %v9256_v13 }
 0x87d   : > { %6736 = vmatpush.bf16.msrb.mxu1 %v9132_v7  ;;  %6749 = vmatpush.bf16.msrb.mxu2 %v9260_v9 }
 0x880   : > { %6711 = vmatpush.bf16.msra.mxu3 %v9112_v26  ;;  %6724 = vmatpush.bf16.msrb.mxu0 %v9240_v55 }
 0x881   : > { %6737 = vmatpush.bf16.msrb.mxu1 %v9116_v18  ;;  %6750 = vmatpush.bf16.msrb.mxu2 %v9244_v48 }
 0x884   : > { %6712 = vmatpush.bf16.msra.mxu3 %v9096_v32  ;;  %6725 = vmatpush.bf16.msrb.mxu0 %v9224_v2  ;;  %v6764_v2 = vperm.slane %v11938_v23, 0 }
 0x885   : > { %6738 = vmatpush.bf16.msrb.mxu1 %v9100_v25  ;;  %6751 = vmatpush.bf16.msrb.mxu2 %v9228_v36  ;;  %v6765_v36 = vperm.slane %v11938_v23, 1 }
 0x887   : > { %v5746_v39 = vpop.f32.mrf.mxu0 }
 0x888   : > { %6713 = vmatpush.bf16.msra.mxu3 %v9080_v19  ;;  %6726 = vmatpush.bf16.msrb.mxu0 %v9208_v40  ;;  %v5759_v43 = vpop.f32.mrf.mxu1  ;;  %v11942_v40 = vpop.permute.xlu0 %6782 }
 0x889   : > { %6739 = vmatpush.bf16.msrb.mxu1 %v9084_v45  ;;  %6752 = vmatpush.bf16.msrb.mxu2 %v9212_v46 }
 0x88b   : > { %6714 = vmatmul.bf16.vlgmr.msra.gmra.mxu3 %v11920_v29  ;;  %6727 = vmatmul.bf16.vlgmr.msrb.gmra.mxu0 %v11922_v33 }
 0x88c   : > { %6740 = vmatmul.bf16.vlgmr.msrb.gmra.mxu1 %v11920_v29  ;;  %6753 = vmatmul.bf16.vlgmr.msrb.gmra.mxu2 %v11922_v33 }
 0x88d   : > { %v5733_v49 = vpop.f32.mrf.mxu3 }
 0x88e   : > { %v5747_v52 = vadd.f32 %v5746_v39, %v5733_v49  ;;  %v5772_v54 = vpop.f32.mrf.mxu2 }
 0x88f   : > { %v5773_v57 = vadd.f32 %v5772_v54, %v5759_v43  ;;  %v5748_v14 = vpop.f32.mrf.mxu0  ;;  %v9882_v54 = vld [vmem:[#allocation31 + $0x78] sm:$0xff] }
 0x890   : > { %v5761_v47 = vpop.f32.mrf.mxu1  ;;  %7198 = vmatpush.bf16.msra.mxu0 %v9882_v54 }
 0x891   : > { %v9873_v47 = vld [vmem:[#allocation31 + $0x30] sm:$0xff] }
 0x895   : > { %v5735_v51 = vpop.f32.mrf.mxu3 }
 0x896   : > { %v5774_v60 = vpop.f32.mrf.mxu2  ;;  %v9881_v51 = vld [vmem:[#allocation31 + $0x70] sm:$0xff] }
 0x897   : > { %v5798_v4 = vpop.f32.mrf.mxu0  ;;  %7199 = vmatpush.bf16.msra.mxu0 %v9881_v51  ;;  %v9889_v51 = vld [vmem:[#allocation31 + $0xb0] sm:$0xff] }
 0x898   : > { %v5811_v27 = vpop.f32.mrf.mxu1 }
 0x89d   : > { %v5785_v59 = vpop.f32.mrf.mxu3 }
 0x89e   : > { %v5799_v0 = vadd.f32 %v5798_v4, %v5785_v59  ;;  %v5824_v61 = vpop.f32.mrf.mxu2  ;;  %v6807_v59 = vld [vmem:[#allocation3] sm:$0xff] }
 0x89f   : > { %v11932_v6 = vadd.f32 %v5824_v61, %v5811_v27  ;;  %v5800_v29 = vpop.f32.mrf.mxu0  ;;  %v9880_v61 = vld [vmem:[#allocation31 + $0x68] sm:$0xff] }
 0x8a0   : > { %v5813_v63 = vpop.f32.mrf.mxu1  ;;  %7200 = vmatpush.bf16.msra.mxu0 %v9880_v61  ;;  %v9888_v61 = vld [vmem:[#allocation31 + $0xa8] sm:$0xff] }
 0x8a5   : > { %v5787_v33 = vpop.f32.mrf.mxu3 }
 0x8a6   : > { %v5826_v56 = vpop.f32.mrf.mxu2  ;;  %v9871_v33 = vld [vmem:[#allocation31 + $0x20] sm:$0xff] }
 0x8a7   : > { %v9879_v56 = vld [vmem:[#allocation31 + $0x60] sm:$0xff] }
 0x8a8   : > { %v6177_v8 = vpop.f32.mrf.mxu0  ;;  %7201 = vmatpush.bf16.msra.mxu0 %v9879_v56 }
 0x8ab   : > { %v6190_v28 = vpop.f32.mrf.mxu1 }
 0x8ac   : > { %v6191_v13 = vadd.f32 %v6190_v28, %v5773_v57  ;;  %v9870_v28 = vld [vmem:[#allocation31 + $0x18] sm:$0xff] }
 0x8ae   : > { %v6164_v5 = vpop.f32.mrf.mxu3 }
 0x8af   : > { %v6165_v42 = vadd.f32 %v6164_v5, %v5747_v52  ;;  %v9874_v52 = vld [vmem:[#allocation31 + $0x38] sm:$0xff] }
 0x8b0   : > { %v6179_v9 = vpop.f32.mrf.mxu0  ;;  %7185 = vmatpush.bf16.msrb.mxu3 %v9874_v52 }
 0x8b1   : > { %v6203_v7 = vpop.f32.mrf.mxu2  ;;  %v6178_v50 = vadd.f32 %v6177_v8, %v6165_v42 }
 0x8b2   : > { %v6204_v20 = vadd.f32 %v6203_v7, %v6191_v13  ;;  %v9878_v13 = vld [vmem:[#allocation31 + $0x58] sm:$0xff] }
 0x8b3   : > { %v6192_v62 = vpop.f32.mrf.mxu1  ;;  %7202 = vmatpush.bf16.msra.mxu0 %v9878_v13 }
 0x8b4   : > { %7186 = vmatpush.bf16.msrb.mxu3 %v9873_v47 }
 0x8b6   : > { %v6166_v24 = vpop.f32.mrf.mxu3 }
 0x8b9   : > { %v6205_v11 = vpop.f32.mrf.mxu2 }
 0x8ba   : > { %v6766_v11 = vperm.slane %v11938_v23, 2 }
 0x8c8   : > { %v6229_v15 = vpop.f32.mrf.mxu0 }
 0x8cb   : > { %v6242_v34 = vpop.f32.mrf.mxu1 }
 0x8cc   : > { %v6243_v7 = vadd.f32 %v6242_v34, %v11932_v6  ;;  %v6767_v6 = vperm.slane %v11938_v23, 3 }
 0x8ce   : > { %v6216_v26 = vpop.f32.mrf.mxu3 }
 0x8cf   : > { %v6217_v55 = vadd.f32 %v6216_v26, %v5799_v0  ;;  %v9872_v0 = vld [vmem:[#allocation31 + $0x28] sm:$0xff] }
 0x8d0   : > { %v6231_v12 = vpop.f32.mrf.mxu0  ;;  %7187 = vmatpush.bf16.msrb.mxu3 %v9872_v0 }
 0x8d1   : > { %v11934_v16 = vpop.f32.mrf.mxu2  ;;  %v11936_v18 = vadd.f32 %v6229_v15, %v6217_v55  ;;  %v9869_v12 = vld [vmem:[#allocation31 + $0x10] sm:$0xff] }
 0x8d2   : > { %v6256_v26 = vadd.f32 %v11934_v16, %v6243_v7  ;;  %v9895_v7 = vld [vmem:[#allocation31 + $0xe0] sm:$0xff] }
 0x8d3   : > { %v6244_v48 = vpop.f32.mrf.mxu1 }
 0x8d4   : > { %7188 = vmatpush.bf16.msrb.mxu3 %v9871_v33  ;;  %v9877_v48 = vld [vmem:[#allocation31 + $0x50] sm:$0xff]  ;;  %v6861_v33 = vld [vmem:[#allocation2] sm:$0x11] }
 0x8d5   : > { %7203 = vmatpush.bf16.msra.mxu0 %v9877_v48  ;;  %v9893_v48 = vld [vmem:[#allocation31 + $0xd0] sm:$0xff] }
 0x8d6   : > { %v6218_v1 = vpop.f32.mrf.mxu3 }
 0x8d8   : > { %7189 = vmatpush.bf16.msrb.mxu3 %v9870_v28 }
 0x8d9   : > { %v6257_v21 = vpop.f32.mrf.mxu2 }
 0x8dc   : > { %7190 = vmatpush.bf16.msrb.mxu3 %v9869_v12  ;;  %v9885_v12 = vld [vmem:[#allocation31 + $0x90] sm:$0xff] }
 0x8e8   : > { %v6676_v53 = vpop.f32.mrf.mxu0 }
 0x8eb   : > { %v6689_v22 = vpop.f32.mrf.mxu1 }
 0x8ee   : > { %v6663_v30 = vpop.f32.mrf.mxu3 }
 0x8ef   : > { %v6677_v32 = vadd.f32 %v6676_v53, %v6663_v30 }
 0x8f0   : > { %v6678_v37 = vpop.f32.mrf.mxu0 }
 0x8f1   : > { %v6702_v58 = vpop.f32.mrf.mxu2  ;;  %v6758_v10 = vadd.f32 %v6677_v32, %v6178_v50  ;;  %v9868_v32 = vld [vmem:[#allocation31 + $0x8] sm:$0xff] }
 0x8f2   : > { %v6703_v25 = vadd.f32 %v6702_v58, %v6689_v22  ;;  %7191 = vmatpush.bf16.msrb.mxu3 %v9868_v32 }
 0x8f3   : > { %v6691_v38 = vpop.f32.mrf.mxu1  ;;  %v6772_v44 = vadd.f32 %v6764_v2, %v6758_v10  ;;  %v9876_v2 = vld [vmem:[#allocation31 + $0x48] sm:$0xff] }
 0x8f4   : > { %v6759_v41 = vadd.f32 %v6703_v25, %v6204_v20  ;;  %7204 = vmatpush.bf16.msra.mxu0 %v9876_v2 }
 0x8f5   : > { %v6776_v19 = vmax.f32 %v6772_v44, 0.0  ;;  %v9875_v44 = vld [vmem:[#allocation31 + $0x40] sm:$0xff] }
 0x8f6   : > { %v6773_v35 = vadd.f32 %v6765_v36, %v6759_v41  ;;  %v6665_v46 = vpop.f32.mrf.mxu3  ;;  %v9867_v41 = vld [vmem:[#allocation31] sm:$0xff] }
 0x8f7   : > { %v6785_v39 = vmul.f32 %v11942_v40, %v6776_v19  ;;  %v9898_v46 = vld [vmem:[#allocation31 + $0xf8] sm:$0xff]  ;;  %7192 = vmatpush.bf16.msrb.mxu3 %v9867_v41 }
 0x8f8   : > { %v6777_v45 = vmax.f32 %v6773_v35, 0.0  ;;  %7205 = vmatpush.bf16.msra.mxu0 %v9875_v44  ;;  %7224 = vmatpush.bf16.msra.mxu2 %v9898_v46 }
 0x8f9   : > { %v6704_v43 = vpop.f32.mrf.mxu2 }
 0x8fa   : > { %v6786_v49 = vmul.f32 %v11942_v40, %v6777_v45  ;;  %v9890_v45 = vld [vmem:[#allocation31 + $0xb8] sm:$0xff] }
 0x8fb   : > { %7211 = vmatpush.bf16.msra.mxu1 %v9890_v45  ;;  %v6864_v45 = vld [vmem:[#allocation2 + $0x8] sm:$0x11] }
 0x8fc   : > { %v6789_v57 = vpack.c.bf16 %v6786_v49, %v6785_v39 }
 0x8fe   : > { %v6792_v14 = vshrl.u32 %v6789_v57, 16  ;;  %v6795_v4 = vshll.u32 %v6789_v57, 16 }
 0x8ff   : > { %7212 = vmatpush.bf16.msra.mxu1 %v9889_v51 }
 0x900   : > { %v6794_v60 = vrot.slane %v6792_v14, 7 }
 0x902   : > { %v6797_v27 = vor.u32 %v6795_v4, %v6794_v60 }
 0x903   : > { %7213 = vmatpush.bf16.msra.mxu1 %v9888_v61  ;;  %v10109_v61 = vld [vmem:[#allocation33] ss:$0 sm:$0xff] }
 0x904   : > { %v6808_v29 = vsel %vm11843_vm3, %v6797_v27, %v6807_v59  ;;  %v6810_v59 = vld [vmem:[#allocation3 + $0x8] sm:$0xff] }
 0x905   : > { %6809 = vst [vmem:[#allocation3] sm:$0xff] %v6808_v29  ;;  %v9896_v29 = vld [vmem:[#allocation31 + $0xe8] sm:$0xff] }
 0x908   : > { %v6728_v63 = vpop.f32.mrf.mxu0 }
 0x909   : > { %v6741_v8 = vpop.f32.mrf.mxu1 }
 0x90c   : > { %v6813_v5 = vld [vmem:[#allocation3] sm:$0x11]  ;;  %v6819_v42 = vld [vmem:[#allocation3] sm:$0x88] }
 0x90d   : > { %v6814_v9 = vsel %vm11852_vm7, 0, %v6813_v5  ;;  %v6820_v50 = vsel %vm11591_vm14, 0, %v6819_v42  ;;  %v9887_v42 = vld [vmem:[#allocation31 + $0xa0] sm:$0xff] }
 0x90e   : > { %v6715_v62 = vpop.f32.mrf.mxu3  ;;  %6815 = vst [vmem:[#allocation3] sm:$0x11] %v6814_v9  ;;  %7214 = vmatpush.bf16.msra.mxu1 %v9887_v42 }
 0x90f   : > { %v6729_v24 = vadd.f32 %v6728_v63, %v6715_v62  ;;  %v6754_v15 = vpop.f32.mrf.mxu2  ;;  %6821 = vst [vmem:[#allocation3] sm:$0x88] %v6820_v50  ;;  %v9894_v62 = vld [vmem:[#allocation31 + $0xd8] sm:$0xff] }
 0x910   : > { %v6755_v55 = vadd.f32 %v6754_v15, %v6741_v8  ;;  %v6730_v34 = vpop.f32.mrf.mxu0 }
 0x911   : > { %v6760_v1 = vadd.f32 %v6729_v24, %v11936_v18  ;;  %v6743_v21 = vpop.f32.mrf.mxu1 }
 0x912   : > { %v6761_v53 = vadd.f32 %v6755_v55, %v6256_v26  ;;  %7215 = vmatpush.bf16.msra.mxu1 %v9886_v3  ;;  %v9892_v21 = vld [vmem:[#allocation31 + $0xc8] sm:$0xff] }
 0x913   : > { %v6774_v22 = vadd.f32 %v6766_v11, %v6760_v1  ;;  %v9884_v1 = vld [vmem:[#allocation31 + $0x88] sm:$0xff] }
 0x914   : > { %v6775_v30 = vadd.f32 %v6767_v6, %v6761_v53 }
 0x915   : > { %v6778_v58 = vmax.f32 %v6774_v22, 0.0  ;;  %v6825_v25 = vld [vmem:[#allocation3] sm:$0x33] }
 0x916   : > { %v6779_v20 = vmax.f32 %v6775_v30, 0.0  ;;  %v6717_v16 = vpop.f32.mrf.mxu3  ;;  %v6827_v37 = vunpack.c.l.bf16 %v6825_v25  ;;  %v6828_v10 = vunpack.c.h.bf16 %v6825_v25  ;;  %v6867_v18 = vld [vmem:[#allocation3] sm:$0xcc]  ;;  %7216 = vmatpush.bf16.msra.mxu1 %v9885_v12 }
 0x917   : > { %v6787_v23 = vmul.f32 %v11942_v40, %v6778_v58  ;;  %v6756_v36 = vpop.f32.mrf.mxu2  ;;  %v6869_v35 = vunpack.c.l.bf16 %v6867_v18  ;;  %v6870_v19 = vunpack.c.h.bf16 %v6867_v18  ;;  %v9891_v16 = vld [vmem:[#allocation31 + $0xc0] sm:$0xff] }
 0x918   : > { %v6788_v38 = vmul.f32 %v11942_v40, %v6779_v20  ;;  %v6835_v39 = vrot.slane %v6827_v37, 1  ;;  %v6836_v43 = vrot.slane %v6828_v10, 1  ;;  %v9897_v40 = vld [vmem:[#allocation31 + $0xf0] sm:$0xff]  ;;  %v9883_v20 = vld [vmem:[#allocation31 + $0x80] sm:$0xff] }
 0x919   : > { %v6877_v14 = vrot.slane %v6869_v35, 1  ;;  %v6878_v47 = vrot.slane %v6870_v19, 1  ;;  %7225 = vmatpush.bf16.msra.mxu2 %v9897_v40 }
 0x91a   : > { %v6790_v49 = vpack.c.bf16 %v6788_v38, %v6787_v23  ;;  %v6843_v52 = vadd.f32 %v6835_v39, %v6827_v37  ;;  %v6844_v54 = vadd.f32 %v6836_v43, %v6828_v10  ;;  %7217 = vmatpush.bf16.msra.mxu1 %v9884_v1 }
 0x91b   : > { %v6885_v56 = vadd.f32 %v6877_v14, %v6869_v35  ;;  %v6886_v8 = vadd.f32 %v6878_v47, %v6870_v19 }
 0x91c   : > { %v6799_v57 = vshrl.u32 %v6790_v49, 16  ;;  %v6847_v60 = vpack.c.bf16 %v6844_v54, %v6843_v52  ;;  %v6802_v27 = vshll.u32 %v6790_v49, 16 }
 0x91d   : > { %7226 = vmatpush.bf16.msra.mxu2 %v9896_v29  ;;  %v6889_v9 = vpack.c.bf16 %v6886_v8, %v6885_v56 }
 0x91e   : > { %v6801_v4 = vrot.slane %v6799_v57, 7  ;;  %v6850_v0 = vshrl.u32 %v6847_v60, 16  ;;  %7218 = vmatpush.bf16.msra.mxu1 %v9883_v20 }
 0x91f   : > { %v9327_v24 = vrot.slane %v6889_v9, 10 }
 0x920   : > { %v6804_v63 = vor.u32 %v6802_v27, %v6801_v4  ;;  %v6862_v28 = vsel %vm11852_vm7, %v6850_v0, %v6861_v33 }
 0x921   : > { %6863 = vst [vmem:[#allocation2] sm:$0x11] %v6862_v28  ;;  %7227 = vmatpush.bf16.msra.mxu2 %v9895_v7 }
 0x922   : > { %v6811_v13 = vsel %vm11843_vm3, %v6804_v63, %v6810_v59 }
 0x923   : > { %6812 = vst [vmem:[#allocation3 + $0x8] sm:$0xff] %v6811_v13 }
 0x925   : > { %7228 = vmatpush.bf16.msra.mxu2 %v9894_v62 }
 0x928   : > { %v6903_v11 = vld [vmem:[#allocation2] sm:$0x11] }
 0x929   : > { %v6904_v55 = vsel %vm6902_vm5, %v9327_v24, %v6903_v11  ;;  %7229 = vmatpush.bf16.msra.mxu2 %v9893_v48 }
 0x92a   : > { %v6816_v15 = vld [vmem:[#allocation3 + $0x8] sm:$0x11]  ;;  %v6822_v26 = vld [vmem:[#allocation3 + $0x8] sm:$0x88]  ;;  %6905 = vst [vmem:[#allocation2] sm:$0x11] %v6904_v55 }
 0x92b   : > { %v6817_v6 = vsel %vm11852_vm7, 0, %v6816_v15  ;;  %v6823_v34 = vsel %vm11591_vm14, 0, %v6822_v26 }
 0x92c   : > { %6818 = vst [vmem:[#allocation3 + $0x8] sm:$0x11] %v6817_v6 }
 0x92d   : > { %6824 = vst [vmem:[#allocation3 + $0x8] sm:$0x88] %v6823_v34  ;;  %7230 = vmatpush.bf16.msra.mxu2 %v9892_v21 }
 0x931   : > { %v6909_v53 = vld [vmem:[#allocation2] sm:$0x11]  ;;  %7231 = vmatpush.bf16.msra.mxu2 %v9891_v16 }
 0x932   : > { %v6981_v30 = vunpack.c.l.b16 %v6909_v53  ;;  %v6982_v32 = vunpack.c.h.b16 %v6909_v53 }
 0x933   : > { %v6826_v22 = vld [vmem:[#allocation3 + $0x8] sm:$0x33] }
 0x934   : > { %v6829_v2 = vunpack.c.l.bf16 %v6826_v22  ;;  %v6830_v17 = vunpack.c.h.bf16 %v6826_v22  ;;  %v6868_v58 = vld [vmem:[#allocation3 + $0x8] sm:$0xcc]  ;;  %v6985_v36 = vpack.c.b16 %v6981_v30, %v6981_v30  ;;  %v6986_v37 = vpack.c.b16 %v6982_v32, %v6982_v32 }
 0x935   : > { %v6871_v25 = vunpack.c.l.bf16 %v6868_v58  ;;  %v6872_v23 = vunpack.c.h.bf16 %v6868_v58 }
 0x936   : > { %v6837_v10 = vrot.slane %v6829_v2, 1  ;;  %v6838_v18 = vrot.slane %v6830_v17, 1  ;;  %7193 = vmatmul.bf16.vlgmr.msrb.gmra.mxu3 %v6985_v36  ;;  %7206 = vmatmul.bf16.vlgmr.msra.gmra.mxu0 %v6986_v37 }
 0x937   : > { %v6879_v44 = vrot.slane %v6871_v25, 1  ;;  %v6880_v35 = vrot.slane %v6872_v23, 1 }
 0x938   : > { %v6845_v38 = vadd.f32 %v6837_v10, %v6829_v2  ;;  %v6846_v41 = vadd.f32 %v6838_v18, %v6830_v17 }
 0x939   : > { %v6887_v39 = vadd.f32 %v6879_v44, %v6871_v25  ;;  %v6888_v43 = vadd.f32 %v6880_v35, %v6872_v23 }
 0x93a   : > { %v6848_v19 = vpack.c.bf16 %v6846_v41, %v6845_v38 }
 0x93b   : > { %v6890_v52 = vpack.c.bf16 %v6888_v43, %v6887_v39 }
 0x93c   : > { %v6855_v46 = vshrl.u32 %v6848_v19, 16 }
 0x93d   : > { %v9328_v54 = vrot.slane %v6890_v52, 10 }
 0x93e   : > { %v6865_v49 = vsel %vm11852_vm7, %v6855_v46, %v6864_v45 }
 0x93f   : > { %6866 = vst [vmem:[#allocation2 + $0x8] sm:$0x11] %v6865_v49 }
 0x946   : > { %v6906_v57 = vld [vmem:[#allocation2 + $0x8] sm:$0x11] }
 0x947   : > { %v6907_v14 = vsel %vm6902_vm5, %v9328_v54, %v6906_v57 }
 0x948   : > { %6908 = vst [vmem:[#allocation2 + $0x8] sm:$0x11] %v6907_v14 }
 0x94f   : > { %v6910_v47 = vld [vmem:[#allocation2 + $0x8] sm:$0x11] }
 0x950   : > { %v6983_v51 = vunpack.c.l.b16 %v6910_v47  ;;  %v6984_v40 = vunpack.c.h.b16 %v6910_v47 }
 0x952   : > { %v6987_v60 = vpack.c.b16 %v6983_v51, %v6983_v51  ;;  %v6988_v4 = vpack.c.b16 %v6984_v40, %v6984_v40 }
 0x954   : > { %7219 = vmatmul.bf16.vlgmr.msra.gmra.mxu1 %v6987_v60  ;;  %7232 = vmatmul.bf16.vlgmr.msra.gmra.mxu2 %v6988_v4 }
 0x9b3   : > { %v7207_v31 = vpop.f32.mrf.mxu0 }
 0x9b9   : > { %v7194_v27 = vpop.f32.mrf.mxu3 }
 0x9ba   : > { %v7195_v29 = vadd.f32 %v10109_v61, %v7194_v27 }
 0x9bb   : > { %v7209_v59 = vpop.f32.mrf.mxu0 }
 0x9bc   : > { %v7208_v33 = vadd.f32 %v7207_v31, %v7195_v29 }
 0x9c1   : > { %v7196_v0 = vpop.f32.mrf.mxu3 }
 0x9d1   : > { %v7220_v63 = vpop.f32.mrf.mxu1 }
 0x9d2   : > { %v7221_v56 = vadd.f32 %v7220_v63, %v7208_v33 }
 0x9d7   : > { %v7233_v8 = vpop.f32.mrf.mxu2 }
 0x9d8   : > { %v7234_v28 = vadd.f32 %v7233_v8, %v7221_v56 }
 0x9d9   : > { %v7222_v13 = vpop.f32.mrf.mxu1 }
 0x9da   : > { %7237 = vst [vmem:[%s1154_s10] sm:$0x3] %v7234_v28 }
 0x9db   : > { %10753 = shalt.err (!%p10750_p7)
}
 0x9dc   : > { %9987 = dma.vmem_to_hbm [thread:$0]  (%p11045_p5), %s7252_s1, 32, %s7254_s4, %s7239_s6  }
 0x9df   : > { %v7235_v5 = vpop.f32.mrf.mxu2 }
 0x9e0 PF: > { %s12217_s7 = sld [smem:[#allocation56_spill]] }
 0x9e1   : > { %s12218_s3 = sld [smem:[#allocation53_spill]] }
 0x9e6   : > { %p10037_p8 = scmp.ge.s32.totalorder %s12217_s7, 2 }
 0x9e7   : > { %s7265_s0 = sand.u32 1, %s12218_s3  }
 0x9e8   : > { %p9990_p9 = pnand %p10037_p8, %p11049_p6  ;;  %s7266_s30 = scalar_lea.sflag [#allocation6], %s7265_s0 }
 0x9ea   : > { %p9991_p10 = pneg %p9990_p9 }
 0x9ec   : > { %10819 = dma.done.wait (%p9991_p10), %s7266_s30, 32  }
 0x9ed   : > { %10821 = vsyncadd (%p9991_p10), %s7266_s30, 4294967264  ;;  %s12220_s30 = sld [smem:[#allocation57_spill]] }
 0x9ee   : > { %s12221_s7 = sld [smem:[#allocation54_spill]] }
 0x9ef   : > { %s12222_s4 = sld [smem:[#allocation55_spill]] }
 0x9f0   : > { %s12223_s8 = sld [smem:[#allocation58_spill]] }
 0x9f3   : > { %p49_p11 = scmp.ge.s32.totalorder %s12220_s30, 4  }
 0x9f5   :  { %51 = sbr.rel (!%p49_p11) target bundleno = 32 (0x20), region = 288 }
 0x9fa   :  { %7272 = vsyncpa [#allocation5], 1 }
 0x9fb   :  { %7274 = vsyncpa [#allocation5 + $0x1], 1 }
 0x9fc   :  { %7275 = vsyncpa [#allocation8], 1 }
 0x9fd   :  { %7276 = vsyncpa [#allocation11], 1 }
 0x9fe   :  { %7277 = vsyncpa [#allocation14], 1 }
 0x9ff   :  { %7278 = vsyncpa [#allocation17], 1 }
 0xa00   :  { %7279 = vsyncpa [#allocation20], 1 }
 0xa01   :  { %7280 = vsyncpa [#allocation23], 1 }
 0xa02   :  { %7281 = vsyncpa [#allocation26], 1 }
 0xa03   :  { %7282 = vsyncpa [#allocation29], 1 }
 0xa04   :  { %7283 = vsyncpa [#allocation32], 1 }
 0xa05   :  { %7284 = vsyncpa [#allocation35], 1 }
 0xa06   :  { %7285 = vsyncpa [#allocation38], 1 }
 0xa07   :  { %7286 = vsyncpa [#allocation6], 1 }
 0xa08   :  { %7288 = vsyncpa [#allocation6 + $0x1], 1 }

</bundles_post_ra>
